<compile_context>
chip_gen: v6e
topology: v6e:2x2x1
jax: 0.10.0
libtpu: 0.0.40
codegen_flags: <defaults>
</compile_context>

<pallas_src>
import functools

import jax
import jax.numpy as jnp
from jax.experimental import pallas as pl
from jax.experimental.pallas import tpu as pltpu


LAYER_CFG = [(64, 3, 1), (128, 4, 2), (256, 6, 2), (512, 3, 2)]


def _round_up(x, m):
    return (x + m - 1) // m * m


def _tile_for(dim_padded):
    """128-granular tile that divides the (already 128-padded) dim, max 256."""
    return 256 if dim_padded % 256 == 0 else 128


def _pad_kn(K, N):
    return _round_up(K, 128), _round_up(N, 128)


# ----------------------------------------------------------------------------
# Pallas kernels
# ----------------------------------------------------------------------------

def _mm_kernel(*refs, relu, has_res):
    """Tiled MXU matmul with fused bias (+ residual) (+ ReLU) epilogue."""
    if has_res:
        a_ref, b_ref, bias_ref, res_ref, o_ref, acc_ref = refs
    else:
        a_ref, b_ref, bias_ref, o_ref, acc_ref = refs
        res_ref = None

    @pl.when(pl.program_id(2) == 0)
    def _():
        acc_ref[...] = jnp.zeros_like(acc_ref)

    acc_ref[...] += jnp.dot(a_ref[...], b_ref[...],
                            preferred_element_type=jnp.float32)

    @pl.when(pl.program_id(2) == pl.num_programs(2) - 1)
    def _():
        r = acc_ref[...] + bias_ref[...]          # (1, tn) bias broadcasts
        if has_res:
            r = r + res_ref[...].astype(jnp.float32)   # fused residual add
        if relu:
            r = jnp.maximum(r, 0.0)
        o_ref[...] = r.astype(o_ref.dtype)


@functools.lru_cache(maxsize=None)
def _build_matmul(Mp, Kp, Np, tm, tn, tk, relu, has_res, out_dtype):
    grid = (Mp // tm, Np // tn, Kp // tk)
    in_specs = [
        pl.BlockSpec((tm, tk), lambda i, j, k: (i, k)),   # A tile (bf16)
        pl.BlockSpec((tk, tn), lambda i, j, k: (k, j)),   # B tile (bf16)
        pl.BlockSpec((1, tn), lambda i, j, k: (0, j)),    # bias (f32)
    ]
    if has_res:
        # residual tile: block index constant across k -> fetched once per (i,j)
        in_specs.append(pl.BlockSpec((tm, tn), lambda i, j, k: (i, j)))
    return pl.pallas_call(
        functools.partial(_mm_kernel, relu=relu, has_res=has_res),
        out_shape=jax.ShapeDtypeStruct((Mp, Np), out_dtype),
        grid_spec=pltpu.PrefetchScalarGridSpec(
            num_scalar_prefetch=0,
            grid=grid,
            in_specs=in_specs,
            out_specs=pl.BlockSpec((tm, tn), lambda i, j, k: (i, j)),
            scratch_shapes=[pltpu.VMEM((tm, tn), jnp.float32)],
        ),
        compiler_params=pltpu.CompilerParams(
            dimension_semantics=("parallel", "parallel", "arbitrary")),
    )


def matmul_bias(a, w_pad, bias_pad, n_out, relu, residual=None,
                out_dtype=jnp.bfloat16):
    """a: (M, K) float; w_pad: (Kp, Np) bf16 (pre-padded); bias_pad: (1, Np) f32.
    Returns (M, n_out) `out_dtype` with fused bias (+ residual) (+ ReLU)."""
    M, K = a.shape
    Kp, Np = w_pad.shape
    tk = _tile_for(Kp)
    tn = _tile_for(Np)
    rm = _round_up(M, 8)
    tm = 512 if rm >= 512 else rm
    Mp = _round_up(M, tm)
    a_p = a.astype(jnp.bfloat16)
    if Mp != M or Kp != K:
        a_p = jnp.pad(a_p, ((0, Mp - M), (0, Kp - K)))
    args = [a_p, w_pad, bias_pad]
    if residual is not None:
        r_p = residual
        if Mp != M or Np != residual.shape[1]:
            r_p = jnp.pad(r_p, ((0, Mp - M), (0, Np - residual.shape[1])))
        args.append(r_p)
    out = _build_matmul(Mp, Kp, Np, tm, tn, tk, bool(relu),
                        residual is not None, out_dtype)(*args)
    if Mp != M or Np != n_out:
        out = out[:M, :n_out]
    return out


def _maxpool_kernel(ee_ref, eo_ref, oe_ref, oo_ref, o_ref):
    ee = ee_ref[...]      # (1, OH+1, OW+1, C): even rows, even cols
    eo = eo_ref[...]      # (1, OH+1, OW,   C): even rows, odd cols
    oe = oe_ref[...]      # (1, OH,   OW+1, C): odd rows,  even cols
    oo = oo_ref[...]      # (1, OH,   OW,   C): odd rows,  odd cols
    oh = oo.shape[1]
    ow = oo.shape[2]
    m = jnp.maximum(ee[:, :oh, :ow], ee[:, :oh, 1:])
    m = jnp.maximum(m, ee[:, 1:, :ow])
    m = jnp.maximum(m, ee[:, 1:, 1:])
    m = jnp.maximum(m, eo[:, :oh])
    m = jnp.maximum(m, eo[:, 1:])
    m = jnp.maximum(m, oe[:, :, :ow])
    m = jnp.maximum(m, oe[:, :, 1:])
    m = jnp.maximum(m, oo)
    o_ref[...] = m


@functools.lru_cache(maxsize=None)
def _build_maxpool(N, OH, OW, C, dtype):
    idx = lambda n: (n, 0, 0, 0)
    return pl.pallas_call(
        _maxpool_kernel,
        out_shape=jax.ShapeDtypeStruct((N, OH, OW, C), dtype),
        grid_spec=pltpu.PrefetchScalarGridSpec(
            num_scalar_prefetch=0,
            grid=(N,),
            in_specs=[
                pl.BlockSpec((1, OH + 1, OW + 1, C), idx),
                pl.BlockSpec((1, OH + 1, OW, C), idx),
                pl.BlockSpec((1, OH, OW + 1, C), idx),
                pl.BlockSpec((1, OH, OW, C), idx),
            ],
            out_specs=pl.BlockSpec((1, OH, OW, C), idx),
        ),
        compiler_params=pltpu.CompilerParams(
            dimension_semantics=("parallel",)),
    )


def maxpool_3x3_s2(x):
    """NHWC max pool, kernel 3, stride 2, padding 1 (PyTorch semantics)."""
    N, H, W, C = x.shape
    OH = (H + 2 - 3) // 2 + 1
    OW = (W + 2 - 3) // 2 + 1
    xp = jnp.pad(x, ((0, 0), (1, 1), (1, 1), (0, 0)),
                 constant_values=-jnp.inf)
    # Window max at output (o, w) = max over rows {2o,2o+1,2o+2} x cols
    # {2w,2w+1,2w+2}; expressed as a 9-way max of unit-shifted slices of the
    # four even/odd "quadrant" views (no 9x stacked tensor in HBM).
    ee = xp[:, 0:2 * OH + 1:2, 0:2 * OW + 1:2, :]
    eo = xp[:, 0:2 * OH + 1:2, 1:2 * OW:2, :]
    oe = xp[:, 1:2 * OH:2, 0:2 * OW + 1:2, :]
    oo = xp[:, 1:2 * OH:2, 1:2 * OW:2, :]
    return _build_maxpool(N, OH, OW, C, x.dtype)(ee, eo, oe, oo)


# ----------------------------------------------------------------------------
# Conv (im2col glue) + parameter construction
# ----------------------------------------------------------------------------

def conv_bn(x, p, *, ksize, stride, padding, cout, relu, residual=None,
            out_dtype=jnp.bfloat16):
    """x: NHWC.  p['w']: (Kp, Np) bf16 (BN folded, pre-transposed/padded),
    p['b']: (1, Np) f32.  Optional residual (NHWC, same shape as the output)
    is fused into the matmul epilogue together with the final ReLU."""
    N, H, W, Cin = x.shape
    OH = (H + 2 * padding - ksize) // stride + 1
    OW = (W + 2 * padding - ksize) // stride + 1
    xb = x.astype(jnp.bfloat16)                    # MXU operands in bf16
    if ksize == 1 and padding == 0:
        if stride != 1:
            xb = xb[:, ::stride, ::stride, :]
        a = xb.reshape(N * OH * OW, Cin)
    else:
        # TODO(synk): k>1 convs still materialize im2col patches in HBM; a
        # direct-conv Pallas kernel (tap grid axis indexing the padded NHWC
        # activation) would remove the remaining k*k read/write amplification.
        xp = jnp.pad(xb, ((0, 0), (padding, padding),
                          (padding, padding), (0, 0)))
        cols = []
        for i in range(ksize):
            for j in range(ksize):
                cols.append(xp[:, i:i + stride * OH:stride,
                               j:j + stride * OW:stride, :])
        a = jnp.concatenate(cols, axis=-1).reshape(
            N * OH * OW, ksize * ksize * Cin)
    res2d = None
    if residual is not None:
        res2d = residual.reshape(N * OH * OW, cout)
    y = matmul_bias(a, p['w'], p['b'], cout, relu, residual=res2d,
                    out_dtype=out_dtype)
    return y.reshape(N, OH, OW, cout)


def _prep_conv(w, b):
    """(Cout,Cin,KH,KW) folded weight -> padded (Kp,Np) bf16 + (1,Np) f32 bias."""
    Cout, Cin, KH, KW = w.shape
    K = KH * KW * Cin
    Kp, Np = _pad_kn(K, Cout)
    wmat = jnp.transpose(w, (2, 3, 1, 0)).reshape(K, Cout)
    w_pad = jnp.pad(wmat, ((0, Kp - K), (0, Np - Cout))).astype(jnp.bfloat16)
    b_pad = jnp.pad(b, (0, Np - Cout)).reshape(1, Np).astype(jnp.float32)
    return {'w': w_pad, 'b': b_pad}


def _init_conv_bn(key, cin, cout, ksize):
    kw, kg, kb, km, kv = jax.random.split(key, 5)
    fan_in = cin * ksize * ksize
    w = jax.random.normal(kw, (cout, cin, ksize, ksize), jnp.float32)
    w = w * (fan_in ** -0.5)
    gamma = 1.0 + 0.1 * jax.random.normal(kg, (cout,), jnp.float32)
    beta = 0.1 * jax.random.normal(kb, (cout,), jnp.float32)
    mean = 0.1 * jax.random.normal(km, (cout,), jnp.float32)
    var = 1.0 + 0.1 * jax.random.normal(kv, (cout,), jnp.float32) ** 2
    scale = gamma * jax.lax.rsqrt(var + 1e-5)      # fold BN (inference mode)
    return _prep_conv(w * scale[:, None, None, None], beta - mean * scale)


def init_resnet50_params(key, num_classes=10):
    keys = iter(jax.random.split(key, 256))
    params = {'conv1': _init_conv_bn(next(keys), 3, 64, 7)}
    in_ch = 64
    layers = []
    for width, nblocks, stride in LAYER_CFG:
        blocks = []
        for b in range(nblocks):
            s = stride if b == 0 else 1
            blk = {
                'c1': _init_conv_bn(next(keys), in_ch, width, 1),
                'c2': _init_conv_bn(next(keys), width, width, 3),
                'c3': _init_conv_bn(next(keys), width, width * 4, 1),
            }
            if s != 1 or in_ch != width * 4:
                blk['down'] = _init_conv_bn(next(keys), in_ch, width * 4, 1)
            blocks.append(blk)
            in_ch = width * 4
        layers.append(blocks)
    params['layers'] = layers
    kfw, kfb = jax.random.split(next(keys))
    fc_w = jax.random.normal(kfw, (num_classes, 2048), jnp.float32)
    fc_w = fc_w * (2048 ** -0.5)
    fc_b = 0.01 * jax.random.normal(kfb, (num_classes,), jnp.float32)
    Kp, Np = _pad_kn(2048, num_classes)
    params['fc_w'] = jnp.pad(
        fc_w.T, ((0, Kp - 2048), (0, Np - num_classes))).astype(jnp.bfloat16)
    params['fc_b'] = jnp.pad(fc_b, (0, Np - num_classes)).reshape(1, Np)
    return params


# ----------------------------------------------------------------------------
# ResNet50 forward
# ----------------------------------------------------------------------------

def resnet50_forward(params, x_nchw, num_classes=10):
    # TODO(synk): BatchNorm is implemented in inference mode (folded into the
    # conv weights); PyTorch's train-mode batch statistics are not reproduced.
    x = jnp.transpose(x_nchw, (0, 2, 3, 1)).astype(jnp.float32)  # NCHW -> NHWC
    x = conv_bn(x, params['conv1'], ksize=7, stride=2, padding=3, cout=64,
                relu=True)
    x = maxpool_3x3_s2(x)
    for (width, nblocks, stride), blocks in zip(LAYER_CFG, params['layers']):
        for b, blk in enumerate(blocks):
            s = stride if b == 0 else 1
            out = conv_bn(x, blk['c1'], ksize=1, stride=1, padding=0,
                          cout=width, relu=True)
            out = conv_bn(out, blk['c2'], ksize=3, stride=s, padding=1,
                          cout=width, relu=True)
            if 'down' in blk:
                identity = conv_bn(x, blk['down'], ksize=1, stride=s,
                                   padding=0, cout=width * 4, relu=False)
            else:
                identity = x
            # residual add + ReLU fused into the c3 matmul epilogue
            x = conv_bn(out, blk['c3'], ksize=1, stride=1, padding=0,
                        cout=width * 4, relu=True, residual=identity)
    x = jnp.mean(x.astype(jnp.float32), axis=(1, 2))   # AdaptiveAvgPool2d(1)
    logits = matmul_bias(x, params['fc_w'], params['fc_b'], num_classes,
                         relu=False, out_dtype=jnp.float32)
    return logits                                      # (N, num_classes) f32


if __name__ == "__main__":
    key = jax.random.PRNGKey(0)
    pkey, xkey = jax.random.split(key)
    params = init_resnet50_params(pkey, num_classes=10)
    # Small input consistent with the module (NCHW, 3 input channels).
    x = jax.random.normal(xkey, (2, 3, 32, 32), jnp.float32)
    fwd = jax.jit(resnet50_forward)                # one jit over the whole net
    logits = fwd(params, x)
    jax.block_until_ready(logits)
    assert logits.shape == (2, 10) and logits.dtype == jnp.float32
    print("KERNEL_OK")
</pallas_src>

<mosaic_0001>
module attributes {stable_mosaic.version = 11 : i64} {
  func.func @_mm_kernel(%arg0: i32, %arg1: i32, %arg2: i32, %arg3: memref<512x256xbf16, #tpu.memory_space<vmem>>, %arg4: memref<256x128xbf16, #tpu.memory_space<vmem>>, %arg5: memref<1x128xf32, #tpu.memory_space<vmem>>, %arg6: memref<512x128xbf16, #tpu.memory_space<vmem>>, %arg7: memref<512x128xf32, #tpu.memory_space<vmem>>) attributes {dimension_semantics = [#tpu.dimension_semantics<parallel>, #tpu.dimension_semantics<parallel>, #tpu.dimension_semantics<arbitrary>], iteration_bounds = array<i64: 1, 1, 1>, scalar_prefetch = 0 : i64, scratch_operands = 1 : i64, tpu.core_type = #tpu.core_type<tc>, window_params = [{transform_indices = @transform_0, window_bounds = array<i64: 512, 256>}, {transform_indices = @transform_1, window_bounds = array<i64: 256, 128>}, {transform_indices = @transform_2, window_bounds = array<i64: 1, 128>}, {transform_indices = @transform_3, window_bounds = array<i64: 512, 128>}]} {
    %c0_i32 = arith.constant 0 : i32
    %0 = arith.cmpi eq, %arg2, %c0_i32 : i32
    %1 = arith.extui %0 : i1 to i32
    %c0_i32_0 = arith.constant 0 : i32
    %2 = arith.cmpi ne, %1, %c0_i32_0 : i32
    scf.if %2 {
      %cst_10 = arith.constant 0.000000e+00 : f32
      %12 = vector.broadcast %cst_10 : f32 to vector<512x128xf32>
      %c0_11 = arith.constant 0 : index
      %c0_12 = arith.constant 0 : index
      %13 = vector.load %arg7[%c0_11, %c0_12] : memref<512x128xf32, #tpu.memory_space<vmem>>, vector<512x128xf32>
      tpu.vector_store %arg7[%c0_11, %c0_12], %12 {strides = array<i32>} : memref<512x128xf32, #tpu.memory_space<vmem>>, vector<512x128xf32>,
    } else {
    }
    %c0 = arith.constant 0 : index
    %c0_1 = arith.constant 0 : index
    %3 = vector.load %arg7[%c0, %c0_1] : memref<512x128xf32, #tpu.memory_space<vmem>>, vector<512x128xf32>
    %c0_2 = arith.constant 0 : index
    %c0_3 = arith.constant 0 : index
    %4 = vector.load %arg3[%c0_2, %c0_3] : memref<512x256xbf16, #tpu.memory_space<vmem>>, vector<512x256xbf16>
    %c0_4 = arith.constant 0 : index
    %c0_5 = arith.constant 0 : index
    %5 = vector.load %arg4[%c0_4, %c0_5] : memref<256x128xbf16, #tpu.memory_space<vmem>>, vector<256x128xbf16>
    %cst = arith.constant dense<0.000000e+00> : vector<512x128xf32>
    %6 = tpu.matmul %4, %5, %cst {dimension_numbers = #tpu.dot_dimension_numbers<[1], [0], [0], [1], [0, 0, 1, 1], [], []>} : vector<512x256xbf16>, vector<256x128xbf16>, vector<512x128xf32> -> vector<512x128xf32>
    %7 = arith.addf %3, %6 : vector<512x128xf32>
    %c0_6 = arith.constant 0 : index
    %c0_7 = arith.constant 0 : index
    %8 = vector.load %arg7[%c0_6, %c0_7] : memref<512x128xf32, #tpu.memory_space<vmem>>, vector<512x128xf32>
    tpu.vector_store %arg7[%c0_6, %c0_7], %7 {strides = array<i32>} : memref<512x128xf32, #tpu.memory_space<vmem>>, vector<512x128xf32>,
    %c0_i32_8 = arith.constant 0 : i32
    %9 = arith.cmpi eq, %arg2, %c0_i32_8 : i32
    %10 = arith.extui %9 : i1 to i32
    %c0_i32_9 = arith.constant 0 : i32
    %11 = arith.cmpi ne, %10, %c0_i32_9 : i32
    scf.if %11 {
      %c0_10 = arith.constant 0 : index
      %c0_11 = arith.constant 0 : index
      %12 = vector.load %arg7[%c0_10, %c0_11] : memref<512x128xf32, #tpu.memory_space<vmem>>, vector<512x128xf32>
      %c0_12 = arith.constant 0 : index
      %c0_13 = arith.constant 0 : index
      %13 = vector.load %arg5[%c0_12, %c0_13] : memref<1x128xf32, #tpu.memory_space<vmem>>, vector<1x128xf32>
      %14 = vector.broadcast %13 : vector<1x128xf32> to vector<512x128xf32>
      %15 = arith.addf %12, %14 : vector<512x128xf32>
      %cst_14 = arith.constant 0.000000e+00 : f32
      %16 = vector.broadcast %cst_14 : f32 to vector<512x128xf32>
      %17 = arith.maximumf %15, %16 : vector<512x128xf32>
      %18 = arith.truncf %17 : vector<512x128xf32> to vector<512x128xbf16>
      %c0_15 = arith.constant 0 : index
      %c0_16 = arith.constant 0 : index
      %19 = vector.load %arg6[%c0_15, %c0_16] : memref<512x128xbf16, #tpu.memory_space<vmem>>, vector<512x128xbf16>
      tpu.vector_store %arg6[%c0_15, %c0_16], %18 {strides = array<i32>} : memref<512x128xbf16, #tpu.memory_space<vmem>>, vector<512x128xbf16>,
    } else {
    }
    return
  }
  func.func @transform_0(%arg0: i32, %arg1: i32, %arg2: i32) -> (i32, i32) {
    %c0_i32 = arith.constant 0 : i32
    return %arg0, %arg2 : i32, i32
  }
  func.func @transform_1(%arg0: i32, %arg1: i32, %arg2: i32) -> (i32, i32) {
    %c0_i32 = arith.constant 0 : i32
    return %arg2, %arg1 : i32, i32
  }
  func.func @transform_2(%arg0: i32, %arg1: i32, %arg2: i32) -> (i32, i32) {
    %c0_i32 = arith.constant 0 : i32
    %c0_i32_0 = arith.constant 0 : i32
    return %c0_i32, %arg1 : i32, i32
  }
  func.func @transform_3(%arg0: i32, %arg1: i32, %arg2: i32) -> (i32, i32) {
    %c0_i32 = arith.constant 0 : i32
    return %arg0, %arg1 : i32, i32
  }
}

module attributes {stable_mosaic.version = 11 : i64} {
  func.func @_maxpool_kernel(%arg0: i32, %arg1: memref<1x9x9x64xbf16, #tpu.memory_space<vmem>>, %arg2: memref<1x9x8x64xbf16, #tpu.memory_space<vmem>>, %arg3: memref<1x8x9x64xbf16, #tpu.memory_space<vmem>>, %arg4: memref<1x8x8x64xbf16, #tpu.memory_space<vmem>>, %arg5: memref<1x8x8x64xbf16, #tpu.memory_space<vmem>>) attributes {dimension_semantics = [#tpu.dimension_semantics<parallel>], iteration_bounds = array<i64: 2>, scalar_prefetch = 0 : i64, scratch_operands = 0 : i64, tpu.core_type = #tpu.core_type<tc>, window_params = [{transform_indices = @transform_0, window_bounds = array<i64: 1, 9, 9, 64>}, {transform_indices = @transform_1, window_bounds = array<i64: 1, 9, 8, 64>}, {transform_indices = @transform_2, window_bounds = array<i64: 1, 8, 9, 64>}, {transform_indices = @transform_3, window_bounds = array<i64: 1, 8, 8, 64>}, {transform_indices = @transform_4, window_bounds = array<i64: 1, 8, 8, 64>}]} {
    %c0 = arith.constant 0 : index
    %c0_0 = arith.constant 0 : index
    %c0_1 = arith.constant 0 : index
    %c0_2 = arith.constant 0 : index
    %0 = vector.load %arg1[%c0, %c0_0, %c0_1, %c0_2] : memref<1x9x9x64xbf16, #tpu.memory_space<vmem>>, vector<1x9x9x64xbf16>
    %c0_3 = arith.constant 0 : index
    %c0_4 = arith.constant 0 : index
    %c0_5 = arith.constant 0 : index
    %c0_6 = arith.constant 0 : index
    %1 = vector.load %arg2[%c0_3, %c0_4, %c0_5, %c0_6] : memref<1x9x8x64xbf16, #tpu.memory_space<vmem>>, vector<1x9x8x64xbf16>
    %c0_7 = arith.constant 0 : index
    %c0_8 = arith.constant 0 : index
    %c0_9 = arith.constant 0 : index
    %c0_10 = arith.constant 0 : index
    %2 = vector.load %arg3[%c0_7, %c0_8, %c0_9, %c0_10] : memref<1x8x9x64xbf16, #tpu.memory_space<vmem>>, vector<1x8x9x64xbf16>
    %c0_11 = arith.constant 0 : index
    %c0_12 = arith.constant 0 : index
    %c0_13 = arith.constant 0 : index
    %c0_14 = arith.constant 0 : index
    %3 = vector.load %arg4[%c0_11, %c0_12, %c0_13, %c0_14] : memref<1x8x8x64xbf16, #tpu.memory_space<vmem>>, vector<1x8x8x64xbf16>
    %4 = vector.extract_strided_slice %0 {offsets = [0, 0, 0, 0], sizes = [1, 8, 8, 64], strides = [1, 1, 1, 1]} : vector<1x9x9x64xbf16> to vector<1x8x8x64xbf16>
    %5 = vector.extract_strided_slice %0 {offsets = [0, 0, 1, 0], sizes = [1, 8, 8, 64], strides = [1, 1, 1, 1]} : vector<1x9x9x64xbf16> to vector<1x8x8x64xbf16>
    %6 = arith.maximumf %4, %5 : vector<1x8x8x64xbf16>
    %7 = vector.extract_strided_slice %0 {offsets = [0, 1, 0, 0], sizes = [1, 8, 8, 64], strides = [1, 1, 1, 1]} : vector<1x9x9x64xbf16> to vector<1x8x8x64xbf16>
    %8 = arith.maximumf %6, %7 : vector<1x8x8x64xbf16>
    %9 = vector.extract_strided_slice %0 {offsets = [0, 1, 1, 0], sizes = [1, 8, 8, 64], strides = [1, 1, 1, 1]} : vector<1x9x9x64xbf16> to vector<1x8x8x64xbf16>
    %10 = arith.maximumf %8, %9 : vector<1x8x8x64xbf16>
    %11 = vector.extract_strided_slice %1 {offsets = [0, 0, 0, 0], sizes = [1, 8, 8, 64], strides = [1, 1, 1, 1]} : vector<1x9x8x64xbf16> to vector<1x8x8x64xbf16>
    %12 = arith.maximumf %10, %11 : vector<1x8x8x64xbf16>
    %13 = vector.extract_strided_slice %1 {offsets = [0, 1, 0, 0], sizes = [1, 8, 8, 64], strides = [1, 1, 1, 1]} : vector<1x9x8x64xbf16> to vector<1x8x8x64xbf16>
    %14 = arith.maximumf %12, %13 : vector<1x8x8x64xbf16>
    %15 = vector.extract_strided_slice %2 {offsets = [0, 0, 0, 0], sizes = [1, 8, 8, 64], strides = [1, 1, 1, 1]} : vector<1x8x9x64xbf16> to vector<1x8x8x64xbf16>
    %16 = arith.maximumf %14, %15 : vector<1x8x8x64xbf16>
    %17 = vector.extract_strided_slice %2 {offsets = [0, 0, 1, 0], sizes = [1, 8, 8, 64], strides = [1, 1, 1, 1]} : vector<1x8x9x64xbf16> to vector<1x8x8x64xbf16>
    %18 = arith.maximumf %16, %17 : vector<1x8x8x64xbf16>
    %19 = arith.maximumf %18, %3 : vector<1x8x8x64xbf16>
    %c0_15 = arith.constant 0 : index
    %c0_16 = arith.constant 0 : index
    %c0_17 = arith.constant 0 : index
    %c0_18 = arith.constant 0 : index
    %20 = vector.load %arg5[%c0_15, %c0_16, %c0_17, %c0_18] : memref<1x8x8x64xbf16, #tpu.memory_space<vmem>>, vector<1x8x8x64xbf16>
    tpu.vector_store %arg5[%c0_15, %c0_16, %c0_17, %c0_18], %19 {strides = array<i32>} : memref<1x8x8x64xbf16, #tpu.memory_space<vmem>>, vector<1x8x8x64xbf16>,
    return
  }
  func.func @transform_0(%arg0: i32) -> (i32, i32, i32, i32) {
    %c0_i32 = arith.constant 0 : i32
    %c0_i32_0 = arith.constant 0 : i32
    %c0_i32_1 = arith.constant 0 : i32
    %c0_i32_2 = arith.constant 0 : i32
    return %arg0, %c0_i32, %c0_i32_0, %c0_i32_1 : i32, i32, i32, i32
  }
  func.func @transform_1(%arg0: i32) -> (i32, i32, i32, i32) {
    %c0_i32 = arith.constant 0 : i32
    %c0_i32_0 = arith.constant 0 : i32
    %c0_i32_1 = arith.constant 0 : i32
    %c0_i32_2 = arith.constant 0 : i32
    return %arg0, %c0_i32, %c0_i32_0, %c0_i32_1 : i32, i32, i32, i32
  }
  func.func @transform_2(%arg0: i32) -> (i32, i32, i32, i32) {
    %c0_i32 = arith.constant 0 : i32
    %c0_i32_0 = arith.constant 0 : i32
    %c0_i32_1 = arith.constant 0 : i32
    %c0_i32_2 = arith.constant 0 : i32
    return %arg0, %c0_i32, %c0_i32_0, %c0_i32_1 : i32, i32, i32, i32
  }
  func.func @transform_3(%arg0: i32) -> (i32, i32, i32, i32) {
    %c0_i32 = arith.constant 0 : i32
    %c0_i32_0 = arith.constant 0 : i32
    %c0_i32_1 = arith.constant 0 : i32
    %c0_i32_2 = arith.constant 0 : i32
    return %arg0, %c0_i32, %c0_i32_0, %c0_i32_1 : i32, i32, i32, i32
  }
  func.func @transform_4(%arg0: i32) -> (i32, i32, i32, i32) {
    %c0_i32 = arith.constant 0 : i32
    %c0_i32_0 = arith.constant 0 : i32
    %c0_i32_1 = arith.constant 0 : i32
    %c0_i32_2 = arith.constant 0 : i32
    return %arg0, %c0_i32, %c0_i32_0, %c0_i32_1 : i32, i32, i32, i32
  }
}

module attributes {stable_mosaic.version = 11 : i64} {
  func.func @_mm_kernel(%arg0: i32, %arg1: i32, %arg2: i32, %arg3: memref<128x128xbf16, #tpu.memory_space<vmem>>, %arg4: memref<128x128xbf16, #tpu.memory_space<vmem>>, %arg5: memref<1x128xf32, #tpu.memory_space<vmem>>, %arg6: memref<128x128xbf16, #tpu.memory_space<vmem>>, %arg7: memref<128x128xf32, #tpu.memory_space<vmem>>) attributes {dimension_semantics = [#tpu.dimension_semantics<parallel>, #tpu.dimension_semantics<parallel>, #tpu.dimension_semantics<arbitrary>], iteration_bounds = array<i64: 1, 1, 1>, scalar_prefetch = 0 : i64, scratch_operands = 1 : i64, tpu.core_type = #tpu.core_type<tc>, window_params = [{transform_indices = @transform_0, window_bounds = array<i64: 128, 128>}, {transform_indices = @transform_1, window_bounds = array<i64: 128, 128>}, {transform_indices = @transform_2, window_bounds = array<i64: 1, 128>}, {transform_indices = @transform_3, window_bounds = array<i64: 128, 128>}]} {
    %c0_i32 = arith.constant 0 : i32
    %0 = arith.cmpi eq, %arg2, %c0_i32 : i32
    %1 = arith.extui %0 : i1 to i32
    %c0_i32_0 = arith.constant 0 : i32
    %2 = arith.cmpi ne, %1, %c0_i32_0 : i32
    scf.if %2 {
      %cst_10 = arith.constant 0.000000e+00 : f32
      %12 = vector.broadcast %cst_10 : f32 to vector<128x128xf32>
      %c0_11 = arith.constant 0 : index
      %c0_12 = arith.constant 0 : index
      %13 = vector.load %arg7[%c0_11, %c0_12] : memref<128x128xf32, #tpu.memory_space<vmem>>, vector<128x128xf32>
      tpu.vector_store %arg7[%c0_11, %c0_12], %12 {strides = array<i32>} : memref<128x128xf32, #tpu.memory_space<vmem>>, vector<128x128xf32>,
    } else {
    }
    %c0 = arith.constant 0 : index
    %c0_1 = arith.constant 0 : index
    %3 = vector.load %arg7[%c0, %c0_1] : memref<128x128xf32, #tpu.memory_space<vmem>>, vector<128x128xf32>
    %c0_2 = arith.constant 0 : index
    %c0_3 = arith.constant 0 : index
    %4 = vector.load %arg3[%c0_2, %c0_3] : memref<128x128xbf16, #tpu.memory_space<vmem>>, vector<128x128xbf16>
    %c0_4 = arith.constant 0 : index
    %c0_5 = arith.constant 0 : index
    %5 = vector.load %arg4[%c0_4, %c0_5] : memref<128x128xbf16, #tpu.memory_space<vmem>>, vector<128x128xbf16>
    %cst = arith.constant dense<0.000000e+00> : vector<128x128xf32>
    %6 = tpu.matmul %4, %5, %cst {dimension_numbers = #tpu.dot_dimension_numbers<[1], [0], [0], [1], [0, 0, 1, 1], [], []>} : vector<128x128xbf16>, vector<128x128xbf16>, vector<128x128xf32> -> vector<128x128xf32>
    %7 = arith.addf %3, %6 : vector<128x128xf32>
    %c0_6 = arith.constant 0 : index
    %c0_7 = arith.constant 0 : index
    %8 = vector.load %arg7[%c0_6, %c0_7] : memref<128x128xf32, #tpu.memory_space<vmem>>, vector<128x128xf32>
    tpu.vector_store %arg7[%c0_6, %c0_7], %7 {strides = array<i32>} : memref<128x128xf32, #tpu.memory_space<vmem>>, vector<128x128xf32>,
    %c0_i32_8 = arith.constant 0 : i32
    %9 = arith.cmpi eq, %arg2, %c0_i32_8 : i32
    %10 = arith.extui %9 : i1 to i32
    %c0_i32_9 = arith.constant 0 : i32
    %11 = arith.cmpi ne, %10, %c0_i32_9 : i32
    scf.if %11 {
      %c0_10 = arith.constant 0 : index
      %c0_11 = arith.constant 0 : index
      %12 = vector.load %arg7[%c0_10, %c0_11] : memref<128x128xf32, #tpu.memory_space<vmem>>, vector<128x128xf32>
      %c0_12 = arith.constant 0 : index
      %c0_13 = arith.constant 0 : index
      %13 = vector.load %arg5[%c0_12, %c0_13] : memref<1x128xf32, #tpu.memory_space<vmem>>, vector<1x128xf32>
      %14 = vector.broadcast %13 : vector<1x128xf32> to vector<128x128xf32>
      %15 = arith.addf %12, %14 : vector<128x128xf32>
      %cst_14 = arith.constant 0.000000e+00 : f32
      %16 = vector.broadcast %cst_14 : f32 to vector<128x128xf32>
      %17 = arith.maximumf %15, %16 : vector<128x128xf32>
      %18 = arith.truncf %17 : vector<128x128xf32> to vector<128x128xbf16>
      %c0_15 = arith.constant 0 : index
      %c0_16 = arith.constant 0 : index
      %19 = vector.load %arg6[%c0_15, %c0_16] : memref<128x128xbf16, #tpu.memory_space<vmem>>, vector<128x128xbf16>
      tpu.vector_store %arg6[%c0_15, %c0_16], %18 {strides = array<i32>} : memref<128x128xbf16, #tpu.memory_space<vmem>>, vector<128x128xbf16>,
    } else {
    }
    return
  }
  func.func @transform_0(%arg0: i32, %arg1: i32, %arg2: i32) -> (i32, i32) {
    %c0_i32 = arith.constant 0 : i32
    return %arg0, %arg2 : i32, i32
  }
  func.func @transform_1(%arg0: i32, %arg1: i32, %arg2: i32) -> (i32, i32) {
    %c0_i32 = arith.constant 0 : i32
    return %arg2, %arg1 : i32, i32
  }
  func.func @transform_2(%arg0: i32, %arg1: i32, %arg2: i32) -> (i32, i32) {
    %c0_i32 = arith.constant 0 : i32
    %c0_i32_0 = arith.constant 0 : i32
    return %c0_i32, %arg1 : i32, i32
  }
  func.func @transform_3(%arg0: i32, %arg1: i32, %arg2: i32) -> (i32, i32) {
    %c0_i32 = arith.constant 0 : i32
    return %arg0, %arg1 : i32, i32
  }
}

module attributes {stable_mosaic.version = 11 : i64} {
  func.func @_mm_kernel(%arg0: i32, %arg1: i32, %arg2: i32, %arg3: memref<128x128xbf16, #tpu.memory_space<vmem>>, %arg4: memref<128x128xbf16, #tpu.memory_space<vmem>>, %arg5: memref<1x128xf32, #tpu.memory_space<vmem>>, %arg6: memref<128x128xbf16, #tpu.memory_space<vmem>>, %arg7: memref<128x128xf32, #tpu.memory_space<vmem>>) attributes {dimension_semantics = [#tpu.dimension_semantics<parallel>, #tpu.dimension_semantics<parallel>, #tpu.dimension_semantics<arbitrary>], iteration_bounds = array<i64: 1, 1, 5>, scalar_prefetch = 0 : i64, scratch_operands = 1 : i64, tpu.core_type = #tpu.core_type<tc>, window_params = [{transform_indices = @transform_0, window_bounds = array<i64: 128, 128>}, {transform_indices = @transform_1, window_bounds = array<i64: 128, 128>}, {transform_indices = @transform_2, window_bounds = array<i64: 1, 128>}, {transform_indices = @transform_3, window_bounds = array<i64: 128, 128>}]} {
    %c0_i32 = arith.constant 0 : i32
    %0 = arith.cmpi eq, %arg2, %c0_i32 : i32
    %1 = arith.extui %0 : i1 to i32
    %c0_i32_0 = arith.constant 0 : i32
    %2 = arith.cmpi ne, %1, %c0_i32_0 : i32
    scf.if %2 {
      %cst_9 = arith.constant 0.000000e+00 : f32
      %12 = vector.broadcast %cst_9 : f32 to vector<128x128xf32>
      %c0_10 = arith.constant 0 : index
      %c0_11 = arith.constant 0 : index
      %13 = vector.load %arg7[%c0_10, %c0_11] : memref<128x128xf32, #tpu.memory_space<vmem>>, vector<128x128xf32>
      tpu.vector_store %arg7[%c0_10, %c0_11], %12 {strides = array<i32>} : memref<128x128xf32, #tpu.memory_space<vmem>>, vector<128x128xf32>,
    } else {
    }
    %c0 = arith.constant 0 : index
    %c0_1 = arith.constant 0 : index
    %3 = vector.load %arg7[%c0, %c0_1] : memref<128x128xf32, #tpu.memory_space<vmem>>, vector<128x128xf32>
    %c0_2 = arith.constant 0 : index
    %c0_3 = arith.constant 0 : index
    %4 = vector.load %arg3[%c0_2, %c0_3] : memref<128x128xbf16, #tpu.memory_space<vmem>>, vector<128x128xbf16>
    %c0_4 = arith.constant 0 : index
    %c0_5 = arith.constant 0 : index
    %5 = vector.load %arg4[%c0_4, %c0_5] : memref<128x128xbf16, #tpu.memory_space<vmem>>, vector<128x128xbf16>
    %cst = arith.constant dense<0.000000e+00> : vector<128x128xf32>
    %6 = tpu.matmul %4, %5, %cst {dimension_numbers = #tpu.dot_dimension_numbers<[1], [0], [0], [1], [0, 0, 1, 1], [], []>} : vector<128x128xbf16>, vector<128x128xbf16>, vector<128x128xf32> -> vector<128x128xf32>
    %7 = arith.addf %3, %6 : vector<128x128xf32>
    %c0_6 = arith.constant 0 : index
    %c0_7 = arith.constant 0 : index
    %8 = vector.load %arg7[%c0_6, %c0_7] : memref<128x128xf32, #tpu.memory_space<vmem>>, vector<128x128xf32>
    tpu.vector_store %arg7[%c0_6, %c0_7], %7 {strides = array<i32>} : memref<128x128xf32, #tpu.memory_space<vmem>>, vector<128x128xf32>,
    %c4_i32 = arith.constant 4 : i32
    %9 = arith.cmpi eq, %arg2, %c4_i32 : i32
    %10 = arith.extui %9 : i1 to i32
    %c0_i32_8 = arith.constant 0 : i32
    %11 = arith.cmpi ne, %10, %c0_i32_8 : i32
    scf.if %11 {
      %c0_9 = arith.constant 0 : index
      %c0_10 = arith.constant 0 : index
      %12 = vector.load %arg7[%c0_9, %c0_10] : memref<128x128xf32, #tpu.memory_space<vmem>>, vector<128x128xf32>
      %c0_11 = arith.constant 0 : index
      %c0_12 = arith.constant 0 : index
      %13 = vector.load %arg5[%c0_11, %c0_12] : memref<1x128xf32, #tpu.memory_space<vmem>>, vector<1x128xf32>
      %14 = vector.broadcast %13 : vector<1x128xf32> to vector<128x128xf32>
      %15 = arith.addf %12, %14 : vector<128x128xf32>
      %cst_13 = arith.constant 0.000000e+00 : f32
      %16 = vector.broadcast %cst_13 : f32 to vector<128x128xf32>
      %17 = arith.maximumf %15, %16 : vector<128x128xf32>
      %18 = arith.truncf %17 : vector<128x128xf32> to vector<128x128xbf16>
      %c0_14 = arith.constant 0 : index
      %c0_15 = arith.constant 0 : index
      %19 = vector.load %arg6[%c0_14, %c0_15] : memref<128x128xbf16, #tpu.memory_space<vmem>>, vector<128x128xbf16>
      tpu.vector_store %arg6[%c0_14, %c0_15], %18 {strides = array<i32>} : memref<128x128xbf16, #tpu.memory_space<vmem>>, vector<128x128xbf16>,
    } else {
    }
    return
  }
  func.func @transform_0(%arg0: i32, %arg1: i32, %arg2: i32) -> (i32, i32) {
    %c0_i32 = arith.constant 0 : i32
    return %arg0, %arg2 : i32, i32
  }
  func.func @transform_1(%arg0: i32, %arg1: i32, %arg2: i32) -> (i32, i32) {
    %c0_i32 = arith.constant 0 : i32
    return %arg2, %arg1 : i32, i32
  }
  func.func @transform_2(%arg0: i32, %arg1: i32, %arg2: i32) -> (i32, i32) {
    %c0_i32 = arith.constant 0 : i32
    %c0_i32_0 = arith.constant 0 : i32
    return %c0_i32, %arg1 : i32, i32
  }
  func.func @transform_3(%arg0: i32, %arg1: i32, %arg2: i32) -> (i32, i32) {
    %c0_i32 = arith.constant 0 : i32
    return %arg0, %arg1 : i32, i32
  }
}

module attributes {stable_mosaic.version = 11 : i64} {
  func.func @_mm_kernel(%arg0: i32, %arg1: i32, %arg2: i32, %arg3: memref<128x128xbf16, #tpu.memory_space<vmem>>, %arg4: memref<128x256xbf16, #tpu.memory_space<vmem>>, %arg5: memref<1x256xf32, #tpu.memory_space<vmem>>, %arg6: memref<128x256xbf16, #tpu.memory_space<vmem>>, %arg7: memref<128x256xf32, #tpu.memory_space<vmem>>) attributes {dimension_semantics = [#tpu.dimension_semantics<parallel>, #tpu.dimension_semantics<parallel>, #tpu.dimension_semantics<arbitrary>], iteration_bounds = array<i64: 1, 1, 1>, scalar_prefetch = 0 : i64, scratch_operands = 1 : i64, tpu.core_type = #tpu.core_type<tc>, window_params = [{transform_indices = @transform_0, window_bounds = array<i64: 128, 128>}, {transform_indices = @transform_1, window_bounds = array<i64: 128, 256>}, {transform_indices = @transform_2, window_bounds = array<i64: 1, 256>}, {transform_indices = @transform_3, window_bounds = array<i64: 128, 256>}]} {
    %c0_i32 = arith.constant 0 : i32
    %0 = arith.cmpi eq, %arg2, %c0_i32 : i32
    %1 = arith.extui %0 : i1 to i32
    %c0_i32_0 = arith.constant 0 : i32
    %2 = arith.cmpi ne, %1, %c0_i32_0 : i32
    scf.if %2 {
      %cst_10 = arith.constant 0.000000e+00 : f32
      %12 = vector.broadcast %cst_10 : f32 to vector<128x256xf32>
      %c0_11 = arith.constant 0 : index
      %c0_12 = arith.constant 0 : index
      %13 = vector.load %arg7[%c0_11, %c0_12] : memref<128x256xf32, #tpu.memory_space<vmem>>, vector<128x256xf32>
      tpu.vector_store %arg7[%c0_11, %c0_12], %12 {strides = array<i32>} : memref<128x256xf32, #tpu.memory_space<vmem>>, vector<128x256xf32>,
    } else {
    }
    %c0 = arith.constant 0 : index
    %c0_1 = arith.constant 0 : index
    %3 = vector.load %arg7[%c0, %c0_1] : memref<128x256xf32, #tpu.memory_space<vmem>>, vector<128x256xf32>
    %c0_2 = arith.constant 0 : index
    %c0_3 = arith.constant 0 : index
    %4 = vector.load %arg3[%c0_2, %c0_3] : memref<128x128xbf16, #tpu.memory_space<vmem>>, vector<128x128xbf16>
    %c0_4 = arith.constant 0 : index
    %c0_5 = arith.constant 0 : index
    %5 = vector.load %arg4[%c0_4, %c0_5] : memref<128x256xbf16, #tpu.memory_space<vmem>>, vector<128x256xbf16>
    %cst = arith.constant dense<0.000000e+00> : vector<128x256xf32>
    %6 = tpu.matmul %4, %5, %cst {dimension_numbers = #tpu.dot_dimension_numbers<[1], [0], [0], [1], [0, 0, 1, 1], [], []>} : vector<128x128xbf16>, vector<128x256xbf16>, vector<128x256xf32> -> vector<128x256xf32>
    %7 = arith.addf %3, %6 : vector<128x256xf32>
    %c0_6 = arith.constant 0 : index
    %c0_7 = arith.constant 0 : index
    %8 = vector.load %arg7[%c0_6, %c0_7] : memref<128x256xf32, #tpu.memory_space<vmem>>, vector<128x256xf32>
    tpu.vector_store %arg7[%c0_6, %c0_7], %7 {strides = array<i32>} : memref<128x256xf32, #tpu.memory_space<vmem>>, vector<128x256xf32>,
    %c0_i32_8 = arith.constant 0 : i32
    %9 = arith.cmpi eq, %arg2, %c0_i32_8 : i32
    %10 = arith.extui %9 : i1 to i32
    %c0_i32_9 = arith.constant 0 : i32
    %11 = arith.cmpi ne, %10, %c0_i32_9 : i32
    scf.if %11 {
      %c0_10 = arith.constant 0 : index
      %c0_11 = arith.constant 0 : index
      %12 = vector.load %arg7[%c0_10, %c0_11] : memref<128x256xf32, #tpu.memory_space<vmem>>, vector<128x256xf32>
      %c0_12 = arith.constant 0 : index
      %c0_13 = arith.constant 0 : index
      %13 = vector.load %arg5[%c0_12, %c0_13] : memref<1x256xf32, #tpu.memory_space<vmem>>, vector<1x256xf32>
      %14 = vector.broadcast %13 : vector<1x256xf32> to vector<128x256xf32>
      %15 = arith.addf %12, %14 : vector<128x256xf32>
      %16 = arith.truncf %15 : vector<128x256xf32> to vector<128x256xbf16>
      %c0_14 = arith.constant 0 : index
      %c0_15 = arith.constant 0 : index
      %17 = vector.load %arg6[%c0_14, %c0_15] : memref<128x256xbf16, #tpu.memory_space<vmem>>, vector<128x256xbf16>
      tpu.vector_store %arg6[%c0_14, %c0_15], %16 {strides = array<i32>} : memref<128x256xbf16, #tpu.memory_space<vmem>>, vector<128x256xbf16>,
    } else {
    }
    return
  }
  func.func @transform_0(%arg0: i32, %arg1: i32, %arg2: i32) -> (i32, i32) {
    %c0_i32 = arith.constant 0 : i32
    return %arg0, %arg2 : i32, i32
  }
  func.func @transform_1(%arg0: i32, %arg1: i32, %arg2: i32) -> (i32, i32) {
    %c0_i32 = arith.constant 0 : i32
    return %arg2, %arg1 : i32, i32
  }
  func.func @transform_2(%arg0: i32, %arg1: i32, %arg2: i32) -> (i32, i32) {
    %c0_i32 = arith.constant 0 : i32
    %c0_i32_0 = arith.constant 0 : i32
    return %c0_i32, %arg1 : i32, i32
  }
  func.func @transform_3(%arg0: i32, %arg1: i32, %arg2: i32) -> (i32, i32) {
    %c0_i32 = arith.constant 0 : i32
    return %arg0, %arg1 : i32, i32
  }
}

module attributes {stable_mosaic.version = 11 : i64} {
  func.func @_mm_kernel(%arg0: i32, %arg1: i32, %arg2: i32, %arg3: memref<128x256xbf16, #tpu.memory_space<vmem>>, %arg4: memref<256x128xbf16, #tpu.memory_space<vmem>>, %arg5: memref<1x128xf32, #tpu.memory_space<vmem>>, %arg6: memref<128x128xbf16, #tpu.memory_space<vmem>>, %arg7: memref<128x128xf32, #tpu.memory_space<vmem>>) attributes {dimension_semantics = [#tpu.dimension_semantics<parallel>, #tpu.dimension_semantics<parallel>, #tpu.dimension_semantics<arbitrary>], iteration_bounds = array<i64: 1, 1, 1>, scalar_prefetch = 0 : i64, scratch_operands = 1 : i64, tpu.core_type = #tpu.core_type<tc>, window_params = [{transform_indices = @transform_0, window_bounds = array<i64: 128, 256>}, {transform_indices = @transform_1, window_bounds = array<i64: 256, 128>}, {transform_indices = @transform_2, window_bounds = array<i64: 1, 128>}, {transform_indices = @transform_3, window_bounds = array<i64: 128, 128>}]} {
    %c0_i32 = arith.constant 0 : i32
    %0 = arith.cmpi eq, %arg2, %c0_i32 : i32
    %1 = arith.extui %0 : i1 to i32
    %c0_i32_0 = arith.constant 0 : i32
    %2 = arith.cmpi ne, %1, %c0_i32_0 : i32
    scf.if %2 {
      %cst_10 = arith.constant 0.000000e+00 : f32
      %12 = vector.broadcast %cst_10 : f32 to vector<128x128xf32>
      %c0_11 = arith.constant 0 : index
      %c0_12 = arith.constant 0 : index
      %13 = vector.load %arg7[%c0_11, %c0_12] : memref<128x128xf32, #tpu.memory_space<vmem>>, vector<128x128xf32>
      tpu.vector_store %arg7[%c0_11, %c0_12], %12 {strides = array<i32>} : memref<128x128xf32, #tpu.memory_space<vmem>>, vector<128x128xf32>,
    } else {
    }
    %c0 = arith.constant 0 : index
    %c0_1 = arith.constant 0 : index
    %3 = vector.load %arg7[%c0, %c0_1] : memref<128x128xf32, #tpu.memory_space<vmem>>, vector<128x128xf32>
    %c0_2 = arith.constant 0 : index
    %c0_3 = arith.constant 0 : index
    %4 = vector.load %arg3[%c0_2, %c0_3] : memref<128x256xbf16, #tpu.memory_space<vmem>>, vector<128x256xbf16>
    %c0_4 = arith.constant 0 : index
    %c0_5 = arith.constant 0 : index
    %5 = vector.load %arg4[%c0_4, %c0_5] : memref<256x128xbf16, #tpu.memory_space<vmem>>, vector<256x128xbf16>
    %cst = arith.constant dense<0.000000e+00> : vector<128x128xf32>
    %6 = tpu.matmul %4, %5, %cst {dimension_numbers = #tpu.dot_dimension_numbers<[1], [0], [0], [1], [0, 0, 1, 1], [], []>} : vector<128x256xbf16>, vector<256x128xbf16>, vector<128x128xf32> -> vector<128x128xf32>
    %7 = arith.addf %3, %6 : vector<128x128xf32>
    %c0_6 = arith.constant 0 : index
    %c0_7 = arith.constant 0 : index
    %8 = vector.load %arg7[%c0_6, %c0_7] : memref<128x128xf32, #tpu.memory_space<vmem>>, vector<128x128xf32>
    tpu.vector_store %arg7[%c0_6, %c0_7], %7 {strides = array<i32>} : memref<128x128xf32, #tpu.memory_space<vmem>>, vector<128x128xf32>,
    %c0_i32_8 = arith.constant 0 : i32
    %9 = arith.cmpi eq, %arg2, %c0_i32_8 : i32
    %10 = arith.extui %9 : i1 to i32
    %c0_i32_9 = arith.constant 0 : i32
    %11 = arith.cmpi ne, %10, %c0_i32_9 : i32
    scf.if %11 {
      %c0_10 = arith.constant 0 : index
      %c0_11 = arith.constant 0 : index
      %12 = vector.load %arg7[%c0_10, %c0_11] : memref<128x128xf32, #tpu.memory_space<vmem>>, vector<128x128xf32>
      %c0_12 = arith.constant 0 : index
      %c0_13 = arith.constant 0 : index
      %13 = vector.load %arg5[%c0_12, %c0_13] : memref<1x128xf32, #tpu.memory_space<vmem>>, vector<1x128xf32>
      %14 = vector.broadcast %13 : vector<1x128xf32> to vector<128x128xf32>
      %15 = arith.addf %12, %14 : vector<128x128xf32>
      %cst_14 = arith.constant 0.000000e+00 : f32
      %16 = vector.broadcast %cst_14 : f32 to vector<128x128xf32>
      %17 = arith.maximumf %15, %16 : vector<128x128xf32>
      %18 = arith.truncf %17 : vector<128x128xf32> to vector<128x128xbf16>
      %c0_15 = arith.constant 0 : index
      %c0_16 = arith.constant 0 : index
      %19 = vector.load %arg6[%c0_15, %c0_16] : memref<128x128xbf16, #tpu.memory_space<vmem>>, vector<128x128xbf16>
      tpu.vector_store %arg6[%c0_15, %c0_16], %18 {strides = array<i32>} : memref<128x128xbf16, #tpu.memory_space<vmem>>, vector<128x128xbf16>,
    } else {
    }
    return
  }
  func.func @transform_0(%arg0: i32, %arg1: i32, %arg2: i32) -> (i32, i32) {
    %c0_i32 = arith.constant 0 : i32
    return %arg0, %arg2 : i32, i32
  }
  func.func @transform_1(%arg0: i32, %arg1: i32, %arg2: i32) -> (i32, i32) {
    %c0_i32 = arith.constant 0 : i32
    return %arg2, %arg1 : i32, i32
  }
  func.func @transform_2(%arg0: i32, %arg1: i32, %arg2: i32) -> (i32, i32) {
    %c0_i32 = arith.constant 0 : i32
    %c0_i32_0 = arith.constant 0 : i32
    return %c0_i32, %arg1 : i32, i32
  }
  func.func @transform_3(%arg0: i32, %arg1: i32, %arg2: i32) -> (i32, i32) {
    %c0_i32 = arith.constant 0 : i32
    return %arg0, %arg1 : i32, i32
  }
}

module attributes {stable_mosaic.version = 11 : i64} {
  func.func @_mm_kernel(%arg0: i32, %arg1: i32, %arg2: i32, %arg3: memref<128x128xbf16, #tpu.memory_space<vmem>>, %arg4: memref<128x256xbf16, #tpu.memory_space<vmem>>, %arg5: memref<1x256xf32, #tpu.memory_space<vmem>>, %arg6: memref<128x256xbf16, #tpu.memory_space<vmem>>, %arg7: memref<128x256xbf16, #tpu.memory_space<vmem>>, %arg8: memref<128x256xf32, #tpu.memory_space<vmem>>) attributes {dimension_semantics = [#tpu.dimension_semantics<parallel>, #tpu.dimension_semantics<parallel>, #tpu.dimension_semantics<arbitrary>], iteration_bounds = array<i64: 1, 1, 1>, scalar_prefetch = 0 : i64, scratch_operands = 1 : i64, tpu.core_type = #tpu.core_type<tc>, window_params = [{transform_indices = @transform_0, window_bounds = array<i64: 128, 128>}, {transform_indices = @transform_1, window_bounds = array<i64: 128, 256>}, {transform_indices = @transform_2, window_bounds = array<i64: 1, 256>}, {transform_indices = @transform_3, window_bounds = array<i64: 128, 256>}, {transform_indices = @transform_4, window_bounds = array<i64: 128, 256>}]} {
    %c0_i32 = arith.constant 0 : i32
    %0 = arith.cmpi eq, %arg2, %c0_i32 : i32
    %1 = arith.extui %0 : i1 to i32
    %c0_i32_0 = arith.constant 0 : i32
    %2 = arith.cmpi ne, %1, %c0_i32_0 : i32
    scf.if %2 {
      %cst_10 = arith.constant 0.000000e+00 : f32
      %12 = vector.broadcast %cst_10 : f32 to vector<128x256xf32>
      %c0_11 = arith.constant 0 : index
      %c0_12 = arith.constant 0 : index
      %13 = vector.load %arg8[%c0_11, %c0_12] : memref<128x256xf32, #tpu.memory_space<vmem>>, vector<128x256xf32>
      tpu.vector_store %arg8[%c0_11, %c0_12], %12 {strides = array<i32>} : memref<128x256xf32, #tpu.memory_space<vmem>>, vector<128x256xf32>,
    } else {
    }
    %c0 = arith.constant 0 : index
    %c0_1 = arith.constant 0 : index
    %3 = vector.load %arg8[%c0, %c0_1] : memref<128x256xf32, #tpu.memory_space<vmem>>, vector<128x256xf32>
    %c0_2 = arith.constant 0 : index
    %c0_3 = arith.constant 0 : index
    %4 = vector.load %arg3[%c0_2, %c0_3] : memref<128x128xbf16, #tpu.memory_space<vmem>>, vector<128x128xbf16>
    %c0_4 = arith.constant 0 : index
    %c0_5 = arith.constant 0 : index
    %5 = vector.load %arg4[%c0_4, %c0_5] : memref<128x256xbf16, #tpu.memory_space<vmem>>, vector<128x256xbf16>
    %cst = arith.constant dense<0.000000e+00> : vector<128x256xf32>
    %6 = tpu.matmul %4, %5, %cst {dimension_numbers = #tpu.dot_dimension_numbers<[1], [0], [0], [1], [0, 0, 1, 1], [], []>} : vector<128x128xbf16>, vector<128x256xbf16>, vector<128x256xf32> -> vector<128x256xf32>
    %7 = arith.addf %3, %6 : vector<128x256xf32>
    %c0_6 = arith.constant 0 : index
    %c0_7 = arith.constant 0 : index
    %8 = vector.load %arg8[%c0_6, %c0_7] : memref<128x256xf32, #tpu.memory_space<vmem>>, vector<128x256xf32>
    tpu.vector_store %arg8[%c0_6, %c0_7], %7 {strides = array<i32>} : memref<128x256xf32, #tpu.memory_space<vmem>>, vector<128x256xf32>,
    %c0_i32_8 = arith.constant 0 : i32
    %9 = arith.cmpi eq, %arg2, %c0_i32_8 : i32
    %10 = arith.extui %9 : i1 to i32
    %c0_i32_9 = arith.constant 0 : i32
    %11 = arith.cmpi ne, %10, %c0_i32_9 : i32
    scf.if %11 {
      %c0_10 = arith.constant 0 : index
      %c0_11 = arith.constant 0 : index
      %12 = vector.load %arg8[%c0_10, %c0_11] : memref<128x256xf32, #tpu.memory_space<vmem>>, vector<128x256xf32>
      %c0_12 = arith.constant 0 : index
      %c0_13 = arith.constant 0 : index
      %13 = vector.load %arg5[%c0_12, %c0_13] : memref<1x256xf32, #tpu.memory_space<vmem>>, vector<1x256xf32>
      %14 = vector.broadcast %13 : vector<1x256xf32> to vector<128x256xf32>
      %15 = arith.addf %12, %14 : vector<128x256xf32>
      %c0_14 = arith.constant 0 : index
      %c0_15 = arith.constant 0 : index
      %16 = vector.load %arg6[%c0_14, %c0_15] : memref<128x256xbf16, #tpu.memory_space<vmem>>, vector<128x256xbf16>
      %17 = arith.extf %16 : vector<128x256xbf16> to vector<128x256xf32>
      %18 = arith.addf %15, %17 : vector<128x256xf32>
      %cst_16 = arith.constant 0.000000e+00 : f32
      %19 = vector.broadcast %cst_16 : f32 to vector<128x256xf32>
      %20 = arith.maximumf %18, %19 : vector<128x256xf32>
      %21 = arith.truncf %20 : vector<128x256xf32> to vector<128x256xbf16>
      %c0_17 = arith.constant 0 : index
      %c0_18 = arith.constant 0 : index
      %22 = vector.load %arg7[%c0_17, %c0_18] : memref<128x256xbf16, #tpu.memory_space<vmem>>, vector<128x256xbf16>
      tpu.vector_store %arg7[%c0_17, %c0_18], %21 {strides = array<i32>} : memref<128x256xbf16, #tpu.memory_space<vmem>>, vector<128x256xbf16>,
    } else {
    }
    return
  }
  func.func @transform_0(%arg0: i32, %arg1: i32, %arg2: i32) -> (i32, i32) {
    %c0_i32 = arith.constant 0 : i32
    return %arg0, %arg2 : i32, i32
  }
  func.func @transform_1(%arg0: i32, %arg1: i32, %arg2: i32) -> (i32, i32) {
    %c0_i32 = arith.constant 0 : i32
    return %arg2, %arg1 : i32, i32
  }
  func.func @transform_2(%arg0: i32, %arg1: i32, %arg2: i32) -> (i32, i32) {
    %c0_i32 = arith.constant 0 : i32
    %c0_i32_0 = arith.constant 0 : i32
    return %c0_i32, %arg1 : i32, i32
  }
  func.func @transform_3(%arg0: i32, %arg1: i32, %arg2: i32) -> (i32, i32) {
    %c0_i32 = arith.constant 0 : i32
    return %arg0, %arg1 : i32, i32
  }
  func.func @transform_4(%arg0: i32, %arg1: i32, %arg2: i32) -> (i32, i32) {
    %c0_i32 = arith.constant 0 : i32
    return %arg0, %arg1 : i32, i32
  }
}

module attributes {stable_mosaic.version = 11 : i64} {
  func.func @_mm_kernel(%arg0: i32, %arg1: i32, %arg2: i32, %arg3: memref<32x128xbf16, #tpu.memory_space<vmem>>, %arg4: memref<128x128xbf16, #tpu.memory_space<vmem>>, %arg5: memref<1x128xf32, #tpu.memory_space<vmem>>, %arg6: memref<32x128xbf16, #tpu.memory_space<vmem>>, %arg7: memref<32x128xf32, #tpu.memory_space<vmem>>) attributes {dimension_semantics = [#tpu.dimension_semantics<parallel>, #tpu.dimension_semantics<parallel>, #tpu.dimension_semantics<arbitrary>], iteration_bounds = array<i64: 1, 1, 9>, scalar_prefetch = 0 : i64, scratch_operands = 1 : i64, tpu.core_type = #tpu.core_type<tc>, window_params = [{transform_indices = @transform_0, window_bounds = array<i64: 32, 128>}, {transform_indices = @transform_1, window_bounds = array<i64: 128, 128>}, {transform_indices = @transform_2, window_bounds = array<i64: 1, 128>}, {transform_indices = @transform_3, window_bounds = array<i64: 32, 128>}]} {
    %c0_i32 = arith.constant 0 : i32
    %0 = arith.cmpi eq, %arg2, %c0_i32 : i32
    %1 = arith.extui %0 : i1 to i32
    %c0_i32_0 = arith.constant 0 : i32
    %2 = arith.cmpi ne, %1, %c0_i32_0 : i32
    scf.if %2 {
      %cst_9 = arith.constant 0.000000e+00 : f32
      %12 = vector.broadcast %cst_9 : f32 to vector<32x128xf32>
      %c0_10 = arith.constant 0 : index
      %c0_11 = arith.constant 0 : index
      %13 = vector.load %arg7[%c0_10, %c0_11] : memref<32x128xf32, #tpu.memory_space<vmem>>, vector<32x128xf32>
      tpu.vector_store %arg7[%c0_10, %c0_11], %12 {strides = array<i32>} : memref<32x128xf32, #tpu.memory_space<vmem>>, vector<32x128xf32>,
    } else {
    }
    %c0 = arith.constant 0 : index
    %c0_1 = arith.constant 0 : index
    %3 = vector.load %arg7[%c0, %c0_1] : memref<32x128xf32, #tpu.memory_space<vmem>>, vector<32x128xf32>
    %c0_2 = arith.constant 0 : index
    %c0_3 = arith.constant 0 : index
    %4 = vector.load %arg3[%c0_2, %c0_3] : memref<32x128xbf16, #tpu.memory_space<vmem>>, vector<32x128xbf16>
    %c0_4 = arith.constant 0 : index
    %c0_5 = arith.constant 0 : index
    %5 = vector.load %arg4[%c0_4, %c0_5] : memref<128x128xbf16, #tpu.memory_space<vmem>>, vector<128x128xbf16>
    %cst = arith.constant dense<0.000000e+00> : vector<32x128xf32>
    %6 = tpu.matmul %4, %5, %cst {dimension_numbers = #tpu.dot_dimension_numbers<[1], [0], [0], [1], [0, 0, 1, 1], [], []>} : vector<32x128xbf16>, vector<128x128xbf16>, vector<32x128xf32> -> vector<32x128xf32>
    %7 = arith.addf %3, %6 : vector<32x128xf32>
    %c0_6 = arith.constant 0 : index
    %c0_7 = arith.constant 0 : index
    %8 = vector.load %arg7[%c0_6, %c0_7] : memref<32x128xf32, #tpu.memory_space<vmem>>, vector<32x128xf32>
    tpu.vector_store %arg7[%c0_6, %c0_7], %7 {strides = array<i32>} : memref<32x128xf32, #tpu.memory_space<vmem>>, vector<32x128xf32>,
    %c8_i32 = arith.constant 8 : i32
    %9 = arith.cmpi eq, %arg2, %c8_i32 : i32
    %10 = arith.extui %9 : i1 to i32
    %c0_i32_8 = arith.constant 0 : i32
    %11 = arith.cmpi ne, %10, %c0_i32_8 : i32
    scf.if %11 {
      %c0_9 = arith.constant 0 : index
      %c0_10 = arith.constant 0 : index
      %12 = vector.load %arg7[%c0_9, %c0_10] : memref<32x128xf32, #tpu.memory_space<vmem>>, vector<32x128xf32>
      %c0_11 = arith.constant 0 : index
      %c0_12 = arith.constant 0 : index
      %13 = vector.load %arg5[%c0_11, %c0_12] : memref<1x128xf32, #tpu.memory_space<vmem>>, vector<1x128xf32>
      %14 = vector.broadcast %13 : vector<1x128xf32> to vector<32x128xf32>
      %15 = arith.addf %12, %14 : vector<32x128xf32>
      %cst_13 = arith.constant 0.000000e+00 : f32
      %16 = vector.broadcast %cst_13 : f32 to vector<32x128xf32>
      %17 = arith.maximumf %15, %16 : vector<32x128xf32>
      %18 = arith.truncf %17 : vector<32x128xf32> to vector<32x128xbf16>
      %c0_14 = arith.constant 0 : index
      %c0_15 = arith.constant 0 : index
      %19 = vector.load %arg6[%c0_14, %c0_15] : memref<32x128xbf16, #tpu.memory_space<vmem>>, vector<32x128xbf16>
      tpu.vector_store %arg6[%c0_14, %c0_15], %18 {strides = array<i32>} : memref<32x128xbf16, #tpu.memory_space<vmem>>, vector<32x128xbf16>,
    } else {
    }
    return
  }
  func.func @transform_0(%arg0: i32, %arg1: i32, %arg2: i32) -> (i32, i32) {
    %c0_i32 = arith.constant 0 : i32
    return %arg0, %arg2 : i32, i32
  }
  func.func @transform_1(%arg0: i32, %arg1: i32, %arg2: i32) -> (i32, i32) {
    %c0_i32 = arith.constant 0 : i32
    return %arg2, %arg1 : i32, i32
  }
  func.func @transform_2(%arg0: i32, %arg1: i32, %arg2: i32) -> (i32, i32) {
    %c0_i32 = arith.constant 0 : i32
    %c0_i32_0 = arith.constant 0 : i32
    return %c0_i32, %arg1 : i32, i32
  }
  func.func @transform_3(%arg0: i32, %arg1: i32, %arg2: i32) -> (i32, i32) {
    %c0_i32 = arith.constant 0 : i32
    return %arg0, %arg1 : i32, i32
  }
}

module attributes {stable_mosaic.version = 11 : i64} {
  func.func @_mm_kernel(%arg0: i32, %arg1: i32, %arg2: i32, %arg3: memref<32x128xbf16, #tpu.memory_space<vmem>>, %arg4: memref<128x256xbf16, #tpu.memory_space<vmem>>, %arg5: memref<1x256xf32, #tpu.memory_space<vmem>>, %arg6: memref<32x256xbf16, #tpu.memory_space<vmem>>, %arg7: memref<32x256xbf16, #tpu.memory_space<vmem>>, %arg8: memref<32x256xf32, #tpu.memory_space<vmem>>) attributes {dimension_semantics = [#tpu.dimension_semantics<parallel>, #tpu.dimension_semantics<parallel>, #tpu.dimension_semantics<arbitrary>], iteration_bounds = array<i64: 1, 2, 1>, scalar_prefetch = 0 : i64, scratch_operands = 1 : i64, tpu.core_type = #tpu.core_type<tc>, window_params = [{transform_indices = @transform_0, window_bounds = array<i64: 32, 128>}, {transform_indices = @transform_1, window_bounds = array<i64: 128, 256>}, {transform_indices = @transform_2, window_bounds = array<i64: 1, 256>}, {transform_indices = @transform_3, window_bounds = array<i64: 32, 256>}, {transform_indices = @transform_4, window_bounds = array<i64: 32, 256>}]} {
    %c0_i32 = arith.constant 0 : i32
    %0 = arith.cmpi eq, %arg2, %c0_i32 : i32
    %1 = arith.extui %0 : i1 to i32
    %c0_i32_0 = arith.constant 0 : i32
    %2 = arith.cmpi ne, %1, %c0_i32_0 : i32
    scf.if %2 {
      %cst_10 = arith.constant 0.000000e+00 : f32
      %12 = vector.broadcast %cst_10 : f32 to vector<32x256xf32>
      %c0_11 = arith.constant 0 : index
      %c0_12 = arith.constant 0 : index
      %13 = vector.load %arg8[%c0_11, %c0_12] : memref<32x256xf32, #tpu.memory_space<vmem>>, vector<32x256xf32>
      tpu.vector_store %arg8[%c0_11, %c0_12], %12 {strides = array<i32>} : memref<32x256xf32, #tpu.memory_space<vmem>>, vector<32x256xf32>,
    } else {
    }
    %c0 = arith.constant 0 : index
    %c0_1 = arith.constant 0 : index
    %3 = vector.load %arg8[%c0, %c0_1] : memref<32x256xf32, #tpu.memory_space<vmem>>, vector<32x256xf32>
    %c0_2 = arith.constant 0 : index
    %c0_3 = arith.constant 0 : index
    %4 = vector.load %arg3[%c0_2, %c0_3] : memref<32x128xbf16, #tpu.memory_space<vmem>>, vector<32x128xbf16>
    %c0_4 = arith.constant 0 : index
    %c0_5 = arith.constant 0 : index
    %5 = vector.load %arg4[%c0_4, %c0_5] : memref<128x256xbf16, #tpu.memory_space<vmem>>, vector<128x256xbf16>
    %cst = arith.constant dense<0.000000e+00> : vector<32x256xf32>
    %6 = tpu.matmul %4, %5, %cst {dimension_numbers = #tpu.dot_dimension_numbers<[1], [0], [0], [1], [0, 0, 1, 1], [], []>} : vector<32x128xbf16>, vector<128x256xbf16>, vector<32x256xf32> -> vector<32x256xf32>
    %7 = arith.addf %3, %6 : vector<32x256xf32>
    %c0_6 = arith.constant 0 : index
    %c0_7 = arith.constant 0 : index
    %8 = vector.load %arg8[%c0_6, %c0_7] : memref<32x256xf32, #tpu.memory_space<vmem>>, vector<32x256xf32>
    tpu.vector_store %arg8[%c0_6, %c0_7], %7 {strides = array<i32>} : memref<32x256xf32, #tpu.memory_space<vmem>>, vector<32x256xf32>,
    %c0_i32_8 = arith.constant 0 : i32
    %9 = arith.cmpi eq, %arg2, %c0_i32_8 : i32
    %10 = arith.extui %9 : i1 to i32
    %c0_i32_9 = arith.constant 0 : i32
    %11 = arith.cmpi ne, %10, %c0_i32_9 : i32
    scf.if %11 {
      %c0_10 = arith.constant 0 : index
      %c0_11 = arith.constant 0 : index
      %12 = vector.load %arg8[%c0_10, %c0_11] : memref<32x256xf32, #tpu.memory_space<vmem>>, vector<32x256xf32>
      %c0_12 = arith.constant 0 : index
      %c0_13 = arith.constant 0 : index
      %13 = vector.load %arg5[%c0_12, %c0_13] : memref<1x256xf32, #tpu.memory_space<vmem>>, vector<1x256xf32>
      %14 = vector.broadcast %13 : vector<1x256xf32> to vector<32x256xf32>
      %15 = arith.addf %12, %14 : vector<32x256xf32>
      %c0_14 = arith.constant 0 : index
      %c0_15 = arith.constant 0 : index
      %16 = vector.load %arg6[%c0_14, %c0_15] : memref<32x256xbf16, #tpu.memory_space<vmem>>, vector<32x256xbf16>
      %17 = arith.extf %16 : vector<32x256xbf16> to vector<32x256xf32>
      %18 = arith.addf %15, %17 : vector<32x256xf32>
      %cst_16 = arith.constant 0.000000e+00 : f32
      %19 = vector.broadcast %cst_16 : f32 to vector<32x256xf32>
      %20 = arith.maximumf %18, %19 : vector<32x256xf32>
      %21 = arith.truncf %20 : vector<32x256xf32> to vector<32x256xbf16>
      %c0_17 = arith.constant 0 : index
      %c0_18 = arith.constant 0 : index
      %22 = vector.load %arg7[%c0_17, %c0_18] : memref<32x256xbf16, #tpu.memory_space<vmem>>, vector<32x256xbf16>
      tpu.vector_store %arg7[%c0_17, %c0_18], %21 {strides = array<i32>} : memref<32x256xbf16, #tpu.memory_space<vmem>>, vector<32x256xbf16>,
    } else {
    }
    return
  }
  func.func @transform_0(%arg0: i32, %arg1: i32, %arg2: i32) -> (i32, i32) {
    %c0_i32 = arith.constant 0 : i32
    return %arg0, %arg2 : i32, i32
  }
  func.func @transform_1(%arg0: i32, %arg1: i32, %arg2: i32) -> (i32, i32) {
    %c0_i32 = arith.constant 0 : i32
    return %arg2, %arg1 : i32, i32
  }
  func.func @transform_2(%arg0: i32, %arg1: i32, %arg2: i32) -> (i32, i32) {
    %c0_i32 = arith.constant 0 : i32
    %c0_i32_0 = arith.constant 0 : i32
    return %c0_i32, %arg1 : i32, i32
  }
  func.func @transform_3(%arg0: i32, %arg1: i32, %arg2: i32) -> (i32, i32) {
    %c0_i32 = arith.constant 0 : i32
    return %arg0, %arg1 : i32, i32
  }
  func.func @transform_4(%arg0: i32, %arg1: i32, %arg2: i32) -> (i32, i32) {
    %c0_i32 = arith.constant 0 : i32
    return %arg0, %arg1 : i32, i32
  }
}

module attributes {stable_mosaic.version = 11 : i64} {
  func.func @_mm_kernel(%arg0: i32, %arg1: i32, %arg2: i32, %arg3: memref<32x256xbf16, #tpu.memory_space<vmem>>, %arg4: memref<256x256xbf16, #tpu.memory_space<vmem>>, %arg5: memref<1x256xf32, #tpu.memory_space<vmem>>, %arg6: memref<32x256xbf16, #tpu.memory_space<vmem>>, %arg7: memref<32x256xf32, #tpu.memory_space<vmem>>) attributes {dimension_semantics = [#tpu.dimension_semantics<parallel>, #tpu.dimension_semantics<parallel>, #tpu.dimension_semantics<arbitrary>], iteration_bounds = array<i64: 1, 2, 1>, scalar_prefetch = 0 : i64, scratch_operands = 1 : i64, tpu.core_type = #tpu.core_type<tc>, window_params = [{transform_indices = @transform_0, window_bounds = array<i64: 32, 256>}, {transform_indices = @transform_1, window_bounds = array<i64: 256, 256>}, {transform_indices = @transform_2, window_bounds = array<i64: 1, 256>}, {transform_indices = @transform_3, window_bounds = array<i64: 32, 256>}]} {
    %c0_i32 = arith.constant 0 : i32
    %0 = arith.cmpi eq, %arg2, %c0_i32 : i32
    %1 = arith.extui %0 : i1 to i32
    %c0_i32_0 = arith.constant 0 : i32
    %2 = arith.cmpi ne, %1, %c0_i32_0 : i32
    scf.if %2 {
      %cst_10 = arith.constant 0.000000e+00 : f32
      %12 = vector.broadcast %cst_10 : f32 to vector<32x256xf32>
      %c0_11 = arith.constant 0 : index
      %c0_12 = arith.constant 0 : index
      %13 = vector.load %arg7[%c0_11, %c0_12] : memref<32x256xf32, #tpu.memory_space<vmem>>, vector<32x256xf32>
      tpu.vector_store %arg7[%c0_11, %c0_12], %12 {strides = array<i32>} : memref<32x256xf32, #tpu.memory_space<vmem>>, vector<32x256xf32>,
    } else {
    }
    %c0 = arith.constant 0 : index
    %c0_1 = arith.constant 0 : index
    %3 = vector.load %arg7[%c0, %c0_1] : memref<32x256xf32, #tpu.memory_space<vmem>>, vector<32x256xf32>
    %c0_2 = arith.constant 0 : index
    %c0_3 = arith.constant 0 : index
    %4 = vector.load %arg3[%c0_2, %c0_3] : memref<32x256xbf16, #tpu.memory_space<vmem>>, vector<32x256xbf16>
    %c0_4 = arith.constant 0 : index
    %c0_5 = arith.constant 0 : index
    %5 = vector.load %arg4[%c0_4, %c0_5] : memref<256x256xbf16, #tpu.memory_space<vmem>>, vector<256x256xbf16>
    %cst = arith.constant dense<0.000000e+00> : vector<32x256xf32>
    %6 = tpu.matmul %4, %5, %cst {dimension_numbers = #tpu.dot_dimension_numbers<[1], [0], [0], [1], [0, 0, 1, 1], [], []>} : vector<32x256xbf16>, vector<256x256xbf16>, vector<32x256xf32> -> vector<32x256xf32>
    %7 = arith.addf %3, %6 : vector<32x256xf32>
    %c0_6 = arith.constant 0 : index
    %c0_7 = arith.constant 0 : index
    %8 = vector.load %arg7[%c0_6, %c0_7] : memref<32x256xf32, #tpu.memory_space<vmem>>, vector<32x256xf32>
    tpu.vector_store %arg7[%c0_6, %c0_7], %7 {strides = array<i32>} : memref<32x256xf32, #tpu.memory_space<vmem>>, vector<32x256xf32>,
    %c0_i32_8 = arith.constant 0 : i32
    %9 = arith.cmpi eq, %arg2, %c0_i32_8 : i32
    %10 = arith.extui %9 : i1 to i32
    %c0_i32_9 = arith.constant 0 : i32
    %11 = arith.cmpi ne, %10, %c0_i32_9 : i32
    scf.if %11 {
      %c0_10 = arith.constant 0 : index
      %c0_11 = arith.constant 0 : index
      %12 = vector.load %arg7[%c0_10, %c0_11] : memref<32x256xf32, #tpu.memory_space<vmem>>, vector<32x256xf32>
      %c0_12 = arith.constant 0 : index
      %c0_13 = arith.constant 0 : index
      %13 = vector.load %arg5[%c0_12, %c0_13] : memref<1x256xf32, #tpu.memory_space<vmem>>, vector<1x256xf32>
      %14 = vector.broadcast %13 : vector<1x256xf32> to vector<32x256xf32>
      %15 = arith.addf %12, %14 : vector<32x256xf32>
      %16 = arith.truncf %15 : vector<32x256xf32> to vector<32x256xbf16>
      %c0_14 = arith.constant 0 : index
      %c0_15 = arith.constant 0 : index
      %17 = vector.load %arg6[%c0_14, %c0_15] : memref<32x256xbf16, #tpu.memory_space<vmem>>, vector<32x256xbf16>
      tpu.vector_store %arg6[%c0_14, %c0_15], %16 {strides = array<i32>} : memref<32x256xbf16, #tpu.memory_space<vmem>>, vector<32x256xbf16>,
    } else {
    }
    return
  }
  func.func @transform_0(%arg0: i32, %arg1: i32, %arg2: i32) -> (i32, i32) {
    %c0_i32 = arith.constant 0 : i32
    return %arg0, %arg2 : i32, i32
  }
  func.func @transform_1(%arg0: i32, %arg1: i32, %arg2: i32) -> (i32, i32) {
    %c0_i32 = arith.constant 0 : i32
    return %arg2, %arg1 : i32, i32
  }
  func.func @transform_2(%arg0: i32, %arg1: i32, %arg2: i32) -> (i32, i32) {
    %c0_i32 = arith.constant 0 : i32
    %c0_i32_0 = arith.constant 0 : i32
    return %c0_i32, %arg1 : i32, i32
  }
  func.func @transform_3(%arg0: i32, %arg1: i32, %arg2: i32) -> (i32, i32) {
    %c0_i32 = arith.constant 0 : i32
    return %arg0, %arg1 : i32, i32
  }
}

module attributes {stable_mosaic.version = 11 : i64} {
  func.func @_mm_kernel(%arg0: i32, %arg1: i32, %arg2: i32, %arg3: memref<32x256xbf16, #tpu.memory_space<vmem>>, %arg4: memref<256x128xbf16, #tpu.memory_space<vmem>>, %arg5: memref<1x128xf32, #tpu.memory_space<vmem>>, %arg6: memref<32x128xbf16, #tpu.memory_space<vmem>>, %arg7: memref<32x128xf32, #tpu.memory_space<vmem>>) attributes {dimension_semantics = [#tpu.dimension_semantics<parallel>, #tpu.dimension_semantics<parallel>, #tpu.dimension_semantics<arbitrary>], iteration_bounds = array<i64: 1, 1, 2>, scalar_prefetch = 0 : i64, scratch_operands = 1 : i64, tpu.core_type = #tpu.core_type<tc>, window_params = [{transform_indices = @transform_0, window_bounds = array<i64: 32, 256>}, {transform_indices = @transform_1, window_bounds = array<i64: 256, 128>}, {transform_indices = @transform_2, window_bounds = array<i64: 1, 128>}, {transform_indices = @transform_3, window_bounds = array<i64: 32, 128>}]} {
    %c0_i32 = arith.constant 0 : i32
    %0 = arith.cmpi eq, %arg2, %c0_i32 : i32
    %1 = arith.extui %0 : i1 to i32
    %c0_i32_0 = arith.constant 0 : i32
    %2 = arith.cmpi ne, %1, %c0_i32_0 : i32
    scf.if %2 {
      %cst_9 = arith.constant 0.000000e+00 : f32
      %12 = vector.broadcast %cst_9 : f32 to vector<32x128xf32>
      %c0_10 = arith.constant 0 : index
      %c0_11 = arith.constant 0 : index
      %13 = vector.load %arg7[%c0_10, %c0_11] : memref<32x128xf32, #tpu.memory_space<vmem>>, vector<32x128xf32>
      tpu.vector_store %arg7[%c0_10, %c0_11], %12 {strides = array<i32>} : memref<32x128xf32, #tpu.memory_space<vmem>>, vector<32x128xf32>,
    } else {
    }
    %c0 = arith.constant 0 : index
    %c0_1 = arith.constant 0 : index
    %3 = vector.load %arg7[%c0, %c0_1] : memref<32x128xf32, #tpu.memory_space<vmem>>, vector<32x128xf32>
    %c0_2 = arith.constant 0 : index
    %c0_3 = arith.constant 0 : index
    %4 = vector.load %arg3[%c0_2, %c0_3] : memref<32x256xbf16, #tpu.memory_space<vmem>>, vector<32x256xbf16>
    %c0_4 = arith.constant 0 : index
    %c0_5 = arith.constant 0 : index
    %5 = vector.load %arg4[%c0_4, %c0_5] : memref<256x128xbf16, #tpu.memory_space<vmem>>, vector<256x128xbf16>
    %cst = arith.constant dense<0.000000e+00> : vector<32x128xf32>
    %6 = tpu.matmul %4, %5, %cst {dimension_numbers = #tpu.dot_dimension_numbers<[1], [0], [0], [1], [0, 0, 1, 1], [], []>} : vector<32x256xbf16>, vector<256x128xbf16>, vector<32x128xf32> -> vector<32x128xf32>
    %7 = arith.addf %3, %6 : vector<32x128xf32>
    %c0_6 = arith.constant 0 : index
    %c0_7 = arith.constant 0 : index
    %8 = vector.load %arg7[%c0_6, %c0_7] : memref<32x128xf32, #tpu.memory_space<vmem>>, vector<32x128xf32>
    tpu.vector_store %arg7[%c0_6, %c0_7], %7 {strides = array<i32>} : memref<32x128xf32, #tpu.memory_space<vmem>>, vector<32x128xf32>,
    %c1_i32 = arith.constant 1 : i32
    %9 = arith.cmpi eq, %arg2, %c1_i32 : i32
    %10 = arith.extui %9 : i1 to i32
    %c0_i32_8 = arith.constant 0 : i32
    %11 = arith.cmpi ne, %10, %c0_i32_8 : i32
    scf.if %11 {
      %c0_9 = arith.constant 0 : index
      %c0_10 = arith.constant 0 : index
      %12 = vector.load %arg7[%c0_9, %c0_10] : memref<32x128xf32, #tpu.memory_space<vmem>>, vector<32x128xf32>
      %c0_11 = arith.constant 0 : index
      %c0_12 = arith.constant 0 : index
      %13 = vector.load %arg5[%c0_11, %c0_12] : memref<1x128xf32, #tpu.memory_space<vmem>>, vector<1x128xf32>
      %14 = vector.broadcast %13 : vector<1x128xf32> to vector<32x128xf32>
      %15 = arith.addf %12, %14 : vector<32x128xf32>
      %cst_13 = arith.constant 0.000000e+00 : f32
      %16 = vector.broadcast %cst_13 : f32 to vector<32x128xf32>
      %17 = arith.maximumf %15, %16 : vector<32x128xf32>
      %18 = arith.truncf %17 : vector<32x128xf32> to vector<32x128xbf16>
      %c0_14 = arith.constant 0 : index
      %c0_15 = arith.constant 0 : index
      %19 = vector.load %arg6[%c0_14, %c0_15] : memref<32x128xbf16, #tpu.memory_space<vmem>>, vector<32x128xbf16>
      tpu.vector_store %arg6[%c0_14, %c0_15], %18 {strides = array<i32>} : memref<32x128xbf16, #tpu.memory_space<vmem>>, vector<32x128xbf16>,
    } else {
    }
    return
  }
  func.func @transform_0(%arg0: i32, %arg1: i32, %arg2: i32) -> (i32, i32) {
    %c0_i32 = arith.constant 0 : i32
    return %arg0, %arg2 : i32, i32
  }
  func.func @transform_1(%arg0: i32, %arg1: i32, %arg2: i32) -> (i32, i32) {
    %c0_i32 = arith.constant 0 : i32
    return %arg2, %arg1 : i32, i32
  }
  func.func @transform_2(%arg0: i32, %arg1: i32, %arg2: i32) -> (i32, i32) {
    %c0_i32 = arith.constant 0 : i32
    %c0_i32_0 = arith.constant 0 : i32
    return %c0_i32, %arg1 : i32, i32
  }
  func.func @transform_3(%arg0: i32, %arg1: i32, %arg2: i32) -> (i32, i32) {
    %c0_i32 = arith.constant 0 : i32
    return %arg0, %arg1 : i32, i32
  }
}

module attributes {stable_mosaic.version = 11 : i64} {
  func.func @_mm_kernel(%arg0: i32, %arg1: i32, %arg2: i32, %arg3: memref<32x256xbf16, #tpu.memory_space<vmem>>, %arg4: memref<256x256xbf16, #tpu.memory_space<vmem>>, %arg5: memref<1x256xf32, #tpu.memory_space<vmem>>, %arg6: memref<32x256xbf16, #tpu.memory_space<vmem>>, %arg7: memref<32x256xf32, #tpu.memory_space<vmem>>) attributes {dimension_semantics = [#tpu.dimension_semantics<parallel>, #tpu.dimension_semantics<parallel>, #tpu.dimension_semantics<arbitrary>], iteration_bounds = array<i64: 1, 1, 2>, scalar_prefetch = 0 : i64, scratch_operands = 1 : i64, tpu.core_type = #tpu.core_type<tc>, window_params = [{transform_indices = @transform_0, window_bounds = array<i64: 32, 256>}, {transform_indices = @transform_1, window_bounds = array<i64: 256, 256>}, {transform_indices = @transform_2, window_bounds = array<i64: 1, 256>}, {transform_indices = @transform_3, window_bounds = array<i64: 32, 256>}]} {
    %c0_i32 = arith.constant 0 : i32
    %0 = arith.cmpi eq, %arg2, %c0_i32 : i32
    %1 = arith.extui %0 : i1 to i32
    %c0_i32_0 = arith.constant 0 : i32
    %2 = arith.cmpi ne, %1, %c0_i32_0 : i32
    scf.if %2 {
      %cst_9 = arith.constant 0.000000e+00 : f32
      %12 = vector.broadcast %cst_9 : f32 to vector<32x256xf32>
      %c0_10 = arith.constant 0 : index
      %c0_11 = arith.constant 0 : index
      %13 = vector.load %arg7[%c0_10, %c0_11] : memref<32x256xf32, #tpu.memory_space<vmem>>, vector<32x256xf32>
      tpu.vector_store %arg7[%c0_10, %c0_11], %12 {strides = array<i32>} : memref<32x256xf32, #tpu.memory_space<vmem>>, vector<32x256xf32>,
    } else {
    }
    %c0 = arith.constant 0 : index
    %c0_1 = arith.constant 0 : index
    %3 = vector.load %arg7[%c0, %c0_1] : memref<32x256xf32, #tpu.memory_space<vmem>>, vector<32x256xf32>
    %c0_2 = arith.constant 0 : index
    %c0_3 = arith.constant 0 : index
    %4 = vector.load %arg3[%c0_2, %c0_3] : memref<32x256xbf16, #tpu.memory_space<vmem>>, vector<32x256xbf16>
    %c0_4 = arith.constant 0 : index
    %c0_5 = arith.constant 0 : index
    %5 = vector.load %arg4[%c0_4, %c0_5] : memref<256x256xbf16, #tpu.memory_space<vmem>>, vector<256x256xbf16>
    %cst = arith.constant dense<0.000000e+00> : vector<32x256xf32>
    %6 = tpu.matmul %4, %5, %cst {dimension_numbers = #tpu.dot_dimension_numbers<[1], [0], [0], [1], [0, 0, 1, 1], [], []>} : vector<32x256xbf16>, vector<256x256xbf16>, vector<32x256xf32> -> vector<32x256xf32>
    %7 = arith.addf %3, %6 : vector<32x256xf32>
    %c0_6 = arith.constant 0 : index
    %c0_7 = arith.constant 0 : index
    %8 = vector.load %arg7[%c0_6, %c0_7] : memref<32x256xf32, #tpu.memory_space<vmem>>, vector<32x256xf32>
    tpu.vector_store %arg7[%c0_6, %c0_7], %7 {strides = array<i32>} : memref<32x256xf32, #tpu.memory_space<vmem>>, vector<32x256xf32>,
    %c1_i32 = arith.constant 1 : i32
    %9 = arith.cmpi eq, %arg2, %c1_i32 : i32
    %10 = arith.extui %9 : i1 to i32
    %c0_i32_8 = arith.constant 0 : i32
    %11 = arith.cmpi ne, %10, %c0_i32_8 : i32
    scf.if %11 {
      %c0_9 = arith.constant 0 : index
      %c0_10 = arith.constant 0 : index
      %12 = vector.load %arg7[%c0_9, %c0_10] : memref<32x256xf32, #tpu.memory_space<vmem>>, vector<32x256xf32>
      %c0_11 = arith.constant 0 : index
      %c0_12 = arith.constant 0 : index
      %13 = vector.load %arg5[%c0_11, %c0_12] : memref<1x256xf32, #tpu.memory_space<vmem>>, vector<1x256xf32>
      %14 = vector.broadcast %13 : vector<1x256xf32> to vector<32x256xf32>
      %15 = arith.addf %12, %14 : vector<32x256xf32>
      %cst_13 = arith.constant 0.000000e+00 : f32
      %16 = vector.broadcast %cst_13 : f32 to vector<32x256xf32>
      %17 = arith.maximumf %15, %16 : vector<32x256xf32>
      %18 = arith.truncf %17 : vector<32x256xf32> to vector<32x256xbf16>
      %c0_14 = arith.constant 0 : index
      %c0_15 = arith.constant 0 : index
      %19 = vector.load %arg6[%c0_14, %c0_15] : memref<32x256xbf16, #tpu.memory_space<vmem>>, vector<32x256xbf16>
      tpu.vector_store %arg6[%c0_14, %c0_15], %18 {strides = array<i32>} : memref<32x256xbf16, #tpu.memory_space<vmem>>, vector<32x256xbf16>,
    } else {
    }
    return
  }
  func.func @transform_0(%arg0: i32, %arg1: i32, %arg2: i32) -> (i32, i32) {
    %c0_i32 = arith.constant 0 : i32
    return %arg0, %arg2 : i32, i32
  }
  func.func @transform_1(%arg0: i32, %arg1: i32, %arg2: i32) -> (i32, i32) {
    %c0_i32 = arith.constant 0 : i32
    return %arg2, %arg1 : i32, i32
  }
  func.func @transform_2(%arg0: i32, %arg1: i32, %arg2: i32) -> (i32, i32) {
    %c0_i32 = arith.constant 0 : i32
    %c0_i32_0 = arith.constant 0 : i32
    return %c0_i32, %arg1 : i32, i32
  }
  func.func @transform_3(%arg0: i32, %arg1: i32, %arg2: i32) -> (i32, i32) {
    %c0_i32 = arith.constant 0 : i32
    return %arg0, %arg1 : i32, i32
  }
}

module attributes {stable_mosaic.version = 11 : i64} {
  func.func @_mm_kernel(%arg0: i32, %arg1: i32, %arg2: i32, %arg3: memref<8x256xbf16, #tpu.memory_space<vmem>>, %arg4: memref<256x256xbf16, #tpu.memory_space<vmem>>, %arg5: memref<1x256xf32, #tpu.memory_space<vmem>>, %arg6: memref<8x256xbf16, #tpu.memory_space<vmem>>, %arg7: memref<8x256xf32, #tpu.memory_space<vmem>>) attributes {dimension_semantics = [#tpu.dimension_semantics<parallel>, #tpu.dimension_semantics<parallel>, #tpu.dimension_semantics<arbitrary>], iteration_bounds = array<i64: 1, 1, 9>, scalar_prefetch = 0 : i64, scratch_operands = 1 : i64, tpu.core_type = #tpu.core_type<tc>, window_params = [{transform_indices = @transform_0, window_bounds = array<i64: 8, 256>}, {transform_indices = @transform_1, window_bounds = array<i64: 256, 256>}, {transform_indices = @transform_2, window_bounds = array<i64: 1, 256>}, {transform_indices = @transform_3, window_bounds = array<i64: 8, 256>}]} {
    %c0_i32 = arith.constant 0 : i32
    %0 = arith.cmpi eq, %arg2, %c0_i32 : i32
    %1 = arith.extui %0 : i1 to i32
    %c0_i32_0 = arith.constant 0 : i32
    %2 = arith.cmpi ne, %1, %c0_i32_0 : i32
    scf.if %2 {
      %cst_9 = arith.constant 0.000000e+00 : f32
      %12 = vector.broadcast %cst_9 : f32 to vector<8x256xf32>
      %c0_10 = arith.constant 0 : index
      %c0_11 = arith.constant 0 : index
      %13 = vector.load %arg7[%c0_10, %c0_11] : memref<8x256xf32, #tpu.memory_space<vmem>>, vector<8x256xf32>
      tpu.vector_store %arg7[%c0_10, %c0_11], %12 {strides = array<i32>} : memref<8x256xf32, #tpu.memory_space<vmem>>, vector<8x256xf32>,
    } else {
    }
    %c0 = arith.constant 0 : index
    %c0_1 = arith.constant 0 : index
    %3 = vector.load %arg7[%c0, %c0_1] : memref<8x256xf32, #tpu.memory_space<vmem>>, vector<8x256xf32>
    %c0_2 = arith.constant 0 : index
    %c0_3 = arith.constant 0 : index
    %4 = vector.load %arg3[%c0_2, %c0_3] : memref<8x256xbf16, #tpu.memory_space<vmem>>, vector<8x256xbf16>
    %c0_4 = arith.constant 0 : index
    %c0_5 = arith.constant 0 : index
    %5 = vector.load %arg4[%c0_4, %c0_5] : memref<256x256xbf16, #tpu.memory_space<vmem>>, vector<256x256xbf16>
    %cst = arith.constant dense<0.000000e+00> : vector<8x256xf32>
    %6 = tpu.matmul %4, %5, %cst {dimension_numbers = #tpu.dot_dimension_numbers<[1], [0], [0], [1], [0, 0, 1, 1], [], []>} : vector<8x256xbf16>, vector<256x256xbf16>, vector<8x256xf32> -> vector<8x256xf32>
    %7 = arith.addf %3, %6 : vector<8x256xf32>
    %c0_6 = arith.constant 0 : index
    %c0_7 = arith.constant 0 : index
    %8 = vector.load %arg7[%c0_6, %c0_7] : memref<8x256xf32, #tpu.memory_space<vmem>>, vector<8x256xf32>
    tpu.vector_store %arg7[%c0_6, %c0_7], %7 {strides = array<i32>} : memref<8x256xf32, #tpu.memory_space<vmem>>, vector<8x256xf32>,
    %c8_i32 = arith.constant 8 : i32
    %9 = arith.cmpi eq, %arg2, %c8_i32 : i32
    %10 = arith.extui %9 : i1 to i32
    %c0_i32_8 = arith.constant 0 : i32
    %11 = arith.cmpi ne, %10, %c0_i32_8 : i32
    scf.if %11 {
      %c0_9 = arith.constant 0 : index
      %c0_10 = arith.constant 0 : index
      %12 = vector.load %arg7[%c0_9, %c0_10] : memref<8x256xf32, #tpu.memory_space<vmem>>, vector<8x256xf32>
      %c0_11 = arith.constant 0 : index
      %c0_12 = arith.constant 0 : index
      %13 = vector.load %arg5[%c0_11, %c0_12] : memref<1x256xf32, #tpu.memory_space<vmem>>, vector<1x256xf32>
      %14 = vector.broadcast %13 : vector<1x256xf32> to vector<8x256xf32>
      %15 = arith.addf %12, %14 : vector<8x256xf32>
      %cst_13 = arith.constant 0.000000e+00 : f32
      %16 = vector.broadcast %cst_13 : f32 to vector<8x256xf32>
      %17 = arith.maximumf %15, %16 : vector<8x256xf32>
      %18 = arith.truncf %17 : vector<8x256xf32> to vector<8x256xbf16>
      %c0_14 = arith.constant 0 : index
      %c0_15 = arith.constant 0 : index
      %19 = vector.load %arg6[%c0_14, %c0_15] : memref<8x256xbf16, #tpu.memory_space<vmem>>, vector<8x256xbf16>
      tpu.vector_store %arg6[%c0_14, %c0_15], %18 {strides = array<i32>} : memref<8x256xbf16, #tpu.memory_space<vmem>>, vector<8x256xbf16>,
    } else {
    }
    return
  }
  func.func @transform_0(%arg0: i32, %arg1: i32, %arg2: i32) -> (i32, i32) {
    %c0_i32 = arith.constant 0 : i32
    return %arg0, %arg2 : i32, i32
  }
  func.func @transform_1(%arg0: i32, %arg1: i32, %arg2: i32) -> (i32, i32) {
    %c0_i32 = arith.constant 0 : i32
    return %arg2, %arg1 : i32, i32
  }
  func.func @transform_2(%arg0: i32, %arg1: i32, %arg2: i32) -> (i32, i32) {
    %c0_i32 = arith.constant 0 : i32
    %c0_i32_0 = arith.constant 0 : i32
    return %c0_i32, %arg1 : i32, i32
  }
  func.func @transform_3(%arg0: i32, %arg1: i32, %arg2: i32) -> (i32, i32) {
    %c0_i32 = arith.constant 0 : i32
    return %arg0, %arg1 : i32, i32
  }
}

module attributes {stable_mosaic.version = 11 : i64} {
  func.func @_mm_kernel(%arg0: i32, %arg1: i32, %arg2: i32, %arg3: memref<8x256xbf16, #tpu.memory_space<vmem>>, %arg4: memref<256x256xbf16, #tpu.memory_space<vmem>>, %arg5: memref<1x256xf32, #tpu.memory_space<vmem>>, %arg6: memref<8x256xbf16, #tpu.memory_space<vmem>>, %arg7: memref<8x256xbf16, #tpu.memory_space<vmem>>, %arg8: memref<8x256xf32, #tpu.memory_space<vmem>>) attributes {dimension_semantics = [#tpu.dimension_semantics<parallel>, #tpu.dimension_semantics<parallel>, #tpu.dimension_semantics<arbitrary>], iteration_bounds = array<i64: 1, 4, 1>, scalar_prefetch = 0 : i64, scratch_operands = 1 : i64, tpu.core_type = #tpu.core_type<tc>, window_params = [{transform_indices = @transform_0, window_bounds = array<i64: 8, 256>}, {transform_indices = @transform_1, window_bounds = array<i64: 256, 256>}, {transform_indices = @transform_2, window_bounds = array<i64: 1, 256>}, {transform_indices = @transform_3, window_bounds = array<i64: 8, 256>}, {transform_indices = @transform_4, window_bounds = array<i64: 8, 256>}]} {
    %c0_i32 = arith.constant 0 : i32
    %0 = arith.cmpi eq, %arg2, %c0_i32 : i32
    %1 = arith.extui %0 : i1 to i32
    %c0_i32_0 = arith.constant 0 : i32
    %2 = arith.cmpi ne, %1, %c0_i32_0 : i32
    scf.if %2 {
      %cst_10 = arith.constant 0.000000e+00 : f32
      %12 = vector.broadcast %cst_10 : f32 to vector<8x256xf32>
      %c0_11 = arith.constant 0 : index
      %c0_12 = arith.constant 0 : index
      %13 = vector.load %arg8[%c0_11, %c0_12] : memref<8x256xf32, #tpu.memory_space<vmem>>, vector<8x256xf32>
      tpu.vector_store %arg8[%c0_11, %c0_12], %12 {strides = array<i32>} : memref<8x256xf32, #tpu.memory_space<vmem>>, vector<8x256xf32>,
    } else {
    }
    %c0 = arith.constant 0 : index
    %c0_1 = arith.constant 0 : index
    %3 = vector.load %arg8[%c0, %c0_1] : memref<8x256xf32, #tpu.memory_space<vmem>>, vector<8x256xf32>
    %c0_2 = arith.constant 0 : index
    %c0_3 = arith.constant 0 : index
    %4 = vector.load %arg3[%c0_2, %c0_3] : memref<8x256xbf16, #tpu.memory_space<vmem>>, vector<8x256xbf16>
    %c0_4 = arith.constant 0 : index
    %c0_5 = arith.constant 0 : index
    %5 = vector.load %arg4[%c0_4, %c0_5] : memref<256x256xbf16, #tpu.memory_space<vmem>>, vector<256x256xbf16>
    %cst = arith.constant dense<0.000000e+00> : vector<8x256xf32>
    %6 = tpu.matmul %4, %5, %cst {dimension_numbers = #tpu.dot_dimension_numbers<[1], [0], [0], [1], [0, 0, 1, 1], [], []>} : vector<8x256xbf16>, vector<256x256xbf16>, vector<8x256xf32> -> vector<8x256xf32>
    %7 = arith.addf %3, %6 : vector<8x256xf32>
    %c0_6 = arith.constant 0 : index
    %c0_7 = arith.constant 0 : index
    %8 = vector.load %arg8[%c0_6, %c0_7] : memref<8x256xf32, #tpu.memory_space<vmem>>, vector<8x256xf32>
    tpu.vector_store %arg8[%c0_6, %c0_7], %7 {strides = array<i32>} : memref<8x256xf32, #tpu.memory_space<vmem>>, vector<8x256xf32>,
    %c0_i32_8 = arith.constant 0 : i32
    %9 = arith.cmpi eq, %arg2, %c0_i32_8 : i32
    %10 = arith.extui %9 : i1 to i32
    %c0_i32_9 = arith.constant 0 : i32
    %11 = arith.cmpi ne, %10, %c0_i32_9 : i32
    scf.if %11 {
      %c0_10 = arith.constant 0 : index
      %c0_11 = arith.constant 0 : index
      %12 = vector.load %arg8[%c0_10, %c0_11] : memref<8x256xf32, #tpu.memory_space<vmem>>, vector<8x256xf32>
      %c0_12 = arith.constant 0 : index
      %c0_13 = arith.constant 0 : index
      %13 = vector.load %arg5[%c0_12, %c0_13] : memref<1x256xf32, #tpu.memory_space<vmem>>, vector<1x256xf32>
      %14 = vector.broadcast %13 : vector<1x256xf32> to vector<8x256xf32>
      %15 = arith.addf %12, %14 : vector<8x256xf32>
      %c0_14 = arith.constant 0 : index
      %c0_15 = arith.constant 0 : index
      %16 = vector.load %arg6[%c0_14, %c0_15] : memref<8x256xbf16, #tpu.memory_space<vmem>>, vector<8x256xbf16>
      %17 = arith.extf %16 : vector<8x256xbf16> to vector<8x256xf32>
      %18 = arith.addf %15, %17 : vector<8x256xf32>
      %cst_16 = arith.constant 0.000000e+00 : f32
      %19 = vector.broadcast %cst_16 : f32 to vector<8x256xf32>
      %20 = arith.maximumf %18, %19 : vector<8x256xf32>
      %21 = arith.truncf %20 : vector<8x256xf32> to vector<8x256xbf16>
      %c0_17 = arith.constant 0 : index
      %c0_18 = arith.constant 0 : index
      %22 = vector.load %arg7[%c0_17, %c0_18] : memref<8x256xbf16, #tpu.memory_space<vmem>>, vector<8x256xbf16>
      tpu.vector_store %arg7[%c0_17, %c0_18], %21 {strides = array<i32>} : memref<8x256xbf16, #tpu.memory_space<vmem>>, vector<8x256xbf16>,
    } else {
    }
    return
  }
  func.func @transform_0(%arg0: i32, %arg1: i32, %arg2: i32) -> (i32, i32) {
    %c0_i32 = arith.constant 0 : i32
    return %arg0, %arg2 : i32, i32
  }
  func.func @transform_1(%arg0: i32, %arg1: i32, %arg2: i32) -> (i32, i32) {
    %c0_i32 = arith.constant 0 : i32
    return %arg2, %arg1 : i32, i32
  }
  func.func @transform_2(%arg0: i32, %arg1: i32, %arg2: i32) -> (i32, i32) {
    %c0_i32 = arith.constant 0 : i32
    %c0_i32_0 = arith.constant 0 : i32
    return %c0_i32, %arg1 : i32, i32
  }
  func.func @transform_3(%arg0: i32, %arg1: i32, %arg2: i32) -> (i32, i32) {
    %c0_i32 = arith.constant 0 : i32
    return %arg0, %arg1 : i32, i32
  }
  func.func @transform_4(%arg0: i32, %arg1: i32, %arg2: i32) -> (i32, i32) {
    %c0_i32 = arith.constant 0 : i32
    return %arg0, %arg1 : i32, i32
  }
}

module attributes {stable_mosaic.version = 11 : i64} {
  func.func @_mm_kernel(%arg0: i32, %arg1: i32, %arg2: i32, %arg3: memref<8x256xbf16, #tpu.memory_space<vmem>>, %arg4: memref<256x256xbf16, #tpu.memory_space<vmem>>, %arg5: memref<1x256xf32, #tpu.memory_space<vmem>>, %arg6: memref<8x256xbf16, #tpu.memory_space<vmem>>, %arg7: memref<8x256xf32, #tpu.memory_space<vmem>>) attributes {dimension_semantics = [#tpu.dimension_semantics<parallel>, #tpu.dimension_semantics<parallel>, #tpu.dimension_semantics<arbitrary>], iteration_bounds = array<i64: 1, 4, 2>, scalar_prefetch = 0 : i64, scratch_operands = 1 : i64, tpu.core_type = #tpu.core_type<tc>, window_params = [{transform_indices = @transform_0, window_bounds = array<i64: 8, 256>}, {transform_indices = @transform_1, window_bounds = array<i64: 256, 256>}, {transform_indices = @transform_2, window_bounds = array<i64: 1, 256>}, {transform_indices = @transform_3, window_bounds = array<i64: 8, 256>}]} {
    %c0_i32 = arith.constant 0 : i32
    %0 = arith.cmpi eq, %arg2, %c0_i32 : i32
    %1 = arith.extui %0 : i1 to i32
    %c0_i32_0 = arith.constant 0 : i32
    %2 = arith.cmpi ne, %1, %c0_i32_0 : i32
    scf.if %2 {
      %cst_9 = arith.constant 0.000000e+00 : f32
      %12 = vector.broadcast %cst_9 : f32 to vector<8x256xf32>
      %c0_10 = arith.constant 0 : index
      %c0_11 = arith.constant 0 : index
      %13 = vector.load %arg7[%c0_10, %c0_11] : memref<8x256xf32, #tpu.memory_space<vmem>>, vector<8x256xf32>
      tpu.vector_store %arg7[%c0_10, %c0_11], %12 {strides = array<i32>} : memref<8x256xf32, #tpu.memory_space<vmem>>, vector<8x256xf32>,
    } else {
    }
    %c0 = arith.constant 0 : index
    %c0_1 = arith.constant 0 : index
    %3 = vector.load %arg7[%c0, %c0_1] : memref<8x256xf32, #tpu.memory_space<vmem>>, vector<8x256xf32>
    %c0_2 = arith.constant 0 : index
    %c0_3 = arith.constant 0 : index
    %4 = vector.load %arg3[%c0_2, %c0_3] : memref<8x256xbf16, #tpu.memory_space<vmem>>, vector<8x256xbf16>
    %c0_4 = arith.constant 0 : index
    %c0_5 = arith.constant 0 : index
    %5 = vector.load %arg4[%c0_4, %c0_5] : memref<256x256xbf16, #tpu.memory_space<vmem>>, vector<256x256xbf16>
    %cst = arith.constant dense<0.000000e+00> : vector<8x256xf32>
    %6 = tpu.matmul %4, %5, %cst {dimension_numbers = #tpu.dot_dimension_numbers<[1], [0], [0], [1], [0, 0, 1, 1], [], []>} : vector<8x256xbf16>, vector<256x256xbf16>, vector<8x256xf32> -> vector<8x256xf32>
    %7 = arith.addf %3, %6 : vector<8x256xf32>
    %c0_6 = arith.constant 0 : index
    %c0_7 = arith.constant 0 : index
    %8 = vector.load %arg7[%c0_6, %c0_7] : memref<8x256xf32, #tpu.memory_space<vmem>>, vector<8x256xf32>
    tpu.vector_store %arg7[%c0_6, %c0_7], %7 {strides = array<i32>} : memref<8x256xf32, #tpu.memory_space<vmem>>, vector<8x256xf32>,
    %c1_i32 = arith.constant 1 : i32
    %9 = arith.cmpi eq, %arg2, %c1_i32 : i32
    %10 = arith.extui %9 : i1 to i32
    %c0_i32_8 = arith.constant 0 : i32
    %11 = arith.cmpi ne, %10, %c0_i32_8 : i32
    scf.if %11 {
      %c0_9 = arith.constant 0 : index
      %c0_10 = arith.constant 0 : index
      %12 = vector.load %arg7[%c0_9, %c0_10] : memref<8x256xf32, #tpu.memory_space<vmem>>, vector<8x256xf32>
      %c0_11 = arith.constant 0 : index
      %c0_12 = arith.constant 0 : index
      %13 = vector.load %arg5[%c0_11, %c0_12] : memref<1x256xf32, #tpu.memory_space<vmem>>, vector<1x256xf32>
      %14 = vector.broadcast %13 : vector<1x256xf32> to vector<8x256xf32>
      %15 = arith.addf %12, %14 : vector<8x256xf32>
      %16 = arith.truncf %15 : vector<8x256xf32> to vector<8x256xbf16>
      %c0_13 = arith.constant 0 : index
      %c0_14 = arith.constant 0 : index
      %17 = vector.load %arg6[%c0_13, %c0_14] : memref<8x256xbf16, #tpu.memory_space<vmem>>, vector<8x256xbf16>
      tpu.vector_store %arg6[%c0_13, %c0_14], %16 {strides = array<i32>} : memref<8x256xbf16, #tpu.memory_space<vmem>>, vector<8x256xbf16>,
    } else {
    }
    return
  }
  func.func @transform_0(%arg0: i32, %arg1: i32, %arg2: i32) -> (i32, i32) {
    %c0_i32 = arith.constant 0 : i32
    return %arg0, %arg2 : i32, i32
  }
  func.func @transform_1(%arg0: i32, %arg1: i32, %arg2: i32) -> (i32, i32) {
    %c0_i32 = arith.constant 0 : i32
    return %arg2, %arg1 : i32, i32
  }
  func.func @transform_2(%arg0: i32, %arg1: i32, %arg2: i32) -> (i32, i32) {
    %c0_i32 = arith.constant 0 : i32
    %c0_i32_0 = arith.constant 0 : i32
    return %c0_i32, %arg1 : i32, i32
  }
  func.func @transform_3(%arg0: i32, %arg1: i32, %arg2: i32) -> (i32, i32) {
    %c0_i32 = arith.constant 0 : i32
    return %arg0, %arg1 : i32, i32
  }
}

module attributes {stable_mosaic.version = 11 : i64} {
  func.func @_mm_kernel(%arg0: i32, %arg1: i32, %arg2: i32, %arg3: memref<8x256xbf16, #tpu.memory_space<vmem>>, %arg4: memref<256x256xbf16, #tpu.memory_space<vmem>>, %arg5: memref<1x256xf32, #tpu.memory_space<vmem>>, %arg6: memref<8x256xbf16, #tpu.memory_space<vmem>>, %arg7: memref<8x256xf32, #tpu.memory_space<vmem>>) attributes {dimension_semantics = [#tpu.dimension_semantics<parallel>, #tpu.dimension_semantics<parallel>, #tpu.dimension_semantics<arbitrary>], iteration_bounds = array<i64: 1, 1, 4>, scalar_prefetch = 0 : i64, scratch_operands = 1 : i64, tpu.core_type = #tpu.core_type<tc>, window_params = [{transform_indices = @transform_0, window_bounds = array<i64: 8, 256>}, {transform_indices = @transform_1, window_bounds = array<i64: 256, 256>}, {transform_indices = @transform_2, window_bounds = array<i64: 1, 256>}, {transform_indices = @transform_3, window_bounds = array<i64: 8, 256>}]} {
    %c0_i32 = arith.constant 0 : i32
    %0 = arith.cmpi eq, %arg2, %c0_i32 : i32
    %1 = arith.extui %0 : i1 to i32
    %c0_i32_0 = arith.constant 0 : i32
    %2 = arith.cmpi ne, %1, %c0_i32_0 : i32
    scf.if %2 {
      %cst_9 = arith.constant 0.000000e+00 : f32
      %12 = vector.broadcast %cst_9 : f32 to vector<8x256xf32>
      %c0_10 = arith.constant 0 : index
      %c0_11 = arith.constant 0 : index
      %13 = vector.load %arg7[%c0_10, %c0_11] : memref<8x256xf32, #tpu.memory_space<vmem>>, vector<8x256xf32>
      tpu.vector_store %arg7[%c0_10, %c0_11], %12 {strides = array<i32>} : memref<8x256xf32, #tpu.memory_space<vmem>>, vector<8x256xf32>,
    } else {
    }
    %c0 = arith.constant 0 : index
    %c0_1 = arith.constant 0 : index
    %3 = vector.load %arg7[%c0, %c0_1] : memref<8x256xf32, #tpu.memory_space<vmem>>, vector<8x256xf32>
    %c0_2 = arith.constant 0 : index
    %c0_3 = arith.constant 0 : index
    %4 = vector.load %arg3[%c0_2, %c0_3] : memref<8x256xbf16, #tpu.memory_space<vmem>>, vector<8x256xbf16>
    %c0_4 = arith.constant 0 : index
    %c0_5 = arith.constant 0 : index
    %5 = vector.load %arg4[%c0_4, %c0_5] : memref<256x256xbf16, #tpu.memory_space<vmem>>, vector<256x256xbf16>
    %cst = arith.constant dense<0.000000e+00> : vector<8x256xf32>
    %6 = tpu.matmul %4, %5, %cst {dimension_numbers = #tpu.dot_dimension_numbers<[1], [0], [0], [1], [0, 0, 1, 1], [], []>} : vector<8x256xbf16>, vector<256x256xbf16>, vector<8x256xf32> -> vector<8x256xf32>
    %7 = arith.addf %3, %6 : vector<8x256xf32>
    %c0_6 = arith.constant 0 : index
    %c0_7 = arith.constant 0 : index
    %8 = vector.load %arg7[%c0_6, %c0_7] : memref<8x256xf32, #tpu.memory_space<vmem>>, vector<8x256xf32>
    tpu.vector_store %arg7[%c0_6, %c0_7], %7 {strides = array<i32>} : memref<8x256xf32, #tpu.memory_space<vmem>>, vector<8x256xf32>,
    %c3_i32 = arith.constant 3 : i32
    %9 = arith.cmpi eq, %arg2, %c3_i32 : i32
    %10 = arith.extui %9 : i1 to i32
    %c0_i32_8 = arith.constant 0 : i32
    %11 = arith.cmpi ne, %10, %c0_i32_8 : i32
    scf.if %11 {
      %c0_9 = arith.constant 0 : index
      %c0_10 = arith.constant 0 : index
      %12 = vector.load %arg7[%c0_9, %c0_10] : memref<8x256xf32, #tpu.memory_space<vmem>>, vector<8x256xf32>
      %c0_11 = arith.constant 0 : index
      %c0_12 = arith.constant 0 : index
      %13 = vector.load %arg5[%c0_11, %c0_12] : memref<1x256xf32, #tpu.memory_space<vmem>>, vector<1x256xf32>
      %14 = vector.broadcast %13 : vector<1x256xf32> to vector<8x256xf32>
      %15 = arith.addf %12, %14 : vector<8x256xf32>
      %cst_13 = arith.constant 0.000000e+00 : f32
      %16 = vector.broadcast %cst_13 : f32 to vector<8x256xf32>
      %17 = arith.maximumf %15, %16 : vector<8x256xf32>
      %18 = arith.truncf %17 : vector<8x256xf32> to vector<8x256xbf16>
      %c0_14 = arith.constant 0 : index
      %c0_15 = arith.constant 0 : index
      %19 = vector.load %arg6[%c0_14, %c0_15] : memref<8x256xbf16, #tpu.memory_space<vmem>>, vector<8x256xbf16>
      tpu.vector_store %arg6[%c0_14, %c0_15], %18 {strides = array<i32>} : memref<8x256xbf16, #tpu.memory_space<vmem>>, vector<8x256xbf16>,
    } else {
    }
    return
  }
  func.func @transform_0(%arg0: i32, %arg1: i32, %arg2: i32) -> (i32, i32) {
    %c0_i32 = arith.constant 0 : i32
    return %arg0, %arg2 : i32, i32
  }
  func.func @transform_1(%arg0: i32, %arg1: i32, %arg2: i32) -> (i32, i32) {
    %c0_i32 = arith.constant 0 : i32
    return %arg2, %arg1 : i32, i32
  }
  func.func @transform_2(%arg0: i32, %arg1: i32, %arg2: i32) -> (i32, i32) {
    %c0_i32 = arith.constant 0 : i32
    %c0_i32_0 = arith.constant 0 : i32
    return %c0_i32, %arg1 : i32, i32
  }
  func.func @transform_3(%arg0: i32, %arg1: i32, %arg2: i32) -> (i32, i32) {
    %c0_i32 = arith.constant 0 : i32
    return %arg0, %arg1 : i32, i32
  }
}

module attributes {stable_mosaic.version = 11 : i64} {
  func.func @_mm_kernel(%arg0: i32, %arg1: i32, %arg2: i32, %arg3: memref<8x256xbf16, #tpu.memory_space<vmem>>, %arg4: memref<256x256xbf16, #tpu.memory_space<vmem>>, %arg5: memref<1x256xf32, #tpu.memory_space<vmem>>, %arg6: memref<8x256xbf16, #tpu.memory_space<vmem>>, %arg7: memref<8x256xf32, #tpu.memory_space<vmem>>) attributes {dimension_semantics = [#tpu.dimension_semantics<parallel>, #tpu.dimension_semantics<parallel>, #tpu.dimension_semantics<arbitrary>], iteration_bounds = array<i64: 1, 1, 9>, scalar_prefetch = 0 : i64, scratch_operands = 1 : i64, tpu.core_type = #tpu.core_type<tc>, window_params = [{transform_indices = @transform_0, window_bounds = array<i64: 8, 256>}, {transform_indices = @transform_1, window_bounds = array<i64: 256, 256>}, {transform_indices = @transform_2, window_bounds = array<i64: 1, 256>}, {transform_indices = @transform_3, window_bounds = array<i64: 8, 256>}]} {
    %c0_i32 = arith.constant 0 : i32
    %0 = arith.cmpi eq, %arg2, %c0_i32 : i32
    %1 = arith.extui %0 : i1 to i32
    %c0_i32_0 = arith.constant 0 : i32
    %2 = arith.cmpi ne, %1, %c0_i32_0 : i32
    scf.if %2 {
      %cst_9 = arith.constant 0.000000e+00 : f32
      %12 = vector.broadcast %cst_9 : f32 to vector<8x256xf32>
      %c0_10 = arith.constant 0 : index
      %c0_11 = arith.constant 0 : index
      %13 = vector.load %arg7[%c0_10, %c0_11] : memref<8x256xf32, #tpu.memory_space<vmem>>, vector<8x256xf32>
      tpu.vector_store %arg7[%c0_10, %c0_11], %12 {strides = array<i32>} : memref<8x256xf32, #tpu.memory_space<vmem>>, vector<8x256xf32>,
    } else {
    }
    %c0 = arith.constant 0 : index
    %c0_1 = arith.constant 0 : index
    %3 = vector.load %arg7[%c0, %c0_1] : memref<8x256xf32, #tpu.memory_space<vmem>>, vector<8x256xf32>
    %c0_2 = arith.constant 0 : index
    %c0_3 = arith.constant 0 : index
    %4 = vector.load %arg3[%c0_2, %c0_3] : memref<8x256xbf16, #tpu.memory_space<vmem>>, vector<8x256xbf16>
    %c0_4 = arith.constant 0 : index
    %c0_5 = arith.constant 0 : index
    %5 = vector.load %arg4[%c0_4, %c0_5] : memref<256x256xbf16, #tpu.memory_space<vmem>>, vector<256x256xbf16>
    %cst = arith.constant dense<0.000000e+00> : vector<8x256xf32>
    %6 = tpu.matmul %4, %5, %cst {dimension_numbers = #tpu.dot_dimension_numbers<[1], [0], [0], [1], [0, 0, 1, 1], [], []>} : vector<8x256xbf16>, vector<256x256xbf16>, vector<8x256xf32> -> vector<8x256xf32>
    %7 = arith.addf %3, %6 : vector<8x256xf32>
    %c0_6 = arith.constant 0 : index
    %c0_7 = arith.constant 0 : index
    %8 = vector.load %arg7[%c0_6, %c0_7] : memref<8x256xf32, #tpu.memory_space<vmem>>, vector<8x256xf32>
    tpu.vector_store %arg7[%c0_6, %c0_7], %7 {strides = array<i32>} : memref<8x256xf32, #tpu.memory_space<vmem>>, vector<8x256xf32>,
    %c8_i32 = arith.constant 8 : i32
    %9 = arith.cmpi eq, %arg2, %c8_i32 : i32
    %10 = arith.extui %9 : i1 to i32
    %c0_i32_8 = arith.constant 0 : i32
    %11 = arith.cmpi ne, %10, %c0_i32_8 : i32
    scf.if %11 {
      %c0_9 = arith.constant 0 : index
      %c0_10 = arith.constant 0 : index
      %12 = vector.load %arg7[%c0_9, %c0_10] : memref<8x256xf32, #tpu.memory_space<vmem>>, vector<8x256xf32>
      %c0_11 = arith.constant 0 : index
      %c0_12 = arith.constant 0 : index
      %13 = vector.load %arg5[%c0_11, %c0_12] : memref<1x256xf32, #tpu.memory_space<vmem>>, vector<1x256xf32>
      %14 = vector.broadcast %13 : vector<1x256xf32> to vector<8x256xf32>
      %15 = arith.addf %12, %14 : vector<8x256xf32>
      %cst_13 = arith.constant 0.000000e+00 : f32
      %16 = vector.broadcast %cst_13 : f32 to vector<8x256xf32>
      %17 = arith.maximumf %15, %16 : vector<8x256xf32>
      %18 = arith.truncf %17 : vector<8x256xf32> to vector<8x256xbf16>
      %c0_14 = arith.constant 0 : index
      %c0_15 = arith.constant 0 : index
      %19 = vector.load %arg6[%c0_14, %c0_15] : memref<8x256xbf16, #tpu.memory_space<vmem>>, vector<8x256xbf16>
      tpu.vector_store %arg6[%c0_14, %c0_15], %18 {strides = array<i32>} : memref<8x256xbf16, #tpu.memory_space<vmem>>, vector<8x256xbf16>,
    } else {
    }
    return
  }
  func.func @transform_0(%arg0: i32, %arg1: i32, %arg2: i32) -> (i32, i32) {
    %c0_i32 = arith.constant 0 : i32
    return %arg0, %arg2 : i32, i32
  }
  func.func @transform_1(%arg0: i32, %arg1: i32, %arg2: i32) -> (i32, i32) {
    %c0_i32 = arith.constant 0 : i32
    return %arg2, %arg1 : i32, i32
  }
  func.func @transform_2(%arg0: i32, %arg1: i32, %arg2: i32) -> (i32, i32) {
    %c0_i32 = arith.constant 0 : i32
    %c0_i32_0 = arith.constant 0 : i32
    return %c0_i32, %arg1 : i32, i32
  }
  func.func @transform_3(%arg0: i32, %arg1: i32, %arg2: i32) -> (i32, i32) {
    %c0_i32 = arith.constant 0 : i32
    return %arg0, %arg1 : i32, i32
  }
}

module attributes {stable_mosaic.version = 11 : i64} {
  func.func @_mm_kernel(%arg0: i32, %arg1: i32, %arg2: i32, %arg3: memref<8x256xbf16, #tpu.memory_space<vmem>>, %arg4: memref<256x256xbf16, #tpu.memory_space<vmem>>, %arg5: memref<1x256xf32, #tpu.memory_space<vmem>>, %arg6: memref<8x256xbf16, #tpu.memory_space<vmem>>, %arg7: memref<8x256xf32, #tpu.memory_space<vmem>>) attributes {dimension_semantics = [#tpu.dimension_semantics<parallel>, #tpu.dimension_semantics<parallel>, #tpu.dimension_semantics<arbitrary>], iteration_bounds = array<i64: 1, 2, 4>, scalar_prefetch = 0 : i64, scratch_operands = 1 : i64, tpu.core_type = #tpu.core_type<tc>, window_params = [{transform_indices = @transform_0, window_bounds = array<i64: 8, 256>}, {transform_indices = @transform_1, window_bounds = array<i64: 256, 256>}, {transform_indices = @transform_2, window_bounds = array<i64: 1, 256>}, {transform_indices = @transform_3, window_bounds = array<i64: 8, 256>}]} {
    %c0_i32 = arith.constant 0 : i32
    %0 = arith.cmpi eq, %arg2, %c0_i32 : i32
    %1 = arith.extui %0 : i1 to i32
    %c0_i32_0 = arith.constant 0 : i32
    %2 = arith.cmpi ne, %1, %c0_i32_0 : i32
    scf.if %2 {
      %cst_9 = arith.constant 0.000000e+00 : f32
      %12 = vector.broadcast %cst_9 : f32 to vector<8x256xf32>
      %c0_10 = arith.constant 0 : index
      %c0_11 = arith.constant 0 : index
      %13 = vector.load %arg7[%c0_10, %c0_11] : memref<8x256xf32, #tpu.memory_space<vmem>>, vector<8x256xf32>
      tpu.vector_store %arg7[%c0_10, %c0_11], %12 {strides = array<i32>} : memref<8x256xf32, #tpu.memory_space<vmem>>, vector<8x256xf32>,
    } else {
    }
    %c0 = arith.constant 0 : index
    %c0_1 = arith.constant 0 : index
    %3 = vector.load %arg7[%c0, %c0_1] : memref<8x256xf32, #tpu.memory_space<vmem>>, vector<8x256xf32>
    %c0_2 = arith.constant 0 : index
    %c0_3 = arith.constant 0 : index
    %4 = vector.load %arg3[%c0_2, %c0_3] : memref<8x256xbf16, #tpu.memory_space<vmem>>, vector<8x256xbf16>
    %c0_4 = arith.constant 0 : index
    %c0_5 = arith.constant 0 : index
    %5 = vector.load %arg4[%c0_4, %c0_5] : memref<256x256xbf16, #tpu.memory_space<vmem>>, vector<256x256xbf16>
    %cst = arith.constant dense<0.000000e+00> : vector<8x256xf32>
    %6 = tpu.matmul %4, %5, %cst {dimension_numbers = #tpu.dot_dimension_numbers<[1], [0], [0], [1], [0, 0, 1, 1], [], []>} : vector<8x256xbf16>, vector<256x256xbf16>, vector<8x256xf32> -> vector<8x256xf32>
    %7 = arith.addf %3, %6 : vector<8x256xf32>
    %c0_6 = arith.constant 0 : index
    %c0_7 = arith.constant 0 : index
    %8 = vector.load %arg7[%c0_6, %c0_7] : memref<8x256xf32, #tpu.memory_space<vmem>>, vector<8x256xf32>
    tpu.vector_store %arg7[%c0_6, %c0_7], %7 {strides = array<i32>} : memref<8x256xf32, #tpu.memory_space<vmem>>, vector<8x256xf32>,
    %c3_i32 = arith.constant 3 : i32
    %9 = arith.cmpi eq, %arg2, %c3_i32 : i32
    %10 = arith.extui %9 : i1 to i32
    %c0_i32_8 = arith.constant 0 : i32
    %11 = arith.cmpi ne, %10, %c0_i32_8 : i32
    scf.if %11 {
      %c0_9 = arith.constant 0 : index
      %c0_10 = arith.constant 0 : index
      %12 = vector.load %arg7[%c0_9, %c0_10] : memref<8x256xf32, #tpu.memory_space<vmem>>, vector<8x256xf32>
      %c0_11 = arith.constant 0 : index
      %c0_12 = arith.constant 0 : index
      %13 = vector.load %arg5[%c0_11, %c0_12] : memref<1x256xf32, #tpu.memory_space<vmem>>, vector<1x256xf32>
      %14 = vector.broadcast %13 : vector<1x256xf32> to vector<8x256xf32>
      %15 = arith.addf %12, %14 : vector<8x256xf32>
      %cst_13 = arith.constant 0.000000e+00 : f32
      %16 = vector.broadcast %cst_13 : f32 to vector<8x256xf32>
      %17 = arith.maximumf %15, %16 : vector<8x256xf32>
      %18 = arith.truncf %17 : vector<8x256xf32> to vector<8x256xbf16>
      %c0_14 = arith.constant 0 : index
      %c0_15 = arith.constant 0 : index
      %19 = vector.load %arg6[%c0_14, %c0_15] : memref<8x256xbf16, #tpu.memory_space<vmem>>, vector<8x256xbf16>
      tpu.vector_store %arg6[%c0_14, %c0_15], %18 {strides = array<i32>} : memref<8x256xbf16, #tpu.memory_space<vmem>>, vector<8x256xbf16>,
    } else {
    }
    return
  }
  func.func @transform_0(%arg0: i32, %arg1: i32, %arg2: i32) -> (i32, i32) {
    %c0_i32 = arith.constant 0 : i32
    return %arg0, %arg2 : i32, i32
  }
  func.func @transform_1(%arg0: i32, %arg1: i32, %arg2: i32) -> (i32, i32) {
    %c0_i32 = arith.constant 0 : i32
    return %arg2, %arg1 : i32, i32
  }
  func.func @transform_2(%arg0: i32, %arg1: i32, %arg2: i32) -> (i32, i32) {
    %c0_i32 = arith.constant 0 : i32
    %c0_i32_0 = arith.constant 0 : i32
    return %c0_i32, %arg1 : i32, i32
  }
  func.func @transform_3(%arg0: i32, %arg1: i32, %arg2: i32) -> (i32, i32) {
    %c0_i32 = arith.constant 0 : i32
    return %arg0, %arg1 : i32, i32
  }
}

module attributes {stable_mosaic.version = 11 : i64} {
  func.func @_mm_kernel(%arg0: i32, %arg1: i32, %arg2: i32, %arg3: memref<8x256xbf16, #tpu.memory_space<vmem>>, %arg4: memref<256x256xbf16, #tpu.memory_space<vmem>>, %arg5: memref<1x256xf32, #tpu.memory_space<vmem>>, %arg6: memref<8x256xbf16, #tpu.memory_space<vmem>>, %arg7: memref<8x256xf32, #tpu.memory_space<vmem>>) attributes {dimension_semantics = [#tpu.dimension_semantics<parallel>, #tpu.dimension_semantics<parallel>, #tpu.dimension_semantics<arbitrary>], iteration_bounds = array<i64: 1, 1, 4>, scalar_prefetch = 0 : i64, scratch_operands = 1 : i64, tpu.core_type = #tpu.core_type<tc>, window_params = [{transform_indices = @transform_0, window_bounds = array<i64: 8, 256>}, {transform_indices = @transform_1, window_bounds = array<i64: 256, 256>}, {transform_indices = @transform_2, window_bounds = array<i64: 1, 256>}, {transform_indices = @transform_3, window_bounds = array<i64: 8, 256>}]} {
    %c0_i32 = arith.constant 0 : i32
    %0 = arith.cmpi eq, %arg2, %c0_i32 : i32
    %1 = arith.extui %0 : i1 to i32
    %c0_i32_0 = arith.constant 0 : i32
    %2 = arith.cmpi ne, %1, %c0_i32_0 : i32
    scf.if %2 {
      %cst_9 = arith.constant 0.000000e+00 : f32
      %12 = vector.broadcast %cst_9 : f32 to vector<8x256xf32>
      %c0_10 = arith.constant 0 : index
      %c0_11 = arith.constant 0 : index
      %13 = vector.load %arg7[%c0_10, %c0_11] : memref<8x256xf32, #tpu.memory_space<vmem>>, vector<8x256xf32>
      tpu.vector_store %arg7[%c0_10, %c0_11], %12 {strides = array<i32>} : memref<8x256xf32, #tpu.memory_space<vmem>>, vector<8x256xf32>,
    } else {
    }
    %c0 = arith.constant 0 : index
    %c0_1 = arith.constant 0 : index
    %3 = vector.load %arg7[%c0, %c0_1] : memref<8x256xf32, #tpu.memory_space<vmem>>, vector<8x256xf32>
    %c0_2 = arith.constant 0 : index
    %c0_3 = arith.constant 0 : index
    %4 = vector.load %arg3[%c0_2, %c0_3] : memref<8x256xbf16, #tpu.memory_space<vmem>>, vector<8x256xbf16>
    %c0_4 = arith.constant 0 : index
    %c0_5 = arith.constant 0 : index
    %5 = vector.load %arg4[%c0_4, %c0_5] : memref<256x256xbf16, #tpu.memory_space<vmem>>, vector<256x256xbf16>
    %cst = arith.constant dense<0.000000e+00> : vector<8x256xf32>
    %6 = tpu.matmul %4, %5, %cst {dimension_numbers = #tpu.dot_dimension_numbers<[1], [0], [0], [1], [0, 0, 1, 1], [], []>} : vector<8x256xbf16>, vector<256x256xbf16>, vector<8x256xf32> -> vector<8x256xf32>
    %7 = arith.addf %3, %6 : vector<8x256xf32>
    %c0_6 = arith.constant 0 : index
    %c0_7 = arith.constant 0 : index
    %8 = vector.load %arg7[%c0_6, %c0_7] : memref<8x256xf32, #tpu.memory_space<vmem>>, vector<8x256xf32>
    tpu.vector_store %arg7[%c0_6, %c0_7], %7 {strides = array<i32>} : memref<8x256xf32, #tpu.memory_space<vmem>>, vector<8x256xf32>,
    %c3_i32 = arith.constant 3 : i32
    %9 = arith.cmpi eq, %arg2, %c3_i32 : i32
    %10 = arith.extui %9 : i1 to i32
    %c0_i32_8 = arith.constant 0 : i32
    %11 = arith.cmpi ne, %10, %c0_i32_8 : i32
    scf.if %11 {
      %c0_9 = arith.constant 0 : index
      %c0_10 = arith.constant 0 : index
      %12 = vector.load %arg7[%c0_9, %c0_10] : memref<8x256xf32, #tpu.memory_space<vmem>>, vector<8x256xf32>
      %c0_11 = arith.constant 0 : index
      %c0_12 = arith.constant 0 : index
      %13 = vector.load %arg5[%c0_11, %c0_12] : memref<1x256xf32, #tpu.memory_space<vmem>>, vector<1x256xf32>
      %14 = vector.broadcast %13 : vector<1x256xf32> to vector<8x256xf32>
      %15 = arith.addf %12, %14 : vector<8x256xf32>
      %cst_13 = arith.constant 0.000000e+00 : f32
      %16 = vector.broadcast %cst_13 : f32 to vector<8x256xf32>
      %17 = arith.maximumf %15, %16 : vector<8x256xf32>
      %18 = arith.truncf %17 : vector<8x256xf32> to vector<8x256xbf16>
      %c0_14 = arith.constant 0 : index
      %c0_15 = arith.constant 0 : index
      %19 = vector.load %arg6[%c0_14, %c0_15] : memref<8x256xbf16, #tpu.memory_space<vmem>>, vector<8x256xbf16>
      tpu.vector_store %arg6[%c0_14, %c0_15], %18 {strides = array<i32>} : memref<8x256xbf16, #tpu.memory_space<vmem>>, vector<8x256xbf16>,
    } else {
    }
    return
  }
  func.func @transform_0(%arg0: i32, %arg1: i32, %arg2: i32) -> (i32, i32) {
    %c0_i32 = arith.constant 0 : i32
    return %arg0, %arg2 : i32, i32
  }
  func.func @transform_1(%arg0: i32, %arg1: i32, %arg2: i32) -> (i32, i32) {
    %c0_i32 = arith.constant 0 : i32
    return %arg2, %arg1 : i32, i32
  }
  func.func @transform_2(%arg0: i32, %arg1: i32, %arg2: i32) -> (i32, i32) {
    %c0_i32 = arith.constant 0 : i32
    %c0_i32_0 = arith.constant 0 : i32
    return %c0_i32, %arg1 : i32, i32
  }
  func.func @transform_3(%arg0: i32, %arg1: i32, %arg2: i32) -> (i32, i32) {
    %c0_i32 = arith.constant 0 : i32
    return %arg0, %arg1 : i32, i32
  }
}

module attributes {stable_mosaic.version = 11 : i64} {
  func.func @_mm_kernel(%arg0: i32, %arg1: i32, %arg2: i32, %arg3: memref<8x256xbf16, #tpu.memory_space<vmem>>, %arg4: memref<256x256xbf16, #tpu.memory_space<vmem>>, %arg5: memref<1x256xf32, #tpu.memory_space<vmem>>, %arg6: memref<8x256xbf16, #tpu.memory_space<vmem>>, %arg7: memref<8x256xf32, #tpu.memory_space<vmem>>) attributes {dimension_semantics = [#tpu.dimension_semantics<parallel>, #tpu.dimension_semantics<parallel>, #tpu.dimension_semantics<arbitrary>], iteration_bounds = array<i64: 1, 2, 18>, scalar_prefetch = 0 : i64, scratch_operands = 1 : i64, tpu.core_type = #tpu.core_type<tc>, window_params = [{transform_indices = @transform_0, window_bounds = array<i64: 8, 256>}, {transform_indices = @transform_1, window_bounds = array<i64: 256, 256>}, {transform_indices = @transform_2, window_bounds = array<i64: 1, 256>}, {transform_indices = @transform_3, window_bounds = array<i64: 8, 256>}]} {
    %c0_i32 = arith.constant 0 : i32
    %0 = arith.cmpi eq, %arg2, %c0_i32 : i32
    %1 = arith.extui %0 : i1 to i32
    %c0_i32_0 = arith.constant 0 : i32
    %2 = arith.cmpi ne, %1, %c0_i32_0 : i32
    scf.if %2 {
      %cst_9 = arith.constant 0.000000e+00 : f32
      %12 = vector.broadcast %cst_9 : f32 to vector<8x256xf32>
      %c0_10 = arith.constant 0 : index
      %c0_11 = arith.constant 0 : index
      %13 = vector.load %arg7[%c0_10, %c0_11] : memref<8x256xf32, #tpu.memory_space<vmem>>, vector<8x256xf32>
      tpu.vector_store %arg7[%c0_10, %c0_11], %12 {strides = array<i32>} : memref<8x256xf32, #tpu.memory_space<vmem>>, vector<8x256xf32>,
    } else {
    }
    %c0 = arith.constant 0 : index
    %c0_1 = arith.constant 0 : index
    %3 = vector.load %arg7[%c0, %c0_1] : memref<8x256xf32, #tpu.memory_space<vmem>>, vector<8x256xf32>
    %c0_2 = arith.constant 0 : index
    %c0_3 = arith.constant 0 : index
    %4 = vector.load %arg3[%c0_2, %c0_3] : memref<8x256xbf16, #tpu.memory_space<vmem>>, vector<8x256xbf16>
    %c0_4 = arith.constant 0 : index
    %c0_5 = arith.constant 0 : index
    %5 = vector.load %arg4[%c0_4, %c0_5] : memref<256x256xbf16, #tpu.memory_space<vmem>>, vector<256x256xbf16>
    %cst = arith.constant dense<0.000000e+00> : vector<8x256xf32>
    %6 = tpu.matmul %4, %5, %cst {dimension_numbers = #tpu.dot_dimension_numbers<[1], [0], [0], [1], [0, 0, 1, 1], [], []>} : vector<8x256xbf16>, vector<256x256xbf16>, vector<8x256xf32> -> vector<8x256xf32>
    %7 = arith.addf %3, %6 : vector<8x256xf32>
    %c0_6 = arith.constant 0 : index
    %c0_7 = arith.constant 0 : index
    %8 = vector.load %arg7[%c0_6, %c0_7] : memref<8x256xf32, #tpu.memory_space<vmem>>, vector<8x256xf32>
    tpu.vector_store %arg7[%c0_6, %c0_7], %7 {strides = array<i32>} : memref<8x256xf32, #tpu.memory_space<vmem>>, vector<8x256xf32>,
    %c17_i32 = arith.constant 17 : i32
    %9 = arith.cmpi eq, %arg2, %c17_i32 : i32
    %10 = arith.extui %9 : i1 to i32
    %c0_i32_8 = arith.constant 0 : i32
    %11 = arith.cmpi ne, %10, %c0_i32_8 : i32
    scf.if %11 {
      %c0_9 = arith.constant 0 : index
      %c0_10 = arith.constant 0 : index
      %12 = vector.load %arg7[%c0_9, %c0_10] : memref<8x256xf32, #tpu.memory_space<vmem>>, vector<8x256xf32>
      %c0_11 = arith.constant 0 : index
      %c0_12 = arith.constant 0 : index
      %13 = vector.load %arg5[%c0_11, %c0_12] : memref<1x256xf32, #tpu.memory_space<vmem>>, vector<1x256xf32>
      %14 = vector.broadcast %13 : vector<1x256xf32> to vector<8x256xf32>
      %15 = arith.addf %12, %14 : vector<8x256xf32>
      %cst_13 = arith.constant 0.000000e+00 : f32
      %16 = vector.broadcast %cst_13 : f32 to vector<8x256xf32>
      %17 = arith.maximumf %15, %16 : vector<8x256xf32>
      %18 = arith.truncf %17 : vector<8x256xf32> to vector<8x256xbf16>
      %c0_14 = arith.constant 0 : index
      %c0_15 = arith.constant 0 : index
      %19 = vector.load %arg6[%c0_14, %c0_15] : memref<8x256xbf16, #tpu.memory_space<vmem>>, vector<8x256xbf16>
      tpu.vector_store %arg6[%c0_14, %c0_15], %18 {strides = array<i32>} : memref<8x256xbf16, #tpu.memory_space<vmem>>, vector<8x256xbf16>,
    } else {
    }
    return
  }
  func.func @transform_0(%arg0: i32, %arg1: i32, %arg2: i32) -> (i32, i32) {
    %c0_i32 = arith.constant 0 : i32
    return %arg0, %arg2 : i32, i32
  }
  func.func @transform_1(%arg0: i32, %arg1: i32, %arg2: i32) -> (i32, i32) {
    %c0_i32 = arith.constant 0 : i32
    return %arg2, %arg1 : i32, i32
  }
  func.func @transform_2(%arg0: i32, %arg1: i32, %arg2: i32) -> (i32, i32) {
    %c0_i32 = arith.constant 0 : i32
    %c0_i32_0 = arith.constant 0 : i32
    return %c0_i32, %arg1 : i32, i32
  }
  func.func @transform_3(%arg0: i32, %arg1: i32, %arg2: i32) -> (i32, i32) {
    %c0_i32 = arith.constant 0 : i32
    return %arg0, %arg1 : i32, i32
  }
}

module attributes {stable_mosaic.version = 11 : i64} {
  func.func @_mm_kernel(%arg0: i32, %arg1: i32, %arg2: i32, %arg3: memref<8x256xbf16, #tpu.memory_space<vmem>>, %arg4: memref<256x256xbf16, #tpu.memory_space<vmem>>, %arg5: memref<1x256xf32, #tpu.memory_space<vmem>>, %arg6: memref<8x256xbf16, #tpu.memory_space<vmem>>, %arg7: memref<8x256xbf16, #tpu.memory_space<vmem>>, %arg8: memref<8x256xf32, #tpu.memory_space<vmem>>) attributes {dimension_semantics = [#tpu.dimension_semantics<parallel>, #tpu.dimension_semantics<parallel>, #tpu.dimension_semantics<arbitrary>], iteration_bounds = array<i64: 1, 8, 2>, scalar_prefetch = 0 : i64, scratch_operands = 1 : i64, tpu.core_type = #tpu.core_type<tc>, window_params = [{transform_indices = @transform_0, window_bounds = array<i64: 8, 256>}, {transform_indices = @transform_1, window_bounds = array<i64: 256, 256>}, {transform_indices = @transform_2, window_bounds = array<i64: 1, 256>}, {transform_indices = @transform_3, window_bounds = array<i64: 8, 256>}, {transform_indices = @transform_4, window_bounds = array<i64: 8, 256>}]} {
    %c0_i32 = arith.constant 0 : i32
    %0 = arith.cmpi eq, %arg2, %c0_i32 : i32
    %1 = arith.extui %0 : i1 to i32
    %c0_i32_0 = arith.constant 0 : i32
    %2 = arith.cmpi ne, %1, %c0_i32_0 : i32
    scf.if %2 {
      %cst_9 = arith.constant 0.000000e+00 : f32
      %12 = vector.broadcast %cst_9 : f32 to vector<8x256xf32>
      %c0_10 = arith.constant 0 : index
      %c0_11 = arith.constant 0 : index
      %13 = vector.load %arg8[%c0_10, %c0_11] : memref<8x256xf32, #tpu.memory_space<vmem>>, vector<8x256xf32>
      tpu.vector_store %arg8[%c0_10, %c0_11], %12 {strides = array<i32>} : memref<8x256xf32, #tpu.memory_space<vmem>>, vector<8x256xf32>,
    } else {
    }
    %c0 = arith.constant 0 : index
    %c0_1 = arith.constant 0 : index
    %3 = vector.load %arg8[%c0, %c0_1] : memref<8x256xf32, #tpu.memory_space<vmem>>, vector<8x256xf32>
    %c0_2 = arith.constant 0 : index
    %c0_3 = arith.constant 0 : index
    %4 = vector.load %arg3[%c0_2, %c0_3] : memref<8x256xbf16, #tpu.memory_space<vmem>>, vector<8x256xbf16>
    %c0_4 = arith.constant 0 : index
    %c0_5 = arith.constant 0 : index
    %5 = vector.load %arg4[%c0_4, %c0_5] : memref<256x256xbf16, #tpu.memory_space<vmem>>, vector<256x256xbf16>
    %cst = arith.constant dense<0.000000e+00> : vector<8x256xf32>
    %6 = tpu.matmul %4, %5, %cst {dimension_numbers = #tpu.dot_dimension_numbers<[1], [0], [0], [1], [0, 0, 1, 1], [], []>} : vector<8x256xbf16>, vector<256x256xbf16>, vector<8x256xf32> -> vector<8x256xf32>
    %7 = arith.addf %3, %6 : vector<8x256xf32>
    %c0_6 = arith.constant 0 : index
    %c0_7 = arith.constant 0 : index
    %8 = vector.load %arg8[%c0_6, %c0_7] : memref<8x256xf32, #tpu.memory_space<vmem>>, vector<8x256xf32>
    tpu.vector_store %arg8[%c0_6, %c0_7], %7 {strides = array<i32>} : memref<8x256xf32, #tpu.memory_space<vmem>>, vector<8x256xf32>,
    %c1_i32 = arith.constant 1 : i32
    %9 = arith.cmpi eq, %arg2, %c1_i32 : i32
    %10 = arith.extui %9 : i1 to i32
    %c0_i32_8 = arith.constant 0 : i32
    %11 = arith.cmpi ne, %10, %c0_i32_8 : i32
    scf.if %11 {
      %c0_9 = arith.constant 0 : index
      %c0_10 = arith.constant 0 : index
      %12 = vector.load %arg8[%c0_9, %c0_10] : memref<8x256xf32, #tpu.memory_space<vmem>>, vector<8x256xf32>
      %c0_11 = arith.constant 0 : index
      %c0_12 = arith.constant 0 : index
      %13 = vector.load %arg5[%c0_11, %c0_12] : memref<1x256xf32, #tpu.memory_space<vmem>>, vector<1x256xf32>
      %14 = vector.broadcast %13 : vector<1x256xf32> to vector<8x256xf32>
      %15 = arith.addf %12, %14 : vector<8x256xf32>
      %c0_13 = arith.constant 0 : index
      %c0_14 = arith.constant 0 : index
      %16 = vector.load %arg6[%c0_13, %c0_14] : memref<8x256xbf16, #tpu.memory_space<vmem>>, vector<8x256xbf16>
      %17 = arith.extf %16 : vector<8x256xbf16> to vector<8x256xf32>
      %18 = arith.addf %15, %17 : vector<8x256xf32>
      %cst_15 = arith.constant 0.000000e+00 : f32
      %19 = vector.broadcast %cst_15 : f32 to vector<8x256xf32>
      %20 = arith.maximumf %18, %19 : vector<8x256xf32>
      %21 = arith.truncf %20 : vector<8x256xf32> to vector<8x256xbf16>
      %c0_16 = arith.constant 0 : index
      %c0_17 = arith.constant 0 : index
      %22 = vector.load %arg7[%c0_16, %c0_17] : memref<8x256xbf16, #tpu.memory_space<vmem>>, vector<8x256xbf16>
      tpu.vector_store %arg7[%c0_16, %c0_17], %21 {strides = array<i32>} : memref<8x256xbf16, #tpu.memory_space<vmem>>, vector<8x256xbf16>,
    } else {
    }
    return
  }
  func.func @transform_0(%arg0: i32, %arg1: i32, %arg2: i32) -> (i32, i32) {
    %c0_i32 = arith.constant 0 : i32
    return %arg0, %arg2 : i32, i32
  }
  func.func @transform_1(%arg0: i32, %arg1: i32, %arg2: i32) -> (i32, i32) {
    %c0_i32 = arith.constant 0 : i32
    return %arg2, %arg1 : i32, i32
  }
  func.func @transform_2(%arg0: i32, %arg1: i32, %arg2: i32) -> (i32, i32) {
    %c0_i32 = arith.constant 0 : i32
    %c0_i32_0 = arith.constant 0 : i32
    return %c0_i32, %arg1 : i32, i32
  }
  func.func @transform_3(%arg0: i32, %arg1: i32, %arg2: i32) -> (i32, i32) {
    %c0_i32 = arith.constant 0 : i32
    return %arg0, %arg1 : i32, i32
  }
  func.func @transform_4(%arg0: i32, %arg1: i32, %arg2: i32) -> (i32, i32) {
    %c0_i32 = arith.constant 0 : i32
    return %arg0, %arg1 : i32, i32
  }
}

module attributes {stable_mosaic.version = 11 : i64} {
  func.func @_mm_kernel(%arg0: i32, %arg1: i32, %arg2: i32, %arg3: memref<8x256xbf16, #tpu.memory_space<vmem>>, %arg4: memref<256x256xbf16, #tpu.memory_space<vmem>>, %arg5: memref<1x256xf32, #tpu.memory_space<vmem>>, %arg6: memref<8x256xbf16, #tpu.memory_space<vmem>>, %arg7: memref<8x256xf32, #tpu.memory_space<vmem>>) attributes {dimension_semantics = [#tpu.dimension_semantics<parallel>, #tpu.dimension_semantics<parallel>, #tpu.dimension_semantics<arbitrary>], iteration_bounds = array<i64: 1, 8, 4>, scalar_prefetch = 0 : i64, scratch_operands = 1 : i64, tpu.core_type = #tpu.core_type<tc>, window_params = [{transform_indices = @transform_0, window_bounds = array<i64: 8, 256>}, {transform_indices = @transform_1, window_bounds = array<i64: 256, 256>}, {transform_indices = @transform_2, window_bounds = array<i64: 1, 256>}, {transform_indices = @transform_3, window_bounds = array<i64: 8, 256>}]} {
    %c0_i32 = arith.constant 0 : i32
    %0 = arith.cmpi eq, %arg2, %c0_i32 : i32
    %1 = arith.extui %0 : i1 to i32
    %c0_i32_0 = arith.constant 0 : i32
    %2 = arith.cmpi ne, %1, %c0_i32_0 : i32
    scf.if %2 {
      %cst_9 = arith.constant 0.000000e+00 : f32
      %12 = vector.broadcast %cst_9 : f32 to vector<8x256xf32>
      %c0_10 = arith.constant 0 : index
      %c0_11 = arith.constant 0 : index
      %13 = vector.load %arg7[%c0_10, %c0_11] : memref<8x256xf32, #tpu.memory_space<vmem>>, vector<8x256xf32>
      tpu.vector_store %arg7[%c0_10, %c0_11], %12 {strides = array<i32>} : memref<8x256xf32, #tpu.memory_space<vmem>>, vector<8x256xf32>,
    } else {
    }
    %c0 = arith.constant 0 : index
    %c0_1 = arith.constant 0 : index
    %3 = vector.load %arg7[%c0, %c0_1] : memref<8x256xf32, #tpu.memory_space<vmem>>, vector<8x256xf32>
    %c0_2 = arith.constant 0 : index
    %c0_3 = arith.constant 0 : index
    %4 = vector.load %arg3[%c0_2, %c0_3] : memref<8x256xbf16, #tpu.memory_space<vmem>>, vector<8x256xbf16>
    %c0_4 = arith.constant 0 : index
    %c0_5 = arith.constant 0 : index
    %5 = vector.load %arg4[%c0_4, %c0_5] : memref<256x256xbf16, #tpu.memory_space<vmem>>, vector<256x256xbf16>
    %cst = arith.constant dense<0.000000e+00> : vector<8x256xf32>
    %6 = tpu.matmul %4, %5, %cst {dimension_numbers = #tpu.dot_dimension_numbers<[1], [0], [0], [1], [0, 0, 1, 1], [], []>} : vector<8x256xbf16>, vector<256x256xbf16>, vector<8x256xf32> -> vector<8x256xf32>
    %7 = arith.addf %3, %6 : vector<8x256xf32>
    %c0_6 = arith.constant 0 : index
    %c0_7 = arith.constant 0 : index
    %8 = vector.load %arg7[%c0_6, %c0_7] : memref<8x256xf32, #tpu.memory_space<vmem>>, vector<8x256xf32>
    tpu.vector_store %arg7[%c0_6, %c0_7], %7 {strides = array<i32>} : memref<8x256xf32, #tpu.memory_space<vmem>>, vector<8x256xf32>,
    %c3_i32 = arith.constant 3 : i32
    %9 = arith.cmpi eq, %arg2, %c3_i32 : i32
    %10 = arith.extui %9 : i1 to i32
    %c0_i32_8 = arith.constant 0 : i32
    %11 = arith.cmpi ne, %10, %c0_i32_8 : i32
    scf.if %11 {
      %c0_9 = arith.constant 0 : index
      %c0_10 = arith.constant 0 : index
      %12 = vector.load %arg7[%c0_9, %c0_10] : memref<8x256xf32, #tpu.memory_space<vmem>>, vector<8x256xf32>
      %c0_11 = arith.constant 0 : index
      %c0_12 = arith.constant 0 : index
      %13 = vector.load %arg5[%c0_11, %c0_12] : memref<1x256xf32, #tpu.memory_space<vmem>>, vector<1x256xf32>
      %14 = vector.broadcast %13 : vector<1x256xf32> to vector<8x256xf32>
      %15 = arith.addf %12, %14 : vector<8x256xf32>
      %16 = arith.truncf %15 : vector<8x256xf32> to vector<8x256xbf16>
      %c0_13 = arith.constant 0 : index
      %c0_14 = arith.constant 0 : index
      %17 = vector.load %arg6[%c0_13, %c0_14] : memref<8x256xbf16, #tpu.memory_space<vmem>>, vector<8x256xbf16>
      tpu.vector_store %arg6[%c0_13, %c0_14], %16 {strides = array<i32>} : memref<8x256xbf16, #tpu.memory_space<vmem>>, vector<8x256xbf16>,
    } else {
    }
    return
  }
  func.func @transform_0(%arg0: i32, %arg1: i32, %arg2: i32) -> (i32, i32) {
    %c0_i32 = arith.constant 0 : i32
    return %arg0, %arg2 : i32, i32
  }
  func.func @transform_1(%arg0: i32, %arg1: i32, %arg2: i32) -> (i32, i32) {
    %c0_i32 = arith.constant 0 : i32
    return %arg2, %arg1 : i32, i32
  }
  func.func @transform_2(%arg0: i32, %arg1: i32, %arg2: i32) -> (i32, i32) {
    %c0_i32 = arith.constant 0 : i32
    %c0_i32_0 = arith.constant 0 : i32
    return %c0_i32, %arg1 : i32, i32
  }
  func.func @transform_3(%arg0: i32, %arg1: i32, %arg2: i32) -> (i32, i32) {
    %c0_i32 = arith.constant 0 : i32
    return %arg0, %arg1 : i32, i32
  }
}

module attributes {stable_mosaic.version = 11 : i64} {
  func.func @_mm_kernel(%arg0: i32, %arg1: i32, %arg2: i32, %arg3: memref<8x256xbf16, #tpu.memory_space<vmem>>, %arg4: memref<256x256xbf16, #tpu.memory_space<vmem>>, %arg5: memref<1x256xf32, #tpu.memory_space<vmem>>, %arg6: memref<8x256xbf16, #tpu.memory_space<vmem>>, %arg7: memref<8x256xf32, #tpu.memory_space<vmem>>) attributes {dimension_semantics = [#tpu.dimension_semantics<parallel>, #tpu.dimension_semantics<parallel>, #tpu.dimension_semantics<arbitrary>], iteration_bounds = array<i64: 1, 2, 8>, scalar_prefetch = 0 : i64, scratch_operands = 1 : i64, tpu.core_type = #tpu.core_type<tc>, window_params = [{transform_indices = @transform_0, window_bounds = array<i64: 8, 256>}, {transform_indices = @transform_1, window_bounds = array<i64: 256, 256>}, {transform_indices = @transform_2, window_bounds = array<i64: 1, 256>}, {transform_indices = @transform_3, window_bounds = array<i64: 8, 256>}]} {
    %c0_i32 = arith.constant 0 : i32
    %0 = arith.cmpi eq, %arg2, %c0_i32 : i32
    %1 = arith.extui %0 : i1 to i32
    %c0_i32_0 = arith.constant 0 : i32
    %2 = arith.cmpi ne, %1, %c0_i32_0 : i32
    scf.if %2 {
      %cst_9 = arith.constant 0.000000e+00 : f32
      %12 = vector.broadcast %cst_9 : f32 to vector<8x256xf32>
      %c0_10 = arith.constant 0 : index
      %c0_11 = arith.constant 0 : index
      %13 = vector.load %arg7[%c0_10, %c0_11] : memref<8x256xf32, #tpu.memory_space<vmem>>, vector<8x256xf32>
      tpu.vector_store %arg7[%c0_10, %c0_11], %12 {strides = array<i32>} : memref<8x256xf32, #tpu.memory_space<vmem>>, vector<8x256xf32>,
    } else {
    }
    %c0 = arith.constant 0 : index
    %c0_1 = arith.constant 0 : index
    %3 = vector.load %arg7[%c0, %c0_1] : memref<8x256xf32, #tpu.memory_space<vmem>>, vector<8x256xf32>
    %c0_2 = arith.constant 0 : index
    %c0_3 = arith.constant 0 : index
    %4 = vector.load %arg3[%c0_2, %c0_3] : memref<8x256xbf16, #tpu.memory_space<vmem>>, vector<8x256xbf16>
    %c0_4 = arith.constant 0 : index
    %c0_5 = arith.constant 0 : index
    %5 = vector.load %arg4[%c0_4, %c0_5] : memref<256x256xbf16, #tpu.memory_space<vmem>>, vector<256x256xbf16>
    %cst = arith.constant dense<0.000000e+00> : vector<8x256xf32>
    %6 = tpu.matmul %4, %5, %cst {dimension_numbers = #tpu.dot_dimension_numbers<[1], [0], [0], [1], [0, 0, 1, 1], [], []>} : vector<8x256xbf16>, vector<256x256xbf16>, vector<8x256xf32> -> vector<8x256xf32>
    %7 = arith.addf %3, %6 : vector<8x256xf32>
    %c0_6 = arith.constant 0 : index
    %c0_7 = arith.constant 0 : index
    %8 = vector.load %arg7[%c0_6, %c0_7] : memref<8x256xf32, #tpu.memory_space<vmem>>, vector<8x256xf32>
    tpu.vector_store %arg7[%c0_6, %c0_7], %7 {strides = array<i32>} : memref<8x256xf32, #tpu.memory_space<vmem>>, vector<8x256xf32>,
    %c7_i32 = arith.constant 7 : i32
    %9 = arith.cmpi eq, %arg2, %c7_i32 : i32
    %10 = arith.extui %9 : i1 to i32
    %c0_i32_8 = arith.constant 0 : i32
    %11 = arith.cmpi ne, %10, %c0_i32_8 : i32
    scf.if %11 {
      %c0_9 = arith.constant 0 : index
      %c0_10 = arith.constant 0 : index
      %12 = vector.load %arg7[%c0_9, %c0_10] : memref<8x256xf32, #tpu.memory_space<vmem>>, vector<8x256xf32>
      %c0_11 = arith.constant 0 : index
      %c0_12 = arith.constant 0 : index
      %13 = vector.load %arg5[%c0_11, %c0_12] : memref<1x256xf32, #tpu.memory_space<vmem>>, vector<1x256xf32>
      %14 = vector.broadcast %13 : vector<1x256xf32> to vector<8x256xf32>
      %15 = arith.addf %12, %14 : vector<8x256xf32>
      %cst_13 = arith.constant 0.000000e+00 : f32
      %16 = vector.broadcast %cst_13 : f32 to vector<8x256xf32>
      %17 = arith.maximumf %15, %16 : vector<8x256xf32>
      %18 = arith.truncf %17 : vector<8x256xf32> to vector<8x256xbf16>
      %c0_14 = arith.constant 0 : index
      %c0_15 = arith.constant 0 : index
      %19 = vector.load %arg6[%c0_14, %c0_15] : memref<8x256xbf16, #tpu.memory_space<vmem>>, vector<8x256xbf16>
      tpu.vector_store %arg6[%c0_14, %c0_15], %18 {strides = array<i32>} : memref<8x256xbf16, #tpu.memory_space<vmem>>, vector<8x256xbf16>,
    } else {
    }
    return
  }
  func.func @transform_0(%arg0: i32, %arg1: i32, %arg2: i32) -> (i32, i32) {
    %c0_i32 = arith.constant 0 : i32
    return %arg0, %arg2 : i32, i32
  }
  func.func @transform_1(%arg0: i32, %arg1: i32, %arg2: i32) -> (i32, i32) {
    %c0_i32 = arith.constant 0 : i32
    return %arg2, %arg1 : i32, i32
  }
  func.func @transform_2(%arg0: i32, %arg1: i32, %arg2: i32) -> (i32, i32) {
    %c0_i32 = arith.constant 0 : i32
    %c0_i32_0 = arith.constant 0 : i32
    return %c0_i32, %arg1 : i32, i32
  }
  func.func @transform_3(%arg0: i32, %arg1: i32, %arg2: i32) -> (i32, i32) {
    %c0_i32 = arith.constant 0 : i32
    return %arg0, %arg1 : i32, i32
  }
}

module attributes {stable_mosaic.version = 11 : i64} {
  func.func @_mm_kernel(%arg0: i32, %arg1: i32, %arg2: i32, %arg3: memref<8x256xbf16, #tpu.memory_space<vmem>>, %arg4: memref<256x128xbf16, #tpu.memory_space<vmem>>, %arg5: memref<1x128xf32, #tpu.memory_space<vmem>>, %arg6: memref<8x128xf32, #tpu.memory_space<vmem>>, %arg7: memref<8x128xf32, #tpu.memory_space<vmem>>) attributes {dimension_semantics = [#tpu.dimension_semantics<parallel>, #tpu.dimension_semantics<parallel>, #tpu.dimension_semantics<arbitrary>], iteration_bounds = array<i64: 1, 1, 8>, scalar_prefetch = 0 : i64, scratch_operands = 1 : i64, tpu.core_type = #tpu.core_type<tc>, window_params = [{transform_indices = @transform_0, window_bounds = array<i64: 8, 256>}, {transform_indices = @transform_1, window_bounds = array<i64: 256, 128>}, {transform_indices = @transform_2, window_bounds = array<i64: 1, 128>}, {transform_indices = @transform_3, window_bounds = array<i64: 8, 128>}]} {
    %c0_i32 = arith.constant 0 : i32
    %0 = arith.cmpi eq, %arg2, %c0_i32 : i32
    %1 = arith.extui %0 : i1 to i32
    %c0_i32_0 = arith.constant 0 : i32
    %2 = arith.cmpi ne, %1, %c0_i32_0 : i32
    scf.if %2 {
      %cst_9 = arith.constant 0.000000e+00 : f32
      %12 = vector.broadcast %cst_9 : f32 to vector<8x128xf32>
      %c0_10 = arith.constant 0 : index
      %c0_11 = arith.constant 0 : index
      %13 = vector.load %arg7[%c0_10, %c0_11] : memref<8x128xf32, #tpu.memory_space<vmem>>, vector<8x128xf32>
      tpu.vector_store %arg7[%c0_10, %c0_11], %12 {strides = array<i32>} : memref<8x128xf32, #tpu.memory_space<vmem>>, vector<8x128xf32>,
    } else {
    }
    %c0 = arith.constant 0 : index
    %c0_1 = arith.constant 0 : index
    %3 = vector.load %arg7[%c0, %c0_1] : memref<8x128xf32, #tpu.memory_space<vmem>>, vector<8x128xf32>
    %c0_2 = arith.constant 0 : index
    %c0_3 = arith.constant 0 : index
    %4 = vector.load %arg3[%c0_2, %c0_3] : memref<8x256xbf16, #tpu.memory_space<vmem>>, vector<8x256xbf16>
    %c0_4 = arith.constant 0 : index
    %c0_5 = arith.constant 0 : index
    %5 = vector.load %arg4[%c0_4, %c0_5] : memref<256x128xbf16, #tpu.memory_space<vmem>>, vector<256x128xbf16>
    %cst = arith.constant dense<0.000000e+00> : vector<8x128xf32>
    %6 = tpu.matmul %4, %5, %cst {dimension_numbers = #tpu.dot_dimension_numbers<[1], [0], [0], [1], [0, 0, 1, 1], [], []>} : vector<8x256xbf16>, vector<256x128xbf16>, vector<8x128xf32> -> vector<8x128xf32>
    %7 = arith.addf %3, %6 : vector<8x128xf32>
    %c0_6 = arith.constant 0 : index
    %c0_7 = arith.constant 0 : index
    %8 = vector.load %arg7[%c0_6, %c0_7] : memref<8x128xf32, #tpu.memory_space<vmem>>, vector<8x128xf32>
    tpu.vector_store %arg7[%c0_6, %c0_7], %7 {strides = array<i32>} : memref<8x128xf32, #tpu.memory_space<vmem>>, vector<8x128xf32>,
    %c7_i32 = arith.constant 7 : i32
    %9 = arith.cmpi eq, %arg2, %c7_i32 : i32
    %10 = arith.extui %9 : i1 to i32
    %c0_i32_8 = arith.constant 0 : i32
    %11 = arith.cmpi ne, %10, %c0_i32_8 : i32
    scf.if %11 {
      %c0_9 = arith.constant 0 : index
      %c0_10 = arith.constant 0 : index
      %12 = vector.load %arg7[%c0_9, %c0_10] : memref<8x128xf32, #tpu.memory_space<vmem>>, vector<8x128xf32>
      %c0_11 = arith.constant 0 : index
      %c0_12 = arith.constant 0 : index
      %13 = vector.load %arg5[%c0_11, %c0_12] : memref<1x128xf32, #tpu.memory_space<vmem>>, vector<1x128xf32>
      %14 = vector.broadcast %13 : vector<1x128xf32> to vector<8x128xf32>
      %15 = arith.addf %12, %14 : vector<8x128xf32>
      %c0_13 = arith.constant 0 : index
      %c0_14 = arith.constant 0 : index
      %16 = vector.load %arg6[%c0_13, %c0_14] : memref<8x128xf32, #tpu.memory_space<vmem>>, vector<8x128xf32>
      tpu.vector_store %arg6[%c0_13, %c0_14], %15 {strides = array<i32>} : memref<8x128xf32, #tpu.memory_space<vmem>>, vector<8x128xf32>,
    } else {
    }
    return
  }
  func.func @transform_0(%arg0: i32, %arg1: i32, %arg2: i32) -> (i32, i32) {
    %c0_i32 = arith.constant 0 : i32
    return %arg0, %arg2 : i32, i32
  }
  func.func @transform_1(%arg0: i32, %arg1: i32, %arg2: i32) -> (i32, i32) {
    %c0_i32 = arith.constant 0 : i32
    return %arg2, %arg1 : i32, i32
  }
  func.func @transform_2(%arg0: i32, %arg1: i32, %arg2: i32) -> (i32, i32) {
    %c0_i32 = arith.constant 0 : i32
    %c0_i32_0 = arith.constant 0 : i32
    return %c0_i32, %arg1 : i32, i32
  }
  func.func @transform_3(%arg0: i32, %arg1: i32, %arg2: i32) -> (i32, i32) {
    %c0_i32 = arith.constant 0 : i32
    return %arg0, %arg1 : i32, i32
  }
}

</mosaic_0001>

<bundles_post_ra>
// kernel: resnet50_forward.56
= control target key start
LH: loop header
LB: loop body
LE: loop exit
PB: predicated region body
PF: predicated region fallthrough
CT: control target
= control target key end

     0   :  { %s792_s15 = smov 0   ;;  %s1028_s0 = inlined_call_operand.vmem [shape: bf16[2,9,9,64], index: 0, kind: input, shape index: {}]   ;;  %s1029_s1 = inlined_call_operand.vmem [shape: bf16[2,9,8,64], index: 1, kind: input, shape index: {}]   ;;  %s1030_s2 = inlined_call_operand.vmem [shape: bf16[2,8,9,64], index: 2, kind: input, shape index: {}]   ;;  %s1031_s3 = inlined_call_operand.vmem [shape: bf16[2,8,8,64], index: 3, kind: input, shape index: {}]   ;;  %s1032_s4 = inlined_call_operand.vmem [shape: bf16[2,8,8,64], index: 4, kind: output, shape index: {}]  }
   0x1 LB: > { %s731_s16 = sadd.s32 4294967295, %s765_s15   ;;  %p735_p0 = scmp.ge.s32.totalorder %s765_s15, 1  ;;  %s765_s15 = sphi %s792_s15, %s14_s15  }
   0x2   : > { %p192_p1 = scmp.lt.s32.totalorder %s765_s15, 3 }
   0x4   : > { %p193_p2 = pnand %p735_p0, %p192_p1 }
   0x5   : > { %p233_p3 = scmp.lt.s32.totalorder (!%p193_p2), %s731_s16, 1 }
   0x6   : > { %196 = sbr.rel (%p193_p2) target bundleno = 81 (0x51), region = 36 }
   0xb   : > { %s1036_s16 = smov (!%p233_p3, %s731_s16), 1  ;;  %vm309_vm0 = vsmask.f32 3328  ;;  %vm310_vm1 = vsmask.f32 7440  ;;  %vm631_vm3 = vcmask 519168  }
   0xc   : > { %s749_s17 = smul.u32 72, %s1036_s16  ;;  %s746_s18 = sshll.u32 %s1036_s16, 6  ;;  %vm839_vm2 = vmor %vm309_vm0, %vm310_vm1 }
   0xd   : > { %s807_s21 = scalar_lea.vmem %s1030_s2, %s746_s18  ;;  %s750_s25 = smul.u32 36, %s1036_s16 }
   0xe   : > { %s812_s24 = scalar_lea.vmem %s1028_s0, %s749_s17  ;;  %v815_v0 = vld [vmem:[%s807_s21] sm:$0xf]  ;;  %v286_v5 = vld [vmem:[%s807_s21 + $0x4] sm:$0x1]  ;;  %v833_v26 = vld [vmem:[%s807_s21 + $0x8] sm:$0xf] }
   0xf   : > { %v258_v1 = vld [vmem:[%s812_s24] sm:$0xf]  ;;  %v259_v2 = vld [vmem:[%s812_s24 + $0x4] sm:$0x1]  ;;  %v820_v3 = vld [vmem:[%s812_s24 + $0x8] sm:$0xf]  ;;  %s860_s28 = scalar_lea.vmem %s1029_s1, %s750_s25 }
  0x10   : > { %v261_v4 = vld [vmem:[%s812_s24 + $0xc] sm:$0x1]  ;;  %v313_v6 = vshrl.u32 %v258_v1, 16  ;;  %v316_v7 = vshll.u32 %v258_v1, 16  ;;  %v322_v8 = vshll.u32 %v259_v2, 16  ;;  %v327_v9 = vshrl.u32 %v820_v3, 16 }
  0x11   : > { %v330_v10 = vshll.u32 %v820_v3, 16  ;;  %v336_v11 = vshll.u32 %v261_v4, 16  ;;  %v496_v12 = vshrl.u32 %v815_v0, 16  ;;  %v499_v13 = vshll.u32 %v815_v0, 16  ;;  %v829_v14 = vld [vmem:[%s812_s24 + $0x10] sm:$0xf] }
  0x12   : > { %v315_v15 = vrot.slane %v313_v6, 4  ;;  %v318_v16 = vrot.slane %v316_v7, 5  ;;  %v329_v17 = vrot.slane %v327_v9, 4  ;;  %v263_v18 = vld [vmem:[%s812_s24 + $0x14] sm:$0x1]  ;;  %v324_v19 = vrot.slane %v322_v8, 5 }
  0x13   : > { %v332_v20 = vrot.slane %v330_v10, 5  ;;  %v498_v21 = vrot.slane %v496_v12, 4  ;;  %v501_v22 = vrot.slane %v499_v13, 5  ;;  %v338_v24 = vrot.slane %v336_v11, 5  ;;  %v288_v31 = vld [vmem:[%s807_s21 + $0xc] sm:$0x1] }
  0x14   : > { %v319_v23 = vor.u32 %v318_v16, %v315_v15  ;;  %v505_v25 = vshll.u32 %v286_v5, 16  ;;  %v341_v27 = vshrl.u32 %v829_v14, 16  ;;  %v344_v32 = vshll.u32 %v829_v14, 16  ;;  %v851_v42 = vld [vmem:[%s812_s24 + $0x18] sm:$0xf]  ;;  %s747_s29 = sshll.u32 %s1036_s16, 5 }
  0x15   : > { %v333_v29 = vor.u32 %v332_v20, %v329_v17  ;;  %v502_v30 = vor.u32 %v501_v22, %v498_v21  ;;  %v350_v33 = vshll.u32 %v263_v18, 16  ;;  %v510_v37 = vshrl.u32 %v833_v26, 16  ;;  %v265_v47 = vld [vmem:[%s812_s24 + $0x1c] sm:$0x1]  ;;  %v869_v52 = vld [vmem:[%s807_s21 + $0x10] sm:$0xf]  ;;  %s894_s6 = scalar_lea.vmem %s1031_s3, %s747_s29  ;;  %s922_s9 = scalar_lea.vmem %s1032_s4, %s747_s29 }
  0x16   : > { %v320_v34 = vrot.slane %v319_v23, 4  ;;  %v845_v35 = vrot.slane %v505_v25, 5  ;;  %v343_v36 = vrot.slane %v341_v27, 4  ;;  %v346_v40 = vrot.slane %v344_v32, 5  ;;  %v276_v61 = vld [vmem:[%s860_s28] sm:$0xf] }
  0x17   : > { %v334_v38 = vrot.slane %v333_v29, 4  ;;  %v848_v39 = vrot.slane %v502_v30, 4  ;;  %v352_v41 = vrot.slane %v350_v33, 5  ;;  %v512_v44 = vrot.slane %v510_v37, 4  ;;  %v277_v5 = vld [vmem:[%s860_s28 + $0x4] sm:$0xf] }
  0x18   : > { %v325_v43 = vsel %vm839_vm2, %v320_v34, %v324_v19  ;;  %v513_v45 = vshll.u32 %v833_v26, 16  ;;  %v519_v46 = vshll.u32 %v288_v31, 16  ;;  %v347_v51 = vor.u32 %v346_v40, %v343_v36  ;;  %v884_v9 = vld [vmem:[%s812_s24 + $0x20] sm:$0xf]  ;;  %v267_v19 = vld [vmem:[%s812_s24 + $0x24] sm:$0x1] }
  0x19   : > { %v339_v48 = vsel %vm839_vm2, %v334_v38, %v338_v24  ;;  %v432_v49 = vmax.bf16 %v325_v43, %v258_v1  ;;  %v508_v50 = vsel %vm839_vm2, %v848_v39, %v845_v35  ;;  %v355_v56 = vshrl.u32 %v851_v42, 16  ;;  %v290_v1 = vld [vmem:[%s807_s21 + $0x14] sm:$0x1]  ;;  %v900_v22 = vld [vmem:[%s807_s21 + $0x18] sm:$0xf] }
  0x1a   : > { %v433_v53 = vmax.bf16 %v339_v48, %v820_v3  ;;  %v515_v54 = vrot.slane %v513_v45, 5  ;;  %v521_v55 = vrot.slane %v519_v46, 5  ;;  %v348_v58 = vrot.slane %v347_v51, 4  ;;  %v278_v25 = vld [vmem:[%s860_s28 + $0x8] sm:$0xf] }
  0x1b   : > { %v440_v57 = vmax.bf16 %v432_v49, %v820_v3  ;;  %v358_v59 = vshll.u32 %v851_v42, 16  ;;  %v364_v60 = vshll.u32 %v265_v47, 16  ;;  %v357_v2 = vrot.slane %v355_v56, 4  ;;  %v301_v35 = vld [vmem:[%s894_s6] sm:$0xf] }
  0x1c   : > { %v441_v62 = vmax.bf16 %v433_v53, %v829_v14  ;;  %v516_v63 = vor.u32 %v515_v54, %v512_v44  ;;  %v524_v4 = vshrl.u32 %v869_v52, 16  ;;  %v353_v7 = vsel %vm839_vm2, %v348_v58, %v352_v41  ;;  %v302_v40 = vld [vmem:[%s894_s6 + $0x4] sm:$0xf]  ;;  %v292_v45 = vld [vmem:[%s807_s21 + $0x1c] sm:$0x1] }
  0x1d   : > { %v463_v6 = vmax.bf16 %v440_v57, %v339_v48  ;;  %v360_v3 = vrot.slane %v358_v59, 5  ;;  %v366_v8 = vrot.slane %v364_v60, 5  ;;  %v434_v10 = vmax.bf16 %v353_v7, %v829_v14  ;;  %v915_v51 = vld [vmem:[%s812_s24 + $0x28] sm:$0xf]  ;;  %v279_v56 = vld [vmem:[%s860_s28 + $0xc] sm:$0xf] }
  0x1e   : > { %v464_v11 = vmax.bf16 %v441_v62, %v353_v7  ;;  %v517_v12 = vrot.slane %v516_v63, 4  ;;  %v526_v13 = vrot.slane %v524_v4, 4  ;;  %v527_v17 = vshll.u32 %v869_v52, 16  ;;  %v931_v60 = vld [vmem:[%s807_s21 + $0x20] sm:$0xf] }
  0x1f   : > { %v471_v15 = vmax.bf16 %v463_v6, %v276_v61  ;;  %v361_v16 = vor.u32 %v360_v3, %v357_v2  ;;  %v533_v18 = vshll.u32 %v290_v1, 16  ;;  %v442_v21 = vmax.bf16 %v434_v10, %v851_v42  ;;  %v303_v7 = vld [vmem:[%s894_s6 + $0x8] sm:$0xf] }
  0x20   : > { %v472_v20 = vmax.bf16 %v464_v11, %v277_v5  ;;  %v522_v14 = vsel %vm839_vm2, %v517_v12, %v521_v55  ;;  %v369_v23 = vshrl.u32 %v884_v9, 16  ;;  %v529_v29 = vrot.slane %v527_v17, 5  ;;  %v269_v55 = vld [vmem:[%s812_s24 + $0x2c] sm:$0x1] }
  0x21   : > { %v479_v24 = vmax.bf16 %v471_v15, %v277_v5  ;;  %v362_v27 = vrot.slane %v361_v16, 4  ;;  %v535_v30 = vrot.slane %v533_v18, 5  ;;  %v372_v33 = vshll.u32 %v884_v9, 16  ;;  %v294_v16 = vld [vmem:[%s807_s21 + $0x24] sm:$0x1] }
  0x22   : > { %v480_v31 = vmax.bf16 %v472_v20, %v278_v25  ;;  %v371_v32 = vrot.slane %v369_v23, 4  ;;  %v378_v34 = vshll.u32 %v267_v19, 16  ;;  %v530_v38 = vor.u32 %v529_v29, %v526_v13  ;;  %v947_v18 = vld [vmem:[%s812_s24 + $0x30] sm:$0xf] }
  0x23   : > { %v487_v36 = vmax.bf16 %v479_v24, %v815_v0  ;;  %v367_v37 = vsel %vm839_vm2, %v362_v27, %v366_v8  ;;  %v538_v39 = vshrl.u32 %v900_v22, 16  ;;  %v374_v46 = vrot.slane %v372_v33, 5 }
  0x24   : > { %v488_v41 = vmax.bf16 %v480_v31, %v833_v26  ;;  %v435_v43 = vmax.bf16 %v367_v37, %v851_v42  ;;  %v465_v44 = vmax.bf16 %v442_v21, %v367_v37  ;;  %v531_v48 = vrot.slane %v530_v38, 4  ;;  %v280_v21 = vld [vmem:[%s860_s28 + $0x10] sm:$0xf] }
  0x25   : > { %v615_v47 = vmax.bf16 %v508_v50, %v487_v36  ;;  %v380_v0 = vrot.slane %v378_v34, 5  ;;  %v540_v49 = vrot.slane %v538_v39, 4  ;;  %v375_v53 = vor.u32 %v374_v46, %v371_v32  ;;  %v954_v32 = vld [vmem:[%s807_s21 + $0x28] sm:$0xf] }
  0x26   : > { %v616_v26 = vmax.bf16 %v522_v14, %v488_v41  ;;  %v473_v42 = vmax.bf16 %v465_v44, %v278_v25  ;;  %v443_v54 = vmax.bf16 %v435_v43, %v884_v9  ;;  %v536_v57 = vsel %vm839_vm2, %v531_v48, %v535_v30  ;;  %v304_v48 = vld [vmem:[%s894_s6 + $0xc] sm:$0xf] }
  0x27   : > { %v623_v50 = vmax.bf16 %v615_v47, %v301_v35  ;;  %v541_v58 = vshll.u32 %v900_v22, 16  ;;  %v547_v59 = vshll.u32 %v292_v45, 16  ;;  %v376_v63 = vrot.slane %v375_v53, 4  ;;  %v296_v45 = vld [vmem:[%s807_s21 + $0x2c] sm:$0x1] }
  0x28   : > { %v624_v61 = vmax.bf16 %v616_v26, %v302_v40  ;;  %v481_v62 = vmax.bf16 %v473_v42, %v279_v56  ;;  %v383_v1 = vshrl.u32 %v915_v51, 16  ;;  %v386_v5 = vshll.u32 %v915_v51, 16  ;;  %v970_v53 = vld [vmem:[%s812_s24 + $0x38] sm:$0xf] }
  0x29   : > { %632 = vst.msk [vmem:[%s922_s9] sm:$0xf] %vm631_vm3, %v623_v50  ;;  %v543_v2 = vrot.slane %v541_v58, 5  ;;  %v549_v4 = vrot.slane %v547_v59, 5  ;;  %v392_v6 = vshll.u32 %v269_v55, 16  ;;  %v381_v8 = vsel %vm839_vm2, %v376_v63, %v380_v0 }
  0x2a   : > { %633 = vst.msk [vmem:[%s922_s9 + $0x4] sm:$0xf] %vm631_vm3, %v624_v61  ;;  %v489_v3 = vmax.bf16 %v481_v62, %v869_v52  ;;  %v385_v10 = vrot.slane %v383_v1, 4  ;;  %v552_v11 = vshrl.u32 %v931_v60, 16  ;;  %v436_v12 = vmax.bf16 %v381_v8, %v884_v9  ;;  %v271_v9 = vld [vmem:[%s812_s24 + $0x34] sm:$0x1] }
  0x2b   : > { %v466_v13 = vmax.bf16 %v443_v54, %v381_v8  ;;  %v544_v15 = vor.u32 %v543_v2, %v540_v49  ;;  %v388_v17 = vrot.slane %v386_v5, 5  ;;  %v394_v20 = vrot.slane %v392_v6, 5  ;;  %v978_v61 = vld [vmem:[%s807_s21 + $0x30] sm:$0xf]  ;;  %v281_v63 = vld [vmem:[%s860_s28 + $0x14] sm:$0xf] }
  0x2c   : > { %v617_v19 = vmax.bf16 %v536_v57, %v489_v3  ;;  %v554_v14 = vrot.slane %v552_v11, 4  ;;  %v555_v52 = vshll.u32 %v931_v60, 16  ;;  %v444_v27 = vmax.bf16 %v436_v12, %v915_v51 }
  0x2d   : > { %v474_v23 = vmax.bf16 %v466_v13, %v279_v56  ;;  %v545_v24 = vrot.slane %v544_v15, 4  ;;  %v389_v25 = vor.u32 %v388_v17, %v385_v10  ;;  %v561_v31 = vshll.u32 %v294_v16, 16  ;;  %v273_v56 = vld [vmem:[%s812_s24 + $0x3c] sm:$0x1]  ;;  %v298_v17 = vld [vmem:[%s807_s21 + $0x34] sm:$0x1] }
  0x2e   : > { %v625_v29 = vmax.bf16 %v617_v19, %v303_v7  ;;  %v557_v30 = vrot.slane %v555_v52, 5  ;;  %v397_v33 = vshrl.u32 %v947_v18, 16  ;;  %v400_v37 = vshll.u32 %v947_v18, 16 }
  0x2f   : > { %v482_v34 = vmax.bf16 %v474_v23, %v280_v21  ;;  %v550_v35 = vsel %vm839_vm2, %v545_v24, %v549_v4  ;;  %v390_v36 = vrot.slane %v389_v25, 4  ;;  %v563_v39 = vrot.slane %v561_v31, 5 }
  0x30   : > { %634 = vst.msk [vmem:[%s922_s9 + $0x8] sm:$0xf] %vm631_vm3, %v625_v29  ;;  %v558_v38 = vor.u32 %v557_v30, %v554_v14  ;;  %v399_v40 = vrot.slane %v397_v33, 4  ;;  %v406_v41 = vshll.u32 %v271_v9, 16  ;;  %v402_v46 = vrot.slane %v400_v37, 5 }
  0x31   : > { %v490_v43 = vmax.bf16 %v482_v34, %v900_v22  ;;  %v395_v44 = vsel %vm839_vm2, %v390_v36, %v394_v20  ;;  %v566_v47 = vshrl.u32 %v954_v32, 16  ;;  %v569_v50 = vshll.u32 %v954_v32, 16  ;;  %v274_v20 = vld [vmem:[%s812_s24 + $0x40] sm:$0xf]  ;;  %v305_v14 = vld [vmem:[%s894_s6 + $0x10] sm:$0xf] }
  0x32   : > { %v437_v0 = vmax.bf16 %v395_v44, %v915_v51  ;;  %v467_v49 = vmax.bf16 %v444_v27, %v395_v44  ;;  %v559_v26 = vrot.slane %v558_v38, 4  ;;  %v408_v42 = vrot.slane %v406_v41, 5  ;;  %v282_v27 = vld [vmem:[%s860_s28 + $0x18] sm:$0xf]  ;;  %v275_v30 = vld [vmem:[%s812_s24 + $0x44] sm:$0x1] }
  0x33   : > { %v618_v54 = vmax.bf16 %v550_v35, %v490_v43  ;;  %v403_v55 = vor.u32 %v402_v46, %v399_v40  ;;  %v568_v22 = vrot.slane %v566_v47, 4  ;;  %v575_v51 = vshll.u32 %v296_v45, 16  ;;  %v299_v34 = vld [vmem:[%s807_s21 + $0x38] sm:$0xf] }
  0x34   : > { %v475_v57 = vmax.bf16 %v467_v49, %v280_v21  ;;  %v564_v58 = vsel %vm839_vm2, %v559_v26, %v563_v39  ;;  %v445_v59 = vmax.bf16 %v437_v0, %v947_v18  ;;  %v571_v2 = vrot.slane %v569_v50, 5  ;;  %v306_v0 = vld [vmem:[%s894_s6 + $0x14] sm:$0xf] }
  0x35   : > { %v626_v62 = vmax.bf16 %v618_v54, %v304_v48  ;;  %v404_v1 = vrot.slane %v403_v55, 4  ;;  %v411_v4 = vshrl.u32 %v970_v53, 16  ;;  %v577_v6 = vrot.slane %v575_v51, 5  ;;  %v300_v54 = vld [vmem:[%s807_s21 + $0x3c] sm:$0x1] }
  0x36   : > { %v483_v5 = vmax.bf16 %v475_v57, %v281_v63  ;;  %v414_v7 = vshll.u32 %v970_v53, 16  ;;  %v420_v3 = vshll.u32 %v273_v56, 16  ;;  %v572_v10 = vor.u32 %v571_v2, %v568_v22  ;;  %v283_v51 = vld [vmem:[%s860_s28 + $0x1c] sm:$0xf] }
  0x37   : > { %635 = vst.msk [vmem:[%s922_s9 + $0xc] sm:$0xf] %vm631_vm3, %v626_v62  ;;  %v409_v8 = vsel %vm839_vm2, %v404_v1, %v408_v42  ;;  %v413_v11 = vrot.slane %v411_v4, 4  ;;  %v580_v12 = vshrl.u32 %v978_v61, 16  ;;  %v583_v24 = vshll.u32 %v978_v61, 16 }
  0x38   : > { %v491_v13 = vmax.bf16 %v483_v5, %v931_v60  ;;  %v438_v15 = vmax.bf16 %v409_v8, %v947_v18  ;;  %v468_v16 = vmax.bf16 %v445_v59, %v409_v8  ;;  %v416_v19 = vrot.slane %v414_v7, 5  ;;  %v284_v8 = vld [vmem:[%s860_s28 + $0x20] sm:$0xf] }
  0x39   : > { %v573_v52 = vrot.slane %v572_v10, 4  ;;  %v422_v21 = vrot.slane %v420_v3, 5  ;;  %v582_v23 = vrot.slane %v580_v12, 4  ;;  %v585_v31 = vrot.slane %v583_v24, 5  ;;  %v307_v3 = vld [vmem:[%s894_s6 + $0x18] sm:$0xf] }
  0x3a   : > { %v619_v25 = vmax.bf16 %v564_v58, %v491_v13  ;;  %v476_v9 = vmax.bf16 %v468_v16, %v281_v63  ;;  %v417_v29 = vor.u32 %v416_v19, %v413_v11  ;;  %v446_v60 = vmax.bf16 %v438_v15, %v970_v53 }
  0x3b   : > { %v578_v18 = vsel %vm839_vm2, %v573_v52, %v577_v6  ;;  %v589_v33 = vshll.u32 %v298_v17, 16  ;;  %v449_v35 = vshrl.u32 %v274_v20, 16  ;;  %v452_v39 = vshll.u32 %v274_v20, 16 }
  0x3c   : > { %v627_v36 = vmax.bf16 %v619_v25, %v305_v14  ;;  %v484_v37 = vmax.bf16 %v476_v9, %v282_v27  ;;  %v418_v38 = vrot.slane %v417_v29, 4  ;;  %v586_v40 = vor.u32 %v585_v31, %v582_v23 }
  0x3d   : > { %v591_v41 = vrot.slane %v589_v33, 5  ;;  %v451_v43 = vrot.slane %v449_v35, 4  ;;  %v458_v44 = vshll.u32 %v275_v30, 16  ;;  %v454_v47 = vrot.slane %v452_v39, 5 }
  0x3e   : > { %636 = vst.msk [vmem:[%s922_s9 + $0x10] sm:$0xf] %vm631_vm3, %v627_v36  ;;  %v492_v45 = vmax.bf16 %v484_v37, %v954_v32  ;;  %v423_v46 = vsel %vm839_vm2, %v418_v38, %v422_v21  ;;  %v594_v48 = vshrl.u32 %v299_v34, 16  ;;  %v587_v42 = vrot.slane %v586_v40, 4 }
  0x3f   : > { %v439_v49 = vmax.bf16 %v423_v46, %v970_v53  ;;  %v469_v26 = vmax.bf16 %v446_v60, %v423_v46  ;;  %v460_v55 = vrot.slane %v458_v44, 5  ;;  %v455_v50 = vor.u32 %v454_v47, %v451_v43 }
  0x40   : > { %v620_v22 = vmax.bf16 %v578_v18, %v492_v45  ;;  %v596_v56 = vrot.slane %v594_v48, 4  ;;  %v597_v57 = vshll.u32 %v299_v34, 16  ;;  %v603_v1 = vshll.u32 %v300_v54, 16 }
  0x41   : > { %v477_v32 = vmax.bf16 %v469_v26, %v282_v27  ;;  %v447_v58 = vmax.bf16 %v439_v49, %v274_v20  ;;  %v456_v62 = vrot.slane %v455_v50, 4  ;;  %v592_v53 = vsel %vm839_vm2, %v587_v42, %v591_v41  ;;  %v308_v20 = vld [vmem:[%s894_s6 + $0x1c] sm:$0xf] }
  0x42   : > { %v628_v59 = vmax.bf16 %v620_v22, %v306_v0  ;;  %v599_v63 = vrot.slane %v597_v57, 5  ;;  %v605_v11 = vrot.slane %v603_v1, 5 }
  0x43   : > { %v485_v2 = vmax.bf16 %v477_v32, %v283_v51  ;;  %v461_v4 = vsel %vm839_vm2, %v456_v62, %v460_v55 }
  0x44   : > { %637 = vst.msk [vmem:[%s922_s9 + $0x14] sm:$0xf] %vm631_vm3, %v628_v59  ;;  %v600_v5 = vor.u32 %v599_v63, %v596_v56  ;;  %v470_v7 = vmax.bf16 %v461_v4, %v447_v58 }
  0x45   : > { %v493_v6 = vmax.bf16 %v485_v2, %v978_v61 }
  0x46   : > { %v601_v10 = vrot.slane %v600_v5, 4  ;;  %v478_v13 = vmax.bf16 %v470_v7, %v283_v51 }
  0x47   : > { %v621_v12 = vmax.bf16 %v592_v53, %v493_v6 }
  0x48   : > { %v486_v16 = vmax.bf16 %v478_v13, %v284_v8  ;;  %v606_v17 = vsel %vm839_vm2, %v601_v10, %v605_v11 }
  0x49   : > { %v629_v15 = vmax.bf16 %v621_v12, %v307_v3 }
  0x4a   : > { %v494_v19 = vmax.bf16 %v486_v16, %v299_v34 }
  0x4b   : > { %638 = vst.msk [vmem:[%s922_s9 + $0x18] sm:$0xf] %vm631_vm3, %v629_v15 }
  0x4c   : > { %v622_v14 = vmax.bf16 %v606_v17, %v494_v19 }
  0x4e   : > { %v630_v52 = vmax.bf16 %v622_v14, %v308_v20 }
  0x50   : > { %639 = vst.msk [vmem:[%s922_s9 + $0x1c] sm:$0xf] %vm631_vm3, %v630_v52 }
  0x51 PF: > { %s14_s15 = sadd.s32 1, %s765_s15  }
  0x52   : > { %p11_p4 = scmp.ge.s32.totalorder %s14_s15, 4  }
  0x54   :  { %13 = sbr.rel (!%p11_p4) target bundleno = 1 (0x1), region = 75 }

// kernel: resnet50_forward.57
= control target key start
LH: loop header
LB: loop body
LE: loop exit
PB: predicated region body
PF: predicated region fallthrough
CT: control target
= control target key end

     0   :  { %s721_s1 = inlined_call_operand.vmem [shape: bf16[128,128], index: 1, kind: input, shape index: {}]   ;;  %s722_s0 = inlined_call_operand.vmem [shape: bf16[128,128], index: 0, kind: input, shape index: {}]   ;;  %s723_s2 = inlined_call_operand.vmem [shape: f32[1,128], index: 2, kind: input, shape index: {}]   ;;  %s724_s3 = inlined_call_operand.vmem [shape: bf16[128,128], index: 3, kind: output, shape index: {}]  }
   0x1   :  { %v610_v0 = vld [vmem:[%s721_s1 + $0x38] sm:$0xff]   ;;  %v611_v1 = vld [vmem:[%s721_s1 + $0x30] sm:$0xff]   ;;  %v612_v2 = vld [vmem:[%s721_s1 + $0x28] sm:$0xff]  }
   0x2   :  { %562 = vmatprep.subr.bf16.mxu0 %v610_v0  ;;  %594 = vmatprep.subr.bf16.mxu1 %v610_v0  ;;  %v613_v3 = vld [vmem:[%s721_s1 + $0x20] sm:$0xff]   ;;  %v614_v6 = vld [vmem:[%s721_s1 + $0x18] sm:$0xff]   ;;  %v615_v7 = vld [vmem:[%s721_s1 + $0x10] sm:$0xff]  }
   0x3   :  { %563 = vmatpush3.bf16.msra.mxu0 %v610_v0  ;;  %602 = vmatpush3.bf16.msra.mxu1 %v610_v0  ;;  %v618_v4 = vld [vmem:[%s722_s0] sm:$0xff]   ;;  %v616_v8 = vld [vmem:[%s721_s1 + $0x8] sm:$0xff]   ;;  %v622_v12 = vld [vmem:[%s722_s0 + $0x10] sm:$0xff]  }
   0x4   :  { %564 = vmatprep.subr.bf16.mxu0 %v611_v1  ;;  %595 = vmatprep.subr.bf16.mxu1 %v611_v1  ;;  %v619_v5 = vld [vmem:[%s722_s0 + $0x20] sm:$0xff]   ;;  %v620_v10 = vld [vmem:[%s722_s0 + $0x8] sm:$0xff]   ;;  %v623_v13 = vld [vmem:[%s722_s0 + $0x30] sm:$0xff]  }
   0x5   :  { %578 = vmatprep.mubr.bf16.mxu0 %v618_v4  ;;  %586 = vmatprep.mubr.bf16.mxu1 %v619_v5  ;;  %v617_v9 = vld [vmem:[%s721_s1] sm:$0xff]   ;;  %v621_v11 = vld [vmem:[%s722_s0 + $0x28] sm:$0xff]   ;;  %v624_v14 = vld [vmem:[%s722_s0 + $0x18] sm:$0xff]  }
   0x6   :  { %v625_v15 = vld [vmem:[%s722_s0 + $0x38] sm:$0xff]   ;;  %v466_v16 = vld [vmem:[%s723_s2] ss:$0 sm:$0xff] }
   0x7   :  { %565 = vmatpush3.bf16.msra.mxu0 %v611_v1  ;;  %603 = vmatpush3.bf16.msra.mxu1 %v611_v1 }
   0x8   :  { %566 = vmatprep.subr.bf16.mxu0 %v612_v2  ;;  %596 = vmatprep.subr.bf16.mxu1 %v612_v2 }
   0xb   :  { %567 = vmatpush3.bf16.msra.mxu0 %v612_v2  ;;  %604 = vmatpush3.bf16.msra.mxu1 %v612_v2 }
   0xc   :  { %568 = vmatprep.subr.bf16.mxu0 %v613_v3  ;;  %597 = vmatprep.subr.bf16.mxu1 %v613_v3 }
   0xf   :  { %569 = vmatpush3.bf16.msra.mxu0 %v613_v3  ;;  %605 = vmatpush3.bf16.msra.mxu1 %v613_v3 }
  0x10   :  { %570 = vmatprep.subr.bf16.mxu0 %v614_v6  ;;  %598 = vmatprep.subr.bf16.mxu1 %v614_v6 }
  0x13   :  { %571 = vmatpush3.bf16.msra.mxu0 %v614_v6  ;;  %606 = vmatpush3.bf16.msra.mxu1 %v614_v6 }
  0x14   :  { %572 = vmatprep.subr.bf16.mxu0 %v615_v7  ;;  %599 = vmatprep.subr.bf16.mxu1 %v615_v7 }
  0x17   :  { %573 = vmatpush3.bf16.msra.mxu0 %v615_v7  ;;  %607 = vmatpush3.bf16.msra.mxu1 %v615_v7 }
  0x18   :  { %574 = vmatprep.subr.bf16.mxu0 %v616_v8  ;;  %600 = vmatprep.subr.bf16.mxu1 %v616_v8 }
  0x1b   :  { %575 = vmatpush3.bf16.msra.mxu0 %v616_v8  ;;  %608 = vmatpush3.bf16.msra.mxu1 %v616_v8 }
  0x1c   :  { %576 = vmatprep.subr.bf16.mxu0 %v617_v9  ;;  %601 = vmatprep.subr.bf16.mxu1 %v617_v9 }
  0x1f   :  { %577 = vmatpush3.bf16.msra.mxu0 %v617_v9  ;;  %609 = vmatpush3.bf16.msra.mxu1 %v617_v9 }
  0x22   :  { %579 = vmatmul.mubr.bf16.vlgmr.msra.gmra.mxu0 %v620_v10  ;;  %587 = vmatmul.mubr.bf16.vlgmr.msra.gmra.mxu1 %v621_v11 }
  0x23   :  { %582 = vmatprep.mubr.bf16.mxu0 %v622_v12  ;;  %590 = vmatprep.mubr.bf16.mxu1 %v623_v13 }
  0x2a   :  { %583 = vmatmul.mubr.bf16.gmra.mxu0 %v624_v14  ;;  %591 = vmatmul.mubr.bf16.gmra.mxu1 %v625_v15 }
  0xe2   :  { %v580_v17 = vpop.f32.mrf.mxu0  ;;  %v588_v18 = vpop.f32.mrf.mxu1 }
  0xe3   :  { %v336_v19 = vadd.f32 %v580_v17, %v466_v16  ;;  %v344_v20 = vadd.f32 %v588_v18, %v466_v16 }
  0xe4   :  { %v213_v21 = vpop.f32.mrf.mxu0  ;;  %v245_v22 = vpop.f32.mrf.mxu1 }
  0xe5   :  { %v334_v23 = vadd.f32 %v466_v16, %v213_v21  ;;  %v342_v24 = vadd.f32 %v466_v16, %v245_v22  ;;  %v352_v29 = vmax.f32 %v336_v19, 0.0  ;;  %v360_v30 = vmax.f32 %v344_v20, 0.0 }
  0xe6   :  { %v581_v25 = vpop.f32.mrf.mxu0  ;;  %v589_v26 = vpop.f32.mrf.mxu1 }
  0xe7   :  { %v337_v27 = vadd.f32 %v581_v25, %v466_v16  ;;  %v345_v28 = vadd.f32 %v589_v26, %v466_v16  ;;  %v350_v37 = vmax.f32 %v334_v23, 0.0  ;;  %v358_v38 = vmax.f32 %v342_v24, 0.0 }
  0xe8   :  { %v216_v31 = vpop.f32.mrf.mxu0  ;;  %v248_v32 = vpop.f32.mrf.mxu1 }
  0xe9   :  { %v353_v33 = vmax.f32 %v337_v27, 0.0  ;;  %v361_v34 = vmax.f32 %v345_v28, 0.0  ;;  %v335_v35 = vadd.f32 %v466_v16, %v216_v31  ;;  %v343_v36 = vadd.f32 %v466_v16, %v248_v32 }
  0xea   :  { %v584_v39 = vpop.f32.mrf.mxu0  ;;  %v592_v40 = vpop.f32.mrf.mxu1 }
  0xeb   :  { %v507_v41 = vpack.c.bf16 %v353_v33, %v352_v29  ;;  %v527_v42 = vpack.c.bf16 %v361_v34, %v360_v30  ;;  %v351_v43 = vmax.f32 %v335_v35, 0.0  ;;  %v359_v44 = vmax.f32 %v343_v36, 0.0 }
  0xec   :  { %v340_v45 = vadd.f32 %v584_v39, %v466_v16  ;;  %v348_v46 = vadd.f32 %v592_v40, %v466_v16  ;;  %v229_v47 = vpop.f32.mrf.mxu0  ;;  %v261_v48 = vpop.f32.mrf.mxu1 }
  0xed   :  { %539 = vst [vmem:[%s724_s3 + $0x8] sm:$0xff] %v507_v41   ;;  %543 = vst [vmem:[%s724_s3 + $0x28] sm:$0xff] %v527_v42   ;;  %v502_v49 = vpack.c.bf16 %v351_v43, %v350_v37  ;;  %v522_v50 = vpack.c.bf16 %v359_v44, %v358_v38  ;;  %v338_v51 = vadd.f32 %v466_v16, %v229_v47 }
  0xee   :  { %v346_v52 = vadd.f32 %v466_v16, %v261_v48  ;;  %v585_v53 = vpop.f32.mrf.mxu0  ;;  %v593_v54 = vpop.f32.mrf.mxu1  ;;  %v356_v57 = vmax.f32 %v340_v45, 0.0  ;;  %v364_v58 = vmax.f32 %v348_v46, 0.0 }
  0xef   :  { %503 = vst [vmem:[%s724_s3] sm:$0xff] %v502_v49   ;;  %542 = vst [vmem:[%s724_s3 + $0x20] sm:$0xff] %v522_v50   ;;  %v341_v55 = vadd.f32 %v585_v53, %v466_v16  ;;  %v349_v56 = vadd.f32 %v593_v54, %v466_v16  ;;  %v354_v1 = vmax.f32 %v338_v51, 0.0 }
  0xf0   :  { %v232_v59 = vpop.f32.mrf.mxu0  ;;  %v264_v60 = vpop.f32.mrf.mxu1  ;;  %v362_v2 = vmax.f32 %v346_v52, 0.0 }
  0xf1   :  { %v357_v61 = vmax.f32 %v341_v55, 0.0  ;;  %v365_v62 = vmax.f32 %v349_v56, 0.0  ;;  %v339_v63 = vadd.f32 %v466_v16, %v232_v59  ;;  %v347_v0 = vadd.f32 %v466_v16, %v264_v60 }
  0xf3   :  { %v517_v3 = vpack.c.bf16 %v357_v61, %v356_v57  ;;  %v537_v4 = vpack.c.bf16 %v365_v62, %v364_v58  ;;  %v355_v5 = vmax.f32 %v339_v63, 0.0  ;;  %v363_v6 = vmax.f32 %v347_v0, 0.0 }
  0xf5   :  { %541 = vst [vmem:[%s724_s3 + $0x18] sm:$0xff] %v517_v3   ;;  %545 = vst [vmem:[%s724_s3 + $0x38] sm:$0xff] %v537_v4   ;;  %v512_v7 = vpack.c.bf16 %v355_v5, %v354_v1  ;;  %v532_v8 = vpack.c.bf16 %v363_v6, %v362_v2 }
  0xf7   :  { %540 = vst [vmem:[%s724_s3 + $0x10] sm:$0xff] %v512_v7   ;;  %544 = vst [vmem:[%s724_s3 + $0x30] sm:$0xff] %v532_v8  }

// kernel: resnet50_forward.55
= control target key start
LH: loop header
LB: loop body
LE: loop exit
PB: predicated region body
PF: predicated region fallthrough
CT: control target
= control target key end

     0   :  { %v2147_v0 = vmov 0   ;;  %s2605_s1 = inlined_call_operand.vmem [shape: bf16[256,128], index: 1, kind: input, shape index: {}]   ;;  %s2606_s0 = inlined_call_operand.vmem [shape: bf16[512,256], index: 0, kind: input, shape index: {}]   ;;  %s2607_s2 = inlined_call_operand.vmem [shape: f32[1,128], index: 2, kind: input, shape index: {}]   ;;  %s2608_s3 = inlined_call_operand.vmem [shape: bf16[512,128], index: 3, kind: output, shape index: {}]  }
   0x1   :  { %659 = vmatprep.subr.bf16.mxu0 %v2147_v0  ;;  %2002 = vmatprep.subr.bf16.mxu1 %v2147_v0  ;;  %v2035_v1 = vld [vmem:[%s2605_s1 + $0x38] sm:$0xff]   ;;  %v2036_v2 = vld [vmem:[%s2605_s1 + $0x30] sm:$0xff]   ;;  %v2037_v3 = vld [vmem:[%s2605_s1 + $0x28] sm:$0xff]  }
   0x2   :  { %660 = vmatpush1.bf16.msra.mxu0 %v2035_v1  ;;  %2018 = vmatpush1.bf16.msra.mxu1 %v2035_v1  ;;  %v2038_v4 = vld [vmem:[%s2605_s1 + $0x20] sm:$0xff]   ;;  %v2039_v5 = vld [vmem:[%s2605_s1 + $0x18] sm:$0xff]   ;;  %v2040_v7 = vld [vmem:[%s2605_s1 + $0x10] sm:$0xff]  }
   0x3   :  { %661 = vmatprep.subr.bf16.mxu0 %v2147_v0  ;;  %2003 = vmatprep.subr.bf16.mxu1 %v2147_v0  ;;  %v2053_v6 = vld [vmem:[%s2606_s0 + $0x4] ss:$8 sps:$4 sm:$0xff]   ;;  %v2043_v11 = vld [vmem:[%s2605_s1 + $0x78] sm:$0xff]   ;;  %v2044_v12 = vld [vmem:[%s2605_s1 + $0x70] sm:$0xff]  }
   0x4   :  { %v2056_v8 = vld [vmem:[%s2606_s0 + $0x104] ss:$8 sps:$4 sm:$0xff]   ;;  %691 = vmatprep.mubr.bf16.mxu0 %v2053_v6  ;;  %v2047_v15 = vld [vmem:[%s2605_s1 + $0x58] sm:$0xff]   ;;  %v2048_v16 = vld [vmem:[%s2605_s1 + $0x50] sm:$0xff]  }
   0x5   :  { %819 = vmatprep.mubr.bf16.mxu1 %v2056_v8  ;;  %v2041_v9 = vld [vmem:[%s2605_s1 + $0x8] sm:$0xff]   ;;  %v2042_v10 = vld [vmem:[%s2605_s1] sm:$0xff]   ;;  %v2057_v21 = vld [vmem:[%s2606_s0 + $0x14] ss:$8 sps:$4 sm:$0xff]  }
   0x6   :  { %662 = vmatpush1.bf16.msra.mxu0 %v2036_v2  ;;  %2019 = vmatpush1.bf16.msra.mxu1 %v2036_v2  ;;  %v2045_v13 = vld [vmem:[%s2605_s1 + $0x68] sm:$0xff]   ;;  %v2046_v14 = vld [vmem:[%s2605_s1 + $0x60] sm:$0xff]   ;;  %v2059_v22 = vld [vmem:[%s2606_s0 + $0x114] ss:$8 sps:$4 sm:$0xff]  }
   0x7   :  { %663 = vmatprep.subr.bf16.mxu0 %v2147_v0  ;;  %2004 = vmatprep.subr.bf16.mxu1 %v2147_v0  ;;  %v2049_v17 = vld [vmem:[%s2605_s1 + $0x48] sm:$0xff]   ;;  %v2050_v18 = vld [vmem:[%s2605_s1 + $0x40] sm:$0xff]   ;;  %v2061_v23 = vld [vmem:[%s2606_s0 + $0x10] ss:$8 sps:$4 sm:$0xff]  }
   0x8   :  { %v2051_v19 = vld [vmem:[%s2606_s0] ss:$8 sps:$4 sm:$0xff]   ;;  %v2062_v24 = vld [vmem:[%s2606_s0 + $0x110] ss:$8 sps:$4 sm:$0xff]   ;;  %v2063_v25 = vld [vmem:[%s2606_s0 + $0x24] ss:$8 sps:$4 sm:$0xff]  }
   0x9   :  { %v2054_v20 = vld [vmem:[%s2606_s0 + $0x100] ss:$8 sps:$4 sm:$0xff]   ;;  %v2065_v26 = vld [vmem:[%s2606_s0 + $0x124] ss:$8 sps:$4 sm:$0xff]   ;;  %v2069_v29 = vld [vmem:[%s2606_s0 + $0x34] ss:$8 sps:$4 sm:$0xff]  }
   0xa   :  { %664 = vmatpush1.bf16.msra.mxu0 %v2037_v3  ;;  %2020 = vmatpush1.bf16.msra.mxu1 %v2037_v3  ;;  %v2067_v27 = vld [vmem:[%s2606_s0 + $0x20] ss:$8 sps:$4 sm:$0xff]   ;;  %v2071_v30 = vld [vmem:[%s2606_s0 + $0x134] ss:$8 sps:$4 sm:$0xff]   ;;  %v2073_v31 = vld [vmem:[%s2606_s0 + $0x30] ss:$8 sps:$4 sm:$0xff]  }
   0xb   :  { %665 = vmatprep.subr.bf16.mxu0 %v2147_v0  ;;  %2005 = vmatprep.subr.bf16.mxu1 %v2147_v0  ;;  %v2068_v28 = vld [vmem:[%s2606_s0 + $0x120] ss:$8 sps:$4 sm:$0xff]   ;;  %v2074_v32 = vld [vmem:[%s2606_s0 + $0x130] ss:$8 sps:$4 sm:$0xff]   ;;  %v2075_v33 = vld [vmem:[%s2606_s0 + $0x44] ss:$8 sps:$4 sm:$0xff]  }
   0xc   :  { %v2077_v34 = vld [vmem:[%s2606_s0 + $0x144] ss:$8 sps:$4 sm:$0xff]   ;;  %v2079_v35 = vld [vmem:[%s2606_s0 + $0x40] ss:$8 sps:$4 sm:$0xff]   ;;  %v2081_v37 = vld [vmem:[%s2606_s0 + $0x54] ss:$8 sps:$4 sm:$0xff]  }
   0xd   :  { %v2080_v36 = vld [vmem:[%s2606_s0 + $0x140] ss:$8 sps:$4 sm:$0xff]   ;;  %v2083_v38 = vld [vmem:[%s2606_s0 + $0x154] ss:$8 sps:$4 sm:$0xff]   ;;  %v2085_v39 = vld [vmem:[%s2606_s0 + $0x50] ss:$8 sps:$4 sm:$0xff]  }
   0xe   :  { %666 = vmatpush1.bf16.msra.mxu0 %v2038_v4  ;;  %2021 = vmatpush1.bf16.msra.mxu1 %v2038_v4  ;;  %v2086_v40 = vld [vmem:[%s2606_s0 + $0x150] ss:$8 sps:$4 sm:$0xff]   ;;  %v2087_v41 = vld [vmem:[%s2606_s0 + $0x64] ss:$8 sps:$4 sm:$0xff]   ;;  %v2091_v43 = vld [vmem:[%s2606_s0 + $0x60] ss:$8 sps:$4 sm:$0xff]  }
   0xf   :  { %667 = vmatprep.subr.bf16.mxu0 %v2147_v0  ;;  %2006 = vmatprep.subr.bf16.mxu1 %v2147_v0  ;;  %v2089_v42 = vld [vmem:[%s2606_s0 + $0x164] ss:$8 sps:$4 sm:$0xff]   ;;  %v2092_v44 = vld [vmem:[%s2606_s0 + $0x160] ss:$8 sps:$4 sm:$0xff]   ;;  %v2093_v45 = vld [vmem:[%s2606_s0 + $0x74] ss:$8 sps:$4 sm:$0xff]  }
  0x10   :  { %v2095_v46 = vld [vmem:[%s2606_s0 + $0x174] ss:$8 sps:$4 sm:$0xff]   ;;  %v2097_v47 = vld [vmem:[%s2606_s0 + $0x70] ss:$8 sps:$4 sm:$0xff]   ;;  %v2099_v49 = vld [vmem:[%s2606_s0 + $0x84] ss:$8 sps:$4 sm:$0xff]  }
  0x11   :  { %v2098_v48 = vld [vmem:[%s2606_s0 + $0x170] ss:$8 sps:$4 sm:$0xff]   ;;  %v2101_v50 = vld [vmem:[%s2606_s0 + $0x184] ss:$8 sps:$4 sm:$0xff]   ;;  %v2103_v51 = vld [vmem:[%s2606_s0 + $0x80] ss:$8 sps:$4 sm:$0xff]  }
  0x12   :  { %668 = vmatpush1.bf16.msra.mxu0 %v2039_v5  ;;  %2022 = vmatpush1.bf16.msra.mxu1 %v2039_v5  ;;  %v2104_v52 = vld [vmem:[%s2606_s0 + $0x180] ss:$8 sps:$4 sm:$0xff]   ;;  %v2105_v53 = vld [vmem:[%s2606_s0 + $0x94] ss:$8 sps:$4 sm:$0xff]   ;;  %v2109_v55 = vld [vmem:[%s2606_s0 + $0x90] ss:$8 sps:$4 sm:$0xff]  }
  0x13   :  { %669 = vmatprep.subr.bf16.mxu0 %v2147_v0  ;;  %2007 = vmatprep.subr.bf16.mxu1 %v2147_v0  ;;  %v2107_v54 = vld [vmem:[%s2606_s0 + $0x194] ss:$8 sps:$4 sm:$0xff]   ;;  %v2110_v56 = vld [vmem:[%s2606_s0 + $0x190] ss:$8 sps:$4 sm:$0xff]   ;;  %v2111_v57 = vld [vmem:[%s2606_s0 + $0xa4] ss:$8 sps:$4 sm:$0xff]  }
  0x14   :  { %v2113_v58 = vld [vmem:[%s2606_s0 + $0x1a4] ss:$8 sps:$4 sm:$0xff]   ;;  %v2115_v59 = vld [vmem:[%s2606_s0 + $0xa0] ss:$8 sps:$4 sm:$0xff]   ;;  %v2117_v61 = vld [vmem:[%s2606_s0 + $0xb4] ss:$8 sps:$4 sm:$0xff]  }
  0x15   :  { %v2116_v60 = vld [vmem:[%s2606_s0 + $0x1a0] ss:$8 sps:$4 sm:$0xff]   ;;  %v2119_v62 = vld [vmem:[%s2606_s0 + $0x1b4] ss:$8 sps:$4 sm:$0xff]   ;;  %v2121_v63 = vld [vmem:[%s2606_s0 + $0xb0] ss:$8 sps:$4 sm:$0xff]  }
  0x16   :  { %670 = vmatpush1.bf16.msra.mxu0 %v2040_v7  ;;  %2023 = vmatpush1.bf16.msra.mxu1 %v2040_v7  ;;  %v2123_v1 = vld [vmem:[%s2606_s0 + $0xc4] ss:$8 sps:$4 sm:$0xff]   ;;  %v2127_v3 = vld [vmem:[%s2606_s0 + $0xc0] ss:$8 sps:$4 sm:$0xff]   ;;  %v2129_v5 = vld [vmem:[%s2606_s0 + $0xd4] ss:$8 sps:$4 sm:$0xff]  }
  0x17   :  { %671 = vmatprep.subr.bf16.mxu0 %v2147_v0  ;;  %2008 = vmatprep.subr.bf16.mxu1 %v2147_v0  ;;  %v2125_v2 = vld [vmem:[%s2606_s0 + $0x1c4] ss:$8 sps:$4 sm:$0xff]   ;;  %v2128_v4 = vld [vmem:[%s2606_s0 + $0x1c0] ss:$8 sps:$4 sm:$0xff]   ;;  %v2131_v6 = vld [vmem:[%s2606_s0 + $0x1d4] ss:$8 sps:$4 sm:$0xff]  }
  0x18   :  { %v2133_v7 = vld [vmem:[%s2606_s0 + $0xd0] ss:$8 sps:$4 sm:$0xff]  }
  0x19   :  { %v2134_v8 = vld [vmem:[%s2606_s0 + $0x1d0] ss:$8 sps:$4 sm:$0xff]  }
  0x1a   :  { %672 = vmatpush1.bf16.msra.mxu0 %v2041_v9  ;;  %2024 = vmatpush1.bf16.msra.mxu1 %v2041_v9  ;;  %v2135_v9 = vld [vmem:[%s2606_s0 + $0xe4] ss:$8 sps:$4 sm:$0xff]  }
  0x1b   :  { %673 = vmatprep.subr.bf16.mxu0 %v2147_v0  ;;  %2009 = vmatprep.subr.bf16.mxu1 %v2147_v0 }
  0x1e   :  { %674 = vmatpush1.bf16.msra.mxu0 %v2042_v10  ;;  %2025 = vmatpush1.bf16.msra.mxu1 %v2042_v10  ;;  %v2137_v10 = vld [vmem:[%s2606_s0 + $0x1e4] ss:$8 sps:$4 sm:$0xff]  }
  0x1f   :  { %675 = vmatprep.subr.bf16.mxu0 %v2147_v0  ;;  %2010 = vmatprep.subr.bf16.mxu1 %v2147_v0 }
  0x22   :  { %676 = vmatpush2.bf16.msra.mxu0 %v2043_v11  ;;  %2026 = vmatpush2.bf16.msra.mxu1 %v2043_v11  ;;  %v2139_v11 = vld [vmem:[%s2606_s0 + $0xe0] ss:$8 sps:$4 sm:$0xff]  }
  0x23   :  { %677 = vmatprep.subr.bf16.mxu0 %v2147_v0  ;;  %2011 = vmatprep.subr.bf16.mxu1 %v2147_v0 }
  0x26   :  { %678 = vmatpush2.bf16.msra.mxu0 %v2044_v12  ;;  %2027 = vmatpush2.bf16.msra.mxu1 %v2044_v12  ;;  %v2140_v12 = vld [vmem:[%s2606_s0 + $0x1e0] ss:$8 sps:$4 sm:$0xff]  }
  0x27   :  { %679 = vmatprep.subr.bf16.mxu0 %v2147_v0  ;;  %2012 = vmatprep.subr.bf16.mxu1 %v2147_v0 }
  0x2a   :  { %680 = vmatpush2.bf16.msra.mxu0 %v2045_v13  ;;  %2028 = vmatpush2.bf16.msra.mxu1 %v2045_v13  ;;  %v2141_v13 = vld [vmem:[%s2606_s0 + $0xf4] ss:$8 sps:$4 sm:$0xff]  }
  0x2b   :  { %681 = vmatprep.subr.bf16.mxu0 %v2147_v0  ;;  %2013 = vmatprep.subr.bf16.mxu1 %v2147_v0 }
  0x2e   :  { %682 = vmatpush2.bf16.msra.mxu0 %v2046_v14  ;;  %2029 = vmatpush2.bf16.msra.mxu1 %v2046_v14  ;;  %v2143_v14 = vld [vmem:[%s2606_s0 + $0x1f4] ss:$8 sps:$4 sm:$0xff]  }
  0x2f   :  { %683 = vmatprep.subr.bf16.mxu0 %v2147_v0  ;;  %2014 = vmatprep.subr.bf16.mxu1 %v2147_v0 }
  0x32   :  { %684 = vmatpush2.bf16.msra.mxu0 %v2047_v15  ;;  %2030 = vmatpush2.bf16.msra.mxu1 %v2047_v15  ;;  %v2145_v15 = vld [vmem:[%s2606_s0 + $0xf0] ss:$8 sps:$4 sm:$0xff]  }
  0x33   :  { %685 = vmatprep.subr.bf16.mxu0 %v2147_v0  ;;  %2015 = vmatprep.subr.bf16.mxu1 %v2147_v0 }
  0x36   :  { %686 = vmatpush2.bf16.msra.mxu0 %v2048_v16  ;;  %2031 = vmatpush2.bf16.msra.mxu1 %v2048_v16  ;;  %v2146_v16 = vld [vmem:[%s2606_s0 + $0x1f0] ss:$8 sps:$4 sm:$0xff]  }
  0x37   :  { %687 = vmatprep.subr.bf16.mxu0 %v2147_v0  ;;  %2016 = vmatprep.subr.bf16.mxu1 %v2147_v0 }
  0x3a   :  { %688 = vmatpush2.bf16.msra.mxu0 %v2049_v17  ;;  %2032 = vmatpush2.bf16.msra.mxu1 %v2049_v17 }
  0x3b   :  { %689 = vmatprep.subr.bf16.mxu0 %v2147_v0  ;;  %2017 = vmatprep.subr.bf16.mxu1 %v2147_v0  ;;  %v2122_v0 = vld [vmem:[%s2606_s0 + $0x1b0] ss:$8 sps:$4 sm:$0xff]  }
  0x3e   :  { %690 = vmatpush2.bf16.msra.mxu0 %v2050_v18  ;;  %2033 = vmatpush2.bf16.msra.mxu1 %v2050_v18  ;;  %v2443_v18 = vld [vmem:[%s2607_s2] ss:$0 sm:$0xff] }
  0x41   :  { %692 = vmatmul.mubr.bf16.vlgmr.msra.gmra.mxu0 %v2051_v19  ;;  %820 = vmatmul.mubr.bf16.vlgmr.msra.gmra.mxu1 %v2054_v20 }
  0x42   :  { %699 = vmatprep.mubr.bf16.mxu0 %v2057_v21  ;;  %827 = vmatprep.mubr.bf16.mxu1 %v2059_v22 }
  0x49   :  { %700 = vmatmul.mubr.bf16.gmra.mxu0 %v2061_v23  ;;  %828 = vmatmul.mubr.bf16.gmra.mxu1 %v2062_v24 }
  0x4a   :  { %707 = vmatprep.mubr.bf16.mxu0 %v2063_v25  ;;  %835 = vmatprep.mubr.bf16.mxu1 %v2065_v26 }
  0x51   :  { %708 = vmatmul.mubr.bf16.gmra.mxu0 %v2067_v27  ;;  %836 = vmatmul.mubr.bf16.gmra.mxu1 %v2068_v28 }
  0x52   :  { %715 = vmatprep.mubr.bf16.mxu0 %v2069_v29  ;;  %843 = vmatprep.mubr.bf16.mxu1 %v2071_v30 }
  0x59   :  { %716 = vmatmul.mubr.bf16.gmra.mxu0 %v2073_v31  ;;  %844 = vmatmul.mubr.bf16.gmra.mxu1 %v2074_v32 }
  0x5a   :  { %723 = vmatprep.mubr.bf16.mxu0 %v2075_v33  ;;  %851 = vmatprep.mubr.bf16.mxu1 %v2077_v34 }
  0x61   :  { %724 = vmatmul.mubr.bf16.gmra.mxu0 %v2079_v35  ;;  %852 = vmatmul.mubr.bf16.gmra.mxu1 %v2080_v36 }
  0x62   :  { %731 = vmatprep.mubr.bf16.mxu0 %v2081_v37  ;;  %859 = vmatprep.mubr.bf16.mxu1 %v2083_v38 }
  0x69   :  { %732 = vmatmul.mubr.bf16.gmra.mxu0 %v2085_v39  ;;  %860 = vmatmul.mubr.bf16.gmra.mxu1 %v2086_v40 }
  0x6a   :  { %739 = vmatprep.mubr.bf16.mxu0 %v2087_v41  ;;  %867 = vmatprep.mubr.bf16.mxu1 %v2089_v42 }
  0x71   :  { %740 = vmatmul.mubr.bf16.gmra.mxu0 %v2091_v43  ;;  %868 = vmatmul.mubr.bf16.gmra.mxu1 %v2092_v44 }
  0x72   :  { %747 = vmatprep.mubr.bf16.mxu0 %v2093_v45  ;;  %875 = vmatprep.mubr.bf16.mxu1 %v2095_v46 }
  0x79   :  { %748 = vmatmul.mubr.bf16.gmra.mxu0 %v2097_v47  ;;  %876 = vmatmul.mubr.bf16.gmra.mxu1 %v2098_v48 }
  0x7a   :  { %755 = vmatprep.mubr.bf16.mxu0 %v2099_v49  ;;  %883 = vmatprep.mubr.bf16.mxu1 %v2101_v50 }
  0x81   :  { %756 = vmatmul.mubr.bf16.gmra.mxu0 %v2103_v51  ;;  %884 = vmatmul.mubr.bf16.gmra.mxu1 %v2104_v52 }
  0x82   :  { %763 = vmatprep.mubr.bf16.mxu0 %v2105_v53  ;;  %891 = vmatprep.mubr.bf16.mxu1 %v2107_v54 }
  0x89   :  { %764 = vmatmul.mubr.bf16.gmra.mxu0 %v2109_v55  ;;  %892 = vmatmul.mubr.bf16.gmra.mxu1 %v2110_v56 }
  0x8a   :  { %771 = vmatprep.mubr.bf16.mxu0 %v2111_v57  ;;  %899 = vmatprep.mubr.bf16.mxu1 %v2113_v58 }
  0x91   :  { %772 = vmatmul.mubr.bf16.gmra.mxu0 %v2115_v59  ;;  %900 = vmatmul.mubr.bf16.gmra.mxu1 %v2116_v60 }
  0x92   :  { %779 = vmatprep.mubr.bf16.mxu0 %v2117_v61  ;;  %907 = vmatprep.mubr.bf16.mxu1 %v2119_v62 }
  0x99   :  { %780 = vmatmul.mubr.bf16.gmra.mxu0 %v2121_v63  ;;  %908 = vmatmul.mubr.bf16.gmra.mxu1 %v2122_v0 }
  0x9a   :  { %787 = vmatprep.mubr.bf16.mxu0 %v2123_v1  ;;  %915 = vmatprep.mubr.bf16.mxu1 %v2125_v2 }
  0xa1   :  { %788 = vmatmul.mubr.bf16.gmra.mxu0 %v2127_v3  ;;  %916 = vmatmul.mubr.bf16.gmra.mxu1 %v2128_v4 }
  0xa2   :  { %795 = vmatprep.mubr.bf16.mxu0 %v2129_v5  ;;  %923 = vmatprep.mubr.bf16.mxu1 %v2131_v6 }
  0xa9   :  { %796 = vmatmul.mubr.bf16.gmra.mxu0 %v2133_v7  ;;  %924 = vmatmul.mubr.bf16.gmra.mxu1 %v2134_v8 }
  0xaa   :  { %803 = vmatprep.mubr.bf16.mxu0 %v2135_v9  ;;  %931 = vmatprep.mubr.bf16.mxu1 %v2137_v10 }
  0xb1   :  { %804 = vmatmul.mubr.bf16.gmra.mxu0 %v2139_v11  ;;  %932 = vmatmul.mubr.bf16.gmra.mxu1 %v2140_v12 }
  0xb2   :  { %811 = vmatprep.mubr.bf16.mxu0 %v2141_v13  ;;  %939 = vmatprep.mubr.bf16.mxu1 %v2143_v14 }
  0xb9   :  { %812 = vmatmul.mubr.bf16.gmra.mxu0 %v2145_v15  ;;  %940 = vmatmul.mubr.bf16.gmra.mxu1 %v2146_v16 }
 0x101   :  { %v693_v17 = vpop.f32.mrf.mxu0  ;;  %v821_v19 = vpop.f32.mrf.mxu1 }
 0x102   :  { %v1150_v22 = vadd.f32 %v2443_v18, %v693_v17  ;;  %v1182_v23 = vadd.f32 %v2443_v18, %v821_v19 }
 0x103   :  { %v695_v20 = vpop.f32.mrf.mxu0  ;;  %v823_v21 = vpop.f32.mrf.mxu1 }
 0x104   :  { %v1214_v30 = vmax.f32 %v1150_v22, 0.0  ;;  %v1246_v31 = vmax.f32 %v1182_v23, 0.0 }
 0x105   :  { %v696_v24 = vpop.f32.mrf.mxu0  ;;  %v824_v25 = vpop.f32.mrf.mxu1 }
 0x106   :  { %v1151_v26 = vadd.f32 %v2443_v18, %v696_v24  ;;  %v1183_v27 = vadd.f32 %v2443_v18, %v824_v25 }
 0x107   :  { %v698_v28 = vpop.f32.mrf.mxu0  ;;  %v826_v29 = vpop.f32.mrf.mxu1 }
 0x108   :  { %v1215_v32 = vmax.f32 %v1151_v26, 0.0  ;;  %v1247_v33 = vmax.f32 %v1183_v27, 0.0 }
 0x109   :  { %v701_v34 = vpop.f32.mrf.mxu0  ;;  %v829_v35 = vpop.f32.mrf.mxu1 }
 0x10a   :  { %v1814_v36 = vpack.c.bf16 %v1215_v32, %v1214_v30  ;;  %v1894_v37 = vpack.c.bf16 %v1247_v33, %v1246_v31  ;;  %v1152_v40 = vadd.f32 %v2443_v18, %v701_v34  ;;  %v1184_v41 = vadd.f32 %v2443_v18, %v829_v35 }
 0x10b   :  { %v703_v38 = vpop.f32.mrf.mxu0  ;;  %v831_v39 = vpop.f32.mrf.mxu1 }
 0x10c   :  { %1815 = vst [vmem:[%s2608_s3] sm:$0xff] %v1814_v36   ;;  %1986 = vst [vmem:[%s2608_s3 + $0x80] sm:$0xff] %v1894_v37   ;;  %v1216_v48 = vmax.f32 %v1152_v40, 0.0  ;;  %v1248_v49 = vmax.f32 %v1184_v41, 0.0 }
 0x10d   :  { %v704_v42 = vpop.f32.mrf.mxu0  ;;  %v832_v43 = vpop.f32.mrf.mxu1 }
 0x10e   :  { %v1153_v44 = vadd.f32 %v2443_v18, %v704_v42  ;;  %v1185_v45 = vadd.f32 %v2443_v18, %v832_v43 }
 0x10f   :  { %v706_v46 = vpop.f32.mrf.mxu0  ;;  %v834_v47 = vpop.f32.mrf.mxu1 }
 0x110   :  { %v1217_v50 = vmax.f32 %v1153_v44, 0.0  ;;  %v1249_v51 = vmax.f32 %v1185_v45, 0.0 }
 0x111   :  { %v709_v52 = vpop.f32.mrf.mxu0  ;;  %v837_v53 = vpop.f32.mrf.mxu1 }
 0x112   :  { %v1819_v54 = vpack.c.bf16 %v1217_v50, %v1216_v48  ;;  %v1899_v55 = vpack.c.bf16 %v1249_v51, %v1248_v49  ;;  %v1154_v58 = vadd.f32 %v2443_v18, %v709_v52  ;;  %v1186_v59 = vadd.f32 %v2443_v18, %v837_v53 }
 0x113   :  { %v711_v56 = vpop.f32.mrf.mxu0  ;;  %v839_v57 = vpop.f32.mrf.mxu1 }
 0x114   :  { %1971 = vst [vmem:[%s2608_s3 + $0x8] sm:$0xff] %v1819_v54   ;;  %1987 = vst [vmem:[%s2608_s3 + $0x88] sm:$0xff] %v1899_v55   ;;  %v1218_v2 = vmax.f32 %v1154_v58, 0.0  ;;  %v1250_v3 = vmax.f32 %v1186_v59, 0.0 }
 0x115   :  { %v712_v60 = vpop.f32.mrf.mxu0  ;;  %v840_v61 = vpop.f32.mrf.mxu1 }
 0x116   :  { %v1155_v62 = vadd.f32 %v2443_v18, %v712_v60  ;;  %v1187_v63 = vadd.f32 %v2443_v18, %v840_v61 }
 0x117   :  { %v714_v0 = vpop.f32.mrf.mxu0  ;;  %v842_v1 = vpop.f32.mrf.mxu1 }
 0x118   :  { %v1219_v4 = vmax.f32 %v1155_v62, 0.0  ;;  %v1251_v5 = vmax.f32 %v1187_v63, 0.0 }
 0x119   :  { %v717_v6 = vpop.f32.mrf.mxu0  ;;  %v845_v7 = vpop.f32.mrf.mxu1 }
 0x11a   :  { %v1824_v8 = vpack.c.bf16 %v1219_v4, %v1218_v2  ;;  %v1904_v9 = vpack.c.bf16 %v1251_v5, %v1250_v3  ;;  %v1156_v12 = vadd.f32 %v2443_v18, %v717_v6  ;;  %v1188_v13 = vadd.f32 %v2443_v18, %v845_v7 }
 0x11b   :  { %v719_v10 = vpop.f32.mrf.mxu0  ;;  %v847_v11 = vpop.f32.mrf.mxu1 }
 0x11c   :  { %1972 = vst [vmem:[%s2608_s3 + $0x10] sm:$0xff] %v1824_v8   ;;  %1988 = vst [vmem:[%s2608_s3 + $0x90] sm:$0xff] %v1904_v9   ;;  %v1220_v21 = vmax.f32 %v1156_v12, 0.0  ;;  %v1252_v22 = vmax.f32 %v1188_v13, 0.0 }
 0x11d   :  { %v720_v14 = vpop.f32.mrf.mxu0  ;;  %v848_v15 = vpop.f32.mrf.mxu1 }
 0x11e   :  { %v1157_v16 = vadd.f32 %v2443_v18, %v720_v14  ;;  %v1189_v17 = vadd.f32 %v2443_v18, %v848_v15 }
 0x11f   :  { %v722_v19 = vpop.f32.mrf.mxu0  ;;  %v850_v20 = vpop.f32.mrf.mxu1 }
 0x120   :  { %v1221_v23 = vmax.f32 %v1157_v16, 0.0  ;;  %v1253_v24 = vmax.f32 %v1189_v17, 0.0 }
 0x121   :  { %v725_v25 = vpop.f32.mrf.mxu0  ;;  %v853_v26 = vpop.f32.mrf.mxu1 }
 0x122   :  { %v1829_v27 = vpack.c.bf16 %v1221_v23, %v1220_v21  ;;  %v1909_v28 = vpack.c.bf16 %v1253_v24, %v1252_v22  ;;  %v1158_v31 = vadd.f32 %v2443_v18, %v725_v25  ;;  %v1190_v32 = vadd.f32 %v2443_v18, %v853_v26 }
 0x123   :  { %v727_v29 = vpop.f32.mrf.mxu0  ;;  %v855_v30 = vpop.f32.mrf.mxu1 }
 0x124   :  { %1973 = vst [vmem:[%s2608_s3 + $0x18] sm:$0xff] %v1829_v27   ;;  %1989 = vst [vmem:[%s2608_s3 + $0x98] sm:$0xff] %v1909_v28   ;;  %v1222_v39 = vmax.f32 %v1158_v31, 0.0  ;;  %v1254_v40 = vmax.f32 %v1190_v32, 0.0 }
 0x125   :  { %v728_v33 = vpop.f32.mrf.mxu0  ;;  %v856_v34 = vpop.f32.mrf.mxu1 }
 0x126   :  { %v1159_v35 = vadd.f32 %v2443_v18, %v728_v33  ;;  %v1191_v36 = vadd.f32 %v2443_v18, %v856_v34 }
 0x127   :  { %v730_v37 = vpop.f32.mrf.mxu0  ;;  %v858_v38 = vpop.f32.mrf.mxu1 }
 0x128   :  { %v1223_v41 = vmax.f32 %v1159_v35, 0.0  ;;  %v1255_v42 = vmax.f32 %v1191_v36, 0.0 }
 0x129   :  { %v733_v43 = vpop.f32.mrf.mxu0  ;;  %v861_v44 = vpop.f32.mrf.mxu1 }
 0x12a   :  { %v1834_v45 = vpack.c.bf16 %v1223_v41, %v1222_v39  ;;  %v1914_v46 = vpack.c.bf16 %v1255_v42, %v1254_v40  ;;  %v1160_v49 = vadd.f32 %v2443_v18, %v733_v43  ;;  %v1192_v50 = vadd.f32 %v2443_v18, %v861_v44 }
 0x12b   :  { %v735_v47 = vpop.f32.mrf.mxu0  ;;  %v863_v48 = vpop.f32.mrf.mxu1 }
 0x12c   :  { %1974 = vst [vmem:[%s2608_s3 + $0x20] sm:$0xff] %v1834_v45   ;;  %1990 = vst [vmem:[%s2608_s3 + $0xa0] sm:$0xff] %v1914_v46   ;;  %v1224_v57 = vmax.f32 %v1160_v49, 0.0  ;;  %v1256_v58 = vmax.f32 %v1192_v50, 0.0 }
 0x12d   :  { %v736_v51 = vpop.f32.mrf.mxu0  ;;  %v864_v52 = vpop.f32.mrf.mxu1 }
 0x12e   :  { %v1161_v53 = vadd.f32 %v2443_v18, %v736_v51  ;;  %v1193_v54 = vadd.f32 %v2443_v18, %v864_v52 }
 0x12f   :  { %v738_v55 = vpop.f32.mrf.mxu0  ;;  %v866_v56 = vpop.f32.mrf.mxu1 }
 0x130   :  { %v1225_v59 = vmax.f32 %v1161_v53, 0.0  ;;  %v1257_v60 = vmax.f32 %v1193_v54, 0.0 }
 0x131   :  { %v741_v61 = vpop.f32.mrf.mxu0  ;;  %v869_v62 = vpop.f32.mrf.mxu1 }
 0x132   :  { %v1839_v63 = vpack.c.bf16 %v1225_v59, %v1224_v57  ;;  %v1919_v0 = vpack.c.bf16 %v1257_v60, %v1256_v58  ;;  %v1162_v3 = vadd.f32 %v2443_v18, %v741_v61  ;;  %v1194_v4 = vadd.f32 %v2443_v18, %v869_v62 }
 0x133   :  { %v743_v1 = vpop.f32.mrf.mxu0  ;;  %v871_v2 = vpop.f32.mrf.mxu1 }
 0x134   :  { %1975 = vst [vmem:[%s2608_s3 + $0x28] sm:$0xff] %v1839_v63   ;;  %1991 = vst [vmem:[%s2608_s3 + $0xa8] sm:$0xff] %v1919_v0   ;;  %v1226_v11 = vmax.f32 %v1162_v3, 0.0  ;;  %v1258_v12 = vmax.f32 %v1194_v4, 0.0 }
 0x135   :  { %v744_v5 = vpop.f32.mrf.mxu0  ;;  %v872_v6 = vpop.f32.mrf.mxu1 }
 0x136   :  { %v1163_v7 = vadd.f32 %v2443_v18, %v744_v5  ;;  %v1195_v8 = vadd.f32 %v2443_v18, %v872_v6 }
 0x137   :  { %v746_v9 = vpop.f32.mrf.mxu0  ;;  %v874_v10 = vpop.f32.mrf.mxu1 }
 0x138   :  { %v1227_v13 = vmax.f32 %v1163_v7, 0.0  ;;  %v1259_v14 = vmax.f32 %v1195_v8, 0.0 }
 0x139   :  { %v749_v15 = vpop.f32.mrf.mxu0  ;;  %v877_v16 = vpop.f32.mrf.mxu1 }
 0x13a   :  { %v1844_v17 = vpack.c.bf16 %v1227_v13, %v1226_v11  ;;  %v1924_v19 = vpack.c.bf16 %v1259_v14, %v1258_v12  ;;  %v1164_v22 = vadd.f32 %v2443_v18, %v749_v15  ;;  %v1196_v23 = vadd.f32 %v2443_v18, %v877_v16 }
 0x13b   :  { %v751_v20 = vpop.f32.mrf.mxu0  ;;  %v879_v21 = vpop.f32.mrf.mxu1 }
 0x13c   :  { %1976 = vst [vmem:[%s2608_s3 + $0x30] sm:$0xff] %v1844_v17   ;;  %1992 = vst [vmem:[%s2608_s3 + $0xb0] sm:$0xff] %v1924_v19   ;;  %v1228_v30 = vmax.f32 %v1164_v22, 0.0  ;;  %v1260_v31 = vmax.f32 %v1196_v23, 0.0 }
 0x13d   :  { %v752_v24 = vpop.f32.mrf.mxu0  ;;  %v880_v25 = vpop.f32.mrf.mxu1 }
 0x13e   :  { %v1165_v26 = vadd.f32 %v2443_v18, %v752_v24  ;;  %v1197_v27 = vadd.f32 %v2443_v18, %v880_v25 }
 0x13f   :  { %v754_v28 = vpop.f32.mrf.mxu0  ;;  %v882_v29 = vpop.f32.mrf.mxu1 }
 0x140   :  { %v1229_v32 = vmax.f32 %v1165_v26, 0.0  ;;  %v1261_v33 = vmax.f32 %v1197_v27, 0.0 }
 0x141   :  { %v757_v34 = vpop.f32.mrf.mxu0  ;;  %v885_v35 = vpop.f32.mrf.mxu1 }
 0x142   :  { %v1849_v36 = vpack.c.bf16 %v1229_v32, %v1228_v30  ;;  %v1929_v37 = vpack.c.bf16 %v1261_v33, %v1260_v31  ;;  %v1166_v40 = vadd.f32 %v2443_v18, %v757_v34  ;;  %v1198_v41 = vadd.f32 %v2443_v18, %v885_v35 }
 0x143   :  { %v759_v38 = vpop.f32.mrf.mxu0  ;;  %v887_v39 = vpop.f32.mrf.mxu1 }
 0x144   :  { %1977 = vst [vmem:[%s2608_s3 + $0x38] sm:$0xff] %v1849_v36   ;;  %1993 = vst [vmem:[%s2608_s3 + $0xb8] sm:$0xff] %v1929_v37   ;;  %v1230_v48 = vmax.f32 %v1166_v40, 0.0  ;;  %v1262_v49 = vmax.f32 %v1198_v41, 0.0 }
 0x145   :  { %v760_v42 = vpop.f32.mrf.mxu0  ;;  %v888_v43 = vpop.f32.mrf.mxu1 }
 0x146   :  { %v1167_v44 = vadd.f32 %v2443_v18, %v760_v42  ;;  %v1199_v45 = vadd.f32 %v2443_v18, %v888_v43 }
 0x147   :  { %v762_v46 = vpop.f32.mrf.mxu0  ;;  %v890_v47 = vpop.f32.mrf.mxu1 }
 0x148   :  { %v1231_v50 = vmax.f32 %v1167_v44, 0.0  ;;  %v1263_v51 = vmax.f32 %v1199_v45, 0.0 }
 0x149   :  { %v765_v52 = vpop.f32.mrf.mxu0  ;;  %v893_v53 = vpop.f32.mrf.mxu1 }
 0x14a   :  { %v1854_v54 = vpack.c.bf16 %v1231_v50, %v1230_v48  ;;  %v1934_v55 = vpack.c.bf16 %v1263_v51, %v1262_v49  ;;  %v1168_v58 = vadd.f32 %v2443_v18, %v765_v52  ;;  %v1200_v59 = vadd.f32 %v2443_v18, %v893_v53 }
 0x14b   :  { %v767_v56 = vpop.f32.mrf.mxu0  ;;  %v895_v57 = vpop.f32.mrf.mxu1 }
 0x14c   :  { %1978 = vst [vmem:[%s2608_s3 + $0x40] sm:$0xff] %v1854_v54   ;;  %1994 = vst [vmem:[%s2608_s3 + $0xc0] sm:$0xff] %v1934_v55   ;;  %v1232_v2 = vmax.f32 %v1168_v58, 0.0  ;;  %v1264_v3 = vmax.f32 %v1200_v59, 0.0 }
 0x14d   :  { %v768_v60 = vpop.f32.mrf.mxu0  ;;  %v896_v61 = vpop.f32.mrf.mxu1 }
 0x14e   :  { %v1169_v62 = vadd.f32 %v2443_v18, %v768_v60  ;;  %v1201_v63 = vadd.f32 %v2443_v18, %v896_v61 }
 0x14f   :  { %v770_v0 = vpop.f32.mrf.mxu0  ;;  %v898_v1 = vpop.f32.mrf.mxu1 }
 0x150   :  { %v1233_v4 = vmax.f32 %v1169_v62, 0.0  ;;  %v1265_v5 = vmax.f32 %v1201_v63, 0.0 }
 0x151   :  { %v773_v6 = vpop.f32.mrf.mxu0  ;;  %v901_v7 = vpop.f32.mrf.mxu1 }
 0x152   :  { %v1859_v8 = vpack.c.bf16 %v1233_v4, %v1232_v2  ;;  %v1939_v9 = vpack.c.bf16 %v1265_v5, %v1264_v3  ;;  %v1170_v12 = vadd.f32 %v2443_v18, %v773_v6  ;;  %v1202_v13 = vadd.f32 %v2443_v18, %v901_v7 }
 0x153   :  { %v775_v10 = vpop.f32.mrf.mxu0  ;;  %v903_v11 = vpop.f32.mrf.mxu1 }
 0x154   :  { %1979 = vst [vmem:[%s2608_s3 + $0x48] sm:$0xff] %v1859_v8   ;;  %1995 = vst [vmem:[%s2608_s3 + $0xc8] sm:$0xff] %v1939_v9   ;;  %v1234_v21 = vmax.f32 %v1170_v12, 0.0  ;;  %v1266_v22 = vmax.f32 %v1202_v13, 0.0 }
 0x155   :  { %v776_v14 = vpop.f32.mrf.mxu0  ;;  %v904_v15 = vpop.f32.mrf.mxu1 }
 0x156   :  { %v1171_v16 = vadd.f32 %v2443_v18, %v776_v14  ;;  %v1203_v17 = vadd.f32 %v2443_v18, %v904_v15 }
 0x157   :  { %v778_v19 = vpop.f32.mrf.mxu0  ;;  %v906_v20 = vpop.f32.mrf.mxu1 }
 0x158   :  { %v1235_v23 = vmax.f32 %v1171_v16, 0.0  ;;  %v1267_v24 = vmax.f32 %v1203_v17, 0.0 }
 0x159   :  { %v781_v25 = vpop.f32.mrf.mxu0  ;;  %v909_v26 = vpop.f32.mrf.mxu1 }
 0x15a   :  { %v1864_v27 = vpack.c.bf16 %v1235_v23, %v1234_v21  ;;  %v1944_v28 = vpack.c.bf16 %v1267_v24, %v1266_v22  ;;  %v1172_v31 = vadd.f32 %v2443_v18, %v781_v25  ;;  %v1204_v32 = vadd.f32 %v2443_v18, %v909_v26 }
 0x15b   :  { %v783_v29 = vpop.f32.mrf.mxu0  ;;  %v911_v30 = vpop.f32.mrf.mxu1 }
 0x15c   :  { %1980 = vst [vmem:[%s2608_s3 + $0x50] sm:$0xff] %v1864_v27   ;;  %1996 = vst [vmem:[%s2608_s3 + $0xd0] sm:$0xff] %v1944_v28   ;;  %v1236_v39 = vmax.f32 %v1172_v31, 0.0  ;;  %v1268_v40 = vmax.f32 %v1204_v32, 0.0 }
 0x15d   :  { %v784_v33 = vpop.f32.mrf.mxu0  ;;  %v912_v34 = vpop.f32.mrf.mxu1 }
 0x15e   :  { %v1173_v35 = vadd.f32 %v2443_v18, %v784_v33  ;;  %v1205_v36 = vadd.f32 %v2443_v18, %v912_v34 }
 0x15f   :  { %v786_v37 = vpop.f32.mrf.mxu0  ;;  %v914_v38 = vpop.f32.mrf.mxu1 }
 0x160   :  { %v1237_v41 = vmax.f32 %v1173_v35, 0.0  ;;  %v1269_v42 = vmax.f32 %v1205_v36, 0.0 }
 0x161   :  { %v789_v43 = vpop.f32.mrf.mxu0  ;;  %v917_v44 = vpop.f32.mrf.mxu1 }
 0x162   :  { %v1869_v45 = vpack.c.bf16 %v1237_v41, %v1236_v39  ;;  %v1949_v46 = vpack.c.bf16 %v1269_v42, %v1268_v40  ;;  %v1174_v49 = vadd.f32 %v2443_v18, %v789_v43  ;;  %v1206_v50 = vadd.f32 %v2443_v18, %v917_v44 }
 0x163   :  { %v791_v47 = vpop.f32.mrf.mxu0  ;;  %v919_v48 = vpop.f32.mrf.mxu1 }
 0x164   :  { %1981 = vst [vmem:[%s2608_s3 + $0x58] sm:$0xff] %v1869_v45   ;;  %1997 = vst [vmem:[%s2608_s3 + $0xd8] sm:$0xff] %v1949_v46   ;;  %v1238_v57 = vmax.f32 %v1174_v49, 0.0  ;;  %v1270_v58 = vmax.f32 %v1206_v50, 0.0 }
 0x165   :  { %v792_v51 = vpop.f32.mrf.mxu0  ;;  %v920_v52 = vpop.f32.mrf.mxu1 }
 0x166   :  { %v1175_v53 = vadd.f32 %v2443_v18, %v792_v51  ;;  %v1207_v54 = vadd.f32 %v2443_v18, %v920_v52 }
 0x167   :  { %v794_v55 = vpop.f32.mrf.mxu0  ;;  %v922_v56 = vpop.f32.mrf.mxu1 }
 0x168   :  { %v1239_v59 = vmax.f32 %v1175_v53, 0.0  ;;  %v1271_v60 = vmax.f32 %v1207_v54, 0.0 }
 0x169   :  { %v797_v61 = vpop.f32.mrf.mxu0  ;;  %v925_v62 = vpop.f32.mrf.mxu1 }
 0x16a   :  { %v1874_v63 = vpack.c.bf16 %v1239_v59, %v1238_v57  ;;  %v1954_v0 = vpack.c.bf16 %v1271_v60, %v1270_v58  ;;  %v1176_v3 = vadd.f32 %v2443_v18, %v797_v61  ;;  %v1208_v4 = vadd.f32 %v2443_v18, %v925_v62 }
 0x16b   :  { %v799_v1 = vpop.f32.mrf.mxu0  ;;  %v927_v2 = vpop.f32.mrf.mxu1 }
 0x16c   :  { %1982 = vst [vmem:[%s2608_s3 + $0x60] sm:$0xff] %v1874_v63   ;;  %1998 = vst [vmem:[%s2608_s3 + $0xe0] sm:$0xff] %v1954_v0   ;;  %v1240_v11 = vmax.f32 %v1176_v3, 0.0  ;;  %v1272_v12 = vmax.f32 %v1208_v4, 0.0 }
 0x16d   :  { %v800_v5 = vpop.f32.mrf.mxu0  ;;  %v928_v6 = vpop.f32.mrf.mxu1 }
 0x16e   :  { %v1177_v7 = vadd.f32 %v2443_v18, %v800_v5  ;;  %v1209_v8 = vadd.f32 %v2443_v18, %v928_v6 }
 0x16f   :  { %v802_v9 = vpop.f32.mrf.mxu0  ;;  %v930_v10 = vpop.f32.mrf.mxu1 }
 0x170   :  { %v1241_v13 = vmax.f32 %v1177_v7, 0.0  ;;  %v1273_v14 = vmax.f32 %v1209_v8, 0.0 }
 0x171   :  { %v805_v15 = vpop.f32.mrf.mxu0  ;;  %v933_v16 = vpop.f32.mrf.mxu1 }
 0x172   :  { %v1879_v17 = vpack.c.bf16 %v1241_v13, %v1240_v11  ;;  %v1959_v19 = vpack.c.bf16 %v1273_v14, %v1272_v12  ;;  %v1178_v22 = vadd.f32 %v2443_v18, %v805_v15  ;;  %v1210_v23 = vadd.f32 %v2443_v18, %v933_v16 }
 0x173   :  { %v807_v20 = vpop.f32.mrf.mxu0  ;;  %v935_v21 = vpop.f32.mrf.mxu1 }
 0x174   :  { %1983 = vst [vmem:[%s2608_s3 + $0x68] sm:$0xff] %v1879_v17   ;;  %1999 = vst [vmem:[%s2608_s3 + $0xe8] sm:$0xff] %v1959_v19   ;;  %v1242_v30 = vmax.f32 %v1178_v22, 0.0  ;;  %v1274_v31 = vmax.f32 %v1210_v23, 0.0 }
 0x175   :  { %v808_v24 = vpop.f32.mrf.mxu0  ;;  %v936_v25 = vpop.f32.mrf.mxu1 }
 0x176   :  { %v1179_v26 = vadd.f32 %v2443_v18, %v808_v24  ;;  %v1211_v27 = vadd.f32 %v2443_v18, %v936_v25 }
 0x177   :  { %v810_v28 = vpop.f32.mrf.mxu0  ;;  %v938_v29 = vpop.f32.mrf.mxu1 }
 0x178   :  { %v1243_v32 = vmax.f32 %v1179_v26, 0.0  ;;  %v1275_v33 = vmax.f32 %v1211_v27, 0.0 }
 0x179   :  { %v813_v34 = vpop.f32.mrf.mxu0  ;;  %v941_v35 = vpop.f32.mrf.mxu1 }
 0x17a   :  { %v1884_v36 = vpack.c.bf16 %v1243_v32, %v1242_v30  ;;  %v1964_v37 = vpack.c.bf16 %v1275_v33, %v1274_v31  ;;  %v1180_v40 = vadd.f32 %v2443_v18, %v813_v34  ;;  %v1212_v41 = vadd.f32 %v2443_v18, %v941_v35 }
 0x17b   :  { %v815_v38 = vpop.f32.mrf.mxu0  ;;  %v943_v39 = vpop.f32.mrf.mxu1 }
 0x17c   :  { %1984 = vst [vmem:[%s2608_s3 + $0x70] sm:$0xff] %v1884_v36   ;;  %2000 = vst [vmem:[%s2608_s3 + $0xf0] sm:$0xff] %v1964_v37   ;;  %v1244_v48 = vmax.f32 %v1180_v40, 0.0  ;;  %v1276_v49 = vmax.f32 %v1212_v41, 0.0 }
 0x17d   :  { %v816_v42 = vpop.f32.mrf.mxu0  ;;  %v944_v43 = vpop.f32.mrf.mxu1 }
 0x17e   :  { %v1181_v44 = vadd.f32 %v2443_v18, %v816_v42  ;;  %v1213_v45 = vadd.f32 %v2443_v18, %v944_v43 }
 0x17f   :  { %v818_v46 = vpop.f32.mrf.mxu0  ;;  %v946_v47 = vpop.f32.mrf.mxu1 }
 0x180   :  { %v1245_v50 = vmax.f32 %v1181_v44, 0.0  ;;  %v1277_v51 = vmax.f32 %v1213_v45, 0.0 }
 0x182   :  { %v1889_v52 = vpack.c.bf16 %v1245_v50, %v1244_v48  ;;  %v1969_v53 = vpack.c.bf16 %v1277_v51, %v1276_v49 }
 0x184   :  { %1985 = vst [vmem:[%s2608_s3 + $0x78] sm:$0xff] %v1889_v52   ;;  %2001 = vst [vmem:[%s2608_s3 + $0xf8] sm:$0xff] %v1969_v53  }

// kernel: resnet50_forward.58
= control target key start
LH: loop header
LB: loop body
LE: loop exit
PB: predicated region body
PF: predicated region fallthrough
CT: control target
= control target key end

     0   :  { %s1192_s12 = smov 0   ;;  %s1194_s13 = smov 0   ;;  %s1324_s0 = inlined_call_operand.vmem [shape: bf16[128,640], index: 0, kind: input, shape index: {}]   ;;  %s1325_s1 = inlined_call_operand.vmem [shape: bf16[640,128], index: 1, kind: input, shape index: {}]   ;;  %s1326_s2 = inlined_call_operand.vmem [shape: f32[1,128], index: 2, kind: input, shape index: {}]   ;;  %s1327_s3 = inlined_call_operand.vmem [shape: bf16[128,128], index: 3, kind: output, shape index: {}]  }
   0x1   :  { %s1196_s14 = smov 0   ;;  %s1198_s15 = smov 0  }
   0x2   :  { %s1200_s16 = smov 0  }
   0x3 LB: > { %s25_s17 = sadd.s32 1, %s1165_s15  ;;  %p48_p1 = scmp.ne.s32.totalorder %s1157_s13, %s1153_s12  ;;  %s1169_s16 = sphi %s1200_s16, %s13_s16   ;;  %s1165_s15 = sphi %s1198_s15, %s1331_s15   ;;  %s1161_s14 = sphi %s1196_s14, %s1330_s14   ;;  %s1157_s13 = sphi %s1194_s13, %s1329_s13   ;;  %s1153_s12 = sphi %s1192_s12, %s1328_s12  }
   0x4   : > { %p26_p0 = scmp.ge.s32.totalorder %s25_s17, 5  ;;  %p49_p2 = scmp.eq.s32.totalorder %s1169_s16, 0 }
   0x5   : > { %s41_s19 = sadd.s32 1, %s1157_s13  ;;  %p901_p5 = scmp.ge.s32.totalorder %s1169_s16, 5 }
   0x6   : > { %s1333_s17 = smov (%p26_p0, %s25_s17), 0  ;;  %p50_p3 = por %p49_p2, %p48_p1 }
   0x7   : > { %s37_s18 = ssub.s32 %s1165_s15, %s1333_s17  ;;  %162 = sbr.rel (%p901_p5) target bundleno = 26 (0x1a), region = 20 }
   0x8   : > { %p39_p4 = scmp.eq.s32.totalorder %s37_s18, 0 }
   0xa   : > { %s1227_s20 = scalar_select %p39_p4, %s1157_s13, %s41_s19  }
   0xc   : > { %165 = sbr.rel (!%p50_p3) target bundleno = 26 (0x1a), region = 24  ;;  %s167_s21 = sand.u32 (%p50_p3), 1, %s1157_s13  }
   0xd   : > { %s903_s22 = sshll.u32 (%p50_p3), %s1165_s15, 2  ;;  %s902_s23 = sshll.u32 (%p50_p3), %s167_s21, 6 }
   0xe   : > { %s1235_s26 = scalar_lea.vmem (%p50_p3), %s1324_s0, %s903_s22  ;;  %s169_s27 = scalar_lea.vmem (%p50_p3), [#allocation3], %s902_s23 }
   0xf   : > { %v191_v0 = vld [vmem:[%s1235_s26] sm:$0xf] (%p50_p3)  ;;  %v193_v1 = vld [vmem:[%s1235_s26 + $0x14] sm:$0xf] (%p50_p3)  ;;  %v195_v2 = vld [vmem:[%s1235_s26 + $0x28] sm:$0xf] (%p50_p3) }
  0x10   : > { %192 = vst [vmem:[%s169_s27] sm:$0xf] (%p50_p3), %v191_v0  ;;  %194 = vst [vmem:[%s169_s27 + $0x4] sm:$0xf] (%p50_p3), %v193_v1  ;;  %v197_v3 = vld [vmem:[%s1235_s26 + $0x3c] sm:$0xf] (%p50_p3) }
  0x11   : > { %v199_v4 = vld [vmem:[%s1235_s26 + $0x50] sm:$0xf]  ;;  %196 = vst [vmem:[%s169_s27 + $0x8] sm:$0xf] %v195_v2  ;;  %198 = vst [vmem:[%s169_s27 + $0xc] sm:$0xf] %v197_v3 }
  0x12   : > { %200 = vst [vmem:[%s169_s27 + $0x10] sm:$0xf] %v199_v4  ;;  %v201_v5 = vld [vmem:[%s1235_s26 + $0x64] sm:$0xf]  ;;  %v203_v6 = vld [vmem:[%s1235_s26 + $0x78] sm:$0xf] }
  0x13   : > { %v205_v7 = vld [vmem:[%s1235_s26 + $0x8c] sm:$0xf]  ;;  %202 = vst [vmem:[%s169_s27 + $0x14] sm:$0xf] %v201_v5  ;;  %204 = vst [vmem:[%s169_s27 + $0x18] sm:$0xf] %v203_v6 }
  0x14   : > { %206 = vst [vmem:[%s169_s27 + $0x1c] sm:$0xf] %v205_v7  ;;  %v207_v8 = vld [vmem:[%s1235_s26 + $0xa0] sm:$0xf]  ;;  %v209_v9 = vld [vmem:[%s1235_s26 + $0xb4] sm:$0xf] }
  0x15   : > { %v211_v10 = vld [vmem:[%s1235_s26 + $0xc8] sm:$0xf]  ;;  %208 = vst [vmem:[%s169_s27 + $0x20] sm:$0xf] %v207_v8  ;;  %210 = vst [vmem:[%s169_s27 + $0x24] sm:$0xf] %v209_v9 }
  0x16   : > { %212 = vst [vmem:[%s169_s27 + $0x28] sm:$0xf] %v211_v10  ;;  %v213_v11 = vld [vmem:[%s1235_s26 + $0xdc] sm:$0xf]  ;;  %v215_v12 = vld [vmem:[%s1235_s26 + $0xf0] sm:$0xf] }
  0x17   : > { %v217_v13 = vld [vmem:[%s1235_s26 + $0x104] sm:$0xf]  ;;  %214 = vst [vmem:[%s169_s27 + $0x2c] sm:$0xf] %v213_v11  ;;  %216 = vst [vmem:[%s169_s27 + $0x30] sm:$0xf] %v215_v12 }
  0x18   : > { %218 = vst [vmem:[%s169_s27 + $0x34] sm:$0xf] %v217_v13  ;;  %v219_v14 = vld [vmem:[%s1235_s26 + $0x118] sm:$0xf]  ;;  %v221_v15 = vld [vmem:[%s1235_s26 + $0x12c] sm:$0xf] }
  0x19   : > { %220 = vst [vmem:[%s169_s27 + $0x38] sm:$0xf] %v219_v14  ;;  %222 = vst [vmem:[%s169_s27 + $0x3c] sm:$0xf] %v221_v15 }
  0x1a PF: > { %p904_p6 = scmp.ge.s32.totalorder %s1169_s16, 1  ;;  %p289_p7 = scmp.lt.s32.totalorder %s1169_s16, 6 }
  0x1c   : > { %p290_p8 = pnand %p904_p6, %p289_p7 }
  0x1d   : > { %s296_s28 = sand.u32 (!%p290_p8), 1, %s1153_s12   ;;  %s906_s29 = sshll.u32 (!%p290_p8), %s1161_s14, 4 }
  0x1e   : > { %293 = sbr.rel (%p290_p8) target bundleno = 308 (0x134), region = 69  ;;  %s905_s30 = sshll.u32 (!%p290_p8), %s296_s28, 6 }
  0x1f   : > { %p335_p9 = scmp.lt.s32.totalorder (!%p290_p8), %s906_s29, 79  ;;  %s1262_s8 = scalar_lea.vmem (!%p290_p8), [#allocation3], %s905_s30 }
  0x20   : > { %p908_p10 = scmp.ne.s32.totalorder (!%p290_p8), %s1161_s14, 0 }
  0x23   : > { %s1335_s29 = smov (!%p335_p9, %s906_s29), 79  ;;  %359 = sbr.rel (%p908_p10) target bundleno = 49 (0x31), region = 77 }
  0x24   : > { %s907_s4 = sshll.u32 %s1335_s29, 2 }
  0x25   : > { %s1260_s7 = scalar_lea.vmem %s1325_s1, %s907_s4 }
  0x28   : > { %v1171_v16 = vmov 0.0  }
  0x29   : > { %360 = vst [vmem:[#allocation2 + $0x30] sm:$0xff] %v1171_v16  ;;  %361 = vst [vmem:[#allocation2] sm:$0xff] %v1171_v16 }
  0x2a   : > { %362 = vst [vmem:[#allocation2 + $0x58] sm:$0xff] %v1171_v16  ;;  %363 = vst [vmem:[#allocation2 + $0x18] sm:$0xff] %v1171_v16 }
  0x2b   : > { %364 = vst [vmem:[#allocation2 + $0x50] sm:$0xff] %v1171_v16  ;;  %365 = vst [vmem:[#allocation2 + $0x68] sm:$0xff] %v1171_v16 }
  0x2c   : > { %366 = vst [vmem:[#allocation2 + $0x8] sm:$0xff] %v1171_v16  ;;  %367 = vst [vmem:[#allocation2 + $0x48] sm:$0xff] %v1171_v16 }
  0x2d   : > { %368 = vst [vmem:[#allocation2 + $0x40] sm:$0xff] %v1171_v16  ;;  %369 = vst [vmem:[#allocation2 + $0x20] sm:$0xff] %v1171_v16 }
  0x2e   : > { %370 = vst [vmem:[#allocation2 + $0x10] sm:$0xff] %v1171_v16  ;;  %371 = vst [vmem:[#allocation2 + $0x38] sm:$0xff] %v1171_v16 }
  0x2f   : > { %372 = vst [vmem:[#allocation2 + $0x60] sm:$0xff] %v1171_v16  ;;  %373 = vst [vmem:[#allocation2 + $0x70] sm:$0xff] %v1171_v16 }
  0x30   : > { %374 = vst [vmem:[#allocation2 + $0x78] sm:$0xff] %v1171_v16  ;;  %375 = vst [vmem:[#allocation2 + $0x28] sm:$0xff] %v1171_v16 }
  0x31 PF: > { %v1115_v17 = vld [vmem:[%s1260_s7 + $0x38] sm:$0xff]   ;;  %v1116_v18 = vld [vmem:[%s1260_s7 + $0x30] sm:$0xff]   ;;  %v1117_v19 = vld [vmem:[%s1260_s7 + $0x28] sm:$0xff]   ;;  %p925_p11 = scmp.ne.s32.totalorder %s1161_s14, 4 }
  0x32   : > { %1026 = vmatprep.subr.bf16.mxu0 %v1115_v17  ;;  %1058 = vmatprep.subr.bf16.mxu1 %v1115_v17  ;;  %v1118_v20 = vld [vmem:[%s1260_s7 + $0x20] sm:$0xff]   ;;  %v1119_v23 = vld [vmem:[%s1260_s7 + $0x18] sm:$0xff]   ;;  %v1120_v24 = vld [vmem:[%s1260_s7 + $0x10] sm:$0xff]  }
  0x33   : > { %1027 = vmatpush3.bf16.msra.mxu0 %v1115_v17  ;;  %1066 = vmatpush3.bf16.msra.mxu1 %v1115_v17  ;;  %v1123_v21 = vld [vmem:[%s1262_s8] sm:$0xff]   ;;  %v1121_v25 = vld [vmem:[%s1260_s7 + $0x8] sm:$0xff]   ;;  %v1127_v29 = vld [vmem:[%s1262_s8 + $0x10] sm:$0xff]  }
  0x34   : > { %1028 = vmatprep.subr.bf16.mxu0 %v1116_v18  ;;  %1059 = vmatprep.subr.bf16.mxu1 %v1116_v18  ;;  %v1124_v22 = vld [vmem:[%s1262_s8 + $0x20] sm:$0xff]   ;;  %v1125_v27 = vld [vmem:[%s1262_s8 + $0x8] sm:$0xff]   ;;  %v1128_v30 = vld [vmem:[%s1262_s8 + $0x30] sm:$0xff]  }
  0x35   : > { %1042 = vmatprep.mubr.bf16.mxu0 %v1123_v21  ;;  %1050 = vmatprep.mubr.bf16.mxu1 %v1124_v22  ;;  %v1122_v26 = vld [vmem:[%s1260_s7] sm:$0xff]   ;;  %v1126_v28 = vld [vmem:[%s1262_s8 + $0x28] sm:$0xff]   ;;  %v1129_v31 = vld [vmem:[%s1262_s8 + $0x18] sm:$0xff]  }
  0x36   : > { %v1130_v32 = vld [vmem:[%s1262_s8 + $0x38] sm:$0xff]   ;;  %v386_v34 = vld [vmem:[#allocation2 + $0x10] sm:$0xff]  ;;  %v384_v38 = vld [vmem:[#allocation2 + $0x40] sm:$0xff] }
  0x37   : > { %1029 = vmatpush3.bf16.msra.mxu0 %v1116_v18  ;;  %1067 = vmatpush3.bf16.msra.mxu1 %v1116_v18  ;;  %v378_v33 = vld [vmem:[#allocation2 + $0x58] sm:$0xff]  ;;  %v376_v37 = vld [vmem:[#allocation2 + $0x30] sm:$0xff]  ;;  %v377_v49 = vld [vmem:[#allocation2] sm:$0xff] }
  0x38   : > { %1030 = vmatprep.subr.bf16.mxu0 %v1117_v19  ;;  %1060 = vmatprep.subr.bf16.mxu1 %v1117_v19  ;;  %v379_v43 = vld [vmem:[#allocation2 + $0x18] sm:$0xff]  ;;  %v385_v50 = vld [vmem:[#allocation2 + $0x20] sm:$0xff]  ;;  %v382_v55 = vld [vmem:[#allocation2 + $0x8] sm:$0xff] }
  0x39   : > { %v387_v44 = vld [vmem:[#allocation2 + $0x38] sm:$0xff]  ;;  %v380_v61 = vld [vmem:[#allocation2 + $0x50] sm:$0xff]  ;;  %v388_v62 = vld [vmem:[#allocation2 + $0x60] sm:$0xff] }
  0x3a   : > { %v390_v56 = vld [vmem:[#allocation2 + $0x78] sm:$0xff]  ;;  %v383_v3 = vld [vmem:[#allocation2 + $0x48] sm:$0xff]  ;;  %v389_v10 = vld [vmem:[#allocation2 + $0x70] sm:$0xff] }
  0x3b   : > { %1031 = vmatpush3.bf16.msra.mxu0 %v1117_v19  ;;  %1068 = vmatpush3.bf16.msra.mxu1 %v1117_v19  ;;  %v391_v4 = vld [vmem:[#allocation2 + $0x28] sm:$0xff] }
  0x3c   : > { %1032 = vmatprep.subr.bf16.mxu0 %v1118_v20  ;;  %1061 = vmatprep.subr.bf16.mxu1 %v1118_v20  ;;  %v381_v9 = vld [vmem:[#allocation2 + $0x68] sm:$0xff] }
  0x3f   : > { %1033 = vmatpush3.bf16.msra.mxu0 %v1118_v20  ;;  %1069 = vmatpush3.bf16.msra.mxu1 %v1118_v20 }
  0x40   : > { %1034 = vmatprep.subr.bf16.mxu0 %v1119_v23  ;;  %1062 = vmatprep.subr.bf16.mxu1 %v1119_v23 }
  0x43   : > { %1035 = vmatpush3.bf16.msra.mxu0 %v1119_v23  ;;  %1070 = vmatpush3.bf16.msra.mxu1 %v1119_v23 }
  0x44   : > { %1036 = vmatprep.subr.bf16.mxu0 %v1120_v24  ;;  %1063 = vmatprep.subr.bf16.mxu1 %v1120_v24 }
  0x47   : > { %1037 = vmatpush3.bf16.msra.mxu0 %v1120_v24  ;;  %1071 = vmatpush3.bf16.msra.mxu1 %v1120_v24 }
  0x48   : > { %1038 = vmatprep.subr.bf16.mxu0 %v1121_v25  ;;  %1064 = vmatprep.subr.bf16.mxu1 %v1121_v25 }
  0x4b   : > { %1039 = vmatpush3.bf16.msra.mxu0 %v1121_v25  ;;  %1072 = vmatpush3.bf16.msra.mxu1 %v1121_v25 }
  0x4c   : > { %1040 = vmatprep.subr.bf16.mxu0 %v1122_v26  ;;  %1065 = vmatprep.subr.bf16.mxu1 %v1122_v26 }
  0x4f   : > { %1041 = vmatpush3.bf16.msra.mxu0 %v1122_v26  ;;  %1073 = vmatpush3.bf16.msra.mxu1 %v1122_v26 }
  0x52   : > { %1043 = vmatmul.mubr.bf16.vlgmr.msra.gmra.mxu0 %v1125_v27  ;;  %1051 = vmatmul.mubr.bf16.vlgmr.msra.gmra.mxu1 %v1126_v28 }
  0x53   : > { %1046 = vmatprep.mubr.bf16.mxu0 %v1127_v29  ;;  %1054 = vmatprep.mubr.bf16.mxu1 %v1128_v30 }
  0x5a   : > { %1047 = vmatmul.mubr.bf16.gmra.mxu0 %v1129_v31  ;;  %1055 = vmatmul.mubr.bf16.gmra.mxu1 %v1130_v32 }
 0x112   : > { %v1044_v35 = vpop.f32.mrf.mxu0  ;;  %v1052_v36 = vpop.f32.mrf.mxu1 }
 0x113   : > { %v619_v39 = vadd.f32 %v1044_v35, %v378_v33  ;;  %v627_v40 = vadd.f32 %v1052_v36, %v386_v34 }
 0x114   : > { %v554_v41 = vpop.f32.mrf.mxu0  ;;  %v586_v42 = vpop.f32.mrf.mxu1 }
 0x115   : > { %635 = vst [vmem:[#allocation2 + $0x58] sm:$0xff] %v619_v39  ;;  %643 = vst [vmem:[#allocation2 + $0x10] sm:$0xff] %v627_v40  ;;  %v617_v45 = vadd.f32 %v554_v41, %v376_v37  ;;  %v625_v46 = vadd.f32 %v586_v42, %v384_v38 }
 0x116   : > { %v1045_v47 = vpop.f32.mrf.mxu0  ;;  %v1053_v48 = vpop.f32.mrf.mxu1 }
 0x117   : > { %633 = vst [vmem:[#allocation2 + $0x30] sm:$0xff] %v617_v45  ;;  %641 = vst [vmem:[#allocation2 + $0x40] sm:$0xff] %v625_v46  ;;  %v620_v51 = vadd.f32 %v1045_v47, %v379_v43  ;;  %v628_v52 = vadd.f32 %v1053_v48, %v387_v44 }
 0x118   : > { %v557_v53 = vpop.f32.mrf.mxu0  ;;  %v589_v54 = vpop.f32.mrf.mxu1 }
 0x119   : > { %636 = vst [vmem:[#allocation2 + $0x18] sm:$0xff] %v620_v51  ;;  %644 = vst [vmem:[#allocation2 + $0x38] sm:$0xff] %v628_v52  ;;  %v618_v57 = vadd.f32 %v557_v53, %v377_v49  ;;  %v626_v58 = vadd.f32 %v589_v54, %v385_v50 }
 0x11a   : > { %v1048_v59 = vpop.f32.mrf.mxu0  ;;  %v1056_v60 = vpop.f32.mrf.mxu1 }
 0x11b   : > { %634 = vst [vmem:[#allocation2] sm:$0xff] %v618_v57  ;;  %642 = vst [vmem:[#allocation2 + $0x20] sm:$0xff] %v626_v58  ;;  %v623_v63 = vadd.f32 %v1048_v59, %v382_v55  ;;  %v631_v0 = vadd.f32 %v1056_v60, %v390_v56 }
 0x11c   : > { %v570_v1 = vpop.f32.mrf.mxu0  ;;  %v602_v2 = vpop.f32.mrf.mxu1 }
 0x11d   : > { %639 = vst [vmem:[#allocation2 + $0x8] sm:$0xff] %v623_v63  ;;  %647 = vst [vmem:[#allocation2 + $0x78] sm:$0xff] %v631_v0  ;;  %v621_v5 = vadd.f32 %v570_v1, %v380_v61  ;;  %v629_v6 = vadd.f32 %v602_v2, %v388_v62 }
 0x11e   : > { %v1049_v7 = vpop.f32.mrf.mxu0  ;;  %v1057_v8 = vpop.f32.mrf.mxu1 }
 0x11f   : > { %637 = vst [vmem:[#allocation2 + $0x50] sm:$0xff] %v621_v5  ;;  %645 = vst [vmem:[#allocation2 + $0x60] sm:$0xff] %v629_v6  ;;  %v624_v11 = vadd.f32 %v1049_v7, %v383_v3  ;;  %v632_v12 = vadd.f32 %v1057_v8, %v391_v4  ;;  %652 = sbr.rel (%p925_p11) target bundleno = 308 (0x134), region = 81 }
 0x120   : > { %v573_v13 = vpop.f32.mrf.mxu0  ;;  %v605_v14 = vpop.f32.mrf.mxu1 }
 0x121   : > { %640 = vst [vmem:[#allocation2 + $0x48] sm:$0xff] %v624_v11  ;;  %648 = vst [vmem:[#allocation2 + $0x28] sm:$0xff] %v632_v12  ;;  %v622_v15 = vadd.f32 %v573_v13, %v381_v9  ;;  %v630_v16 = vadd.f32 %v605_v14, %v389_v10 }
 0x123   : > { %638 = vst [vmem:[#allocation2 + $0x68] sm:$0xff] %v622_v15  ;;  %646 = vst [vmem:[#allocation2 + $0x70] sm:$0xff] %v630_v16 }
 0x124   : > { %v653_v17 = vld [vmem:[#allocation2 + $0x30] sm:$0xff]  ;;  %v654_v18 = vld [vmem:[#allocation2] sm:$0xff]  ;;  %v655_v22 = vld [vmem:[#allocation2 + $0x58] sm:$0xff] }
 0x125   : > { %v926_v19 = vld [vmem:[%s1326_s2] ss:$0 sm:$0xff]  ;;  %v656_v23 = vld [vmem:[#allocation2 + $0x18] sm:$0xff]  ;;  %v659_v29 = vld [vmem:[#allocation2 + $0x8] sm:$0xff] }
 0x126   : > { %v676_v20 = vadd.f32 %v926_v19, %v653_v17  ;;  %v677_v21 = vadd.f32 %v926_v19, %v654_v18  ;;  %v657_v24 = vld [vmem:[#allocation2 + $0x50] sm:$0xff]  ;;  %v678_v25 = vadd.f32 %v926_v19, %v655_v22  ;;  %v679_v26 = vadd.f32 %v926_v19, %v656_v23  ;;  %v661_v35 = vld [vmem:[#allocation2 + $0x40] sm:$0xff]  ;;  %v664_v42 = vld [vmem:[#allocation2 + $0x38] sm:$0xff] }
 0x127   : > { %v680_v28 = vadd.f32 %v926_v19, %v657_v24  ;;  %v682_v34 = vadd.f32 %v926_v19, %v659_v29  ;;  %v662_v36 = vld [vmem:[#allocation2 + $0x20] sm:$0xff]  ;;  %v663_v37 = vld [vmem:[#allocation2 + $0x10] sm:$0xff]  ;;  %v684_v47 = vadd.f32 %v926_v19, %v661_v35  ;;  %v667_v53 = vld [vmem:[#allocation2 + $0x78] sm:$0xff]  ;;  %v687_v57 = vadd.f32 %v926_v19, %v664_v42 }
 0x128   : > { %v660_v30 = vld [vmem:[#allocation2 + $0x48] sm:$0xff]  ;;  %v692_v31 = vmax.f32 %v676_v20, 0.0  ;;  %v693_v32 = vmax.f32 %v677_v21, 0.0  ;;  %v694_v38 = vmax.f32 %v678_v25, 0.0  ;;  %v695_v39 = vmax.f32 %v679_v26, 0.0  ;;  %v665_v43 = vld [vmem:[#allocation2 + $0x60] sm:$0xff] }
 0x129   : > { %v696_v40 = vmax.f32 %v680_v28, 0.0  ;;  %v683_v41 = vadd.f32 %v926_v19, %v660_v30  ;;  %v698_v46 = vmax.f32 %v682_v34, 0.0  ;;  %v685_v51 = vadd.f32 %v926_v19, %v662_v36  ;;  %v668_v54 = vld [vmem:[#allocation2 + $0x28] sm:$0xff] }
 0x12a   : > { %v658_v27 = vld [vmem:[#allocation2 + $0x68] sm:$0xff]  ;;  %v966_v44 = vpack.c.bf16 %v693_v32, %v692_v31  ;;  %v666_v48 = vld [vmem:[#allocation2 + $0x70] sm:$0xff]  ;;  %v971_v49 = vpack.c.bf16 %v695_v39, %v694_v38  ;;  %v686_v52 = vadd.f32 %v926_v19, %v663_v37  ;;  %v700_v56 = vmax.f32 %v684_v47, 0.0 }
 0x12b   : > { %v681_v33 = vadd.f32 %v926_v19, %v658_v27  ;;  %v699_v50 = vmax.f32 %v683_v41, 0.0  ;;  %v688_v58 = vadd.f32 %v926_v19, %v665_v43  ;;  %v701_v60 = vmax.f32 %v685_v51, 0.0 }
 0x12c   : > { %967 = vst [vmem:[%s1327_s3] sm:$0xff] %v966_v44   ;;  %1003 = vst [vmem:[%s1327_s3 + $0x8] sm:$0xff] %v971_v49   ;;  %v702_v61 = vmax.f32 %v686_v52, 0.0  ;;  %v689_v62 = vadd.f32 %v926_v19, %v666_v48  ;;  %v703_v63 = vmax.f32 %v687_v57, 0.0  ;;  %v690_v1 = vadd.f32 %v926_v19, %v667_v53 }
 0x12d   : > { %v697_v45 = vmax.f32 %v681_v33, 0.0  ;;  %v981_v59 = vpack.c.bf16 %v699_v50, %v698_v46  ;;  %v704_v0 = vmax.f32 %v688_v58, 0.0  ;;  %v691_v2 = vadd.f32 %v926_v19, %v668_v54 }
 0x12e   : > { %v986_v3 = vpack.c.bf16 %v701_v60, %v700_v56  ;;  %v705_v4 = vmax.f32 %v689_v62, 0.0  ;;  %v991_v5 = vpack.c.bf16 %v703_v63, %v702_v61  ;;  %v706_v6 = vmax.f32 %v690_v1, 0.0 }
 0x12f   : > { %v976_v55 = vpack.c.bf16 %v697_v45, %v696_v40  ;;  %1005 = vst [vmem:[%s1327_s3 + $0x18] sm:$0xff] %v981_v59   ;;  %v707_v7 = vmax.f32 %v691_v2, 0.0 }
 0x130   : > { %1006 = vst [vmem:[%s1327_s3 + $0x20] sm:$0xff] %v986_v3   ;;  %v996_v8 = vpack.c.bf16 %v705_v4, %v704_v0  ;;  %1007 = vst [vmem:[%s1327_s3 + $0x28] sm:$0xff] %v991_v5  }
 0x131   : > { %1004 = vst [vmem:[%s1327_s3 + $0x10] sm:$0xff] %v976_v55   ;;  %v1001_v9 = vpack.c.bf16 %v707_v7, %v706_v6 }
 0x132   : > { %1008 = vst [vmem:[%s1327_s3 + $0x30] sm:$0xff] %v996_v8  }
 0x133   : > { %1009 = vst [vmem:[%s1327_s3 + $0x38] sm:$0xff] %v1001_v9  }
 0x134 PF: > { %s13_s16 = sadd.s32 1, %s1169_s16   ;;  %s1328_s12 = smov %s1157_s13 }
 0x135   : > { %p10_p12 = scmp.ge.s32.totalorder %s13_s16, 7   ;;  %s1329_s13 = smov %s1227_s20 }
 0x136   : > { %s1330_s14 = smov %s1165_s15  ;;  %s1331_s15 = smov %s1333_s17 }
 0x137   :  { %12 = sbr.rel (!%p10_p12) target bundleno = 3 (0x3), region = 122 }

// kernel: resnet50_forward.59
= control target key start
LH: loop header
LB: loop body
LE: loop exit
PB: predicated region body
PF: predicated region fallthrough
CT: control target
= control target key end

     0   :  { %v720_v1 = vmov 0   ;;  %v457_v25 = vlaneseq  ;;  %s908_s1 = inlined_call_operand.vmem [shape: bf16[128,256], index: 1, kind: input, shape index: {}]   ;;  %s909_s0 = inlined_call_operand.vmem [shape: bf16[128,128], index: 0, kind: input, shape index: {}]   ;;  %s910_s2 = inlined_call_operand.vmem [shape: f32[1,256], index: 2, kind: input, shape index: {}]   ;;  %s911_s3 = inlined_call_operand.vmem [shape: bf16[128,256], index: 3, kind: output, shape index: {}]  }
   0x1   :  { %v688_v0 = vld [vmem:[%s908_s1 + $0x74] ss:$8 sps:$4 sm:$0xff]   ;;  %275 = vmatprep.mubr.bf16.mxu0 %v720_v1  ;;  %315 = vmatprep.mubr.bf16.mxu1 %v720_v1  ;;  %v690_v2 = vld [vmem:[%s908_s1 + $0x70] ss:$8 sps:$4 sm:$0xff]   ;;  %v691_v3 = vld [vmem:[%s908_s1 + $0x64] ss:$8 sps:$4 sm:$0xff]  }
   0x2   :  { %243 = vmatprep.subr.bf16.mxu0 %v688_v0  ;;  %671 = vmatprep.subr.bf16.mxu1 %v688_v0  ;;  %v693_v4 = vld [vmem:[%s908_s1 + $0x60] ss:$8 sps:$4 sm:$0xff]   ;;  %v694_v5 = vld [vmem:[%s908_s1 + $0x54] ss:$8 sps:$4 sm:$0xff]   ;;  %v696_v6 = vld [vmem:[%s908_s1 + $0x50] ss:$8 sps:$4 sm:$0xff]  }
   0x3   :  { %244 = vmatpush1.bf16.msra.mxu0 %v690_v2  ;;  %679 = vmatpush1.bf16.msra.mxu1 %v690_v2  ;;  %v697_v7 = vld [vmem:[%s908_s1 + $0x44] ss:$8 sps:$4 sm:$0xff]   ;;  %v699_v8 = vld [vmem:[%s908_s1 + $0x40] ss:$8 sps:$4 sm:$0xff]   ;;  %v700_v9 = vld [vmem:[%s908_s1 + $0x34] ss:$8 sps:$4 sm:$0xff]  }
   0x4   :  { %245 = vmatprep.subr.bf16.mxu0 %v691_v3  ;;  %672 = vmatprep.subr.bf16.mxu1 %v691_v3  ;;  %v702_v10 = vld [vmem:[%s908_s1 + $0x30] ss:$8 sps:$4 sm:$0xff]   ;;  %v703_v11 = vld [vmem:[%s908_s1 + $0x24] ss:$8 sps:$4 sm:$0xff]   ;;  %v705_v12 = vld [vmem:[%s908_s1 + $0x20] ss:$8 sps:$4 sm:$0xff]  }
   0x5   :  { %v706_v13 = vld [vmem:[%s908_s1 + $0x14] ss:$8 sps:$4 sm:$0xff]   ;;  %v708_v14 = vld [vmem:[%s908_s1 + $0x10] ss:$8 sps:$4 sm:$0xff]   ;;  %v709_v15 = vld [vmem:[%s908_s1 + $0x4] ss:$8 sps:$4 sm:$0xff]  }
   0x6   :  { %v711_v16 = vld [vmem:[%s908_s1] ss:$8 sps:$4 sm:$0xff]   ;;  %v716_v21 = vld [vmem:[%s909_s0 + $0x10] sm:$0xff]   ;;  %v718_v23 = vld [vmem:[%s909_s0 + $0x18] sm:$0xff]   ;;  %v458_v26 = vshrl.u32 %v457_v25, 7 }
   0x7   :  { %246 = vmatpush1.bf16.msra.mxu0 %v693_v4  ;;  %680 = vmatpush1.bf16.msra.mxu1 %v693_v4  ;;  %v712_v17 = vld [vmem:[%s909_s0] sm:$0xff]   ;;  %v714_v19 = vld [vmem:[%s909_s0 + $0x8] sm:$0xff]   ;;  %v717_v22 = vld [vmem:[%s909_s0 + $0x30] sm:$0xff]  }
   0x8   :  { %247 = vmatprep.subr.bf16.mxu0 %v694_v5  ;;  %673 = vmatprep.subr.bf16.mxu1 %v694_v5  ;;  %v713_v18 = vld [vmem:[%s909_s0 + $0x20] sm:$0xff]   ;;  %v715_v20 = vld [vmem:[%s909_s0 + $0x28] sm:$0xff]   ;;  %v719_v24 = vld [vmem:[%s909_s0 + $0x38] sm:$0xff]   ;;  %v459_v27 = vsub.s32 0, %v458_v26  ;;  %v463_v28 = vsub.s32 1, %v458_v26 }
   0x9   :  { %v455_v29 = vld [vmem:[%s910_s2] sm:$0x3] }
   0xa   :  { %v824_v30 = vrot.slane %v455_v29, %v459_v27  ;;  %v826_v31 = vrot.slane %v455_v29, %v463_v28 }
   0xb   :  { %248 = vmatpush1.bf16.msra.mxu0 %v696_v6  ;;  %681 = vmatpush1.bf16.msra.mxu1 %v696_v6 }
   0xc   :  { %249 = vmatprep.subr.bf16.mxu0 %v697_v7  ;;  %674 = vmatprep.subr.bf16.mxu1 %v697_v7 }
   0xf   :  { %250 = vmatpush1.bf16.msra.mxu0 %v699_v8  ;;  %682 = vmatpush1.bf16.msra.mxu1 %v699_v8 }
  0x10   :  { %251 = vmatprep.subr.bf16.mxu0 %v700_v9  ;;  %675 = vmatprep.subr.bf16.mxu1 %v700_v9 }
  0x13   :  { %252 = vmatpush1.bf16.msra.mxu0 %v702_v10  ;;  %683 = vmatpush1.bf16.msra.mxu1 %v702_v10 }
  0x14   :  { %253 = vmatprep.subr.bf16.mxu0 %v703_v11  ;;  %676 = vmatprep.subr.bf16.mxu1 %v703_v11 }
  0x17   :  { %254 = vmatpush1.bf16.msra.mxu0 %v705_v12  ;;  %684 = vmatpush1.bf16.msra.mxu1 %v705_v12 }
  0x18   :  { %255 = vmatprep.subr.bf16.mxu0 %v706_v13  ;;  %677 = vmatprep.subr.bf16.mxu1 %v706_v13 }
  0x1b   :  { %256 = vmatpush1.bf16.msra.mxu0 %v708_v14  ;;  %685 = vmatpush1.bf16.msra.mxu1 %v708_v14 }
  0x1c   :  { %257 = vmatprep.subr.bf16.mxu0 %v709_v15  ;;  %678 = vmatprep.subr.bf16.mxu1 %v709_v15 }
  0x1f   :  { %258 = vmatpush1.bf16.msra.mxu0 %v711_v16  ;;  %686 = vmatpush1.bf16.msra.mxu1 %v711_v16 }
  0x22   :  { %276 = vmatmul.mubr.bf16.vlgmr.msra.gmra.mxu0 %v712_v17  ;;  %316 = vmatmul.mubr.bf16.vlgmr.msra.gmra.mxu1 %v713_v18 }
  0x23   :  { %285 = vmatprep.mubr.bf16.mxu0 %v720_v1  ;;  %325 = vmatprep.mubr.bf16.mxu1 %v720_v1 }
  0x2a   :  { %286 = vmatmul.mubr.bf16.gmra.mxu0 %v714_v19  ;;  %326 = vmatmul.mubr.bf16.gmra.mxu1 %v715_v20 }
  0x2b   :  { %295 = vmatprep.mubr.bf16.mxu0 %v720_v1  ;;  %335 = vmatprep.mubr.bf16.mxu1 %v720_v1 }
  0x32   :  { %296 = vmatmul.mubr.bf16.gmra.mxu0 %v716_v21  ;;  %336 = vmatmul.mubr.bf16.gmra.mxu1 %v717_v22 }
  0x33   :  { %305 = vmatprep.mubr.bf16.mxu0 %v720_v1  ;;  %345 = vmatprep.mubr.bf16.mxu1 %v720_v1 }
  0x3a   :  { %306 = vmatmul.mubr.bf16.gmra.mxu0 %v718_v23  ;;  %346 = vmatmul.mubr.bf16.gmra.mxu1 %v719_v24 }
  0xe2   :  { %v277_v32 = vpop.f32.mrf.mxu0  ;;  %v317_v33 = vpop.f32.mrf.mxu1 }
  0xe3   :  { %v467_v36 = vadd.f32 %v824_v30, %v277_v32  ;;  %v483_v37 = vadd.f32 %v824_v30, %v317_v33 }
  0xe4   :  { %v279_v34 = vpop.f32.mrf.mxu0  ;;  %v319_v35 = vpop.f32.mrf.mxu1 }
  0xe5   :  { %v468_v38 = vadd.f32 %v826_v31, %v279_v34  ;;  %v484_v39 = vadd.f32 %v826_v31, %v319_v35 }
  0xe6   :  { %v281_v40 = vpop.f32.mrf.mxu0  ;;  %v321_v41 = vpop.f32.mrf.mxu1 }
  0xe7   :  { %v655_v42 = vpack.c.bf16 %v468_v38, %v467_v36  ;;  %v663_v43 = vpack.c.bf16 %v484_v39, %v483_v37  ;;  %v469_v46 = vadd.f32 %v824_v30, %v281_v40  ;;  %v485_v47 = vadd.f32 %v824_v30, %v321_v41 }
  0xe8   :  { %v283_v44 = vpop.f32.mrf.mxu0  ;;  %v323_v45 = vpop.f32.mrf.mxu1 }
  0xe9   :  { %595 = vst [vmem:[%s911_s3] sm:$0xff] %v655_v42  ;;  %603 = vst [vmem:[%s911_s3 + $0x40] sm:$0xff] %v663_v43  ;;  %v470_v48 = vadd.f32 %v826_v31, %v283_v44  ;;  %v486_v49 = vadd.f32 %v826_v31, %v323_v45 }
  0xea   :  { %v287_v50 = vpop.f32.mrf.mxu0  ;;  %v327_v51 = vpop.f32.mrf.mxu1 }
  0xeb   :  { %v656_v52 = vpack.c.bf16 %v470_v48, %v469_v46  ;;  %v664_v53 = vpack.c.bf16 %v486_v49, %v485_v47  ;;  %v471_v56 = vadd.f32 %v824_v30, %v287_v50  ;;  %v487_v57 = vadd.f32 %v824_v30, %v327_v51 }
  0xec   :  { %v289_v54 = vpop.f32.mrf.mxu0  ;;  %v329_v55 = vpop.f32.mrf.mxu1 }
  0xed   :  { %596 = vst [vmem:[%s911_s3 + $0x8] sm:$0xff] %v656_v52  ;;  %604 = vst [vmem:[%s911_s3 + $0x48] sm:$0xff] %v664_v53  ;;  %v472_v58 = vadd.f32 %v826_v31, %v289_v54  ;;  %v488_v59 = vadd.f32 %v826_v31, %v329_v55 }
  0xee   :  { %v291_v60 = vpop.f32.mrf.mxu0  ;;  %v331_v61 = vpop.f32.mrf.mxu1 }
  0xef   :  { %v657_v62 = vpack.c.bf16 %v472_v58, %v471_v56  ;;  %v665_v63 = vpack.c.bf16 %v488_v59, %v487_v57  ;;  %v473_v2 = vadd.f32 %v824_v30, %v291_v60  ;;  %v489_v3 = vadd.f32 %v824_v30, %v331_v61 }
  0xf0   :  { %v293_v0 = vpop.f32.mrf.mxu0  ;;  %v333_v1 = vpop.f32.mrf.mxu1 }
  0xf1   :  { %597 = vst [vmem:[%s911_s3 + $0x10] sm:$0xff] %v657_v62  ;;  %605 = vst [vmem:[%s911_s3 + $0x50] sm:$0xff] %v665_v63  ;;  %v474_v4 = vadd.f32 %v826_v31, %v293_v0  ;;  %v490_v5 = vadd.f32 %v826_v31, %v333_v1 }
  0xf2   :  { %v297_v6 = vpop.f32.mrf.mxu0  ;;  %v337_v7 = vpop.f32.mrf.mxu1 }
  0xf3   :  { %v658_v8 = vpack.c.bf16 %v474_v4, %v473_v2  ;;  %v666_v9 = vpack.c.bf16 %v490_v5, %v489_v3  ;;  %v475_v12 = vadd.f32 %v824_v30, %v297_v6  ;;  %v491_v13 = vadd.f32 %v824_v30, %v337_v7 }
  0xf4   :  { %v299_v10 = vpop.f32.mrf.mxu0  ;;  %v339_v11 = vpop.f32.mrf.mxu1 }
  0xf5   :  { %598 = vst [vmem:[%s911_s3 + $0x18] sm:$0xff] %v658_v8  ;;  %606 = vst [vmem:[%s911_s3 + $0x58] sm:$0xff] %v666_v9  ;;  %v476_v14 = vadd.f32 %v826_v31, %v299_v10  ;;  %v492_v15 = vadd.f32 %v826_v31, %v339_v11 }
  0xf6   :  { %v301_v16 = vpop.f32.mrf.mxu0  ;;  %v341_v17 = vpop.f32.mrf.mxu1 }
  0xf7   :  { %v659_v18 = vpack.c.bf16 %v476_v14, %v475_v12  ;;  %v667_v19 = vpack.c.bf16 %v492_v15, %v491_v13  ;;  %v477_v22 = vadd.f32 %v824_v30, %v301_v16  ;;  %v493_v23 = vadd.f32 %v824_v30, %v341_v17 }
  0xf8   :  { %v303_v20 = vpop.f32.mrf.mxu0  ;;  %v343_v21 = vpop.f32.mrf.mxu1 }
  0xf9   :  { %599 = vst [vmem:[%s911_s3 + $0x20] sm:$0xff] %v659_v18  ;;  %607 = vst [vmem:[%s911_s3 + $0x60] sm:$0xff] %v667_v19  ;;  %v478_v24 = vadd.f32 %v826_v31, %v303_v20  ;;  %v494_v25 = vadd.f32 %v826_v31, %v343_v21 }
  0xfa   :  { %v307_v26 = vpop.f32.mrf.mxu0  ;;  %v347_v27 = vpop.f32.mrf.mxu1 }
  0xfb   :  { %v660_v28 = vpack.c.bf16 %v478_v24, %v477_v22  ;;  %v668_v29 = vpack.c.bf16 %v494_v25, %v493_v23  ;;  %v479_v34 = vadd.f32 %v824_v30, %v307_v26  ;;  %v495_v35 = vadd.f32 %v824_v30, %v347_v27 }
  0xfc   :  { %v309_v32 = vpop.f32.mrf.mxu0  ;;  %v349_v33 = vpop.f32.mrf.mxu1 }
  0xfd   :  { %600 = vst [vmem:[%s911_s3 + $0x28] sm:$0xff] %v660_v28  ;;  %608 = vst [vmem:[%s911_s3 + $0x68] sm:$0xff] %v668_v29  ;;  %v480_v36 = vadd.f32 %v826_v31, %v309_v32  ;;  %v496_v37 = vadd.f32 %v826_v31, %v349_v33 }
  0xfe   :  { %v311_v38 = vpop.f32.mrf.mxu0  ;;  %v351_v39 = vpop.f32.mrf.mxu1 }
  0xff   :  { %v661_v40 = vpack.c.bf16 %v480_v36, %v479_v34  ;;  %v669_v41 = vpack.c.bf16 %v496_v37, %v495_v35  ;;  %v481_v44 = vadd.f32 %v824_v30, %v311_v38  ;;  %v497_v45 = vadd.f32 %v824_v30, %v351_v39 }
 0x100   :  { %v313_v42 = vpop.f32.mrf.mxu0  ;;  %v353_v43 = vpop.f32.mrf.mxu1 }
 0x101   :  { %601 = vst [vmem:[%s911_s3 + $0x30] sm:$0xff] %v661_v40  ;;  %609 = vst [vmem:[%s911_s3 + $0x70] sm:$0xff] %v669_v41  ;;  %v482_v46 = vadd.f32 %v826_v31, %v313_v42  ;;  %v498_v47 = vadd.f32 %v826_v31, %v353_v43 }
 0x103   :  { %v662_v48 = vpack.c.bf16 %v482_v46, %v481_v44  ;;  %v670_v49 = vpack.c.bf16 %v498_v47, %v497_v45 }
 0x105   :  { %602 = vst [vmem:[%s911_s3 + $0x38] sm:$0xff] %v662_v48  ;;  %610 = vst [vmem:[%s911_s3 + $0x78] sm:$0xff] %v670_v49 }

// kernel: resnet50_forward.61
= control target key start
LH: loop header
LB: loop body
LE: loop exit
PB: predicated region body
PF: predicated region fallthrough
CT: control target
= control target key end

     0   :  { %s939_s1 = inlined_call_operand.vmem [shape: bf16[256,128], index: 1, kind: input, shape index: {}]   ;;  %s940_s0 = inlined_call_operand.vmem [shape: bf16[128,256], index: 0, kind: input, shape index: {}]   ;;  %s941_s2 = inlined_call_operand.vmem [shape: f32[1,128], index: 2, kind: input, shape index: {}]   ;;  %s942_s3 = inlined_call_operand.vmem [shape: bf16[128,128], index: 3, kind: output, shape index: {}]  }
   0x1   :  { %v738_v0 = vld [vmem:[%s939_s1 + $0x78] sm:$0xff]   ;;  %v740_v2 = vld [vmem:[%s939_s1 + $0x70] sm:$0xff]   ;;  %v742_v4 = vld [vmem:[%s939_s1 + $0x68] sm:$0xff]  }
   0x2   :  { %v739_v1 = vld [vmem:[%s939_s1 + $0x38] sm:$0xff]   ;;  %658 = vmatprep.subr.bf16.mxu0 %v738_v0  ;;  %722 = vmatprep.subr.bf16.mxu1 %v738_v0  ;;  %v741_v3 = vld [vmem:[%s939_s1 + $0x30] sm:$0xff]   ;;  %v743_v5 = vld [vmem:[%s939_s1 + $0x28] sm:$0xff]  }
   0x3   :  { %659 = vmatpush3.bf16.msra.mxu0 %v739_v1  ;;  %730 = vmatpush3.bf16.msra.mxu1 %v739_v1  ;;  %v744_v6 = vld [vmem:[%s939_s1 + $0x60] sm:$0xff]   ;;  %v746_v8 = vld [vmem:[%s939_s1 + $0x58] sm:$0xff]   ;;  %v748_v10 = vld [vmem:[%s939_s1 + $0x50] sm:$0xff]  }
   0x4   :  { %660 = vmatprep.subr.bf16.mxu0 %v740_v2  ;;  %723 = vmatprep.subr.bf16.mxu1 %v740_v2  ;;  %v745_v7 = vld [vmem:[%s939_s1 + $0x20] sm:$0xff]   ;;  %v747_v9 = vld [vmem:[%s939_s1 + $0x18] sm:$0xff]   ;;  %v749_v13 = vld [vmem:[%s939_s1 + $0x10] sm:$0xff]  }
   0x5   :  { %v756_v11 = vld [vmem:[%s940_s0 + $0x4] ss:$8 sps:$4 sm:$0xff]   ;;  %v754_v18 = vld [vmem:[%s940_s0] ss:$8 sps:$4 sm:$0xff]   ;;  %v760_v20 = vld [vmem:[%s940_s0 + $0x14] ss:$8 sps:$4 sm:$0xff]  }
   0x6   :  { %v759_v12 = vld [vmem:[%s940_s0 + $0x44] ss:$8 sps:$4 sm:$0xff]   ;;  %307 = vmatprep.mubr.bf16.mxu0 %v756_v11  ;;  %v757_v19 = vld [vmem:[%s940_s0 + $0x40] ss:$8 sps:$4 sm:$0xff]   ;;  %v762_v21 = vld [vmem:[%s940_s0 + $0x54] ss:$8 sps:$4 sm:$0xff]  }
   0x7   :  { %661 = vmatpush3.bf16.msra.mxu0 %v741_v3  ;;  %731 = vmatpush3.bf16.msra.mxu1 %v741_v3  ;;  %v750_v14 = vld [vmem:[%s939_s1 + $0x48] sm:$0xff]   ;;  %v752_v16 = vld [vmem:[%s939_s1 + $0x40] sm:$0xff]   ;;  %v764_v22 = vld [vmem:[%s940_s0 + $0x10] ss:$8 sps:$4 sm:$0xff]  }
   0x8   :  { %662 = vmatprep.subr.bf16.mxu0 %v742_v4  ;;  %724 = vmatprep.subr.bf16.mxu1 %v742_v4  ;;  %v751_v15 = vld [vmem:[%s939_s1 + $0x8] sm:$0xff]   ;;  %v753_v17 = vld [vmem:[%s939_s1] sm:$0xff]   ;;  %v765_v23 = vld [vmem:[%s940_s0 + $0x50] ss:$8 sps:$4 sm:$0xff]  }
   0x9   :  { %339 = vmatprep.mubr.bf16.mxu1 %v759_v12  ;;  %v766_v24 = vld [vmem:[%s940_s0 + $0x24] ss:$8 sps:$4 sm:$0xff]   ;;  %v770_v26 = vld [vmem:[%s940_s0 + $0x20] ss:$8 sps:$4 sm:$0xff]   ;;  %v772_v28 = vld [vmem:[%s940_s0 + $0x34] ss:$8 sps:$4 sm:$0xff]  }
   0xa   :  { %v768_v25 = vld [vmem:[%s940_s0 + $0x64] ss:$8 sps:$4 sm:$0xff]   ;;  %v771_v27 = vld [vmem:[%s940_s0 + $0x60] ss:$8 sps:$4 sm:$0xff]   ;;  %v774_v29 = vld [vmem:[%s940_s0 + $0x74] ss:$8 sps:$4 sm:$0xff]  }
   0xb   :  { %663 = vmatpush3.bf16.msra.mxu0 %v743_v5  ;;  %732 = vmatpush3.bf16.msra.mxu1 %v743_v5  ;;  %v776_v30 = vld [vmem:[%s940_s0 + $0x30] ss:$8 sps:$4 sm:$0xff]   ;;  %v897_v37 = vld [vmem:[%s941_s2] ss:$0 sm:$0xff] }
   0xc   :  { %664 = vmatprep.subr.bf16.mxu0 %v744_v6  ;;  %725 = vmatprep.subr.bf16.mxu1 %v744_v6  ;;  %v777_v31 = vld [vmem:[%s940_s0 + $0x70] ss:$8 sps:$4 sm:$0xff]  }
   0xf   :  { %665 = vmatpush3.bf16.msra.mxu0 %v745_v7  ;;  %733 = vmatpush3.bf16.msra.mxu1 %v745_v7 }
  0x10   :  { %666 = vmatprep.subr.bf16.mxu0 %v746_v8  ;;  %726 = vmatprep.subr.bf16.mxu1 %v746_v8 }
  0x13   :  { %667 = vmatpush3.bf16.msra.mxu0 %v747_v9  ;;  %734 = vmatpush3.bf16.msra.mxu1 %v747_v9 }
  0x14   :  { %668 = vmatprep.subr.bf16.mxu0 %v748_v10  ;;  %727 = vmatprep.subr.bf16.mxu1 %v748_v10 }
  0x17   :  { %669 = vmatpush3.bf16.msra.mxu0 %v749_v13  ;;  %735 = vmatpush3.bf16.msra.mxu1 %v749_v13 }
  0x18   :  { %670 = vmatprep.subr.bf16.mxu0 %v750_v14  ;;  %728 = vmatprep.subr.bf16.mxu1 %v750_v14 }
  0x1b   :  { %671 = vmatpush3.bf16.msra.mxu0 %v751_v15  ;;  %736 = vmatpush3.bf16.msra.mxu1 %v751_v15 }
  0x1c   :  { %672 = vmatprep.subr.bf16.mxu0 %v752_v16  ;;  %729 = vmatprep.subr.bf16.mxu1 %v752_v16 }
  0x1f   :  { %673 = vmatpush3.bf16.msra.mxu0 %v753_v17  ;;  %737 = vmatpush3.bf16.msra.mxu1 %v753_v17 }
  0x22   :  { %308 = vmatmul.mubr.bf16.vlgmr.msra.gmra.mxu0 %v754_v18  ;;  %340 = vmatmul.mubr.bf16.vlgmr.msra.gmra.mxu1 %v757_v19 }
  0x23   :  { %315 = vmatprep.mubr.bf16.mxu0 %v760_v20  ;;  %347 = vmatprep.mubr.bf16.mxu1 %v762_v21 }
  0x2a   :  { %316 = vmatmul.mubr.bf16.gmra.mxu0 %v764_v22  ;;  %348 = vmatmul.mubr.bf16.gmra.mxu1 %v765_v23 }
  0x2b   :  { %323 = vmatprep.mubr.bf16.mxu0 %v766_v24  ;;  %355 = vmatprep.mubr.bf16.mxu1 %v768_v25 }
  0x32   :  { %324 = vmatmul.mubr.bf16.gmra.mxu0 %v770_v26  ;;  %356 = vmatmul.mubr.bf16.gmra.mxu1 %v771_v27 }
  0x33   :  { %331 = vmatprep.mubr.bf16.mxu0 %v772_v28  ;;  %363 = vmatprep.mubr.bf16.mxu1 %v774_v29 }
  0x3a   :  { %332 = vmatmul.mubr.bf16.gmra.mxu0 %v776_v30  ;;  %364 = vmatmul.mubr.bf16.gmra.mxu1 %v777_v31 }
  0xe2   :  { %v674_v32 = vpop.f32.mrf.mxu0  ;;  %v698_v33 = vpop.f32.mrf.mxu1 }
  0xe4   :  { %v675_v34 = vpop.f32.mrf.mxu0  ;;  %v699_v35 = vpop.f32.mrf.mxu1 }
  0xe5   :  { %v676_v36 = vadd.f32 %v675_v34, %v674_v32  ;;  %v700_v38 = vadd.f32 %v699_v35, %v698_v33 }
  0xe6   :  { %v677_v39 = vpop.f32.mrf.mxu0  ;;  %v701_v40 = vpop.f32.mrf.mxu1 }
  0xe7   :  { %v430_v41 = vadd.f32 %v676_v36, %v897_v37  ;;  %v438_v42 = vadd.f32 %v700_v38, %v897_v37 }
  0xe8   :  { %v678_v43 = vpop.f32.mrf.mxu0  ;;  %v702_v44 = vpop.f32.mrf.mxu1 }
  0xe9   :  { %v679_v45 = vadd.f32 %v678_v43, %v677_v39  ;;  %v703_v46 = vadd.f32 %v702_v44, %v701_v40  ;;  %v446_v51 = vmax.f32 %v430_v41, 0.0  ;;  %v454_v52 = vmax.f32 %v438_v42, 0.0 }
  0xea   :  { %v680_v47 = vpop.f32.mrf.mxu0  ;;  %v704_v48 = vpop.f32.mrf.mxu1 }
  0xeb   :  { %v431_v49 = vadd.f32 %v679_v45, %v897_v37  ;;  %v439_v50 = vadd.f32 %v703_v46, %v897_v37 }
  0xec   :  { %v681_v53 = vpop.f32.mrf.mxu0  ;;  %v705_v54 = vpop.f32.mrf.mxu1 }
  0xed   :  { %v447_v55 = vmax.f32 %v431_v49, 0.0  ;;  %v455_v56 = vmax.f32 %v439_v50, 0.0  ;;  %v682_v57 = vadd.f32 %v681_v53, %v680_v47  ;;  %v706_v58 = vadd.f32 %v705_v54, %v704_v48 }
  0xee   :  { %v683_v59 = vpop.f32.mrf.mxu0  ;;  %v707_v60 = vpop.f32.mrf.mxu1 }
  0xef   :  { %v614_v61 = vpack.c.bf16 %v447_v55, %v446_v51  ;;  %v634_v62 = vpack.c.bf16 %v455_v56, %v454_v52  ;;  %v432_v63 = vadd.f32 %v682_v57, %v897_v37  ;;  %v440_v0 = vadd.f32 %v706_v58, %v897_v37 }
  0xf0   :  { %v684_v1 = vpop.f32.mrf.mxu0  ;;  %v708_v2 = vpop.f32.mrf.mxu1 }
  0xf1   :  { %615 = vst [vmem:[%s942_s3] sm:$0xff] %v614_v61   ;;  %654 = vst [vmem:[%s942_s3 + $0x20] sm:$0xff] %v634_v62   ;;  %v685_v3 = vadd.f32 %v684_v1, %v683_v59  ;;  %v709_v4 = vadd.f32 %v708_v2, %v707_v60  ;;  %v448_v9 = vmax.f32 %v432_v63, 0.0  ;;  %v456_v10 = vmax.f32 %v440_v0, 0.0 }
  0xf2   :  { %v686_v5 = vpop.f32.mrf.mxu0  ;;  %v710_v6 = vpop.f32.mrf.mxu1 }
  0xf3   :  { %v433_v7 = vadd.f32 %v685_v3, %v897_v37  ;;  %v441_v8 = vadd.f32 %v709_v4, %v897_v37 }
  0xf4   :  { %v687_v11 = vpop.f32.mrf.mxu0  ;;  %v711_v12 = vpop.f32.mrf.mxu1 }
  0xf5   :  { %v449_v13 = vmax.f32 %v433_v7, 0.0  ;;  %v457_v14 = vmax.f32 %v441_v8, 0.0  ;;  %v688_v15 = vadd.f32 %v687_v11, %v686_v5  ;;  %v712_v16 = vadd.f32 %v711_v12, %v710_v6 }
  0xf6   :  { %v689_v17 = vpop.f32.mrf.mxu0  ;;  %v713_v18 = vpop.f32.mrf.mxu1 }
  0xf7   :  { %v619_v19 = vpack.c.bf16 %v449_v13, %v448_v9  ;;  %v639_v20 = vpack.c.bf16 %v457_v14, %v456_v10  ;;  %v434_v21 = vadd.f32 %v688_v15, %v897_v37  ;;  %v442_v22 = vadd.f32 %v712_v16, %v897_v37 }
  0xf8   :  { %v690_v23 = vpop.f32.mrf.mxu0  ;;  %v714_v24 = vpop.f32.mrf.mxu1 }
  0xf9   :  { %651 = vst [vmem:[%s942_s3 + $0x8] sm:$0xff] %v619_v19   ;;  %655 = vst [vmem:[%s942_s3 + $0x28] sm:$0xff] %v639_v20   ;;  %v691_v25 = vadd.f32 %v690_v23, %v689_v17  ;;  %v715_v26 = vadd.f32 %v714_v24, %v713_v18  ;;  %v450_v31 = vmax.f32 %v434_v21, 0.0  ;;  %v458_v32 = vmax.f32 %v442_v22, 0.0 }
  0xfa   :  { %v692_v27 = vpop.f32.mrf.mxu0  ;;  %v716_v28 = vpop.f32.mrf.mxu1 }
  0xfb   :  { %v435_v29 = vadd.f32 %v691_v25, %v897_v37  ;;  %v443_v30 = vadd.f32 %v715_v26, %v897_v37 }
  0xfc   :  { %v693_v33 = vpop.f32.mrf.mxu0  ;;  %v717_v34 = vpop.f32.mrf.mxu1 }
  0xfd   :  { %v451_v35 = vmax.f32 %v435_v29, 0.0  ;;  %v459_v36 = vmax.f32 %v443_v30, 0.0  ;;  %v694_v38 = vadd.f32 %v693_v33, %v692_v27  ;;  %v718_v39 = vadd.f32 %v717_v34, %v716_v28 }
  0xfe   :  { %v695_v40 = vpop.f32.mrf.mxu0  ;;  %v719_v41 = vpop.f32.mrf.mxu1 }
  0xff   :  { %v624_v42 = vpack.c.bf16 %v451_v35, %v450_v31  ;;  %v644_v43 = vpack.c.bf16 %v459_v36, %v458_v32  ;;  %v436_v46 = vadd.f32 %v694_v38, %v897_v37  ;;  %v444_v47 = vadd.f32 %v718_v39, %v897_v37 }
 0x100   :  { %v696_v44 = vpop.f32.mrf.mxu0  ;;  %v720_v45 = vpop.f32.mrf.mxu1 }
 0x101   :  { %652 = vst [vmem:[%s942_s3 + $0x10] sm:$0xff] %v624_v42   ;;  %656 = vst [vmem:[%s942_s3 + $0x30] sm:$0xff] %v644_v43   ;;  %v697_v48 = vadd.f32 %v696_v44, %v695_v40  ;;  %v721_v49 = vadd.f32 %v720_v45, %v719_v41  ;;  %v452_v52 = vmax.f32 %v436_v46, 0.0  ;;  %v460_v53 = vmax.f32 %v444_v47, 0.0 }
 0x103   :  { %v437_v50 = vadd.f32 %v697_v48, %v897_v37  ;;  %v445_v51 = vadd.f32 %v721_v49, %v897_v37 }
 0x105   :  { %v453_v54 = vmax.f32 %v437_v50, 0.0  ;;  %v461_v55 = vmax.f32 %v445_v51, 0.0 }
 0x107   :  { %v629_v56 = vpack.c.bf16 %v453_v54, %v452_v52  ;;  %v649_v57 = vpack.c.bf16 %v461_v55, %v460_v53 }
 0x109   :  { %653 = vst [vmem:[%s942_s3 + $0x18] sm:$0xff] %v629_v56   ;;  %657 = vst [vmem:[%s942_s3 + $0x38] sm:$0xff] %v649_v57  }

// kernel: resnet50_forward.60
= control target key start
LH: loop header
LB: loop body
LE: loop exit
PB: predicated region body
PF: predicated region fallthrough
CT: control target
= control target key end

     0   :  { %v835_v1 = vmov 0   ;;  %v460_v25 = vlaneseq  ;;  %s1160_s1 = inlined_call_operand.vmem [shape: bf16[128,256], index: 1, kind: input, shape index: {}]   ;;  %s1161_s0 = inlined_call_operand.vmem [shape: bf16[128,128], index: 0, kind: input, shape index: {}]   ;;  %s1162_s2 = inlined_call_operand.vmem [shape: f32[1,256], index: 2, kind: input, shape index: {}]   ;;  %s1163_s3 = inlined_call_operand.vmem [shape: bf16[128,256], index: 3, kind: input, shape index: {}]   ;;  %s1164_s4 = inlined_call_operand.vmem [shape: bf16[128,256], index: 4, kind: output, shape index: {}]  }
   0x1   :  { %v803_v0 = vld [vmem:[%s1160_s1 + $0x74] ss:$8 sps:$4 sm:$0xff]   ;;  %278 = vmatprep.mubr.bf16.mxu0 %v835_v1  ;;  %318 = vmatprep.mubr.bf16.mxu1 %v835_v1  ;;  %v805_v2 = vld [vmem:[%s1160_s1 + $0x70] ss:$8 sps:$4 sm:$0xff]   ;;  %v806_v3 = vld [vmem:[%s1160_s1 + $0x64] ss:$8 sps:$4 sm:$0xff]  }
   0x2   :  { %246 = vmatprep.subr.bf16.mxu0 %v803_v0  ;;  %786 = vmatprep.subr.bf16.mxu1 %v803_v0  ;;  %v808_v4 = vld [vmem:[%s1160_s1 + $0x60] ss:$8 sps:$4 sm:$0xff]   ;;  %v809_v5 = vld [vmem:[%s1160_s1 + $0x54] ss:$8 sps:$4 sm:$0xff]   ;;  %v811_v6 = vld [vmem:[%s1160_s1 + $0x50] ss:$8 sps:$4 sm:$0xff]  }
   0x3   :  { %247 = vmatpush1.bf16.msra.mxu0 %v805_v2  ;;  %794 = vmatpush1.bf16.msra.mxu1 %v805_v2  ;;  %v812_v7 = vld [vmem:[%s1160_s1 + $0x44] ss:$8 sps:$4 sm:$0xff]   ;;  %v814_v8 = vld [vmem:[%s1160_s1 + $0x40] ss:$8 sps:$4 sm:$0xff]   ;;  %v815_v9 = vld [vmem:[%s1160_s1 + $0x34] ss:$8 sps:$4 sm:$0xff]  }
   0x4   :  { %248 = vmatprep.subr.bf16.mxu0 %v806_v3  ;;  %787 = vmatprep.subr.bf16.mxu1 %v806_v3  ;;  %v817_v10 = vld [vmem:[%s1160_s1 + $0x30] ss:$8 sps:$4 sm:$0xff]   ;;  %v818_v11 = vld [vmem:[%s1160_s1 + $0x24] ss:$8 sps:$4 sm:$0xff]   ;;  %v820_v12 = vld [vmem:[%s1160_s1 + $0x20] ss:$8 sps:$4 sm:$0xff]  }
   0x5   :  { %v821_v13 = vld [vmem:[%s1160_s1 + $0x14] ss:$8 sps:$4 sm:$0xff]   ;;  %v823_v14 = vld [vmem:[%s1160_s1 + $0x10] ss:$8 sps:$4 sm:$0xff]   ;;  %v824_v15 = vld [vmem:[%s1160_s1 + $0x4] ss:$8 sps:$4 sm:$0xff]  }
   0x6   :  { %v826_v16 = vld [vmem:[%s1160_s1] ss:$8 sps:$4 sm:$0xff]   ;;  %v831_v21 = vld [vmem:[%s1161_s0 + $0x10] sm:$0xff]   ;;  %v833_v23 = vld [vmem:[%s1161_s0 + $0x18] sm:$0xff]   ;;  %v461_v26 = vshrl.u32 %v460_v25, 7 }
   0x7   :  { %249 = vmatpush1.bf16.msra.mxu0 %v808_v4  ;;  %795 = vmatpush1.bf16.msra.mxu1 %v808_v4  ;;  %v827_v17 = vld [vmem:[%s1161_s0] sm:$0xff]   ;;  %v829_v19 = vld [vmem:[%s1161_s0 + $0x8] sm:$0xff]   ;;  %v832_v22 = vld [vmem:[%s1161_s0 + $0x30] sm:$0xff]  }
   0x8   :  { %250 = vmatprep.subr.bf16.mxu0 %v809_v5  ;;  %788 = vmatprep.subr.bf16.mxu1 %v809_v5  ;;  %v828_v18 = vld [vmem:[%s1161_s0 + $0x20] sm:$0xff]   ;;  %v830_v20 = vld [vmem:[%s1161_s0 + $0x28] sm:$0xff]   ;;  %v834_v24 = vld [vmem:[%s1161_s0 + $0x38] sm:$0xff]   ;;  %v462_v27 = vsub.s32 0, %v461_v26  ;;  %v466_v30 = vsub.s32 1, %v461_v26 }
   0x9   :  { %v458_v28 = vld [vmem:[%s1162_s2] sm:$0x3]  ;;  %v955_v33 = vld [vmem:[%s1163_s3 + $0x8] sm:$0xff]  ;;  %v965_v36 = vld [vmem:[%s1163_s3 + $0x10] sm:$0xff] }
   0xa   :  { %v502_v29 = vld [vmem:[%s1163_s3] sm:$0xff]  ;;  %v950_v32 = vrot.slane %v458_v28, %v462_v27  ;;  %v960_v34 = vld [vmem:[%s1163_s3 + $0x48] sm:$0xff]  ;;  %v970_v37 = vld [vmem:[%s1163_s3 + $0x50] sm:$0xff]  ;;  %v972_v39 = vrot.slane %v458_v28, %v466_v30  ;;  %v520_v46 = vunpack.c.l.bf16 %v955_v33  ;;  %v521_v48 = vunpack.c.h.bf16 %v955_v33 }
   0xb   :  { %251 = vmatpush1.bf16.msra.mxu0 %v811_v6  ;;  %796 = vmatpush1.bf16.msra.mxu1 %v811_v6  ;;  %v510_v31 = vld [vmem:[%s1163_s3 + $0x40] sm:$0xff]  ;;  %v518_v35 = vunpack.c.l.bf16 %v502_v29  ;;  %v519_v40 = vunpack.c.h.bf16 %v502_v29  ;;  %v977_v42 = vld [vmem:[%s1163_s3 + $0x18] sm:$0xff]  ;;  %v536_v47 = vunpack.c.l.bf16 %v960_v34  ;;  %v537_v49 = vunpack.c.h.bf16 %v960_v34 }
   0xc   :  { %252 = vmatprep.subr.bf16.mxu0 %v812_v7  ;;  %789 = vmatprep.subr.bf16.mxu1 %v812_v7  ;;  %v534_v38 = vunpack.c.l.bf16 %v510_v31  ;;  %v535_v41 = vunpack.c.h.bf16 %v510_v31  ;;  %v982_v43 = vld [vmem:[%s1163_s3 + $0x58] sm:$0xff]  ;;  %v522_v52 = vunpack.c.l.bf16 %v965_v36  ;;  %v538_v53 = vunpack.c.l.bf16 %v970_v37  ;;  %v995_v54 = vld [vmem:[%s1163_s3 + $0x20] sm:$0xff] }
   0xd   :  { %v1000_v55 = vld [vmem:[%s1163_s3 + $0x60] sm:$0xff]  ;;  %v523_v58 = vunpack.c.h.bf16 %v965_v36  ;;  %v539_v59 = vunpack.c.h.bf16 %v970_v37  ;;  %v524_v60 = vunpack.c.l.bf16 %v977_v42  ;;  %v540_v61 = vunpack.c.l.bf16 %v982_v43 }
   0xe   :  { %v525_v4 = vunpack.c.h.bf16 %v977_v42  ;;  %v541_v5 = vunpack.c.h.bf16 %v982_v43  ;;  %v526_v6 = vunpack.c.l.bf16 %v995_v54  ;;  %v542_v7 = vunpack.c.l.bf16 %v1000_v55 }
   0xf   :  { %253 = vmatpush1.bf16.msra.mxu0 %v814_v8  ;;  %797 = vmatpush1.bf16.msra.mxu1 %v814_v8 }
  0x10   :  { %254 = vmatprep.subr.bf16.mxu0 %v815_v9  ;;  %790 = vmatprep.subr.bf16.mxu1 %v815_v9 }
  0x13   :  { %255 = vmatpush1.bf16.msra.mxu0 %v817_v10  ;;  %798 = vmatpush1.bf16.msra.mxu1 %v817_v10  ;;  %v527_v10 = vunpack.c.h.bf16 %v995_v54 }
  0x14   :  { %256 = vmatprep.subr.bf16.mxu0 %v818_v11  ;;  %791 = vmatprep.subr.bf16.mxu1 %v818_v11  ;;  %v543_v11 = vunpack.c.h.bf16 %v1000_v55 }
  0x17   :  { %257 = vmatpush1.bf16.msra.mxu0 %v820_v12  ;;  %799 = vmatpush1.bf16.msra.mxu1 %v820_v12  ;;  %v1017_v12 = vld [vmem:[%s1163_s3 + $0x28] sm:$0xff] }
  0x18   :  { %258 = vmatprep.subr.bf16.mxu0 %v821_v13  ;;  %792 = vmatprep.subr.bf16.mxu1 %v821_v13  ;;  %v1022_v13 = vld [vmem:[%s1163_s3 + $0x68] sm:$0xff]  ;;  %v528_v28 = vunpack.c.l.bf16 %v1017_v12 }
  0x19   :  { %v544_v29 = vunpack.c.l.bf16 %v1022_v13 }
  0x1b   :  { %259 = vmatpush1.bf16.msra.mxu0 %v823_v14  ;;  %800 = vmatpush1.bf16.msra.mxu1 %v823_v14 }
  0x1c   :  { %260 = vmatprep.subr.bf16.mxu0 %v824_v15  ;;  %793 = vmatprep.subr.bf16.mxu1 %v824_v15 }
  0x1f   :  { %261 = vmatpush1.bf16.msra.mxu0 %v826_v16  ;;  %801 = vmatpush1.bf16.msra.mxu1 %v826_v16 }
  0x22   :  { %279 = vmatmul.mubr.bf16.vlgmr.msra.gmra.mxu0 %v827_v17  ;;  %319 = vmatmul.mubr.bf16.vlgmr.msra.gmra.mxu1 %v828_v18 }
  0x23   :  { %288 = vmatprep.mubr.bf16.mxu0 %v835_v1  ;;  %328 = vmatprep.mubr.bf16.mxu1 %v835_v1 }
  0x2a   :  { %289 = vmatmul.mubr.bf16.gmra.mxu0 %v829_v19  ;;  %329 = vmatmul.mubr.bf16.gmra.mxu1 %v830_v20 }
  0x2b   :  { %298 = vmatprep.mubr.bf16.mxu0 %v835_v1  ;;  %338 = vmatprep.mubr.bf16.mxu1 %v835_v1 }
  0x32   :  { %299 = vmatmul.mubr.bf16.gmra.mxu0 %v831_v21  ;;  %339 = vmatmul.mubr.bf16.gmra.mxu1 %v832_v22 }
  0x33   :  { %308 = vmatprep.mubr.bf16.mxu0 %v835_v1  ;;  %348 = vmatprep.mubr.bf16.mxu1 %v835_v1 }
  0x3a   :  { %309 = vmatmul.mubr.bf16.gmra.mxu0 %v833_v23  ;;  %349 = vmatmul.mubr.bf16.gmra.mxu1 %v834_v24 }
  0xe2   :  { %v280_v44 = vpop.f32.mrf.mxu0  ;;  %v320_v45 = vpop.f32.mrf.mxu1 }
  0xe3   :  { %v470_v50 = vadd.f32 %v950_v32, %v280_v44  ;;  %v486_v51 = vadd.f32 %v950_v32, %v320_v45 }
  0xe4   :  { %v282_v56 = vpop.f32.mrf.mxu0  ;;  %v322_v57 = vpop.f32.mrf.mxu1 }
  0xe5   :  { %v550_v62 = vadd.f32 %v518_v35, %v470_v50  ;;  %v566_v63 = vadd.f32 %v534_v38, %v486_v51  ;;  %v471_v0 = vadd.f32 %v972_v39, %v282_v56  ;;  %v487_v1 = vadd.f32 %v972_v39, %v322_v57 }
  0xe6   :  { %v284_v2 = vpop.f32.mrf.mxu0  ;;  %v324_v3 = vpop.f32.mrf.mxu1  ;;  %v529_v56 = vunpack.c.h.bf16 %v1017_v12  ;;  %v545_v57 = vunpack.c.h.bf16 %v1022_v13 }
  0xe7   :  { %v551_v8 = vadd.f32 %v519_v40, %v471_v0  ;;  %v567_v9 = vadd.f32 %v535_v41, %v487_v1  ;;  %v582_v14 = vmax.f32 %v550_v62, 0.0  ;;  %v598_v15 = vmax.f32 %v566_v63, 0.0 }
  0xe8   :  { %v472_v16 = vadd.f32 %v950_v32, %v284_v2  ;;  %v488_v17 = vadd.f32 %v950_v32, %v324_v3  ;;  %v286_v18 = vpop.f32.mrf.mxu0  ;;  %v326_v19 = vpop.f32.mrf.mxu1  ;;  %v1045_v2 = vld [vmem:[%s1163_s3 + $0x30] sm:$0xff] }
  0xe9   :  { %v583_v20 = vmax.f32 %v551_v8, 0.0  ;;  %v599_v21 = vmax.f32 %v567_v9, 0.0  ;;  %v473_v22 = vadd.f32 %v972_v39, %v286_v18  ;;  %v489_v23 = vadd.f32 %v972_v39, %v326_v19 }
  0xea   :  { %v552_v24 = vadd.f32 %v520_v46, %v472_v16  ;;  %v568_v25 = vadd.f32 %v536_v47, %v488_v17  ;;  %v290_v26 = vpop.f32.mrf.mxu0  ;;  %v330_v27 = vpop.f32.mrf.mxu1 }
  0xeb   :  { %v770_v30 = vpack.c.bf16 %v583_v20, %v582_v14  ;;  %v778_v31 = vpack.c.bf16 %v599_v21, %v598_v15  ;;  %v553_v33 = vadd.f32 %v521_v48, %v473_v22  ;;  %v569_v34 = vadd.f32 %v537_v49, %v489_v23 }
  0xec   :  { %v584_v35 = vmax.f32 %v552_v24, 0.0  ;;  %v600_v36 = vmax.f32 %v568_v25, 0.0  ;;  %v474_v37 = vadd.f32 %v950_v32, %v290_v26  ;;  %v490_v38 = vadd.f32 %v950_v32, %v330_v27  ;;  %v292_v40 = vpop.f32.mrf.mxu0  ;;  %v332_v41 = vpop.f32.mrf.mxu1 }
  0xed   :  { %710 = vst [vmem:[%s1164_s4] sm:$0xff] %v770_v30  ;;  %718 = vst [vmem:[%s1164_s4 + $0x40] sm:$0xff] %v778_v31  ;;  %v585_v44 = vmax.f32 %v553_v33, 0.0  ;;  %v601_v45 = vmax.f32 %v569_v34, 0.0  ;;  %v475_v46 = vadd.f32 %v972_v39, %v292_v40  ;;  %v491_v47 = vadd.f32 %v972_v39, %v332_v41 }
  0xee   :  { %v554_v48 = vadd.f32 %v522_v52, %v474_v37  ;;  %v570_v49 = vadd.f32 %v538_v53, %v490_v38  ;;  %v294_v50 = vpop.f32.mrf.mxu0  ;;  %v334_v51 = vpop.f32.mrf.mxu1  ;;  %v1050_v52 = vld [vmem:[%s1163_s3 + $0x70] sm:$0xff]  ;;  %v530_v22 = vunpack.c.l.bf16 %v1045_v2  ;;  %v531_v40 = vunpack.c.h.bf16 %v1045_v2 }
  0xef   :  { %v771_v62 = vpack.c.bf16 %v585_v44, %v584_v35  ;;  %v779_v63 = vpack.c.bf16 %v601_v45, %v600_v36  ;;  %v555_v0 = vadd.f32 %v523_v58, %v475_v46  ;;  %v571_v1 = vadd.f32 %v539_v59, %v491_v47 }
  0xf0   :  { %v586_v53 = vmax.f32 %v554_v48, 0.0  ;;  %v602_v3 = vmax.f32 %v570_v49, 0.0  ;;  %v476_v8 = vadd.f32 %v950_v32, %v294_v50  ;;  %v492_v9 = vadd.f32 %v950_v32, %v334_v51  ;;  %v296_v14 = vpop.f32.mrf.mxu0  ;;  %v336_v15 = vpop.f32.mrf.mxu1 }
  0xf1   :  { %711 = vst [vmem:[%s1164_s4 + $0x8] sm:$0xff] %v771_v62  ;;  %719 = vst [vmem:[%s1164_s4 + $0x48] sm:$0xff] %v779_v63  ;;  %v587_v58 = vmax.f32 %v555_v0, 0.0  ;;  %v603_v59 = vmax.f32 %v571_v1, 0.0  ;;  %v477_v16 = vadd.f32 %v972_v39, %v296_v14  ;;  %v493_v17 = vadd.f32 %v972_v39, %v336_v15 }
  0xf2   :  { %v556_v18 = vadd.f32 %v524_v60, %v476_v8  ;;  %v572_v19 = vadd.f32 %v540_v61, %v492_v9  ;;  %v300_v20 = vpop.f32.mrf.mxu0  ;;  %v340_v21 = vpop.f32.mrf.mxu1  ;;  %v546_v23 = vunpack.c.l.bf16 %v1050_v52  ;;  %v547_v41 = vunpack.c.h.bf16 %v1050_v52 }
  0xf3   :  { %v772_v24 = vpack.c.bf16 %v587_v58, %v586_v53  ;;  %v780_v25 = vpack.c.bf16 %v603_v59, %v602_v3  ;;  %v557_v26 = vadd.f32 %v525_v4, %v477_v16  ;;  %v573_v27 = vadd.f32 %v541_v5, %v493_v17 }
  0xf4   :  { %v588_v30 = vmax.f32 %v556_v18, 0.0  ;;  %v604_v31 = vmax.f32 %v572_v19, 0.0  ;;  %v478_v60 = vadd.f32 %v950_v32, %v300_v20  ;;  %v494_v61 = vadd.f32 %v950_v32, %v340_v21  ;;  %v302_v33 = vpop.f32.mrf.mxu0  ;;  %v342_v34 = vpop.f32.mrf.mxu1 }
  0xf5   :  { %712 = vst [vmem:[%s1164_s4 + $0x10] sm:$0xff] %v772_v24  ;;  %720 = vst [vmem:[%s1164_s4 + $0x50] sm:$0xff] %v780_v25  ;;  %v589_v42 = vmax.f32 %v557_v26, 0.0  ;;  %v605_v4 = vmax.f32 %v573_v27, 0.0  ;;  %v479_v43 = vadd.f32 %v972_v39, %v302_v33  ;;  %v495_v5 = vadd.f32 %v972_v39, %v342_v34 }
  0xf6   :  { %v558_v35 = vadd.f32 %v526_v6, %v478_v60  ;;  %v574_v36 = vadd.f32 %v542_v7, %v494_v61  ;;  %v304_v37 = vpop.f32.mrf.mxu0  ;;  %v344_v38 = vpop.f32.mrf.mxu1  ;;  %v1095_v6 = vld [vmem:[%s1163_s3 + $0x38] sm:$0xff] }
  0xf7   :  { %v773_v44 = vpack.c.bf16 %v589_v42, %v588_v30  ;;  %v781_v45 = vpack.c.bf16 %v605_v4, %v604_v31  ;;  %v559_v46 = vadd.f32 %v527_v10, %v479_v43  ;;  %v575_v47 = vadd.f32 %v543_v11, %v495_v5  ;;  %v1100_v7 = vld [vmem:[%s1163_s3 + $0x78] sm:$0xff] }
  0xf8   :  { %v590_v48 = vmax.f32 %v558_v35, 0.0  ;;  %v606_v49 = vmax.f32 %v574_v36, 0.0  ;;  %v480_v50 = vadd.f32 %v950_v32, %v304_v37  ;;  %v496_v54 = vadd.f32 %v950_v32, %v344_v38  ;;  %v306_v10 = vpop.f32.mrf.mxu0  ;;  %v346_v51 = vpop.f32.mrf.mxu1 }
  0xf9   :  { %713 = vst [vmem:[%s1164_s4 + $0x18] sm:$0xff] %v773_v44  ;;  %721 = vst [vmem:[%s1164_s4 + $0x58] sm:$0xff] %v781_v45  ;;  %v591_v55 = vmax.f32 %v559_v46, 0.0  ;;  %v607_v11 = vmax.f32 %v575_v47, 0.0  ;;  %v481_v62 = vadd.f32 %v972_v39, %v306_v10  ;;  %v497_v63 = vadd.f32 %v972_v39, %v346_v51 }
  0xfa   :  { %v560_v0 = vadd.f32 %v528_v28, %v480_v50  ;;  %v576_v1 = vadd.f32 %v544_v29, %v496_v54  ;;  %v310_v53 = vpop.f32.mrf.mxu0  ;;  %v350_v3 = vpop.f32.mrf.mxu1  ;;  %v532_v8 = vunpack.c.l.bf16 %v1095_v6  ;;  %v548_v9 = vunpack.c.l.bf16 %v1100_v7 }
  0xfb   :  { %v774_v14 = vpack.c.bf16 %v591_v55, %v590_v48  ;;  %v782_v15 = vpack.c.bf16 %v607_v11, %v606_v49  ;;  %v561_v58 = vadd.f32 %v529_v56, %v481_v62  ;;  %v577_v59 = vadd.f32 %v545_v57, %v497_v63 }
  0xfc   :  { %v592_v16 = vmax.f32 %v560_v0, 0.0  ;;  %v608_v17 = vmax.f32 %v576_v1, 0.0  ;;  %v482_v28 = vadd.f32 %v950_v32, %v310_v53  ;;  %v498_v29 = vadd.f32 %v950_v32, %v350_v3  ;;  %v312_v18 = vpop.f32.mrf.mxu0  ;;  %v352_v19 = vpop.f32.mrf.mxu1 }
  0xfd   :  { %714 = vst [vmem:[%s1164_s4 + $0x20] sm:$0xff] %v774_v14  ;;  %722 = vst [vmem:[%s1164_s4 + $0x60] sm:$0xff] %v782_v15  ;;  %v593_v12 = vmax.f32 %v561_v58, 0.0  ;;  %v609_v56 = vmax.f32 %v577_v59, 0.0  ;;  %v483_v13 = vadd.f32 %v972_v39, %v312_v18  ;;  %v499_v57 = vadd.f32 %v972_v39, %v352_v19 }
  0xfe   :  { %v562_v20 = vadd.f32 %v530_v22, %v482_v28  ;;  %v578_v21 = vadd.f32 %v546_v23, %v498_v29  ;;  %v314_v24 = vpop.f32.mrf.mxu0  ;;  %v354_v25 = vpop.f32.mrf.mxu1  ;;  %v533_v26 = vunpack.c.h.bf16 %v1095_v6  ;;  %v549_v27 = vunpack.c.h.bf16 %v1100_v7 }
  0xff   :  { %v775_v30 = vpack.c.bf16 %v593_v12, %v592_v16  ;;  %v783_v31 = vpack.c.bf16 %v609_v56, %v608_v17  ;;  %v563_v60 = vadd.f32 %v531_v40, %v483_v13  ;;  %v579_v61 = vadd.f32 %v547_v41, %v499_v57 }
 0x100   :  { %v594_v33 = vmax.f32 %v562_v20, 0.0  ;;  %v610_v34 = vmax.f32 %v578_v21, 0.0  ;;  %v484_v42 = vadd.f32 %v950_v32, %v314_v24  ;;  %v500_v2 = vadd.f32 %v950_v32, %v354_v25  ;;  %v316_v22 = vpop.f32.mrf.mxu0  ;;  %v356_v4 = vpop.f32.mrf.mxu1 }
 0x101   :  { %715 = vst [vmem:[%s1164_s4 + $0x28] sm:$0xff] %v775_v30  ;;  %723 = vst [vmem:[%s1164_s4 + $0x68] sm:$0xff] %v783_v31  ;;  %v595_v52 = vmax.f32 %v563_v60, 0.0  ;;  %v611_v23 = vmax.f32 %v579_v61, 0.0  ;;  %v485_v43 = vadd.f32 %v972_v39, %v316_v22  ;;  %v501_v5 = vadd.f32 %v972_v39, %v356_v4 }
 0x102   :  { %v564_v35 = vadd.f32 %v532_v8, %v484_v42  ;;  %v580_v36 = vadd.f32 %v548_v9, %v500_v2 }
 0x103   :  { %v776_v37 = vpack.c.bf16 %v595_v52, %v594_v33  ;;  %v784_v32 = vpack.c.bf16 %v611_v23, %v610_v34  ;;  %v565_v38 = vadd.f32 %v533_v26, %v485_v43  ;;  %v581_v40 = vadd.f32 %v549_v27, %v501_v5 }
 0x104   :  { %v596_v41 = vmax.f32 %v564_v35, 0.0  ;;  %v612_v44 = vmax.f32 %v580_v36, 0.0 }
 0x105   :  { %716 = vst [vmem:[%s1164_s4 + $0x30] sm:$0xff] %v776_v37  ;;  %724 = vst [vmem:[%s1164_s4 + $0x70] sm:$0xff] %v784_v32  ;;  %v597_v45 = vmax.f32 %v565_v38, 0.0  ;;  %v613_v46 = vmax.f32 %v581_v40, 0.0 }
 0x107   :  { %v777_v47 = vpack.c.bf16 %v597_v45, %v596_v41  ;;  %v785_v39 = vpack.c.bf16 %v613_v46, %v612_v44 }
 0x109   :  { %717 = vst [vmem:[%s1164_s4 + $0x38] sm:$0xff] %v777_v47  ;;  %725 = vst [vmem:[%s1164_s4 + $0x78] sm:$0xff] %v785_v39 }

// kernel: resnet50_forward.68
= control target key start
LH: loop header
LB: loop body
LE: loop exit
PB: predicated region body
PF: predicated region fallthrough
CT: control target
= control target key end

     0   :  { %s798_s12 = smov 0   ;;  %s800_s13 = smov 0   ;;  %s891_s0 = inlined_call_operand.vmem [shape: bf16[32,1152], index: 0, kind: input, shape index: {}]   ;;  %s892_s1 = inlined_call_operand.vmem [shape: bf16[1152,128], index: 1, kind: input, shape index: {}]   ;;  %s893_s2 = inlined_call_operand.vmem [shape: f32[1,128], index: 2, kind: input, shape index: {}]   ;;  %s894_s3 = inlined_call_operand.vmem [shape: bf16[32,128], index: 3, kind: output, shape index: {}]  }
   0x1   :  { %s802_s14 = smov 0   ;;  %s804_s15 = smov 0  }
   0x2   :  { %s806_s16 = smov 0  }
   0x3 LB: > { %s25_s17 = sadd.s32 1, %s771_s15  ;;  %p48_p1 = scmp.ne.s32.totalorder %s763_s13, %s759_s12  ;;  %s775_s16 = sphi %s806_s16, %s13_s16   ;;  %s771_s15 = sphi %s804_s15, %s898_s15   ;;  %s767_s14 = sphi %s802_s14, %s897_s14   ;;  %s763_s13 = sphi %s800_s13, %s896_s13   ;;  %s759_s12 = sphi %s798_s12, %s895_s12  }
   0x4   : > { %p26_p0 = scmp.ge.s32.totalorder %s25_s17, 9  ;;  %p49_p2 = scmp.eq.s32.totalorder %s775_s16, 0 }
   0x5   : > { %s41_s19 = sadd.s32 1, %s763_s13  ;;  %p613_p5 = scmp.ge.s32.totalorder %s775_s16, 9 }
   0x6   : > { %s900_s17 = smov (%p26_p0, %s25_s17), 0  ;;  %p50_p3 = por %p49_p2, %p48_p1 }
   0x7   : > { %s37_s18 = ssub.s32 %s771_s15, %s900_s17  ;;  %162 = sbr.rel (%p613_p5) target bundleno = 18 (0x12), region = 20 }
   0x8   : > { %p39_p4 = scmp.eq.s32.totalorder %s37_s18, 0 }
   0xa   : > { %s833_s20 = scalar_select %p39_p4, %s763_s13, %s41_s19  }
   0xc   : > { %165 = sbr.rel (!%p50_p3) target bundleno = 18 (0x12), region = 24  ;;  %s167_s21 = sand.u32 (%p50_p3), 1, %s763_s13  }
   0xd   : > { %s615_s22 = sshll.u32 (%p50_p3), %s771_s15, 2  ;;  %s614_s23 = sshll.u32 (%p50_p3), %s167_s21, 4 }
   0xe   : > { %s174_s26 = scalar_lea.vmem (%p50_p3), %s891_s0, %s615_s22  ;;  %s169_s27 = scalar_lea.vmem (%p50_p3), [#allocation3], %s614_s23 }
   0xf   : > { %v191_v0 = vld [vmem:[%s174_s26] sm:$0xf] (%p50_p3)  ;;  %v193_v1 = vld [vmem:[%s174_s26 + $0x24] sm:$0xf] (%p50_p3)  ;;  %v195_v2 = vld [vmem:[%s174_s26 + $0x48] sm:$0xf] (%p50_p3) }
  0x10   : > { %192 = vst [vmem:[%s169_s27] sm:$0xf] (%p50_p3), %v191_v0  ;;  %194 = vst [vmem:[%s169_s27 + $0x4] sm:$0xf] (%p50_p3), %v193_v1  ;;  %v197_v3 = vld [vmem:[%s174_s26 + $0x6c] sm:$0xf] (%p50_p3) }
  0x11   : > { %196 = vst [vmem:[%s169_s27 + $0x8] sm:$0xf] %v195_v2  ;;  %198 = vst [vmem:[%s169_s27 + $0xc] sm:$0xf] %v197_v3 }
  0x12 PF: > { %p616_p6 = scmp.ge.s32.totalorder %s775_s16, 1  ;;  %p241_p7 = scmp.lt.s32.totalorder %s775_s16, 10 }
  0x14   : > { %p242_p8 = pnand %p616_p6, %p241_p7 }
  0x15   : > { %s248_s28 = sand.u32 (!%p242_p8), 1, %s759_s12   ;;  %s618_s29 = sshll.u32 (!%p242_p8), %s767_s14, 4 }
  0x16   : > { %245 = sbr.rel (%p242_p8) target bundleno = 284 (0x11c), region = 69  ;;  %s845_s30 = sshll.u32 (!%p242_p8), %s248_s28, 4 }
  0x17   : > { %p287_p9 = scmp.lt.s32.totalorder (!%p242_p8), %s618_s29, 143  ;;  %s250_s8 = scalar_lea.vmem (!%p242_p8), [#allocation3], %s845_s30 }
  0x18   : > { %p620_p10 = scmp.ne.s32.totalorder (!%p242_p8), %s767_s14, 0 }
  0x1b   : > { %s902_s29 = smov (!%p287_p9, %s618_s29), 143  ;;  %311 = sbr.rel (%p620_p10) target bundleno = 35 (0x23), region = 77 }
  0x1c   : > { %s619_s4 = sshll.u32 %s902_s29, 2 }
  0x1d   : > { %s850_s7 = scalar_lea.vmem %s892_s1, %s619_s4 }
  0x20   : > { %v777_v4 = vmov 0.0  }
  0x21   : > { %312 = vst [vmem:[#allocation2 + $0x10] sm:$0xff] %v777_v4  ;;  %313 = vst [vmem:[#allocation2] sm:$0xff] %v777_v4 }
  0x22   : > { %314 = vst [vmem:[#allocation2 + $0x18] sm:$0xff] %v777_v4  ;;  %315 = vst [vmem:[#allocation2 + $0x8] sm:$0xff] %v777_v4 }
  0x23 PF: > { %v727_v5 = vld [vmem:[%s850_s7 + $0x38] sm:$0xff]   ;;  %v728_v6 = vld [vmem:[%s850_s7 + $0x30] sm:$0xff]   ;;  %v729_v7 = vld [vmem:[%s850_s7 + $0x28] sm:$0xff]   ;;  %p631_p11 = scmp.ne.s32.totalorder %s767_s14, 8 }
  0x24   : > { %666 = vmatprep.subr.bf16.mxu0 %v727_v5  ;;  %v730_v8 = vld [vmem:[%s850_s7 + $0x20] sm:$0xff]   ;;  %v731_v10 = vld [vmem:[%s850_s7 + $0x18] sm:$0xff]   ;;  %v732_v11 = vld [vmem:[%s850_s7 + $0x10] sm:$0xff]  }
  0x25   : > { %667 = vmatpush3.bf16.msra.mxu0 %v727_v5  ;;  %v735_v9 = vld [vmem:[%s250_s8] sm:$0xff]   ;;  %v733_v12 = vld [vmem:[%s850_s7 + $0x8] sm:$0xff]  }
  0x26   : > { %668 = vmatprep.subr.bf16.mxu0 %v728_v6  ;;  %682 = vmatprep.mubr.bf16.mxu0 %v735_v9  ;;  %v734_v13 = vld [vmem:[%s850_s7] sm:$0xff]   ;;  %v736_v14 = vld [vmem:[%s250_s8 + $0x8] sm:$0xff]  }
  0x28   : > { %v316_v17 = vld [vmem:[#allocation2 + $0x10] sm:$0xff]  ;;  %v317_v23 = vld [vmem:[#allocation2] sm:$0xff] }
  0x29   : > { %669 = vmatpush3.bf16.msra.mxu0 %v728_v6  ;;  %v318_v15 = vld [vmem:[#allocation2 + $0x18] sm:$0xff]  ;;  %v319_v20 = vld [vmem:[#allocation2 + $0x8] sm:$0xff] }
  0x2a   : > { %670 = vmatprep.subr.bf16.mxu0 %v729_v7 }
  0x2d   : > { %671 = vmatpush3.bf16.msra.mxu0 %v729_v7 }
  0x2e   : > { %672 = vmatprep.subr.bf16.mxu0 %v730_v8 }
  0x31   : > { %673 = vmatpush3.bf16.msra.mxu0 %v730_v8 }
  0x32   : > { %674 = vmatprep.subr.bf16.mxu0 %v731_v10 }
  0x35   : > { %675 = vmatpush3.bf16.msra.mxu0 %v731_v10 }
  0x36   : > { %676 = vmatprep.subr.bf16.mxu0 %v732_v11 }
  0x39   : > { %677 = vmatpush3.bf16.msra.mxu0 %v732_v11 }
  0x3a   : > { %678 = vmatprep.subr.bf16.mxu0 %v733_v12 }
  0x3d   : > { %679 = vmatpush3.bf16.msra.mxu0 %v733_v12 }
  0x3e   : > { %680 = vmatprep.subr.bf16.mxu0 %v734_v13 }
  0x41   : > { %681 = vmatpush3.bf16.msra.mxu0 %v734_v13 }
  0x44   : > { %683 = vmatmul.mubr.bf16.vlgmr.msra.gmra.mxu0 %v736_v14 }
 0x104   : > { %v684_v16 = vpop.f32.mrf.mxu0 }
 0x105   : > { %v451_v18 = vadd.f32 %v684_v16, %v318_v15 }
 0x106   : > { %v434_v19 = vpop.f32.mrf.mxu0 }
 0x107   : > { %455 = vst [vmem:[#allocation2 + $0x18] sm:$0xff] %v451_v18  ;;  %v449_v21 = vadd.f32 %v434_v19, %v316_v17 }
 0x108   : > { %v685_v22 = vpop.f32.mrf.mxu0 }
 0x109   : > { %453 = vst [vmem:[#allocation2 + $0x10] sm:$0xff] %v449_v21  ;;  %v452_v24 = vadd.f32 %v685_v22, %v319_v20  ;;  %460 = sbr.rel (%p631_p11) target bundleno = 284 (0x11c), region = 81 }
 0x10a   : > { %v437_v25 = vpop.f32.mrf.mxu0 }
 0x10b   : > { %456 = vst [vmem:[#allocation2 + $0x8] sm:$0xff] %v452_v24  ;;  %v450_v26 = vadd.f32 %v437_v25, %v317_v23 }
 0x10d   : > { %454 = vst [vmem:[#allocation2] sm:$0xff] %v450_v26 }
 0x10e   : > { %v632_v29 = vld [vmem:[%s893_s2] ss:$0 sm:$0xff]  ;;  %v463_v32 = vld [vmem:[#allocation2 + $0x18] sm:$0xff] }
 0x10f   : > { %v474_v34 = vadd.f32 %v632_v29, %v463_v32 }
 0x110   : > { %v461_v27 = vld [vmem:[#allocation2 + $0x10] sm:$0xff] }
 0x111   : > { %v472_v30 = vadd.f32 %v632_v29, %v461_v27  ;;  %v478_v38 = vmax.f32 %v474_v34, 0.0 }
 0x112   : > { %v464_v33 = vld [vmem:[#allocation2 + $0x8] sm:$0xff] }
 0x113   : > { %v475_v35 = vadd.f32 %v632_v29, %v464_v33  ;;  %v476_v36 = vmax.f32 %v472_v30, 0.0 }
 0x114   : > { %v462_v28 = vld [vmem:[#allocation2] sm:$0xff] }
 0x115   : > { %v473_v31 = vadd.f32 %v632_v29, %v462_v28  ;;  %v479_v39 = vmax.f32 %v475_v35, 0.0 }
 0x117   : > { %v477_v37 = vmax.f32 %v473_v31, 0.0  ;;  %v653_v41 = vpack.c.bf16 %v479_v39, %v478_v38 }
 0x119   : > { %v648_v40 = vpack.c.bf16 %v477_v37, %v476_v36  ;;  %655 = vst [vmem:[%s894_s3 + $0x8] sm:$0xff] %v653_v41  }
 0x11b   : > { %649 = vst [vmem:[%s894_s3] sm:$0xff] %v648_v40  }
 0x11c PF: > { %s13_s16 = sadd.s32 1, %s775_s16   ;;  %s895_s12 = smov %s763_s13 }
 0x11d   : > { %p10_p12 = scmp.ge.s32.totalorder %s13_s16, 11   ;;  %s896_s13 = smov %s833_s20 }
 0x11e   : > { %s897_s14 = smov %s771_s15  ;;  %s898_s15 = smov %s900_s17 }
 0x11f   :  { %12 = sbr.rel (!%p10_p12) target bundleno = 3 (0x3), region = 122 }

// kernel: resnet50_forward.70
= control target key start
LH: loop header
LB: loop body
LE: loop exit
PB: predicated region body
PF: predicated region fallthrough
CT: control target
= control target key end

     0   :  { %s1113_s15 = smov 0   ;;  %s1115_s16 = smov 0   ;;  %s1252_s0 = inlined_call_operand.vmem [shape: bf16[32,128], index: 0, kind: input, shape index: {}]   ;;  %s1253_s1 = inlined_call_operand.vmem [shape: bf16[128,512], index: 1, kind: input, shape index: {}]   ;;  %s1254_s2 = inlined_call_operand.vmem [shape: f32[1,512], index: 2, kind: input, shape index: {}]   ;;  %s1255_s3 = inlined_call_operand.vmem [shape: bf16[32,512], index: 3, kind: input, shape index: {}]   ;;  %s1256_s4 = inlined_call_operand.vmem [shape: bf16[32,512], index: 4, kind: output, shape index: {}]  }
   0x1   :  { %s1117_s17 = smov 0   ;;  %s1119_s18 = smov 0  }
   0x2   :  { %s1121_s19 = smov 0  }
   0x3 LB: > { %s29_s20 = sadd.s32 1, %s1081_s18  ;;  %s914_s21 = sadd.s32 4294967295, %s1085_s19   ;;  %s1085_s19 = sphi %s1121_s19, %s14_s19   ;;  %s1081_s18 = sphi %s1119_s18, %s1262_s18   ;;  %s1077_s17 = sphi %s1117_s17, %s1261_s17   ;;  %s1073_s16 = sphi %s1115_s16, %s1260_s16   ;;  %s1069_s15 = sphi %s1113_s15, %s1259_s15  }
   0x4   : > { %p31_p0 = scmp.ge.s32.totalorder %s29_s20, 2  ;;  %p77_p1 = scmp.ne.s32.totalorder %s1073_s16, %s1069_s15 }
   0x5   : > { %p78_p2 = scmp.eq.s32.totalorder %s1085_s19, 0  ;;  %p163_p4 = scmp.eq.s32.totalorder %s914_s21, 1 }
   0x6   : > { %s1264_s20 = smov (%p31_p0, %s29_s20), 0  ;;  %s70_s24 = sadd.s32 1, %s1073_s16 }
   0x7   : > { %p1145_p3 = por %p78_p2, %p77_p1  ;;  %s66_s23 = ssub.s32 %s1081_s18, %s1264_s20 }
   0x8   : > { %p68_p5 = scmp.eq.s32.totalorder %s66_s23, 0  ;;  %p1152_p6 = por %p163_p4, %p77_p1 }
   0x9   : > { %p918_p7 = scmp.ge.s32.totalorder %s1085_s19, 2 }
   0xa   : > { %s1157_s26 = scalar_select %p68_p5, %s1073_s16, %s70_s24  }
   0xb   : > { %197 = sbr.rel (%p918_p7) target bundleno = 34 (0x22), region = 20 }
  0x10   : > { %200 = sbr.rel (!%p1145_p3) target bundleno = 28 (0x1c), region = 24  ;;  %s202_s27 = sand.u32 (%p1145_p3), 1, %s1073_s16  }
  0x11   : > { %s957_s28 = sshll.u32 (%p1145_p3), %s1081_s18, 3  ;;  %s919_s29 = sshll.u32 (%p1145_p3), %s202_s27, 7 }
  0x12   : > { %s1167_s6 = scalar_lea.vmem (%p1145_p3), %s1253_s1, %s957_s28  ;;  %s204_s7 = scalar_lea.vmem (%p1145_p3), [#allocation3], %s919_s29 }
  0x13   : > { %v269_v0 = vld [vmem:[%s1167_s6] sm:$0xff] (%p1145_p3)  ;;  %v271_v1 = vld [vmem:[%s1167_s6 + $0x10] sm:$0xff] (%p1145_p3) }
  0x14   : > { %v273_v2 = vld [vmem:[%s1167_s6 + $0x20] sm:$0xff] (%p1145_p3)  ;;  %270 = vst [vmem:[%s204_s7] sm:$0xff] (%p1145_p3), %v269_v0  ;;  %272 = vst [vmem:[%s204_s7 + $0x8] sm:$0xff] (%p1145_p3), %v271_v1  ;;  %v275_v3 = vld [vmem:[%s1167_s6 + $0x30] sm:$0xff] (%p1145_p3) }
  0x15   : > { %274 = vst [vmem:[%s204_s7 + $0x10] sm:$0xff] %v273_v2  ;;  %v277_v4 = vld [vmem:[%s1167_s6 + $0x40] sm:$0xff]  ;;  %v279_v5 = vld [vmem:[%s1167_s6 + $0x50] sm:$0xff]  ;;  %276 = vst [vmem:[%s204_s7 + $0x18] sm:$0xff] %v275_v3 }
  0x16   : > { %278 = vst [vmem:[%s204_s7 + $0x20] sm:$0xff] %v277_v4  ;;  %280 = vst [vmem:[%s204_s7 + $0x28] sm:$0xff] %v279_v5  ;;  %v281_v6 = vld [vmem:[%s1167_s6 + $0x60] sm:$0xff]  ;;  %v283_v7 = vld [vmem:[%s1167_s6 + $0x70] sm:$0xff] }
  0x17   : > { %v285_v8 = vld [vmem:[%s1167_s6 + $0x80] sm:$0xff]  ;;  %282 = vst [vmem:[%s204_s7 + $0x30] sm:$0xff] %v281_v6  ;;  %284 = vst [vmem:[%s204_s7 + $0x38] sm:$0xff] %v283_v7  ;;  %v287_v9 = vld [vmem:[%s1167_s6 + $0x90] sm:$0xff] }
  0x18   : > { %286 = vst [vmem:[%s204_s7 + $0x40] sm:$0xff] %v285_v8  ;;  %v289_v10 = vld [vmem:[%s1167_s6 + $0xa0] sm:$0xff]  ;;  %v291_v11 = vld [vmem:[%s1167_s6 + $0xb0] sm:$0xff]  ;;  %288 = vst [vmem:[%s204_s7 + $0x48] sm:$0xff] %v287_v9 }
  0x19   : > { %290 = vst [vmem:[%s204_s7 + $0x50] sm:$0xff] %v289_v10  ;;  %292 = vst [vmem:[%s204_s7 + $0x58] sm:$0xff] %v291_v11  ;;  %v293_v12 = vld [vmem:[%s1167_s6 + $0xc0] sm:$0xff]  ;;  %v295_v13 = vld [vmem:[%s1167_s6 + $0xd0] sm:$0xff] }
  0x1a   : > { %v297_v14 = vld [vmem:[%s1167_s6 + $0xe0] sm:$0xff]  ;;  %294 = vst [vmem:[%s204_s7 + $0x60] sm:$0xff] %v293_v12  ;;  %296 = vst [vmem:[%s204_s7 + $0x68] sm:$0xff] %v295_v13  ;;  %v299_v15 = vld [vmem:[%s1167_s6 + $0xf0] sm:$0xff] }
  0x1b   : > { %298 = vst [vmem:[%s204_s7 + $0x70] sm:$0xff] %v297_v14  ;;  %300 = vst [vmem:[%s204_s7 + $0x78] sm:$0xff] %v299_v15 }
  0x1c PF: > { %314 = sbr.rel (!%p1145_p3) target bundleno = 34 (0x22), region = 66  ;;  %s316_s8 = sand.u32 (%p1145_p3), 1, %s1073_s16  }
  0x1d   : > { %s958_s9 = sshll.u32 (%p1145_p3), %s1081_s18, 3  ;;  %s922_s10 = sshll.u32 (%p1145_p3), %s316_s8, 5 }
  0x1e   : > { %s324_s13 = scalar_lea.vmem (%p1145_p3), %s1255_s3, %s958_s9  ;;  %s318_s14 = scalar_lea.vmem (%p1145_p3), [#allocation4], %s922_s10 }
  0x1f   : > { %v359_v16 = vld [vmem:[%s324_s13] sm:$0xff] (%p1145_p3)  ;;  %v361_v17 = vld [vmem:[%s324_s13 + $0x10] sm:$0xff] (%p1145_p3) }
  0x20   : > { %v363_v18 = vld [vmem:[%s324_s13 + $0x20] sm:$0xff] (%p1145_p3)  ;;  %360 = vst [vmem:[%s318_s14] sm:$0xff] (%p1145_p3), %v359_v16  ;;  %362 = vst [vmem:[%s318_s14 + $0x8] sm:$0xff] (%p1145_p3), %v361_v17  ;;  %v365_v19 = vld [vmem:[%s324_s13 + $0x30] sm:$0xff] (%p1145_p3) }
  0x21   : > { %364 = vst [vmem:[%s318_s14 + $0x10] sm:$0xff] %v363_v18  ;;  %366 = vst [vmem:[%s318_s14 + $0x18] sm:$0xff] %v365_v19 }
  0x22 PF: > { %p925_p8 = scmp.ge.s32.totalorder %s1085_s19, 1  ;;  %p371_p9 = scmp.lt.s32.totalorder %s1085_s19, 3 }
  0x24   : > { %p372_p10 = pnand %p925_p8, %p371_p9 }
  0x25   : > { %s378_s21 = sand.u32 (!%p372_p10), 1, %s1069_s15   ;;  %s929_s30 = sshll.u32 (!%p372_p10), %s1077_s17, 1 }
  0x26   : > { %375 = sbr.rel (%p372_p10) target bundleno = 293 (0x125), region = 104  ;;  %s926_s22 = sshll.u32 (!%p372_p10), %s378_s21, 7 }
  0x27   : > { %s1197_s23 = scalar_lea.vmem (!%p372_p10), [#allocation3], %s926_s22  ;;  %p437_p11 = scmp.lt.s32.totalorder (!%p372_p10), %s929_s30, 3 }
  0x28   : > { %s1224_s5 = sshll.u32 (!%p372_p10), %s378_s21, 5 }
  0x29   : > { %s387_s9 = scalar_lea.vmem (!%p372_p10), [#allocation4], %s1224_s5  ;;  %s424_s15 = scalar_lea.vmem (!%p372_p10), [#allocation5], %s1224_s5 }
  0x2b   : > { %v1087_v20 = vmov 0   ;;  %v1021_v21 = vld [vmem:[%s1197_s23 + $0x74] ss:$8 sps:$4 sm:$0xff]   ;;  %v1023_v22 = vld [vmem:[%s1197_s23 + $0x70] ss:$8 sps:$4 sm:$0xff]   ;;  %v1045_v37 = vld [vmem:[%s1252_s0] sm:$0xff]   ;;  %v660_v39 = vlaneseq }
  0x2c   : > { %610 = vmatprep.mubr.bf16.mxu0 %v1087_v20  ;;  %620 = vmatprep.mubr.bf16.mxu1 %v1087_v20  ;;  %v1024_v23 = vld [vmem:[%s1197_s23 + $0x64] ss:$8 sps:$4 sm:$0xff]   ;;  %v1026_v24 = vld [vmem:[%s1197_s23 + $0x60] ss:$8 sps:$4 sm:$0xff]   ;;  %v1027_v25 = vld [vmem:[%s1197_s23 + $0x54] ss:$8 sps:$4 sm:$0xff]  }
  0x2d   : > { %578 = vmatprep.subr.bf16.mxu0 %v1021_v21  ;;  %964 = vmatprep.subr.bf16.mxu1 %v1021_v21  ;;  %v1029_v26 = vld [vmem:[%s1197_s23 + $0x50] ss:$8 sps:$4 sm:$0xff]   ;;  %v1030_v27 = vld [vmem:[%s1197_s23 + $0x44] ss:$8 sps:$4 sm:$0xff]   ;;  %v1032_v28 = vld [vmem:[%s1197_s23 + $0x40] ss:$8 sps:$4 sm:$0xff]  }
  0x2e   : > { %579 = vmatpush1.bf16.msra.mxu0 %v1023_v22  ;;  %972 = vmatpush1.bf16.msra.mxu1 %v1023_v22  ;;  %v1033_v29 = vld [vmem:[%s1197_s23 + $0x34] ss:$8 sps:$4 sm:$0xff]   ;;  %v1035_v30 = vld [vmem:[%s1197_s23 + $0x30] ss:$8 sps:$4 sm:$0xff]   ;;  %v1036_v31 = vld [vmem:[%s1197_s23 + $0x24] ss:$8 sps:$4 sm:$0xff]  }
  0x2f   : > { %580 = vmatprep.subr.bf16.mxu0 %v1024_v23  ;;  %965 = vmatprep.subr.bf16.mxu1 %v1024_v23  ;;  %v1038_v32 = vld [vmem:[%s1197_s23 + $0x20] ss:$8 sps:$4 sm:$0xff]   ;;  %v1039_v33 = vld [vmem:[%s1197_s23 + $0x14] ss:$8 sps:$4 sm:$0xff]   ;;  %v1041_v34 = vld [vmem:[%s1197_s23 + $0x10] ss:$8 sps:$4 sm:$0xff]  }
  0x30   : > { %v1042_v35 = vld [vmem:[%s1197_s23 + $0x4] ss:$8 sps:$4 sm:$0xff]   ;;  %v1044_v36 = vld [vmem:[%s1197_s23] ss:$8 sps:$4 sm:$0xff]   ;;  %s1266_s30 = smov (!%p437_p11, %s929_s30), 3  ;;  %v661_v40 = vshrl.u32 %v660_v39, 7 }
  0x31   : > { %v1046_v38 = vld [vmem:[%s1252_s0 + $0x8] sm:$0xff]   ;;  %s439_s8 = scalar_lea.vmem %s1254_s2, %s1266_s30  ;;  %v678_v44 = vld [vmem:[%s387_s9] sm:$0xff]  ;;  %v680_v45 = vld [vmem:[%s387_s9 + $0x10] sm:$0xff]  ;;  %s963_s10 = sshll.u32 (%p1152_p6), %s1077_s17, 3 }
  0x32   : > { %581 = vmatpush1.bf16.msra.mxu0 %v1026_v24  ;;  %973 = vmatpush1.bf16.msra.mxu1 %v1026_v24  ;;  %v662_v41 = vsub.s32 0, %v661_v40  ;;  %v658_v42 = vld [vmem:[%s439_s8] sm:$0x3]  ;;  %v666_v43 = vsub.s32 1, %v661_v40  ;;  %v682_v47 = vunpack.c.l.bf16 %v678_v44  ;;  %v686_v48 = vunpack.c.l.bf16 %v680_v45  ;;  %v679_v56 = vld [vmem:[%s387_s9 + $0x8] sm:$0xff]  ;;  %v681_v57 = vld [vmem:[%s387_s9 + $0x18] sm:$0xff]  ;;  %s746_s13 = scalar_lea.vmem (%p1152_p6), %s1256_s4, %s963_s10 }
  0x33   : > { %582 = vmatprep.subr.bf16.mxu0 %v1027_v25  ;;  %966 = vmatprep.subr.bf16.mxu1 %v1027_v25  ;;  %v683_v54 = vunpack.c.h.bf16 %v678_v44  ;;  %v687_v55 = vunpack.c.h.bf16 %v680_v45  ;;  %v684_v1 = vunpack.c.l.bf16 %v679_v56  ;;  %v688_v3 = vunpack.c.l.bf16 %v681_v57 }
  0x34   : > { %v663_v46 = vrot.slane %v658_v42, %v662_v41  ;;  %v667_v49 = vrot.slane %v658_v42, %v666_v43  ;;  %v685_v6 = vunpack.c.h.bf16 %v679_v56  ;;  %v689_v7 = vunpack.c.h.bf16 %v681_v57 }
  0x36   : > { %583 = vmatpush1.bf16.msra.mxu0 %v1029_v26  ;;  %974 = vmatpush1.bf16.msra.mxu1 %v1029_v26 }
  0x37   : > { %584 = vmatprep.subr.bf16.mxu0 %v1030_v27  ;;  %967 = vmatprep.subr.bf16.mxu1 %v1030_v27 }
  0x3a   : > { %585 = vmatpush1.bf16.msra.mxu0 %v1032_v28  ;;  %975 = vmatpush1.bf16.msra.mxu1 %v1032_v28 }
  0x3b   : > { %586 = vmatprep.subr.bf16.mxu0 %v1033_v29  ;;  %968 = vmatprep.subr.bf16.mxu1 %v1033_v29 }
  0x3e   : > { %587 = vmatpush1.bf16.msra.mxu0 %v1035_v30  ;;  %976 = vmatpush1.bf16.msra.mxu1 %v1035_v30 }
  0x3f   : > { %588 = vmatprep.subr.bf16.mxu0 %v1036_v31  ;;  %969 = vmatprep.subr.bf16.mxu1 %v1036_v31 }
  0x42   : > { %589 = vmatpush1.bf16.msra.mxu0 %v1038_v32  ;;  %977 = vmatpush1.bf16.msra.mxu1 %v1038_v32 }
  0x43   : > { %590 = vmatprep.subr.bf16.mxu0 %v1039_v33  ;;  %970 = vmatprep.subr.bf16.mxu1 %v1039_v33 }
  0x46   : > { %591 = vmatpush1.bf16.msra.mxu0 %v1041_v34  ;;  %978 = vmatpush1.bf16.msra.mxu1 %v1041_v34 }
  0x47   : > { %592 = vmatprep.subr.bf16.mxu0 %v1042_v35  ;;  %971 = vmatprep.subr.bf16.mxu1 %v1042_v35 }
  0x4a   : > { %593 = vmatpush1.bf16.msra.mxu0 %v1044_v36  ;;  %979 = vmatpush1.bf16.msra.mxu1 %v1044_v36 }
  0x4d   : > { %611 = vmatmul.mubr.bf16.vlgmr.msra.gmra.mxu0 %v1045_v37  ;;  %621 = vmatmul.mubr.bf16.vlgmr.msra.gmra.mxu1 %v1046_v38 }
 0x10d   : > { %v612_v50 = vpop.f32.mrf.mxu0  ;;  %v622_v51 = vpop.f32.mrf.mxu1 }
 0x10e   : > { %v670_v52 = vadd.f32 %v663_v46, %v612_v50  ;;  %v674_v53 = vadd.f32 %v663_v46, %v622_v51 }
 0x10f   : > { %v614_v58 = vpop.f32.mrf.mxu0  ;;  %v624_v59 = vpop.f32.mrf.mxu1 }
 0x110   : > { %v690_v60 = vadd.f32 %v682_v47, %v670_v52  ;;  %v694_v61 = vadd.f32 %v686_v48, %v674_v53  ;;  %v671_v62 = vadd.f32 %v667_v49, %v614_v58  ;;  %v675_v63 = vadd.f32 %v667_v49, %v624_v59 }
 0x111   : > { %v616_v0 = vpop.f32.mrf.mxu0  ;;  %v626_v2 = vpop.f32.mrf.mxu1 }
 0x112   : > { %v691_v4 = vadd.f32 %v683_v54, %v671_v62  ;;  %v695_v5 = vadd.f32 %v687_v55, %v675_v63  ;;  %v698_v8 = vmax.f32 %v690_v60, 0.0  ;;  %v702_v9 = vmax.f32 %v694_v61, 0.0 }
 0x113   : > { %v672_v10 = vadd.f32 %v663_v46, %v616_v0  ;;  %v676_v11 = vadd.f32 %v663_v46, %v626_v2  ;;  %v618_v12 = vpop.f32.mrf.mxu0  ;;  %v628_v13 = vpop.f32.mrf.mxu1 }
 0x114   : > { %v699_v14 = vmax.f32 %v691_v4, 0.0  ;;  %v703_v15 = vmax.f32 %v695_v5, 0.0  ;;  %v673_v16 = vadd.f32 %v667_v49, %v618_v12  ;;  %v677_v17 = vadd.f32 %v667_v49, %v628_v13 }
 0x115   : > { %v692_v18 = vadd.f32 %v684_v1, %v672_v10  ;;  %v696_v19 = vadd.f32 %v688_v3, %v676_v11 }
 0x116   : > { %v959_v20 = vpack.c.bf16 %v699_v14, %v698_v8  ;;  %v961_v21 = vpack.c.bf16 %v703_v15, %v702_v9  ;;  %v693_v22 = vadd.f32 %v685_v6, %v673_v16  ;;  %v697_v23 = vadd.f32 %v689_v7, %v677_v17 }
 0x117   : > { %v700_v24 = vmax.f32 %v692_v18, 0.0  ;;  %v704_v25 = vmax.f32 %v696_v19, 0.0 }
 0x118   : > { %730 = vst [vmem:[%s424_s15] sm:$0xff] %v959_v20  ;;  %732 = vst [vmem:[%s424_s15 + $0x10] sm:$0xff] %v961_v21  ;;  %v701_v26 = vmax.f32 %v693_v22, 0.0  ;;  %v705_v27 = vmax.f32 %v697_v23, 0.0  ;;  %740 = sbr.rel (!%p1152_p6) target bundleno = 293 (0x125), region = 124 }
 0x11a   : > { %v960_v28 = vpack.c.bf16 %v701_v26, %v700_v24  ;;  %v962_v29 = vpack.c.bf16 %v705_v27, %v704_v25 }
 0x11c   : > { %731 = vst [vmem:[%s424_s15 + $0x8] sm:$0xff] %v960_v28  ;;  %733 = vst [vmem:[%s424_s15 + $0x18] sm:$0xff] %v962_v29 }
 0x11f   : > { %v781_v30 = vld [vmem:[%s424_s15] sm:$0xff]  ;;  %v785_v32 = vld [vmem:[%s424_s15 + $0x10] sm:$0xff] }
 0x120   : > { %782 = vst [vmem:[%s746_s13] sm:$0xff] %v781_v30  ;;  %786 = vst [vmem:[%s746_s13 + $0x20] sm:$0xff] %v785_v32 }
 0x123   : > { %v783_v31 = vld [vmem:[%s424_s15 + $0x8] sm:$0xff]  ;;  %v787_v33 = vld [vmem:[%s424_s15 + $0x18] sm:$0xff] }
 0x124   : > { %784 = vst [vmem:[%s746_s13 + $0x10] sm:$0xff] %v783_v31  ;;  %788 = vst [vmem:[%s746_s13 + $0x30] sm:$0xff] %v787_v33 }
 0x125 PF: > { %s14_s19 = sadd.s32 1, %s1085_s19   ;;  %s1259_s15 = smov %s1073_s16 }
 0x126   : > { %p11_p12 = scmp.ge.s32.totalorder %s14_s19, 4   ;;  %s1260_s16 = smov %s1157_s26 }
 0x127   : > { %s1261_s17 = smov %s1081_s18  ;;  %s1262_s18 = smov %s1264_s20 }
 0x128   :  { %13 = sbr.rel (!%p11_p12) target bundleno = 3 (0x3), region = 207 }

// kernel: resnet50_forward.69
= control target key start
LH: loop header
LB: loop body
LE: loop exit
PB: predicated region body
PF: predicated region fallthrough
CT: control target
= control target key end

     0   :  { %s1190_s12 = smov 0   ;;  %s1192_s13 = smov 0   ;;  %s1384_s0 = inlined_call_operand.vmem [shape: bf16[32,256], index: 0, kind: input, shape index: {}]   ;;  %s1385_s1 = inlined_call_operand.vmem [shape: bf16[256,512], index: 1, kind: input, shape index: {}]   ;;  %s1386_s2 = inlined_call_operand.vmem [shape: f32[1,512], index: 2, kind: input, shape index: {}]   ;;  %s1387_s3 = inlined_call_operand.vmem [shape: bf16[32,512], index: 3, kind: output, shape index: {}]  }
   0x1   :  { %s1194_s14 = smov 0   ;;  %s1196_s15 = smov 0  }
   0x2   :  { %s1198_s16 = smov 0  }
   0x3 LB: > { %s28_s17 = sadd.s32 1, %s1164_s15  ;;  %s941_s18 = sadd.s32 4294967295, %s1168_s16   ;;  %s1168_s16 = sphi %s1198_s16, %s13_s16   ;;  %s1164_s15 = sphi %s1196_s15, %s1392_s15   ;;  %s1160_s14 = sphi %s1194_s14, %s1391_s14   ;;  %s1156_s13 = sphi %s1192_s13, %s1390_s13   ;;  %s1152_s12 = sphi %s1190_s12, %s1389_s12  }
   0x4   : > { %p30_p0 = scmp.ge.s32.totalorder %s28_s17, 2  ;;  %p76_p1 = scmp.ne.s32.totalorder %s1156_s13, %s1152_s12 }
   0x5   : > { %p77_p2 = scmp.eq.s32.totalorder %s1168_s16, 0  ;;  %p134_p4 = scmp.eq.s32.totalorder %s941_s18, 1 }
   0x6   : > { %s1394_s17 = smov (%p30_p0, %s28_s17), 0  ;;  %s69_s20 = sadd.s32 1, %s1156_s13 }
   0x7   : > { %p78_p3 = por %p77_p2, %p76_p1  ;;  %s65_s19 = ssub.s32 %s1164_s15, %s1394_s17 }
   0x8   : > { %p67_p5 = scmp.eq.s32.totalorder %s65_s19, 0  ;;  %p1225_p6 = por %p134_p4, %p76_p1 }
   0x9   : > { %p945_p7 = scmp.ge.s32.totalorder %s1168_s16, 2 }
   0xa   : > { %s1230_s22 = scalar_select %p67_p5, %s1156_s13, %s69_s20  }
   0xb   : > { %171 = sbr.rel (%p945_p7) target bundleno = 36 (0x24), region = 20 }
  0x10   : > { %174 = sbr.rel (!%p78_p3) target bundleno = 36 (0x24), region = 24  ;;  %s176_s23 = sand.u32 (%p78_p3), 1, %s1156_s13  }
  0x11   : > { %s998_s24 = sshll.u32 (%p78_p3), %s1164_s15, 3  ;;  %s946_s25 = sshll.u32 (%p78_p3), %s176_s23, 8 }
  0x12   : > { %s1238_s28 = scalar_lea.vmem (%p78_p3), %s1385_s1, %s998_s24  ;;  %s1243_s29 = scalar_lea.vmem (%p78_p3), [#allocation3], %s946_s25 }
  0x13   : > { %v275_v0 = vld [vmem:[%s1238_s28] sm:$0xff] (%p78_p3)  ;;  %v277_v1 = vld [vmem:[%s1238_s28 + $0x10] sm:$0xff] (%p78_p3) }
  0x14   : > { %v279_v2 = vld [vmem:[%s1238_s28 + $0x20] sm:$0xff] (%p78_p3)  ;;  %276 = vst [vmem:[%s1243_s29] sm:$0xff] (%p78_p3), %v275_v0  ;;  %278 = vst [vmem:[%s1243_s29 + $0x8] sm:$0xff] (%p78_p3), %v277_v1  ;;  %v281_v3 = vld [vmem:[%s1238_s28 + $0x30] sm:$0xff] (%p78_p3) }
  0x15   : > { %280 = vst [vmem:[%s1243_s29 + $0x10] sm:$0xff] %v279_v2  ;;  %v283_v4 = vld [vmem:[%s1238_s28 + $0x40] sm:$0xff]  ;;  %v285_v5 = vld [vmem:[%s1238_s28 + $0x50] sm:$0xff]  ;;  %282 = vst [vmem:[%s1243_s29 + $0x18] sm:$0xff] %v281_v3 }
  0x16   : > { %284 = vst [vmem:[%s1243_s29 + $0x20] sm:$0xff] %v283_v4  ;;  %286 = vst [vmem:[%s1243_s29 + $0x28] sm:$0xff] %v285_v5  ;;  %v287_v6 = vld [vmem:[%s1238_s28 + $0x60] sm:$0xff]  ;;  %v289_v7 = vld [vmem:[%s1238_s28 + $0x70] sm:$0xff] }
  0x17   : > { %v291_v8 = vld [vmem:[%s1238_s28 + $0x80] sm:$0xff]  ;;  %288 = vst [vmem:[%s1243_s29 + $0x30] sm:$0xff] %v287_v6  ;;  %290 = vst [vmem:[%s1243_s29 + $0x38] sm:$0xff] %v289_v7  ;;  %v293_v9 = vld [vmem:[%s1238_s28 + $0x90] sm:$0xff] }
  0x18   : > { %292 = vst [vmem:[%s1243_s29 + $0x40] sm:$0xff] %v291_v8  ;;  %v295_v10 = vld [vmem:[%s1238_s28 + $0xa0] sm:$0xff]  ;;  %v297_v11 = vld [vmem:[%s1238_s28 + $0xb0] sm:$0xff]  ;;  %294 = vst [vmem:[%s1243_s29 + $0x48] sm:$0xff] %v293_v9 }
  0x19   : > { %296 = vst [vmem:[%s1243_s29 + $0x50] sm:$0xff] %v295_v10  ;;  %298 = vst [vmem:[%s1243_s29 + $0x58] sm:$0xff] %v297_v11  ;;  %v299_v12 = vld [vmem:[%s1238_s28 + $0xc0] sm:$0xff]  ;;  %v301_v13 = vld [vmem:[%s1238_s28 + $0xd0] sm:$0xff] }
  0x1a   : > { %v303_v14 = vld [vmem:[%s1238_s28 + $0xe0] sm:$0xff]  ;;  %300 = vst [vmem:[%s1243_s29 + $0x60] sm:$0xff] %v299_v12  ;;  %302 = vst [vmem:[%s1243_s29 + $0x68] sm:$0xff] %v301_v13  ;;  %v305_v15 = vld [vmem:[%s1238_s28 + $0xf0] sm:$0xff] }
  0x1b   : > { %304 = vst [vmem:[%s1243_s29 + $0x70] sm:$0xff] %v303_v14  ;;  %v307_v16 = vld [vmem:[%s1238_s28 + $0x100] sm:$0xff]  ;;  %v309_v17 = vld [vmem:[%s1238_s28 + $0x110] sm:$0xff]  ;;  %306 = vst [vmem:[%s1243_s29 + $0x78] sm:$0xff] %v305_v15 }
  0x1c   : > { %308 = vst [vmem:[%s1243_s29 + $0x80] sm:$0xff] %v307_v16  ;;  %310 = vst [vmem:[%s1243_s29 + $0x88] sm:$0xff] %v309_v17  ;;  %v311_v18 = vld [vmem:[%s1238_s28 + $0x120] sm:$0xff]  ;;  %v313_v19 = vld [vmem:[%s1238_s28 + $0x130] sm:$0xff] }
  0x1d   : > { %v315_v20 = vld [vmem:[%s1238_s28 + $0x140] sm:$0xff]  ;;  %312 = vst [vmem:[%s1243_s29 + $0x90] sm:$0xff] %v311_v18  ;;  %314 = vst [vmem:[%s1243_s29 + $0x98] sm:$0xff] %v313_v19  ;;  %v317_v21 = vld [vmem:[%s1238_s28 + $0x150] sm:$0xff] }
  0x1e   : > { %316 = vst [vmem:[%s1243_s29 + $0xa0] sm:$0xff] %v315_v20  ;;  %v319_v22 = vld [vmem:[%s1238_s28 + $0x160] sm:$0xff]  ;;  %v321_v23 = vld [vmem:[%s1238_s28 + $0x170] sm:$0xff]  ;;  %318 = vst [vmem:[%s1243_s29 + $0xa8] sm:$0xff] %v317_v21 }
  0x1f   : > { %320 = vst [vmem:[%s1243_s29 + $0xb0] sm:$0xff] %v319_v22  ;;  %322 = vst [vmem:[%s1243_s29 + $0xb8] sm:$0xff] %v321_v23  ;;  %v323_v24 = vld [vmem:[%s1238_s28 + $0x180] sm:$0xff]  ;;  %v325_v25 = vld [vmem:[%s1238_s28 + $0x190] sm:$0xff] }
  0x20   : > { %v327_v26 = vld [vmem:[%s1238_s28 + $0x1a0] sm:$0xff]  ;;  %324 = vst [vmem:[%s1243_s29 + $0xc0] sm:$0xff] %v323_v24  ;;  %326 = vst [vmem:[%s1243_s29 + $0xc8] sm:$0xff] %v325_v25  ;;  %v329_v27 = vld [vmem:[%s1238_s28 + $0x1b0] sm:$0xff] }
  0x21   : > { %328 = vst [vmem:[%s1243_s29 + $0xd0] sm:$0xff] %v327_v26  ;;  %v331_v28 = vld [vmem:[%s1238_s28 + $0x1c0] sm:$0xff]  ;;  %v333_v29 = vld [vmem:[%s1238_s28 + $0x1d0] sm:$0xff]  ;;  %330 = vst [vmem:[%s1243_s29 + $0xd8] sm:$0xff] %v329_v27 }
  0x22   : > { %332 = vst [vmem:[%s1243_s29 + $0xe0] sm:$0xff] %v331_v28  ;;  %334 = vst [vmem:[%s1243_s29 + $0xe8] sm:$0xff] %v333_v29  ;;  %v335_v30 = vld [vmem:[%s1238_s28 + $0x1e0] sm:$0xff]  ;;  %v337_v31 = vld [vmem:[%s1238_s28 + $0x1f0] sm:$0xff] }
  0x23   : > { %336 = vst [vmem:[%s1243_s29 + $0xf0] sm:$0xff] %v335_v30  ;;  %338 = vst [vmem:[%s1243_s29 + $0xf8] sm:$0xff] %v337_v31 }
  0x24 PF: > { %p949_p8 = scmp.ge.s32.totalorder %s1168_s16, 1  ;;  %p351_p9 = scmp.lt.s32.totalorder %s1168_s16, 3 }
  0x26   : > { %p352_p10 = pnand %p949_p8, %p351_p9 }
  0x27   : > { %s358_s30 = sand.u32 (!%p352_p10), 1, %s1152_s12   ;;  %s952_s20 = sshll.u32 (!%p352_p10), %s1160_s14, 1 }
  0x28   : > { %355 = sbr.rel (%p352_p10) target bundleno = 323 (0x143), region = 66  ;;  %s950_s4 = sshll.u32 (!%p352_p10), %s358_s30, 8 }
  0x29   : > { %s1317_s9 = scalar_lea.vmem (!%p352_p10), [#allocation3], %s950_s4  ;;  %p409_p11 = scmp.lt.s32.totalorder (!%p352_p10), %s952_s20, 3 }
  0x2a   : > { %s951_s26 = sshll.u32 (!%p352_p10), %s358_s30, 5 }
  0x2b   : > { %s393_s27 = scalar_lea.vmem (!%p352_p10), [#allocation4], %s951_s26 }
  0x2d   : > { %v1126_v32 = vld [vmem:[%s1384_s0 + $0x4] ss:$8 sps:$4 sm:$0xff]   ;;  %v1129_v33 = vld [vmem:[%s1384_s0 + $0x14] ss:$8 sps:$4 sm:$0xff]   ;;  %v1078_v35 = vld [vmem:[%s1317_s9 + $0x70] ss:$8 sps:$4 sm:$0xff]   ;;  %v733_v4 = vlaneseq }
  0x2e   : > { %v1076_v34 = vld [vmem:[%s1317_s9 + $0x74] ss:$8 sps:$4 sm:$0xff]   ;;  %683 = vmatprep.mubr.bf16.mxu0 %v1126_v32  ;;  %693 = vmatprep.mubr.bf16.mxu1 %v1129_v33  ;;  %v1079_v36 = vld [vmem:[%s1317_s9 + $0x64] ss:$8 sps:$4 sm:$0xff]   ;;  %v1081_v37 = vld [vmem:[%s1317_s9 + $0x60] ss:$8 sps:$4 sm:$0xff]  }
  0x2f   : > { %651 = vmatprep.subr.bf16.mxu0 %v1076_v34  ;;  %1004 = vmatprep.subr.bf16.mxu1 %v1076_v34  ;;  %v1082_v38 = vld [vmem:[%s1317_s9 + $0x54] ss:$8 sps:$4 sm:$0xff]   ;;  %v1084_v39 = vld [vmem:[%s1317_s9 + $0x50] ss:$8 sps:$4 sm:$0xff]   ;;  %v1085_v40 = vld [vmem:[%s1317_s9 + $0x44] ss:$8 sps:$4 sm:$0xff]  }
  0x30   : > { %652 = vmatpush1.bf16.msra.mxu0 %v1078_v35  ;;  %1020 = vmatpush1.bf16.msra.mxu1 %v1078_v35  ;;  %v1087_v41 = vld [vmem:[%s1317_s9 + $0x40] ss:$8 sps:$4 sm:$0xff]   ;;  %v1088_v42 = vld [vmem:[%s1317_s9 + $0x34] ss:$8 sps:$4 sm:$0xff]   ;;  %v1090_v43 = vld [vmem:[%s1317_s9 + $0x30] ss:$8 sps:$4 sm:$0xff]  }
  0x31   : > { %653 = vmatprep.subr.bf16.mxu0 %v1079_v36  ;;  %1005 = vmatprep.subr.bf16.mxu1 %v1079_v36  ;;  %v1091_v44 = vld [vmem:[%s1317_s9 + $0x24] ss:$8 sps:$4 sm:$0xff]   ;;  %v1093_v45 = vld [vmem:[%s1317_s9 + $0x20] ss:$8 sps:$4 sm:$0xff]   ;;  %v1094_v46 = vld [vmem:[%s1317_s9 + $0x14] ss:$8 sps:$4 sm:$0xff]  }
  0x32   : > { %v1096_v47 = vld [vmem:[%s1317_s9 + $0x10] ss:$8 sps:$4 sm:$0xff]   ;;  %v1097_v48 = vld [vmem:[%s1317_s9 + $0x4] ss:$8 sps:$4 sm:$0xff]   ;;  %v1099_v49 = vld [vmem:[%s1317_s9] ss:$8 sps:$4 sm:$0xff]  }
  0x33   : > { %v1100_v50 = vld [vmem:[%s1317_s9 + $0xf4] ss:$8 sps:$4 sm:$0xff]   ;;  %v1102_v51 = vld [vmem:[%s1317_s9 + $0xf0] ss:$8 sps:$4 sm:$0xff]   ;;  %v1103_v52 = vld [vmem:[%s1317_s9 + $0xe4] ss:$8 sps:$4 sm:$0xff]  }
  0x34   : > { %654 = vmatpush1.bf16.msra.mxu0 %v1081_v37  ;;  %1021 = vmatpush1.bf16.msra.mxu1 %v1081_v37  ;;  %v1105_v53 = vld [vmem:[%s1317_s9 + $0xe0] ss:$8 sps:$4 sm:$0xff]   ;;  %v1106_v54 = vld [vmem:[%s1317_s9 + $0xd4] ss:$8 sps:$4 sm:$0xff]   ;;  %v1108_v55 = vld [vmem:[%s1317_s9 + $0xd0] ss:$8 sps:$4 sm:$0xff]  }
  0x35   : > { %655 = vmatprep.subr.bf16.mxu0 %v1082_v38  ;;  %1006 = vmatprep.subr.bf16.mxu1 %v1082_v38  ;;  %v1109_v56 = vld [vmem:[%s1317_s9 + $0xc4] ss:$8 sps:$4 sm:$0xff]   ;;  %v1111_v57 = vld [vmem:[%s1317_s9 + $0xc0] ss:$8 sps:$4 sm:$0xff]   ;;  %v1112_v58 = vld [vmem:[%s1317_s9 + $0xb4] ss:$8 sps:$4 sm:$0xff]  }
  0x36   : > { %v1114_v59 = vld [vmem:[%s1317_s9 + $0xb0] ss:$8 sps:$4 sm:$0xff]   ;;  %v1115_v60 = vld [vmem:[%s1317_s9 + $0xa4] ss:$8 sps:$4 sm:$0xff]   ;;  %v1117_v61 = vld [vmem:[%s1317_s9 + $0xa0] ss:$8 sps:$4 sm:$0xff]  }
  0x37   : > { %v1118_v62 = vld [vmem:[%s1317_s9 + $0x94] ss:$8 sps:$4 sm:$0xff]   ;;  %v1120_v63 = vld [vmem:[%s1317_s9 + $0x90] ss:$8 sps:$4 sm:$0xff]   ;;  %v1121_v0 = vld [vmem:[%s1317_s9 + $0x84] ss:$8 sps:$4 sm:$0xff]  }
  0x38   : > { %656 = vmatpush1.bf16.msra.mxu0 %v1084_v39  ;;  %1022 = vmatpush1.bf16.msra.mxu1 %v1084_v39  ;;  %v1123_v1 = vld [vmem:[%s1317_s9 + $0x80] ss:$8 sps:$4 sm:$0xff]   ;;  %v1127_v3 = vld [vmem:[%s1384_s0 + $0x10] ss:$8 sps:$4 sm:$0xff]   ;;  %s1396_s20 = smov (!%p409_p11, %s952_s20), 3  ;;  %v734_v5 = vshrl.u32 %v733_v4, 7 }
  0x39   : > { %657 = vmatprep.subr.bf16.mxu0 %v1085_v40  ;;  %1007 = vmatprep.subr.bf16.mxu1 %v1085_v40  ;;  %v1124_v2 = vld [vmem:[%s1384_s0] ss:$8 sps:$4 sm:$0xff]   ;;  %s411_s25 = scalar_lea.vmem %s1386_s2, %s1396_s20  ;;  %s1003_s12 = sshll.u32 (%p1225_p6), %s1160_s14, 3 }
  0x3a   : > { %v735_v6 = vsub.s32 0, %v734_v5  ;;  %v739_v7 = vsub.s32 1, %v734_v5  ;;  %v731_v8 = vld [vmem:[%s411_s25] sm:$0x3]  ;;  %s791_s30 = scalar_lea.vmem (%p1225_p6), %s1387_s3, %s1003_s12 }
  0x3c   : > { %658 = vmatpush1.bf16.msra.mxu0 %v1087_v41  ;;  %1023 = vmatpush1.bf16.msra.mxu1 %v1087_v41  ;;  %v736_v9 = vrot.slane %v731_v8, %v735_v6  ;;  %v740_v10 = vrot.slane %v731_v8, %v739_v7 }
  0x3d   : > { %659 = vmatprep.subr.bf16.mxu0 %v1088_v42  ;;  %1008 = vmatprep.subr.bf16.mxu1 %v1088_v42 }
  0x40   : > { %660 = vmatpush1.bf16.msra.mxu0 %v1090_v43  ;;  %1024 = vmatpush1.bf16.msra.mxu1 %v1090_v43 }
  0x41   : > { %661 = vmatprep.subr.bf16.mxu0 %v1091_v44  ;;  %1009 = vmatprep.subr.bf16.mxu1 %v1091_v44 }
  0x44   : > { %662 = vmatpush1.bf16.msra.mxu0 %v1093_v45  ;;  %1025 = vmatpush1.bf16.msra.mxu1 %v1093_v45 }
  0x45   : > { %663 = vmatprep.subr.bf16.mxu0 %v1094_v46  ;;  %1010 = vmatprep.subr.bf16.mxu1 %v1094_v46 }
  0x48   : > { %664 = vmatpush1.bf16.msra.mxu0 %v1096_v47  ;;  %1026 = vmatpush1.bf16.msra.mxu1 %v1096_v47 }
  0x49   : > { %665 = vmatprep.subr.bf16.mxu0 %v1097_v48  ;;  %1011 = vmatprep.subr.bf16.mxu1 %v1097_v48 }
  0x4c   : > { %666 = vmatpush1.bf16.msra.mxu0 %v1099_v49  ;;  %1027 = vmatpush1.bf16.msra.mxu1 %v1099_v49 }
  0x4d   : > { %667 = vmatprep.subr.bf16.mxu0 %v1100_v50  ;;  %1012 = vmatprep.subr.bf16.mxu1 %v1100_v50 }
  0x50   : > { %668 = vmatpush2.bf16.msra.mxu0 %v1102_v51  ;;  %1028 = vmatpush2.bf16.msra.mxu1 %v1102_v51 }
  0x51   : > { %669 = vmatprep.subr.bf16.mxu0 %v1103_v52  ;;  %1013 = vmatprep.subr.bf16.mxu1 %v1103_v52 }
  0x54   : > { %670 = vmatpush2.bf16.msra.mxu0 %v1105_v53  ;;  %1029 = vmatpush2.bf16.msra.mxu1 %v1105_v53 }
  0x55   : > { %671 = vmatprep.subr.bf16.mxu0 %v1106_v54  ;;  %1014 = vmatprep.subr.bf16.mxu1 %v1106_v54 }
  0x58   : > { %672 = vmatpush2.bf16.msra.mxu0 %v1108_v55  ;;  %1030 = vmatpush2.bf16.msra.mxu1 %v1108_v55 }
  0x59   : > { %673 = vmatprep.subr.bf16.mxu0 %v1109_v56  ;;  %1015 = vmatprep.subr.bf16.mxu1 %v1109_v56 }
  0x5c   : > { %674 = vmatpush2.bf16.msra.mxu0 %v1111_v57  ;;  %1031 = vmatpush2.bf16.msra.mxu1 %v1111_v57 }
  0x5d   : > { %675 = vmatprep.subr.bf16.mxu0 %v1112_v58  ;;  %1016 = vmatprep.subr.bf16.mxu1 %v1112_v58 }
  0x60   : > { %676 = vmatpush2.bf16.msra.mxu0 %v1114_v59  ;;  %1032 = vmatpush2.bf16.msra.mxu1 %v1114_v59 }
  0x61   : > { %677 = vmatprep.subr.bf16.mxu0 %v1115_v60  ;;  %1017 = vmatprep.subr.bf16.mxu1 %v1115_v60 }
  0x64   : > { %678 = vmatpush2.bf16.msra.mxu0 %v1117_v61  ;;  %1033 = vmatpush2.bf16.msra.mxu1 %v1117_v61 }
  0x65   : > { %679 = vmatprep.subr.bf16.mxu0 %v1118_v62  ;;  %1018 = vmatprep.subr.bf16.mxu1 %v1118_v62 }
  0x68   : > { %680 = vmatpush2.bf16.msra.mxu0 %v1120_v63  ;;  %1034 = vmatpush2.bf16.msra.mxu1 %v1120_v63 }
  0x69   : > { %681 = vmatprep.subr.bf16.mxu0 %v1121_v0  ;;  %1019 = vmatprep.subr.bf16.mxu1 %v1121_v0 }
  0x6c   : > { %682 = vmatpush2.bf16.msra.mxu0 %v1123_v1  ;;  %1035 = vmatpush2.bf16.msra.mxu1 %v1123_v1 }
  0x6f   : > { %684 = vmatmul.mubr.bf16.vlgmr.msra.gmra.mxu0 %v1124_v2  ;;  %694 = vmatmul.mubr.bf16.vlgmr.msra.gmra.mxu1 %v1127_v3 }
 0x12f   : > { %v685_v11 = vpop.f32.mrf.mxu0  ;;  %v695_v12 = vpop.f32.mrf.mxu1 }
 0x130   : > { %v743_v15 = vadd.f32 %v736_v9, %v685_v11  ;;  %v747_v16 = vadd.f32 %v736_v9, %v695_v12 }
 0x131   : > { %v687_v13 = vpop.f32.mrf.mxu0  ;;  %v697_v14 = vpop.f32.mrf.mxu1 }
 0x132   : > { %v744_v17 = vadd.f32 %v740_v10, %v687_v13  ;;  %v748_v18 = vadd.f32 %v740_v10, %v697_v14 }
 0x133   : > { %v689_v19 = vpop.f32.mrf.mxu0  ;;  %v699_v20 = vpop.f32.mrf.mxu1 }
 0x134   : > { %v999_v21 = vpack.c.bf16 %v744_v17, %v743_v15  ;;  %v1001_v22 = vpack.c.bf16 %v748_v18, %v747_v16  ;;  %v745_v25 = vadd.f32 %v736_v9, %v689_v19  ;;  %v749_v26 = vadd.f32 %v736_v9, %v699_v20 }
 0x135   : > { %v691_v23 = vpop.f32.mrf.mxu0  ;;  %v701_v24 = vpop.f32.mrf.mxu1 }
 0x136   : > { %775 = vst [vmem:[%s393_s27] sm:$0xff] %v999_v21  ;;  %777 = vst [vmem:[%s393_s27 + $0x10] sm:$0xff] %v1001_v22  ;;  %v746_v27 = vadd.f32 %v740_v10, %v691_v23  ;;  %v750_v28 = vadd.f32 %v740_v10, %v701_v24  ;;  %785 = sbr.rel (!%p1225_p6) target bundleno = 323 (0x143), region = 82 }
 0x138   : > { %v1000_v29 = vpack.c.bf16 %v746_v27, %v745_v25  ;;  %v1002_v30 = vpack.c.bf16 %v750_v28, %v749_v26 }
 0x13a   : > { %776 = vst [vmem:[%s393_s27 + $0x8] sm:$0xff] %v1000_v29  ;;  %778 = vst [vmem:[%s393_s27 + $0x18] sm:$0xff] %v1002_v30 }
 0x13d   : > { %v826_v31 = vld [vmem:[%s393_s27] sm:$0xff]  ;;  %v830_v33 = vld [vmem:[%s393_s27 + $0x10] sm:$0xff] }
 0x13e   : > { %827 = vst [vmem:[%s791_s30] sm:$0xff] %v826_v31  ;;  %831 = vst [vmem:[%s791_s30 + $0x20] sm:$0xff] %v830_v33 }
 0x141   : > { %v828_v32 = vld [vmem:[%s393_s27 + $0x8] sm:$0xff]  ;;  %v832_v34 = vld [vmem:[%s393_s27 + $0x18] sm:$0xff] }
 0x142   : > { %829 = vst [vmem:[%s791_s30 + $0x10] sm:$0xff] %v828_v32  ;;  %833 = vst [vmem:[%s791_s30 + $0x30] sm:$0xff] %v832_v34 }
 0x143 PF: > { %s13_s16 = sadd.s32 1, %s1168_s16   ;;  %s1389_s12 = smov %s1156_s13 }
 0x144   : > { %p10_p12 = scmp.ge.s32.totalorder %s13_s16, 4   ;;  %s1390_s13 = smov %s1230_s22 }
 0x145   : > { %s1391_s14 = smov %s1164_s15  ;;  %s1392_s15 = smov %s1394_s17 }
 0x146   :  { %12 = sbr.rel (!%p10_p12) target bundleno = 3 (0x3), region = 157 }

// kernel: resnet50_forward.71
= control target key start
LH: loop header
LB: loop body
LE: loop exit
PB: predicated region body
PF: predicated region fallthrough
CT: control target
= control target key end

     0   :  { %s903_s12 = smov 0   ;;  %s905_s13 = smov 0   ;;  %s1003_s0 = inlined_call_operand.vmem [shape: bf16[32,512], index: 0, kind: input, shape index: {}]   ;;  %s1004_s1 = inlined_call_operand.vmem [shape: bf16[512,128], index: 1, kind: input, shape index: {}]   ;;  %s1005_s2 = inlined_call_operand.vmem [shape: f32[1,128], index: 2, kind: input, shape index: {}]   ;;  %s1006_s3 = inlined_call_operand.vmem [shape: bf16[32,128], index: 3, kind: output, shape index: {}]  }
   0x1   :  { %s907_s14 = smov 0   ;;  %s909_s15 = smov 0  }
   0x2   :  { %s911_s16 = smov 0  }
   0x3 LB: > { %s25_s17 = sadd.s32 1, %s876_s15  ;;  %p48_p1 = scmp.ne.s32.totalorder %s868_s13, %s864_s12  ;;  %s880_s16 = sphi %s911_s16, %s13_s16   ;;  %s876_s15 = sphi %s909_s15, %s1010_s15   ;;  %s872_s14 = sphi %s907_s14, %s1009_s14   ;;  %s868_s13 = sphi %s905_s13, %s1008_s13   ;;  %s864_s12 = sphi %s903_s12, %s1007_s12  }
   0x4   : > { %p26_p0 = scmp.ge.s32.totalorder %s25_s17, 2  ;;  %p49_p2 = scmp.eq.s32.totalorder %s880_s16, 0 }
   0x5   : > { %s41_s19 = sadd.s32 1, %s868_s13  ;;  %p680_p5 = scmp.ge.s32.totalorder %s880_s16, 2 }
   0x6   : > { %s1012_s17 = smov (%p26_p0, %s25_s17), 0  ;;  %p50_p3 = por %p49_p2, %p48_p1 }
   0x7   : > { %s37_s18 = ssub.s32 %s876_s15, %s1012_s17  ;;  %162 = sbr.rel (%p680_p5) target bundleno = 18 (0x12), region = 20 }
   0x8   : > { %p39_p4 = scmp.eq.s32.totalorder %s37_s18, 0 }
   0xa   : > { %s938_s20 = scalar_select %p39_p4, %s868_s13, %s41_s19  }
   0xc   : > { %165 = sbr.rel (!%p50_p3) target bundleno = 18 (0x12), region = 24  ;;  %s167_s21 = sand.u32 (%p50_p3), 1, %s868_s13  }
   0xd   : > { %s719_s22 = sshll.u32 (%p50_p3), %s876_s15, 3  ;;  %s681_s23 = sshll.u32 (%p50_p3), %s167_s21, 5 }
   0xe   : > { %s175_s26 = scalar_lea.vmem (%p50_p3), %s1003_s0, %s719_s22  ;;  %s169_s27 = scalar_lea.vmem (%p50_p3), [#allocation3], %s681_s23 }
   0xf   : > { %v210_v0 = vld [vmem:[%s175_s26] sm:$0xff] (%p50_p3)  ;;  %v212_v1 = vld [vmem:[%s175_s26 + $0x10] sm:$0xff] (%p50_p3) }
  0x10   : > { %v214_v2 = vld [vmem:[%s175_s26 + $0x20] sm:$0xff] (%p50_p3)  ;;  %211 = vst [vmem:[%s169_s27] sm:$0xff] (%p50_p3), %v210_v0  ;;  %213 = vst [vmem:[%s169_s27 + $0x8] sm:$0xff] (%p50_p3), %v212_v1  ;;  %v216_v3 = vld [vmem:[%s175_s26 + $0x30] sm:$0xff] (%p50_p3) }
  0x11   : > { %215 = vst [vmem:[%s169_s27 + $0x10] sm:$0xff] %v214_v2  ;;  %217 = vst [vmem:[%s169_s27 + $0x18] sm:$0xff] %v216_v3 }
  0x12 PF: > { %p684_p6 = scmp.ge.s32.totalorder %s880_s16, 1  ;;  %p234_p7 = scmp.lt.s32.totalorder %s880_s16, 3 }
  0x14   : > { %p235_p8 = pnand %p684_p6, %p234_p7 }
  0x15   : > { %s241_s28 = sand.u32 (!%p235_p8), 1, %s864_s12   ;;  %s686_s29 = sshll.u32 (!%p235_p8), %s872_s14, 5 }
  0x16   : > { %238 = sbr.rel (%p235_p8) target bundleno = 286 (0x11e), region = 66  ;;  %s685_s30 = sshll.u32 (!%p235_p8), %s241_s28, 5 }
  0x17   : > { %p281_p9 = scmp.lt.s32.totalorder (!%p235_p8), %s686_s29, 63  ;;  %s955_s8 = scalar_lea.vmem (!%p235_p8), [#allocation3], %s685_s30 }
  0x18   : > { %p688_p10 = scmp.ne.s32.totalorder (!%p235_p8), %s872_s14, 0 }
  0x1b   : > { %s1014_s29 = smov (!%p281_p9, %s686_s29), 63  ;;  %305 = sbr.rel (%p688_p10) target bundleno = 35 (0x23), region = 74 }
  0x1c   : > { %s687_s4 = sshll.u32 %s1014_s29, 2 }
  0x1d   : > { %s953_s7 = scalar_lea.vmem %s1004_s1, %s687_s4 }
  0x20   : > { %v882_v4 = vmov 0.0  }
  0x21   : > { %306 = vst [vmem:[#allocation2 + $0x10] sm:$0xff] %v882_v4  ;;  %307 = vst [vmem:[#allocation2] sm:$0xff] %v882_v4 }
  0x22   : > { %308 = vst [vmem:[#allocation2 + $0x18] sm:$0xff] %v882_v4  ;;  %309 = vst [vmem:[#allocation2 + $0x8] sm:$0xff] %v882_v4 }
  0x23 PF: > { %v820_v5 = vld [vmem:[%s953_s7 + $0x78] sm:$0xff]   ;;  %v822_v7 = vld [vmem:[%s953_s7 + $0x70] sm:$0xff]   ;;  %v824_v9 = vld [vmem:[%s953_s7 + $0x68] sm:$0xff]   ;;  %p709_p11 = scmp.ne.s32.totalorder %s872_s14, 1 }
  0x24   : > { %v821_v6 = vld [vmem:[%s953_s7 + $0x38] sm:$0xff]   ;;  %735 = vmatprep.subr.bf16.mxu0 %v820_v5  ;;  %763 = vmatprep.subr.bf16.mxu1 %v820_v5  ;;  %v823_v8 = vld [vmem:[%s953_s7 + $0x30] sm:$0xff]   ;;  %v825_v10 = vld [vmem:[%s953_s7 + $0x28] sm:$0xff]  }
  0x25   : > { %736 = vmatpush3.bf16.msra.mxu0 %v821_v6  ;;  %771 = vmatpush3.bf16.msra.mxu1 %v821_v6  ;;  %v826_v11 = vld [vmem:[%s953_s7 + $0x60] sm:$0xff]   ;;  %v828_v13 = vld [vmem:[%s953_s7 + $0x58] sm:$0xff]   ;;  %v830_v15 = vld [vmem:[%s953_s7 + $0x50] sm:$0xff]  }
  0x26   : > { %737 = vmatprep.subr.bf16.mxu0 %v822_v7  ;;  %764 = vmatprep.subr.bf16.mxu1 %v822_v7  ;;  %v827_v12 = vld [vmem:[%s953_s7 + $0x20] sm:$0xff]   ;;  %v829_v14 = vld [vmem:[%s953_s7 + $0x18] sm:$0xff]   ;;  %v831_v18 = vld [vmem:[%s953_s7 + $0x10] sm:$0xff]  }
  0x27   : > { %v838_v16 = vld [vmem:[%s955_s8 + $0x4] ss:$8 sps:$4 sm:$0xff]   ;;  %v841_v17 = vld [vmem:[%s955_s8 + $0x14] ss:$8 sps:$4 sm:$0xff]   ;;  %v836_v23 = vld [vmem:[%s955_s8] ss:$8 sps:$4 sm:$0xff]  }
  0x28   : > { %v832_v19 = vld [vmem:[%s953_s7 + $0x48] sm:$0xff]   ;;  %498 = vmatprep.mubr.bf16.mxu0 %v838_v16  ;;  %506 = vmatprep.mubr.bf16.mxu1 %v841_v17  ;;  %v834_v21 = vld [vmem:[%s953_s7 + $0x40] sm:$0xff]   ;;  %v839_v24 = vld [vmem:[%s955_s8 + $0x10] ss:$8 sps:$4 sm:$0xff]  }
  0x29   : > { %738 = vmatpush3.bf16.msra.mxu0 %v823_v8  ;;  %772 = vmatpush3.bf16.msra.mxu1 %v823_v8  ;;  %v833_v20 = vld [vmem:[%s953_s7 + $0x8] sm:$0xff]   ;;  %v835_v22 = vld [vmem:[%s953_s7] sm:$0xff]   ;;  %v310_v27 = vld [vmem:[#allocation2 + $0x10] sm:$0xff] }
  0x2a   : > { %739 = vmatprep.subr.bf16.mxu0 %v824_v9  ;;  %765 = vmatprep.subr.bf16.mxu1 %v824_v9  ;;  %v312_v29 = vld [vmem:[#allocation2 + $0x18] sm:$0xff]  ;;  %v311_v37 = vld [vmem:[#allocation2] sm:$0xff]  ;;  %v313_v39 = vld [vmem:[#allocation2 + $0x8] sm:$0xff] }
  0x2d   : > { %740 = vmatpush3.bf16.msra.mxu0 %v825_v10  ;;  %773 = vmatpush3.bf16.msra.mxu1 %v825_v10 }
  0x2e   : > { %741 = vmatprep.subr.bf16.mxu0 %v826_v11  ;;  %766 = vmatprep.subr.bf16.mxu1 %v826_v11 }
  0x31   : > { %742 = vmatpush3.bf16.msra.mxu0 %v827_v12  ;;  %774 = vmatpush3.bf16.msra.mxu1 %v827_v12 }
  0x32   : > { %743 = vmatprep.subr.bf16.mxu0 %v828_v13  ;;  %767 = vmatprep.subr.bf16.mxu1 %v828_v13 }
  0x35   : > { %744 = vmatpush3.bf16.msra.mxu0 %v829_v14  ;;  %775 = vmatpush3.bf16.msra.mxu1 %v829_v14 }
  0x36   : > { %745 = vmatprep.subr.bf16.mxu0 %v830_v15  ;;  %768 = vmatprep.subr.bf16.mxu1 %v830_v15 }
  0x39   : > { %746 = vmatpush3.bf16.msra.mxu0 %v831_v18  ;;  %776 = vmatpush3.bf16.msra.mxu1 %v831_v18 }
  0x3a   : > { %747 = vmatprep.subr.bf16.mxu0 %v832_v19  ;;  %769 = vmatprep.subr.bf16.mxu1 %v832_v19 }
  0x3d   : > { %748 = vmatpush3.bf16.msra.mxu0 %v833_v20  ;;  %777 = vmatpush3.bf16.msra.mxu1 %v833_v20 }
  0x3e   : > { %749 = vmatprep.subr.bf16.mxu0 %v834_v21  ;;  %770 = vmatprep.subr.bf16.mxu1 %v834_v21 }
  0x41   : > { %750 = vmatpush3.bf16.msra.mxu0 %v835_v22  ;;  %778 = vmatpush3.bf16.msra.mxu1 %v835_v22 }
  0x44   : > { %499 = vmatmul.mubr.bf16.vlgmr.msra.gmra.mxu0 %v836_v23  ;;  %507 = vmatmul.mubr.bf16.vlgmr.msra.gmra.mxu1 %v839_v24 }
 0x104   : > { %v751_v25 = vpop.f32.mrf.mxu0  ;;  %v757_v26 = vpop.f32.mrf.mxu1 }
 0x106   : > { %v752_v28 = vpop.f32.mrf.mxu0  ;;  %v758_v30 = vpop.f32.mrf.mxu1 }
 0x107   : > { %v753_v31 = vadd.f32 %v752_v28, %v751_v25  ;;  %v759_v32 = vadd.f32 %v758_v30, %v757_v26 }
 0x108   : > { %v754_v33 = vpop.f32.mrf.mxu0  ;;  %v760_v34 = vpop.f32.mrf.mxu1 }
 0x109   : > { %v515_v35 = vadd.f32 %v753_v31, %v310_v27  ;;  %v517_v36 = vadd.f32 %v759_v32, %v312_v29 }
 0x10a   : > { %v755_v38 = vpop.f32.mrf.mxu0  ;;  %v761_v40 = vpop.f32.mrf.mxu1 }
 0x10b   : > { %519 = vst [vmem:[#allocation2 + $0x10] sm:$0xff] %v515_v35  ;;  %521 = vst [vmem:[#allocation2 + $0x18] sm:$0xff] %v517_v36  ;;  %v756_v41 = vadd.f32 %v755_v38, %v754_v33  ;;  %v762_v42 = vadd.f32 %v761_v40, %v760_v34  ;;  %526 = sbr.rel (%p709_p11) target bundleno = 286 (0x11e), region = 78 }
 0x10d   : > { %v516_v43 = vadd.f32 %v756_v41, %v311_v37  ;;  %v518_v44 = vadd.f32 %v762_v42, %v313_v39 }
 0x10f   : > { %520 = vst [vmem:[#allocation2] sm:$0xff] %v516_v43  ;;  %522 = vst [vmem:[#allocation2 + $0x8] sm:$0xff] %v518_v44 }
 0x110   : > { %v710_v47 = vld [vmem:[%s1005_s2] ss:$0 sm:$0xff] }
 0x112   : > { %v527_v45 = vld [vmem:[#allocation2 + $0x10] sm:$0xff]  ;;  %v529_v50 = vld [vmem:[#allocation2 + $0x18] sm:$0xff] }
 0x113   : > { %v538_v48 = vadd.f32 %v710_v47, %v527_v45  ;;  %v540_v52 = vadd.f32 %v710_v47, %v529_v50 }
 0x115   : > { %v542_v54 = vmax.f32 %v538_v48, 0.0  ;;  %v544_v56 = vmax.f32 %v540_v52, 0.0 }
 0x116   : > { %v528_v46 = vld [vmem:[#allocation2] sm:$0xff]  ;;  %v530_v51 = vld [vmem:[#allocation2 + $0x8] sm:$0xff] }
 0x117   : > { %v539_v49 = vadd.f32 %v710_v47, %v528_v46  ;;  %v541_v53 = vadd.f32 %v710_v47, %v530_v51 }
 0x119   : > { %v543_v55 = vmax.f32 %v539_v49, 0.0  ;;  %v545_v57 = vmax.f32 %v541_v53, 0.0 }
 0x11b   : > { %v727_v58 = vpack.c.bf16 %v543_v55, %v542_v54  ;;  %v732_v59 = vpack.c.bf16 %v545_v57, %v544_v56 }
 0x11d   : > { %728 = vst [vmem:[%s1006_s3] sm:$0xff] %v727_v58   ;;  %734 = vst [vmem:[%s1006_s3 + $0x8] sm:$0xff] %v732_v59  }
 0x11e PF: > { %s13_s16 = sadd.s32 1, %s880_s16   ;;  %s1007_s12 = smov %s868_s13 }
 0x11f   : > { %p10_p12 = scmp.ge.s32.totalorder %s13_s16, 4   ;;  %s1008_s13 = smov %s938_s20 }
 0x120   : > { %s1009_s14 = smov %s876_s15  ;;  %s1010_s15 = smov %s1012_s17 }
 0x121   :  { %12 = sbr.rel (!%p10_p12) target bundleno = 3 (0x3), region = 119 }

// kernel: resnet50_forward.80
= control target key start
LH: loop header
LB: loop body
LE: loop exit
PB: predicated region body
PF: predicated region fallthrough
CT: control target
= control target key end

     0   :  { %s1067_s12 = smov 0   ;;  %s1069_s13 = smov 0   ;;  %s1189_s0 = inlined_call_operand.vmem [shape: bf16[32,512], index: 0, kind: input, shape index: {}]   ;;  %s1190_s1 = inlined_call_operand.vmem [shape: bf16[512,256], index: 1, kind: input, shape index: {}]   ;;  %s1191_s2 = inlined_call_operand.vmem [shape: f32[1,256], index: 2, kind: input, shape index: {}]   ;;  %s1192_s3 = inlined_call_operand.vmem [shape: bf16[32,256], index: 3, kind: output, shape index: {}]  }
   0x1   :  { %s1071_s14 = smov 0   ;;  %s1073_s15 = smov 0  }
   0x2   :  { %s1075_s16 = smov 0  }
   0x3 LB: > { %s25_s17 = sadd.s32 1, %s1040_s15  ;;  %p48_p1 = scmp.ne.s32.totalorder %s1032_s13, %s1028_s12  ;;  %s1044_s16 = sphi %s1075_s16, %s13_s16   ;;  %s1040_s15 = sphi %s1073_s15, %s1196_s15   ;;  %s1036_s14 = sphi %s1071_s14, %s1195_s14   ;;  %s1032_s13 = sphi %s1069_s13, %s1194_s13   ;;  %s1028_s12 = sphi %s1067_s12, %s1193_s12  }
   0x4   : > { %p26_p0 = scmp.ge.s32.totalorder %s25_s17, 2  ;;  %p49_p2 = scmp.eq.s32.totalorder %s1044_s16, 0 }
   0x5   : > { %s41_s19 = sadd.s32 1, %s1032_s13  ;;  %p818_p5 = scmp.ge.s32.totalorder %s1044_s16, 2 }
   0x6   : > { %s1198_s17 = smov (%p26_p0, %s25_s17), 0  ;;  %p50_p3 = por %p49_p2, %p48_p1 }
   0x7   : > { %s37_s18 = ssub.s32 %s1040_s15, %s1198_s17  ;;  %164 = sbr.rel (%p818_p5) target bundleno = 18 (0x12), region = 20 }
   0x8   : > { %p39_p4 = scmp.eq.s32.totalorder %s37_s18, 0 }
   0xa   : > { %s1102_s20 = scalar_select %p39_p4, %s1032_s13, %s41_s19  }
   0xc   : > { %167 = sbr.rel (!%p50_p3) target bundleno = 18 (0x12), region = 24  ;;  %s169_s21 = sand.u32 (%p50_p3), 1, %s1032_s13  }
   0xd   : > { %s873_s22 = sshll.u32 (%p50_p3), %s1040_s15, 3  ;;  %s819_s23 = sshll.u32 (%p50_p3), %s169_s21, 5 }
   0xe   : > { %s177_s26 = scalar_lea.vmem (%p50_p3), %s1189_s0, %s873_s22  ;;  %s171_s27 = scalar_lea.vmem (%p50_p3), [#allocation3], %s819_s23 }
   0xf   : > { %v212_v0 = vld [vmem:[%s177_s26] sm:$0xff] (%p50_p3)  ;;  %v214_v1 = vld [vmem:[%s177_s26 + $0x10] sm:$0xff] (%p50_p3) }
  0x10   : > { %v216_v2 = vld [vmem:[%s177_s26 + $0x20] sm:$0xff] (%p50_p3)  ;;  %213 = vst [vmem:[%s171_s27] sm:$0xff] (%p50_p3), %v212_v0  ;;  %215 = vst [vmem:[%s171_s27 + $0x8] sm:$0xff] (%p50_p3), %v214_v1  ;;  %v218_v3 = vld [vmem:[%s177_s26 + $0x30] sm:$0xff] (%p50_p3) }
  0x11   : > { %217 = vst [vmem:[%s171_s27 + $0x10] sm:$0xff] %v216_v2  ;;  %219 = vst [vmem:[%s171_s27 + $0x18] sm:$0xff] %v218_v3 }
  0x12 PF: > { %p822_p6 = scmp.ge.s32.totalorder %s1044_s16, 1  ;;  %p239_p7 = scmp.lt.s32.totalorder %s1044_s16, 3 }
  0x14   : > { %p240_p8 = pnand %p822_p6, %p239_p7 }
  0x15   : > { %s246_s28 = sand.u32 (!%p240_p8), 1, %s1028_s12   ;;  %s824_s29 = sshll.u32 (!%p240_p8), %s1036_s14, 5 }
  0x16   : > { %243 = sbr.rel (%p240_p8) target bundleno = 320 (0x140), region = 66  ;;  %s823_s30 = sshll.u32 (!%p240_p8), %s246_s28, 5 }
  0x17   : > { %p292_p9 = scmp.lt.s32.totalorder (!%p240_p8), %s824_s29, 63  ;;  %s1119_s8 = scalar_lea.vmem (!%p240_p8), [#allocation3], %s823_s30 }
  0x18   : > { %p827_p10 = scmp.ne.s32.totalorder (!%p240_p8), %s1036_s14, 0 }
  0x1b   : > { %s1200_s29 = smov (!%p292_p9, %s824_s29), 63  ;;  %322 = sbr.rel (%p827_p10) target bundleno = 37 (0x25), region = 74 }
  0x1c   : > { %s874_s4 = sshll.u32 %s1200_s29, 3 }
  0x1d   : > { %s1117_s7 = scalar_lea.vmem %s1190_s1, %s874_s4 }
  0x20   : > { %v1046_v4 = vmov 0.0  }
  0x21   : > { %323 = vst [vmem:[#allocation2 + $0x30] sm:$0xff] %v1046_v4  ;;  %324 = vst [vmem:[#allocation2] sm:$0xff] %v1046_v4 }
  0x22   : > { %325 = vst [vmem:[#allocation2 + $0x18] sm:$0xff] %v1046_v4  ;;  %326 = vst [vmem:[#allocation2 + $0x10] sm:$0xff] %v1046_v4 }
  0x23   : > { %327 = vst [vmem:[#allocation2 + $0x8] sm:$0xff] %v1046_v4  ;;  %328 = vst [vmem:[#allocation2 + $0x20] sm:$0xff] %v1046_v4 }
  0x24   : > { %329 = vst [vmem:[#allocation2 + $0x28] sm:$0xff] %v1046_v4  ;;  %330 = vst [vmem:[#allocation2 + $0x38] sm:$0xff] %v1046_v4 }
  0x25 PF: > { %v952_v5 = vld [vmem:[%s1117_s7 + $0x74] ss:$8 sps:$4 sm:$0xff]   ;;  %v954_v6 = vld [vmem:[%s1117_s7 + $0x70] ss:$8 sps:$4 sm:$0xff]   ;;  %v955_v7 = vld [vmem:[%s1117_s7 + $0x64] ss:$8 sps:$4 sm:$0xff]  }
  0x26   : > { %555 = vmatprep.subr.bf16.mxu0 %v952_v5  ;;  %879 = vmatprep.subr.bf16.mxu1 %v952_v5  ;;  %v957_v8 = vld [vmem:[%s1117_s7 + $0x60] ss:$8 sps:$4 sm:$0xff]   ;;  %v958_v9 = vld [vmem:[%s1117_s7 + $0x54] ss:$8 sps:$4 sm:$0xff]   ;;  %v960_v10 = vld [vmem:[%s1117_s7 + $0x50] ss:$8 sps:$4 sm:$0xff]  }
  0x27   : > { %556 = vmatpush1.bf16.msra.mxu0 %v954_v6  ;;  %895 = vmatpush1.bf16.msra.mxu1 %v954_v6  ;;  %v961_v11 = vld [vmem:[%s1117_s7 + $0x44] ss:$8 sps:$4 sm:$0xff]   ;;  %v963_v12 = vld [vmem:[%s1117_s7 + $0x40] ss:$8 sps:$4 sm:$0xff]   ;;  %v964_v13 = vld [vmem:[%s1117_s7 + $0x34] ss:$8 sps:$4 sm:$0xff]  }
  0x28   : > { %557 = vmatprep.subr.bf16.mxu0 %v955_v7  ;;  %880 = vmatprep.subr.bf16.mxu1 %v955_v7  ;;  %v966_v14 = vld [vmem:[%s1117_s7 + $0x30] ss:$8 sps:$4 sm:$0xff]   ;;  %v967_v15 = vld [vmem:[%s1117_s7 + $0x24] ss:$8 sps:$4 sm:$0xff]   ;;  %v969_v16 = vld [vmem:[%s1117_s7 + $0x20] ss:$8 sps:$4 sm:$0xff]  }
  0x29   : > { %v970_v17 = vld [vmem:[%s1117_s7 + $0x14] ss:$8 sps:$4 sm:$0xff]   ;;  %v1002_v18 = vld [vmem:[%s1119_s8 + $0x4] ss:$8 sps:$4 sm:$0xff]   ;;  %v972_v19 = vld [vmem:[%s1117_s7 + $0x10] ss:$8 sps:$4 sm:$0xff]  }
  0x2a   : > { %v1005_v20 = vld [vmem:[%s1119_s8 + $0x14] ss:$8 sps:$4 sm:$0xff]   ;;  %v973_v21 = vld [vmem:[%s1117_s7 + $0x4] ss:$8 sps:$4 sm:$0xff]   ;;  %587 = vmatprep.mubr.bf16.mxu0 %v1002_v18  ;;  %v975_v22 = vld [vmem:[%s1117_s7] ss:$8 sps:$4 sm:$0xff]  }
  0x2b   : > { %558 = vmatpush1.bf16.msra.mxu0 %v957_v8  ;;  %896 = vmatpush1.bf16.msra.mxu1 %v957_v8  ;;  %v976_v23 = vld [vmem:[%s1117_s7 + $0xf4] ss:$8 sps:$4 sm:$0xff]   ;;  %v978_v24 = vld [vmem:[%s1117_s7 + $0xf0] ss:$8 sps:$4 sm:$0xff]   ;;  %v979_v25 = vld [vmem:[%s1117_s7 + $0xe4] ss:$8 sps:$4 sm:$0xff]  }
  0x2c   : > { %559 = vmatprep.subr.bf16.mxu0 %v958_v9  ;;  %881 = vmatprep.subr.bf16.mxu1 %v958_v9  ;;  %v981_v26 = vld [vmem:[%s1117_s7 + $0xe0] ss:$8 sps:$4 sm:$0xff]   ;;  %v982_v27 = vld [vmem:[%s1117_s7 + $0xd4] ss:$8 sps:$4 sm:$0xff]   ;;  %v984_v28 = vld [vmem:[%s1117_s7 + $0xd0] ss:$8 sps:$4 sm:$0xff]  }
  0x2d   : > { %597 = vmatprep.mubr.bf16.mxu1 %v1005_v20  ;;  %v985_v29 = vld [vmem:[%s1117_s7 + $0xc4] ss:$8 sps:$4 sm:$0xff]   ;;  %v987_v30 = vld [vmem:[%s1117_s7 + $0xc0] ss:$8 sps:$4 sm:$0xff]   ;;  %v988_v31 = vld [vmem:[%s1117_s7 + $0xb4] ss:$8 sps:$4 sm:$0xff]  }
  0x2e   : > { %v990_v32 = vld [vmem:[%s1117_s7 + $0xb0] ss:$8 sps:$4 sm:$0xff]   ;;  %v991_v33 = vld [vmem:[%s1117_s7 + $0xa4] ss:$8 sps:$4 sm:$0xff]   ;;  %v993_v34 = vld [vmem:[%s1117_s7 + $0xa0] ss:$8 sps:$4 sm:$0xff]  }
  0x2f   : > { %560 = vmatpush1.bf16.msra.mxu0 %v960_v10  ;;  %897 = vmatpush1.bf16.msra.mxu1 %v960_v10  ;;  %v994_v35 = vld [vmem:[%s1117_s7 + $0x94] ss:$8 sps:$4 sm:$0xff]   ;;  %v996_v36 = vld [vmem:[%s1117_s7 + $0x90] ss:$8 sps:$4 sm:$0xff]   ;;  %v997_v37 = vld [vmem:[%s1117_s7 + $0x84] ss:$8 sps:$4 sm:$0xff]  }
  0x30   : > { %561 = vmatprep.subr.bf16.mxu0 %v961_v11  ;;  %882 = vmatprep.subr.bf16.mxu1 %v961_v11  ;;  %v999_v38 = vld [vmem:[%s1117_s7 + $0x80] ss:$8 sps:$4 sm:$0xff]   ;;  %v1003_v40 = vld [vmem:[%s1119_s8 + $0x10] ss:$8 sps:$4 sm:$0xff]   ;;  %p864_p11 = scmp.ne.s32.totalorder %s1036_s14, 1 }
  0x31   : > { %v1000_v39 = vld [vmem:[%s1119_s8] ss:$8 sps:$4 sm:$0xff]   ;;  %v331_v41 = vld [vmem:[#allocation2 + $0x30] sm:$0xff]  ;;  %v333_v51 = vld [vmem:[#allocation2 + $0x18] sm:$0xff] }
  0x32   : > { %v335_v42 = vld [vmem:[#allocation2 + $0x8] sm:$0xff]  ;;  %v332_v45 = vld [vmem:[#allocation2] sm:$0xff]  ;;  %v334_v57 = vld [vmem:[#allocation2 + $0x10] sm:$0xff] }
  0x33   : > { %562 = vmatpush1.bf16.msra.mxu0 %v963_v12  ;;  %898 = vmatpush1.bf16.msra.mxu1 %v963_v12  ;;  %v336_v46 = vld [vmem:[#allocation2 + $0x20] sm:$0xff]  ;;  %v337_v52 = vld [vmem:[#allocation2 + $0x28] sm:$0xff]  ;;  %v338_v58 = vld [vmem:[#allocation2 + $0x38] sm:$0xff] }
  0x34   : > { %563 = vmatprep.subr.bf16.mxu0 %v964_v13  ;;  %883 = vmatprep.subr.bf16.mxu1 %v964_v13 }
  0x37   : > { %564 = vmatpush1.bf16.msra.mxu0 %v966_v14  ;;  %899 = vmatpush1.bf16.msra.mxu1 %v966_v14 }
  0x38   : > { %565 = vmatprep.subr.bf16.mxu0 %v967_v15  ;;  %884 = vmatprep.subr.bf16.mxu1 %v967_v15 }
  0x3b   : > { %566 = vmatpush1.bf16.msra.mxu0 %v969_v16  ;;  %900 = vmatpush1.bf16.msra.mxu1 %v969_v16 }
  0x3c   : > { %567 = vmatprep.subr.bf16.mxu0 %v970_v17  ;;  %885 = vmatprep.subr.bf16.mxu1 %v970_v17 }
  0x3f   : > { %568 = vmatpush1.bf16.msra.mxu0 %v972_v19  ;;  %901 = vmatpush1.bf16.msra.mxu1 %v972_v19 }
  0x40   : > { %569 = vmatprep.subr.bf16.mxu0 %v973_v21  ;;  %886 = vmatprep.subr.bf16.mxu1 %v973_v21 }
  0x43   : > { %570 = vmatpush1.bf16.msra.mxu0 %v975_v22  ;;  %902 = vmatpush1.bf16.msra.mxu1 %v975_v22 }
  0x44   : > { %571 = vmatprep.subr.bf16.mxu0 %v976_v23  ;;  %887 = vmatprep.subr.bf16.mxu1 %v976_v23 }
  0x47   : > { %572 = vmatpush2.bf16.msra.mxu0 %v978_v24  ;;  %903 = vmatpush2.bf16.msra.mxu1 %v978_v24 }
  0x48   : > { %573 = vmatprep.subr.bf16.mxu0 %v979_v25  ;;  %888 = vmatprep.subr.bf16.mxu1 %v979_v25 }
  0x4b   : > { %574 = vmatpush2.bf16.msra.mxu0 %v981_v26  ;;  %904 = vmatpush2.bf16.msra.mxu1 %v981_v26 }
  0x4c   : > { %575 = vmatprep.subr.bf16.mxu0 %v982_v27  ;;  %889 = vmatprep.subr.bf16.mxu1 %v982_v27 }
  0x4f   : > { %576 = vmatpush2.bf16.msra.mxu0 %v984_v28  ;;  %905 = vmatpush2.bf16.msra.mxu1 %v984_v28 }
  0x50   : > { %577 = vmatprep.subr.bf16.mxu0 %v985_v29  ;;  %890 = vmatprep.subr.bf16.mxu1 %v985_v29 }
  0x53   : > { %578 = vmatpush2.bf16.msra.mxu0 %v987_v30  ;;  %906 = vmatpush2.bf16.msra.mxu1 %v987_v30 }
  0x54   : > { %579 = vmatprep.subr.bf16.mxu0 %v988_v31  ;;  %891 = vmatprep.subr.bf16.mxu1 %v988_v31 }
  0x57   : > { %580 = vmatpush2.bf16.msra.mxu0 %v990_v32  ;;  %907 = vmatpush2.bf16.msra.mxu1 %v990_v32 }
  0x58   : > { %581 = vmatprep.subr.bf16.mxu0 %v991_v33  ;;  %892 = vmatprep.subr.bf16.mxu1 %v991_v33 }
  0x5b   : > { %582 = vmatpush2.bf16.msra.mxu0 %v993_v34  ;;  %908 = vmatpush2.bf16.msra.mxu1 %v993_v34 }
  0x5c   : > { %583 = vmatprep.subr.bf16.mxu0 %v994_v35  ;;  %893 = vmatprep.subr.bf16.mxu1 %v994_v35 }
  0x5f   : > { %584 = vmatpush2.bf16.msra.mxu0 %v996_v36  ;;  %909 = vmatpush2.bf16.msra.mxu1 %v996_v36 }
  0x60   : > { %585 = vmatprep.subr.bf16.mxu0 %v997_v37  ;;  %894 = vmatprep.subr.bf16.mxu1 %v997_v37 }
  0x63   : > { %586 = vmatpush2.bf16.msra.mxu0 %v999_v38  ;;  %910 = vmatpush2.bf16.msra.mxu1 %v999_v38 }
  0x66   : > { %588 = vmatmul.mubr.bf16.vlgmr.msra.gmra.mxu0 %v1000_v39  ;;  %598 = vmatmul.mubr.bf16.vlgmr.msra.gmra.mxu1 %v1003_v40 }
 0x126   : > { %v589_v43 = vpop.f32.mrf.mxu0  ;;  %v599_v44 = vpop.f32.mrf.mxu1 }
 0x127   : > { %v608_v47 = vadd.f32 %v589_v43, %v331_v41  ;;  %v612_v48 = vadd.f32 %v599_v44, %v335_v42 }
 0x128   : > { %v591_v49 = vpop.f32.mrf.mxu0  ;;  %v601_v50 = vpop.f32.mrf.mxu1 }
 0x129   : > { %616 = vst [vmem:[#allocation2 + $0x30] sm:$0xff] %v608_v47  ;;  %620 = vst [vmem:[#allocation2 + $0x8] sm:$0xff] %v612_v48  ;;  %v609_v53 = vadd.f32 %v591_v49, %v332_v45  ;;  %v613_v54 = vadd.f32 %v601_v50, %v336_v46 }
 0x12a   : > { %v593_v55 = vpop.f32.mrf.mxu0  ;;  %v603_v56 = vpop.f32.mrf.mxu1 }
 0x12b   : > { %617 = vst [vmem:[#allocation2] sm:$0xff] %v609_v53  ;;  %621 = vst [vmem:[#allocation2 + $0x20] sm:$0xff] %v613_v54  ;;  %v610_v59 = vadd.f32 %v593_v55, %v333_v51  ;;  %v614_v60 = vadd.f32 %v603_v56, %v337_v52  ;;  %627 = sbr.rel (%p864_p11) target bundleno = 320 (0x140), region = 78 }
 0x12c   : > { %v595_v61 = vpop.f32.mrf.mxu0  ;;  %v605_v62 = vpop.f32.mrf.mxu1 }
 0x12d   : > { %618 = vst [vmem:[#allocation2 + $0x18] sm:$0xff] %v610_v59  ;;  %622 = vst [vmem:[#allocation2 + $0x28] sm:$0xff] %v614_v60  ;;  %v611_v63 = vadd.f32 %v595_v61, %v334_v57  ;;  %v615_v0 = vadd.f32 %v605_v62, %v338_v58 }
 0x12f   : > { %619 = vst [vmem:[#allocation2 + $0x10] sm:$0xff] %v611_v63  ;;  %623 = vst [vmem:[#allocation2 + $0x38] sm:$0xff] %v615_v0 }
 0x130   : > { %v638_v1 = vlaneseq  ;;  %v636_v3 = vld [vmem:[%s1191_s2] sm:$0x3]  ;;  %v628_v4 = vld [vmem:[#allocation2 + $0x30] sm:$0xff]  ;;  %v632_v10 = vld [vmem:[#allocation2 + $0x8] sm:$0xff] }
 0x132   : > { %v639_v2 = vshrl.u32 %v638_v1, 7  ;;  %v629_v5 = vld [vmem:[#allocation2] sm:$0xff] }
 0x133   : > { %v633_v13 = vld [vmem:[#allocation2 + $0x20] sm:$0xff] }
 0x134   : > { %v640_v6 = vsub.s32 0, %v639_v2  ;;  %v644_v7 = vsub.s32 1, %v639_v2  ;;  %v630_v8 = vld [vmem:[#allocation2 + $0x18] sm:$0xff]  ;;  %v634_v14 = vld [vmem:[#allocation2 + $0x28] sm:$0xff] }
 0x136   : > { %v631_v9 = vld [vmem:[#allocation2 + $0x10] sm:$0xff]  ;;  %v641_v11 = vrot.slane %v636_v3, %v640_v6  ;;  %v645_v12 = vrot.slane %v636_v3, %v644_v7  ;;  %v635_v15 = vld [vmem:[#allocation2 + $0x38] sm:$0xff] }
 0x138   : > { %v648_v16 = vadd.f32 %v641_v11, %v628_v4  ;;  %v649_v17 = vadd.f32 %v645_v12, %v629_v5  ;;  %v650_v18 = vadd.f32 %v641_v11, %v630_v8  ;;  %v651_v19 = vadd.f32 %v645_v12, %v631_v9 }
 0x139   : > { %v652_v20 = vadd.f32 %v641_v11, %v632_v10  ;;  %v653_v21 = vadd.f32 %v645_v12, %v633_v13  ;;  %v654_v22 = vadd.f32 %v641_v11, %v634_v14  ;;  %v655_v23 = vadd.f32 %v645_v12, %v635_v15 }
 0x13a   : > { %v656_v24 = vmax.f32 %v648_v16, 0.0  ;;  %v657_v25 = vmax.f32 %v649_v17, 0.0  ;;  %v658_v26 = vmax.f32 %v650_v18, 0.0  ;;  %v659_v27 = vmax.f32 %v651_v19, 0.0 }
 0x13b   : > { %v660_v28 = vmax.f32 %v652_v20, 0.0  ;;  %v661_v29 = vmax.f32 %v653_v21, 0.0  ;;  %v662_v30 = vmax.f32 %v654_v22, 0.0  ;;  %v663_v31 = vmax.f32 %v655_v23, 0.0 }
 0x13c   : > { %v875_v32 = vpack.c.bf16 %v657_v25, %v656_v24  ;;  %v876_v33 = vpack.c.bf16 %v659_v27, %v658_v26 }
 0x13d   : > { %v877_v34 = vpack.c.bf16 %v661_v29, %v660_v28  ;;  %v878_v35 = vpack.c.bf16 %v663_v31, %v662_v30 }
 0x13e   : > { %688 = vst [vmem:[%s1192_s3] sm:$0xff] %v875_v32  ;;  %689 = vst [vmem:[%s1192_s3 + $0x8] sm:$0xff] %v876_v33 }
 0x13f   : > { %690 = vst [vmem:[%s1192_s3 + $0x10] sm:$0xff] %v877_v34  ;;  %691 = vst [vmem:[%s1192_s3 + $0x18] sm:$0xff] %v878_v35 }
 0x140 PF: > { %s13_s16 = sadd.s32 1, %s1044_s16   ;;  %s1193_s12 = smov %s1032_s13 }
 0x141   : > { %p10_p12 = scmp.ge.s32.totalorder %s13_s16, 4   ;;  %s1194_s13 = smov %s1102_s20 }
 0x142   : > { %s1195_s14 = smov %s1040_s15  ;;  %s1196_s15 = smov %s1198_s17 }
 0x143   :  { %12 = sbr.rel (!%p10_p12) target bundleno = 3 (0x3), region = 119 }

// kernel: resnet50_forward.81
= control target key start
LH: loop header
LB: loop body
LE: loop exit
PB: predicated region body
PF: predicated region fallthrough
CT: control target
= control target key end

     0   :  { %s851_s12 = smov 0   ;;  %s853_s13 = smov 0   ;;  %s933_s0 = inlined_call_operand.vmem [shape: bf16[8,2304], index: 0, kind: input, shape index: {}]   ;;  %s934_s1 = inlined_call_operand.vmem [shape: bf16[2304,256], index: 1, kind: input, shape index: {}]   ;;  %s935_s2 = inlined_call_operand.vmem [shape: f32[1,256], index: 2, kind: input, shape index: {}]   ;;  %s936_s3 = inlined_call_operand.vmem [shape: bf16[8,256], index: 3, kind: output, shape index: {}]  }
   0x1   :  { %s855_s14 = smov 0  }
   0x2 LB: > { %s25_s15 = sadd.s32 1, %s824_s13  ;;  %p682_p0 = scmp.ge.s32.totalorder %s828_s14, 1  ;;  %s828_s14 = sphi %s855_s14, %s13_s14   ;;  %s824_s13 = sphi %s853_s13, %s938_s13   ;;  %s820_s12 = sphi %s851_s12, %s937_s12  }
   0x3   : > { %p26_p1 = scmp.ge.s32.totalorder %s25_s15, 9  ;;  %p194_p2 = scmp.lt.s32.totalorder %s828_s14, 10 }
   0x5   : > { %s940_s15 = smov (%p26_p1, %s25_s15), 0  ;;  %p195_p3 = pnand %p682_p0, %p194_p2 }
   0x6   : > { %s683_s16 = sshll.u32 (!%p195_p3), %s820_s12, 1  ;;  %s685_s17 = sshll.u32 (!%p195_p3), %s820_s12, 5 }
   0x7   : > { %198 = sbr.rel (%p195_p3) target bundleno = 301 (0x12d), region = 32  ;;  %p243_p4 = scmp.lt.s32.totalorder (!%p195_p3), %s683_s16, 17 }
   0x8   : > { %p252_p5 = scmp.lt.s32.totalorder (!%p195_p3), %s685_s17, 287  ;;  %p688_p6 = scmp.ne.s32.totalorder (!%p195_p3), %s820_s12, 0 }
   0xc   : > { %s942_s16 = smov (!%p243_p4, %s683_s16), 17  ;;  %s944_s17 = smov (!%p252_p5, %s685_s17), 287 }
   0xd   : > { %s684_s18 = sshll.u32 %s942_s16, 2  ;;  %s729_s22 = sshll.u32 %s944_s17, 3 }
   0xe   : > { %s876_s21 = scalar_lea.vmem %s933_s0, %s684_s18  ;;  %s881_s25 = scalar_lea.vmem %s934_s1, %s729_s22 }
   0xf   : > { %280 = sbr.rel (%p688_p6) target bundleno = 22 (0x16), region = 36 }
  0x14   : > { %v830_v0 = vmov 0.0  }
  0x15   : > { %281 = vst [vmem:[#allocation2] sm:$0xff] %v830_v0  ;;  %282 = vst [vmem:[#allocation2 + $0x8] sm:$0xff] %v830_v0 }
  0x16 PF: > { %v756_v1 = vld [vmem:[%s881_s25 + $0x74] ss:$8 sps:$4 sm:$0xff]   ;;  %v758_v2 = vld [vmem:[%s881_s25 + $0x70] ss:$8 sps:$4 sm:$0xff]   ;;  %v759_v3 = vld [vmem:[%s881_s25 + $0x64] ss:$8 sps:$4 sm:$0xff]  }
  0x17   : > { %485 = vmatprep.subr.bf16.mxu0 %v756_v1  ;;  %v761_v4 = vld [vmem:[%s881_s25 + $0x60] ss:$8 sps:$4 sm:$0xff]   ;;  %v762_v5 = vld [vmem:[%s881_s25 + $0x54] ss:$8 sps:$4 sm:$0xff]   ;;  %v764_v6 = vld [vmem:[%s881_s25 + $0x50] ss:$8 sps:$4 sm:$0xff]  }
  0x18   : > { %486 = vmatpush1.bf16.msra.mxu0 %v758_v2  ;;  %v765_v7 = vld [vmem:[%s881_s25 + $0x44] ss:$8 sps:$4 sm:$0xff]   ;;  %v767_v8 = vld [vmem:[%s881_s25 + $0x40] ss:$8 sps:$4 sm:$0xff]   ;;  %v768_v9 = vld [vmem:[%s881_s25 + $0x34] ss:$8 sps:$4 sm:$0xff]  }
  0x19   : > { %487 = vmatprep.subr.bf16.mxu0 %v759_v3  ;;  %v770_v10 = vld [vmem:[%s881_s25 + $0x30] ss:$8 sps:$4 sm:$0xff]   ;;  %v771_v11 = vld [vmem:[%s881_s25 + $0x24] ss:$8 sps:$4 sm:$0xff]   ;;  %v773_v12 = vld [vmem:[%s881_s25 + $0x20] ss:$8 sps:$4 sm:$0xff]  }
  0x1a   : > { %v774_v13 = vld [vmem:[%s881_s25 + $0x14] ss:$8 sps:$4 sm:$0xff]   ;;  %v285_v14 = vld [vmem:[%s876_s21] sm:$0xff]  ;;  %v776_v16 = vld [vmem:[%s881_s25 + $0x10] ss:$8 sps:$4 sm:$0xff]   ;;  %p723_p7 = scmp.ne.s32.totalorder %s820_s12, 8 }
  0x1b   : > { %v690_v15 = vcombine.high %v285_v14, %v285_v14  ;;  %v777_v17 = vld [vmem:[%s881_s25 + $0x4] ss:$8 sps:$4 sm:$0xff]   ;;  %v779_v18 = vld [vmem:[%s881_s25] ss:$8 sps:$4 sm:$0xff]   ;;  %v780_v19 = vld [vmem:[%s881_s25 + $0xf4] ss:$8 sps:$4 sm:$0xff]   ;;  %v689_v35 = vcombine.low %v285_v14, %v285_v14 }
  0x1c   : > { %488 = vmatpush1.bf16.msra.mxu0 %v761_v4  ;;  %v782_v20 = vld [vmem:[%s881_s25 + $0xf0] ss:$8 sps:$4 sm:$0xff]   ;;  %v783_v21 = vld [vmem:[%s881_s25 + $0xe4] ss:$8 sps:$4 sm:$0xff]   ;;  %v785_v22 = vld [vmem:[%s881_s25 + $0xe0] ss:$8 sps:$4 sm:$0xff]  }
  0x1d   : > { %489 = vmatprep.subr.bf16.mxu0 %v762_v5  ;;  %517 = vmatprep.mubr.bf16.mxu0 %v690_v15  ;;  %v786_v23 = vld [vmem:[%s881_s25 + $0xd4] ss:$8 sps:$4 sm:$0xff]   ;;  %v788_v24 = vld [vmem:[%s881_s25 + $0xd0] ss:$8 sps:$4 sm:$0xff]   ;;  %v789_v25 = vld [vmem:[%s881_s25 + $0xc4] ss:$8 sps:$4 sm:$0xff]  }
  0x1e   : > { %v791_v26 = vld [vmem:[%s881_s25 + $0xc0] ss:$8 sps:$4 sm:$0xff]   ;;  %v792_v27 = vld [vmem:[%s881_s25 + $0xb4] ss:$8 sps:$4 sm:$0xff]   ;;  %v794_v28 = vld [vmem:[%s881_s25 + $0xb0] ss:$8 sps:$4 sm:$0xff]  }
  0x1f   : > { %v795_v29 = vld [vmem:[%s881_s25 + $0xa4] ss:$8 sps:$4 sm:$0xff]   ;;  %v797_v30 = vld [vmem:[%s881_s25 + $0xa0] ss:$8 sps:$4 sm:$0xff]   ;;  %v798_v31 = vld [vmem:[%s881_s25 + $0x94] ss:$8 sps:$4 sm:$0xff]  }
  0x20   : > { %490 = vmatpush1.bf16.msra.mxu0 %v764_v6  ;;  %v800_v32 = vld [vmem:[%s881_s25 + $0x90] ss:$8 sps:$4 sm:$0xff]   ;;  %v801_v33 = vld [vmem:[%s881_s25 + $0x84] ss:$8 sps:$4 sm:$0xff]   ;;  %v803_v34 = vld [vmem:[%s881_s25 + $0x80] ss:$8 sps:$4 sm:$0xff]  }
  0x21   : > { %491 = vmatprep.subr.bf16.mxu0 %v765_v7  ;;  %v283_v36 = vld [vmem:[#allocation2] sm:$0xff]  ;;  %v284_v38 = vld [vmem:[#allocation2 + $0x8] sm:$0xff] }
  0x24   : > { %492 = vmatpush1.bf16.msra.mxu0 %v767_v8 }
  0x25   : > { %493 = vmatprep.subr.bf16.mxu0 %v768_v9 }
  0x28   : > { %494 = vmatpush1.bf16.msra.mxu0 %v770_v10 }
  0x29   : > { %495 = vmatprep.subr.bf16.mxu0 %v771_v11 }
  0x2c   : > { %496 = vmatpush1.bf16.msra.mxu0 %v773_v12 }
  0x2d   : > { %497 = vmatprep.subr.bf16.mxu0 %v774_v13 }
  0x30   : > { %498 = vmatpush1.bf16.msra.mxu0 %v776_v16 }
  0x31   : > { %499 = vmatprep.subr.bf16.mxu0 %v777_v17 }
  0x34   : > { %500 = vmatpush1.bf16.msra.mxu0 %v779_v18 }
  0x35   : > { %501 = vmatprep.subr.bf16.mxu0 %v780_v19 }
  0x38   : > { %502 = vmatpush2.bf16.msra.mxu0 %v782_v20 }
  0x39   : > { %503 = vmatprep.subr.bf16.mxu0 %v783_v21 }
  0x3c   : > { %504 = vmatpush2.bf16.msra.mxu0 %v785_v22 }
  0x3d   : > { %505 = vmatprep.subr.bf16.mxu0 %v786_v23 }
  0x40   : > { %506 = vmatpush2.bf16.msra.mxu0 %v788_v24 }
  0x41   : > { %507 = vmatprep.subr.bf16.mxu0 %v789_v25 }
  0x44   : > { %508 = vmatpush2.bf16.msra.mxu0 %v791_v26 }
  0x45   : > { %509 = vmatprep.subr.bf16.mxu0 %v792_v27 }
  0x48   : > { %510 = vmatpush2.bf16.msra.mxu0 %v794_v28 }
  0x49   : > { %511 = vmatprep.subr.bf16.mxu0 %v795_v29 }
  0x4c   : > { %512 = vmatpush2.bf16.msra.mxu0 %v797_v30 }
  0x4d   : > { %513 = vmatprep.subr.bf16.mxu0 %v798_v31 }
  0x50   : > { %514 = vmatpush2.bf16.msra.mxu0 %v800_v32 }
  0x51   : > { %515 = vmatprep.subr.bf16.mxu0 %v801_v33 }
  0x54   : > { %516 = vmatpush2.bf16.msra.mxu0 %v803_v34 }
  0x57   : > { %518 = vmatmul.mubr.bf16.vlgmr.msra.gmra.mxu0 %v689_v35 }
 0x117   : > { %v519_v37 = vpop.f32.mrf.mxu0 }
 0x118   : > { %v526_v39 = vadd.f32 %v519_v37, %v283_v36 }
 0x119   : > { %v521_v40 = vpop.f32.mrf.mxu0  ;;  %533 = sbr.rel (%p723_p7) target bundleno = 301 (0x12d), region = 40 }
 0x11a   : > { %528 = vst [vmem:[#allocation2] sm:$0xff] %v526_v39  ;;  %v527_v41 = vadd.f32 %v521_v40, %v284_v38 }
 0x11b   : > { %v523_v42 = vpop.f32.mrf.mxu0 }
 0x11c   : > { %529 = vst [vmem:[#allocation2 + $0x8] sm:$0xff] %v527_v41 }
 0x11d   : > { %v524_v43 = vpop.f32.mrf.mxu0 }
 0x11e   : > { %v538_v44 = vlaneseq  ;;  %v536_v46 = vld [vmem:[%s935_s2] sm:$0x3] }
 0x120   : > { %v539_v45 = vshrl.u32 %v538_v44, 7 }
 0x121   : > { %v534_v49 = vld [vmem:[#allocation2] sm:$0xff] }
 0x122   : > { %v540_v47 = vsub.s32 0, %v539_v45  ;;  %v544_v48 = vsub.s32 1, %v539_v45 }
 0x123   : > { %v535_v50 = vld [vmem:[#allocation2 + $0x8] sm:$0xff] }
 0x124   : > { %v541_v51 = vrot.slane %v536_v46, %v540_v47  ;;  %v545_v52 = vrot.slane %v536_v46, %v544_v48 }
 0x126   : > { %v548_v53 = vadd.f32 %v541_v51, %v534_v49  ;;  %v549_v54 = vadd.f32 %v545_v52, %v535_v50 }
 0x128   : > { %v550_v55 = vmax.f32 %v548_v53, 0.0  ;;  %v551_v56 = vmax.f32 %v549_v54, 0.0 }
 0x12a   : > { %v730_v57 = vpack.c.bf16 %v551_v56, %v550_v55 }
 0x12c   : > { %560 = vst [vmem:[%s936_s3] sm:$0xff] %v730_v57 }
 0x12d PF: > { %s13_s14 = sadd.s32 1, %s828_s14   ;;  %s937_s12 = smov %s824_s13 }
 0x12e   : > { %p10_p8 = scmp.ge.s32.totalorder %s13_s14, 11   ;;  %s938_s13 = smov %s940_s15 }
 0x130   :  { %12 = sbr.rel (!%p10_p8) target bundleno = 2 (0x2), region = 76 }

// kernel: resnet50_forward.83
= control target key start
LH: loop header
LB: loop body
LE: loop exit
PB: predicated region body
PF: predicated region fallthrough
CT: control target
= control target key end

     0   :  { %s1124_s15 = smov 0   ;;  %s1126_s16 = smov 0   ;;  %s1306_s0 = inlined_call_operand.vmem [shape: bf16[8,256], index: 0, kind: input, shape index: {}]   ;;  %s1307_s1 = inlined_call_operand.vmem [shape: bf16[256,1024], index: 1, kind: input, shape index: {}]   ;;  %s1308_s2 = inlined_call_operand.vmem [shape: f32[1,1024], index: 2, kind: input, shape index: {}]   ;;  %s1309_s3 = inlined_call_operand.vmem [shape: bf16[8,1024], index: 3, kind: input, shape index: {}]   ;;  %s1310_s4 = inlined_call_operand.vmem [shape: bf16[8,1024], index: 4, kind: output, shape index: {}]  }
   0x1   :  { %s1128_s17 = smov 0   ;;  %s1130_s18 = smov 0  }
   0x2   :  { %s1132_s19 = smov 0  }
   0x3 LB: > { %s29_s20 = sadd.s32 1, %s1093_s18  ;;  %p77_p1 = scmp.ne.s32.totalorder %s1085_s16, %s1081_s15  ;;  %s1097_s19 = sphi %s1132_s19, %s14_s19   ;;  %s1093_s18 = sphi %s1130_s18, %s1314_s18   ;;  %s1089_s17 = sphi %s1128_s17, %s1313_s17   ;;  %s1085_s16 = sphi %s1126_s16, %s1312_s16   ;;  %s1081_s15 = sphi %s1124_s15, %s1311_s15  }
   0x4   : > { %p31_p0 = scmp.ge.s32.totalorder %s29_s20, 4  ;;  %p78_p2 = scmp.eq.s32.totalorder %s1097_s19, 0 }
   0x5   : > { %s70_s22 = sadd.s32 1, %s1085_s16  ;;  %p919_p5 = scmp.ge.s32.totalorder %s1097_s19, 4 }
   0x6   : > { %s1316_s20 = smov (%p31_p0, %s29_s20), 0  ;;  %p79_p3 = por %p78_p2, %p77_p1 }
   0x7   : > { %s66_s21 = ssub.s32 %s1093_s18, %s1316_s20  ;;  %198 = sbr.rel (%p919_p5) target bundleno = 48 (0x30), region = 20 }
   0x8   : > { %p68_p4 = scmp.eq.s32.totalorder %s66_s21, 0 }
   0xa   : > { %s1159_s23 = scalar_select %p68_p4, %s1085_s16, %s70_s22  }
   0xc   : > { %201 = sbr.rel (!%p79_p3) target bundleno = 48 (0x30), region = 24  ;;  %s203_s24 = sand.u32 (%p79_p3), 1, %s1085_s16  }
   0xd   : > { %s967_s25 = sshll.u32 (%p79_p3), %s1093_s18, 3  ;;  %s920_s26 = sshll.u32 (%p79_p3), %s203_s24, 8 }
   0xe   : > { %s1167_s29 = scalar_lea.vmem (%p79_p3), %s1307_s1, %s967_s25  ;;  %s1172_s30 = scalar_lea.vmem (%p79_p3), [#allocation3], %s920_s26 }
   0xf   : > { %v302_v0 = vld [vmem:[%s1167_s29] sm:$0xff] (%p79_p3) }
  0x10   : > { %v304_v1 = vld [vmem:[%s1167_s29 + $0x20] sm:$0xff] (%p79_p3)  ;;  %303 = vst [vmem:[%s1172_s30] sm:$0xff] (%p79_p3), %v302_v0 }
  0x11   : > { %v306_v2 = vld [vmem:[%s1167_s29 + $0x40] sm:$0xff]  ;;  %305 = vst [vmem:[%s1172_s30 + $0x8] sm:$0xff] %v304_v1 }
  0x12   : > { %307 = vst [vmem:[%s1172_s30 + $0x10] sm:$0xff] %v306_v2  ;;  %v308_v3 = vld [vmem:[%s1167_s29 + $0x60] sm:$0xff] }
  0x13   : > { %v310_v4 = vld [vmem:[%s1167_s29 + $0x80] sm:$0xff]  ;;  %309 = vst [vmem:[%s1172_s30 + $0x18] sm:$0xff] %v308_v3 }
  0x14   : > { %v312_v5 = vld [vmem:[%s1167_s29 + $0xa0] sm:$0xff]  ;;  %311 = vst [vmem:[%s1172_s30 + $0x20] sm:$0xff] %v310_v4 }
  0x15   : > { %313 = vst [vmem:[%s1172_s30 + $0x28] sm:$0xff] %v312_v5  ;;  %v314_v6 = vld [vmem:[%s1167_s29 + $0xc0] sm:$0xff] }
  0x16   : > { %v316_v7 = vld [vmem:[%s1167_s29 + $0xe0] sm:$0xff]  ;;  %315 = vst [vmem:[%s1172_s30 + $0x30] sm:$0xff] %v314_v6 }
  0x17   : > { %v318_v8 = vld [vmem:[%s1167_s29 + $0x100] sm:$0xff]  ;;  %317 = vst [vmem:[%s1172_s30 + $0x38] sm:$0xff] %v316_v7 }
  0x18   : > { %319 = vst [vmem:[%s1172_s30 + $0x40] sm:$0xff] %v318_v8  ;;  %v320_v9 = vld [vmem:[%s1167_s29 + $0x120] sm:$0xff] }
  0x19   : > { %v322_v10 = vld [vmem:[%s1167_s29 + $0x140] sm:$0xff]  ;;  %321 = vst [vmem:[%s1172_s30 + $0x48] sm:$0xff] %v320_v9 }
  0x1a   : > { %v324_v11 = vld [vmem:[%s1167_s29 + $0x160] sm:$0xff]  ;;  %323 = vst [vmem:[%s1172_s30 + $0x50] sm:$0xff] %v322_v10 }
  0x1b   : > { %325 = vst [vmem:[%s1172_s30 + $0x58] sm:$0xff] %v324_v11  ;;  %v326_v12 = vld [vmem:[%s1167_s29 + $0x180] sm:$0xff] }
  0x1c   : > { %v328_v13 = vld [vmem:[%s1167_s29 + $0x1a0] sm:$0xff]  ;;  %327 = vst [vmem:[%s1172_s30 + $0x60] sm:$0xff] %v326_v12 }
  0x1d   : > { %v330_v14 = vld [vmem:[%s1167_s29 + $0x1c0] sm:$0xff]  ;;  %329 = vst [vmem:[%s1172_s30 + $0x68] sm:$0xff] %v328_v13 }
  0x1e   : > { %331 = vst [vmem:[%s1172_s30 + $0x70] sm:$0xff] %v330_v14  ;;  %v332_v15 = vld [vmem:[%s1167_s29 + $0x1e0] sm:$0xff] }
  0x1f   : > { %v334_v16 = vld [vmem:[%s1167_s29 + $0x200] sm:$0xff]  ;;  %333 = vst [vmem:[%s1172_s30 + $0x78] sm:$0xff] %v332_v15 }
  0x20   : > { %v336_v17 = vld [vmem:[%s1167_s29 + $0x220] sm:$0xff]  ;;  %335 = vst [vmem:[%s1172_s30 + $0x80] sm:$0xff] %v334_v16 }
  0x21   : > { %337 = vst [vmem:[%s1172_s30 + $0x88] sm:$0xff] %v336_v17  ;;  %v338_v18 = vld [vmem:[%s1167_s29 + $0x240] sm:$0xff] }
  0x22   : > { %v340_v19 = vld [vmem:[%s1167_s29 + $0x260] sm:$0xff]  ;;  %339 = vst [vmem:[%s1172_s30 + $0x90] sm:$0xff] %v338_v18 }
  0x23   : > { %v342_v20 = vld [vmem:[%s1167_s29 + $0x280] sm:$0xff]  ;;  %341 = vst [vmem:[%s1172_s30 + $0x98] sm:$0xff] %v340_v19 }
  0x24   : > { %343 = vst [vmem:[%s1172_s30 + $0xa0] sm:$0xff] %v342_v20  ;;  %v344_v21 = vld [vmem:[%s1167_s29 + $0x2a0] sm:$0xff] }
  0x25   : > { %v346_v22 = vld [vmem:[%s1167_s29 + $0x2c0] sm:$0xff]  ;;  %345 = vst [vmem:[%s1172_s30 + $0xa8] sm:$0xff] %v344_v21 }
  0x26   : > { %v348_v23 = vld [vmem:[%s1167_s29 + $0x2e0] sm:$0xff]  ;;  %347 = vst [vmem:[%s1172_s30 + $0xb0] sm:$0xff] %v346_v22 }
  0x27   : > { %349 = vst [vmem:[%s1172_s30 + $0xb8] sm:$0xff] %v348_v23  ;;  %v350_v24 = vld [vmem:[%s1167_s29 + $0x300] sm:$0xff] }
  0x28   : > { %v352_v25 = vld [vmem:[%s1167_s29 + $0x320] sm:$0xff]  ;;  %351 = vst [vmem:[%s1172_s30 + $0xc0] sm:$0xff] %v350_v24 }
  0x29   : > { %v354_v26 = vld [vmem:[%s1167_s29 + $0x340] sm:$0xff]  ;;  %353 = vst [vmem:[%s1172_s30 + $0xc8] sm:$0xff] %v352_v25 }
  0x2a   : > { %355 = vst [vmem:[%s1172_s30 + $0xd0] sm:$0xff] %v354_v26  ;;  %v356_v27 = vld [vmem:[%s1167_s29 + $0x360] sm:$0xff] }
  0x2b   : > { %v358_v28 = vld [vmem:[%s1167_s29 + $0x380] sm:$0xff]  ;;  %357 = vst [vmem:[%s1172_s30 + $0xd8] sm:$0xff] %v356_v27 }
  0x2c   : > { %v360_v29 = vld [vmem:[%s1167_s29 + $0x3a0] sm:$0xff]  ;;  %359 = vst [vmem:[%s1172_s30 + $0xe0] sm:$0xff] %v358_v28 }
  0x2d   : > { %361 = vst [vmem:[%s1172_s30 + $0xe8] sm:$0xff] %v360_v29  ;;  %v362_v30 = vld [vmem:[%s1167_s29 + $0x3c0] sm:$0xff] }
  0x2e   : > { %v364_v31 = vld [vmem:[%s1167_s29 + $0x3e0] sm:$0xff]  ;;  %363 = vst [vmem:[%s1172_s30 + $0xf0] sm:$0xff] %v362_v30 }
  0x2f   : > { %365 = vst [vmem:[%s1172_s30 + $0xf8] sm:$0xff] %v364_v31 }
  0x30 PF: > { %p923_p6 = scmp.ge.s32.totalorder %s1097_s19, 1  ;;  %p391_p7 = scmp.lt.s32.totalorder %s1097_s19, 5 }
  0x32   : > { %p392_p8 = pnand %p923_p6, %p391_p7 }
  0x33   : > { %s398_s5 = sand.u32 (!%p392_p8), 1, %s1081_s15   ;;  %s925_s10 = sshll.u32 (!%p392_p8), %s1089_s17, 1 }
  0x34   : > { %395 = sbr.rel (%p392_p8) target bundleno = 326 (0x146), region = 70  ;;  %s924_s8 = sshll.u32 (!%p392_p8), %s398_s5, 8 }
  0x35   : > { %s1245_s9 = scalar_lea.vmem (!%p392_p8), [#allocation3], %s924_s8  ;;  %p462_p9 = scmp.lt.s32.totalorder (!%p392_p8), %s925_s10, 7 }
  0x39   : > { %v1241_v32 = vld [vmem:[%s1306_s0] sm:$0xff]  ;;  %v1009_v34 = vld [vmem:[%s1245_s9 + $0x74] ss:$8 sps:$4 sm:$0xff]   ;;  %v1011_v35 = vld [vmem:[%s1245_s9 + $0x70] ss:$8 sps:$4 sm:$0xff]   ;;  %v746_v3 = vlaneseq  ;;  %s1318_s10 = smov (!%p462_p9, %s925_s10), 7 }
  0x3a   : > { %v931_v33 = vcombine.high %v1241_v32, %v1241_v32  ;;  %694 = vmatprep.subr.bf16.mxu0 %v1009_v34  ;;  %v1012_v36 = vld [vmem:[%s1245_s9 + $0x64] ss:$8 sps:$4 sm:$0xff]   ;;  %v1014_v37 = vld [vmem:[%s1245_s9 + $0x60] ss:$8 sps:$4 sm:$0xff]   ;;  %v1015_v38 = vld [vmem:[%s1245_s9 + $0x54] ss:$8 sps:$4 sm:$0xff]   ;;  %v930_v2 = vcombine.low %v1241_v32, %v1241_v32  ;;  %s464_s14 = scalar_lea.vmem %s1308_s2, %s1318_s10 }
  0x3b   : > { %695 = vmatpush1.bf16.msra.mxu0 %v1011_v35  ;;  %v1017_v39 = vld [vmem:[%s1245_s9 + $0x50] ss:$8 sps:$4 sm:$0xff]   ;;  %v1018_v40 = vld [vmem:[%s1245_s9 + $0x44] ss:$8 sps:$4 sm:$0xff]   ;;  %v1020_v41 = vld [vmem:[%s1245_s9 + $0x40] ss:$8 sps:$4 sm:$0xff]  }
  0x3c   : > { %726 = vmatprep.mubr.bf16.mxu0 %v931_v33  ;;  %696 = vmatprep.subr.bf16.mxu0 %v1012_v36  ;;  %v1021_v42 = vld [vmem:[%s1245_s9 + $0x34] ss:$8 sps:$4 sm:$0xff]   ;;  %v1023_v43 = vld [vmem:[%s1245_s9 + $0x30] ss:$8 sps:$4 sm:$0xff]   ;;  %v1024_v44 = vld [vmem:[%s1245_s9 + $0x24] ss:$8 sps:$4 sm:$0xff]  }
  0x3d   : > { %v1026_v45 = vld [vmem:[%s1245_s9 + $0x20] ss:$8 sps:$4 sm:$0xff]   ;;  %v1027_v46 = vld [vmem:[%s1245_s9 + $0x14] ss:$8 sps:$4 sm:$0xff]   ;;  %v1029_v47 = vld [vmem:[%s1245_s9 + $0x10] ss:$8 sps:$4 sm:$0xff]  }
  0x3e   : > { %v1030_v48 = vld [vmem:[%s1245_s9 + $0x4] ss:$8 sps:$4 sm:$0xff]   ;;  %v1032_v49 = vld [vmem:[%s1245_s9] ss:$8 sps:$4 sm:$0xff]   ;;  %v1033_v50 = vld [vmem:[%s1245_s9 + $0xf4] ss:$8 sps:$4 sm:$0xff]  }
  0x3f   : > { %697 = vmatpush1.bf16.msra.mxu0 %v1014_v37  ;;  %v1035_v51 = vld [vmem:[%s1245_s9 + $0xf0] ss:$8 sps:$4 sm:$0xff]   ;;  %v1036_v52 = vld [vmem:[%s1245_s9 + $0xe4] ss:$8 sps:$4 sm:$0xff]   ;;  %v1038_v53 = vld [vmem:[%s1245_s9 + $0xe0] ss:$8 sps:$4 sm:$0xff]  }
  0x40   : > { %698 = vmatprep.subr.bf16.mxu0 %v1015_v38  ;;  %v1039_v54 = vld [vmem:[%s1245_s9 + $0xd4] ss:$8 sps:$4 sm:$0xff]   ;;  %v1041_v55 = vld [vmem:[%s1245_s9 + $0xd0] ss:$8 sps:$4 sm:$0xff]   ;;  %v1042_v56 = vld [vmem:[%s1245_s9 + $0xc4] ss:$8 sps:$4 sm:$0xff]  }
  0x41   : > { %v1044_v57 = vld [vmem:[%s1245_s9 + $0xc0] ss:$8 sps:$4 sm:$0xff]   ;;  %v1045_v58 = vld [vmem:[%s1245_s9 + $0xb4] ss:$8 sps:$4 sm:$0xff]   ;;  %v1047_v59 = vld [vmem:[%s1245_s9 + $0xb0] ss:$8 sps:$4 sm:$0xff]  }
  0x42   : > { %v1048_v60 = vld [vmem:[%s1245_s9 + $0xa4] ss:$8 sps:$4 sm:$0xff]   ;;  %v1050_v61 = vld [vmem:[%s1245_s9 + $0xa0] ss:$8 sps:$4 sm:$0xff]   ;;  %v1051_v62 = vld [vmem:[%s1245_s9 + $0x94] ss:$8 sps:$4 sm:$0xff]  }
  0x43   : > { %699 = vmatpush1.bf16.msra.mxu0 %v1017_v39  ;;  %v1053_v63 = vld [vmem:[%s1245_s9 + $0x90] ss:$8 sps:$4 sm:$0xff]   ;;  %v1054_v0 = vld [vmem:[%s1245_s9 + $0x84] ss:$8 sps:$4 sm:$0xff]   ;;  %v1056_v1 = vld [vmem:[%s1245_s9 + $0x80] ss:$8 sps:$4 sm:$0xff]  }
  0x44   : > { %700 = vmatprep.subr.bf16.mxu0 %v1018_v40  ;;  %v747_v4 = vshrl.u32 %v746_v3, 7  ;;  %s927_s11 = sshll.u32 %s1318_s10, 2  ;;  %v744_v6 = vld [vmem:[%s464_s14] sm:$0x3] }
  0x45   : > { %s474_s22 = scalar_lea.vmem %s1309_s3, %s927_s11  ;;  %s484_s25 = scalar_lea.vmem %s1310_s4, %s927_s11 }
  0x46   : > { %v748_v5 = vsub.s32 0, %v747_v4  ;;  %v752_v7 = vsub.s32 1, %v747_v4  ;;  %v758_v8 = vld [vmem:[%s474_s22] sm:$0xff] }
  0x47   : > { %701 = vmatpush1.bf16.msra.mxu0 %v1020_v41  ;;  %v759_v10 = vunpack.c.l.bf16 %v758_v8  ;;  %v760_v14 = vunpack.c.h.bf16 %v758_v8 }
  0x48   : > { %702 = vmatprep.subr.bf16.mxu0 %v1021_v42  ;;  %v749_v9 = vrot.slane %v744_v6, %v748_v5  ;;  %v753_v11 = vrot.slane %v744_v6, %v752_v7 }
  0x4b   : > { %703 = vmatpush1.bf16.msra.mxu0 %v1023_v43 }
  0x4c   : > { %704 = vmatprep.subr.bf16.mxu0 %v1024_v44 }
  0x4f   : > { %705 = vmatpush1.bf16.msra.mxu0 %v1026_v45 }
  0x50   : > { %706 = vmatprep.subr.bf16.mxu0 %v1027_v46 }
  0x53   : > { %707 = vmatpush1.bf16.msra.mxu0 %v1029_v47 }
  0x54   : > { %708 = vmatprep.subr.bf16.mxu0 %v1030_v48 }
  0x57   : > { %709 = vmatpush1.bf16.msra.mxu0 %v1032_v49 }
  0x58   : > { %710 = vmatprep.subr.bf16.mxu0 %v1033_v50 }
  0x5b   : > { %711 = vmatpush2.bf16.msra.mxu0 %v1035_v51 }
  0x5c   : > { %712 = vmatprep.subr.bf16.mxu0 %v1036_v52 }
  0x5f   : > { %713 = vmatpush2.bf16.msra.mxu0 %v1038_v53 }
  0x60   : > { %714 = vmatprep.subr.bf16.mxu0 %v1039_v54 }
  0x63   : > { %715 = vmatpush2.bf16.msra.mxu0 %v1041_v55 }
  0x64   : > { %716 = vmatprep.subr.bf16.mxu0 %v1042_v56 }
  0x67   : > { %717 = vmatpush2.bf16.msra.mxu0 %v1044_v57 }
  0x68   : > { %718 = vmatprep.subr.bf16.mxu0 %v1045_v58 }
  0x6b   : > { %719 = vmatpush2.bf16.msra.mxu0 %v1047_v59 }
  0x6c   : > { %720 = vmatprep.subr.bf16.mxu0 %v1048_v60 }
  0x6f   : > { %721 = vmatpush2.bf16.msra.mxu0 %v1050_v61 }
  0x70   : > { %722 = vmatprep.subr.bf16.mxu0 %v1051_v62 }
  0x73   : > { %723 = vmatpush2.bf16.msra.mxu0 %v1053_v63 }
  0x74   : > { %724 = vmatprep.subr.bf16.mxu0 %v1054_v0 }
  0x77   : > { %725 = vmatpush2.bf16.msra.mxu0 %v1056_v1 }
  0x7a   : > { %727 = vmatmul.mubr.bf16.vlgmr.msra.gmra.mxu0 %v930_v2 }
 0x13a   : > { %v728_v12 = vpop.f32.mrf.mxu0 }
 0x13b   : > { %v756_v13 = vadd.f32 %v749_v9, %v728_v12 }
 0x13c   : > { %v730_v15 = vpop.f32.mrf.mxu0 }
 0x13d   : > { %v761_v16 = vadd.f32 %v759_v10, %v756_v13  ;;  %v757_v17 = vadd.f32 %v753_v11, %v730_v15 }
 0x13e   : > { %v732_v18 = vpop.f32.mrf.mxu0 }
 0x13f   : > { %v762_v19 = vadd.f32 %v760_v14, %v757_v17  ;;  %v763_v21 = vmax.f32 %v761_v16, 0.0 }
 0x140   : > { %v733_v20 = vpop.f32.mrf.mxu0 }
 0x141   : > { %v764_v22 = vmax.f32 %v762_v19, 0.0 }
 0x143   : > { %v968_v23 = vpack.c.bf16 %v764_v22, %v763_v21 }
 0x145   : > { %773 = vst [vmem:[%s484_s25] sm:$0xff] %v968_v23 }
 0x146 PF: > { %s14_s19 = sadd.s32 1, %s1097_s19   ;;  %s1311_s15 = smov %s1085_s16 }
 0x147   : > { %p11_p10 = scmp.ge.s32.totalorder %s14_s19, 6   ;;  %s1312_s16 = smov %s1159_s23 }
 0x148   : > { %s1313_s17 = smov %s1093_s18  ;;  %s1314_s18 = smov %s1316_s20 }
 0x149   :  { %13 = sbr.rel (!%p11_p10) target bundleno = 3 (0x3), region = 126 }

// kernel: resnet50_forward.82
= control target key start
LH: loop header
LB: loop body
LE: loop exit
PB: predicated region body
PF: predicated region fallthrough
CT: control target
= control target key end

     0   :  { %s1069_s12 = smov 0   ;;  %s1071_s13 = smov 0   ;;  %s1283_s0 = inlined_call_operand.vmem [shape: bf16[8,512], index: 0, kind: input, shape index: {}]   ;;  %s1284_s1 = inlined_call_operand.vmem [shape: bf16[512,1024], index: 1, kind: input, shape index: {}]   ;;  %s1285_s2 = inlined_call_operand.vmem [shape: f32[1,1024], index: 2, kind: input, shape index: {}]   ;;  %s1286_s3 = inlined_call_operand.vmem [shape: bf16[8,1024], index: 3, kind: output, shape index: {}]  }
   0x1   :  { %s1073_s14 = smov 0   ;;  %s1075_s15 = smov 0  }
   0x2   :  { %s1077_s16 = smov 0   ;;  %s1079_s17 = smov 0  }
   0x3   :  { %s1081_s18 = smov 0  }
   0x4 LB: > { %s25_s19 = sadd.s32 1, %s1038_s16  ;;  %s28_s20 = sadd.s32 1, %s1042_s17  ;;  %s1046_s18 = sphi %s1081_s18, %s13_s18   ;;  %s1042_s17 = sphi %s1079_s17, %s1292_s17   ;;  %s1038_s16 = sphi %s1077_s16, %s1291_s16   ;;  %s1034_s15 = sphi %s1075_s15, %s1290_s15   ;;  %s1030_s14 = sphi %s1073_s14, %s1289_s14   ;;  %s1026_s13 = sphi %s1071_s13, %s1288_s13   ;;  %s1022_s12 = sphi %s1069_s12, %s1287_s12  }
   0x5   : > { %p26_p0 = scmp.ge.s32.totalorder %s25_s19, 2  ;;  %p76_p1 = scmp.ne.s32.totalorder %s1026_s13, %s1022_s12 }
   0x6   : > { %p77_p2 = scmp.eq.s32.totalorder %s1046_s18, 0  ;;  %s69_s24 = sadd.s32 1, %s1026_s13 }
   0x7   : > { %s1294_s19 = smov (%p26_p0, %s25_s19), 0  ;;  %s1296_s20 = smov (!%p26_p0, %s28_s20), %s1042_s17 }
   0x8   : > { %p78_p3 = por %p77_p2, %p76_p1  ;;  %p30_p4 = scmp.ge.s32.totalorder %s1296_s20, 4 }
   0x9   : > { %s64_s21 = ssub.s32 %s1038_s16, %s1294_s19  ;;  %p831_p6 = scmp.ge.s32.totalorder %s1046_s18, 8 }
   0xa   : > { %s1298_s20 = smov (%p30_p4, %s1296_s20), 0 }
   0xb   : > { %s65_s22 = ssub.s32 %s1042_s17, %s1298_s20  ;;  %156 = sbr.rel (%p831_p6) target bundleno = 55 (0x37), region = 16 }
   0xc   : > { %s66_s23 = sor.u32 %s65_s22, %s64_s21 }
   0xd   : > { %p67_p5 = scmp.eq.s32.totalorder %s66_s23, 0 }
   0xf   : > { %s1120_s25 = scalar_select %p67_p5, %s1026_s13, %s69_s24  }
  0x10   : > { %172 = sbr.rel (!%p78_p3) target bundleno = 55 (0x37), region = 24  ;;  %s174_s26 = sand.u32 (%p78_p3), 1, %s1026_s13  }
  0x11   : > { %s834_s27 = sshll.u32 (%p78_p3), %s1042_s17, 1  ;;  %s832_s28 = sshll.u32 (%p78_p3), %s174_s26, 8 }
  0x12   : > { %s883_s29 = sshll.u32 (%p78_p3), %s1038_s16, 8  ;;  %s1134_s8 = scalar_lea.vmem (%p78_p3), [#allocation3], %s832_s28 }
  0x13   : > { %s180_s30 = sadd.s32 (%p78_p3), %s883_s29, %s834_s27 }
  0x14   : > { %s836_s4 = sshll.u32 (%p78_p3), %s180_s30, 2 }
  0x15   : > { %s1129_s7 = scalar_lea.vmem %s1284_s1, %s836_s4 }
  0x16   : > { %v273_v0 = vld [vmem:[%s1129_s7] sm:$0xff] }
  0x17   : > { %v275_v1 = vld [vmem:[%s1129_s7 + $0x20] sm:$0xff]  ;;  %274 = vst [vmem:[%s1134_s8] sm:$0xff] %v273_v0 }
  0x18   : > { %v277_v2 = vld [vmem:[%s1129_s7 + $0x40] sm:$0xff]  ;;  %276 = vst [vmem:[%s1134_s8 + $0x8] sm:$0xff] %v275_v1 }
  0x19   : > { %278 = vst [vmem:[%s1134_s8 + $0x10] sm:$0xff] %v277_v2  ;;  %v279_v3 = vld [vmem:[%s1129_s7 + $0x60] sm:$0xff] }
  0x1a   : > { %v281_v4 = vld [vmem:[%s1129_s7 + $0x80] sm:$0xff]  ;;  %280 = vst [vmem:[%s1134_s8 + $0x18] sm:$0xff] %v279_v3 }
  0x1b   : > { %v283_v5 = vld [vmem:[%s1129_s7 + $0xa0] sm:$0xff]  ;;  %282 = vst [vmem:[%s1134_s8 + $0x20] sm:$0xff] %v281_v4 }
  0x1c   : > { %284 = vst [vmem:[%s1134_s8 + $0x28] sm:$0xff] %v283_v5  ;;  %v285_v6 = vld [vmem:[%s1129_s7 + $0xc0] sm:$0xff] }
  0x1d   : > { %v287_v7 = vld [vmem:[%s1129_s7 + $0xe0] sm:$0xff]  ;;  %286 = vst [vmem:[%s1134_s8 + $0x30] sm:$0xff] %v285_v6 }
  0x1e   : > { %v289_v8 = vld [vmem:[%s1129_s7 + $0x100] sm:$0xff]  ;;  %288 = vst [vmem:[%s1134_s8 + $0x38] sm:$0xff] %v287_v7 }
  0x1f   : > { %290 = vst [vmem:[%s1134_s8 + $0x40] sm:$0xff] %v289_v8  ;;  %v291_v9 = vld [vmem:[%s1129_s7 + $0x120] sm:$0xff] }
  0x20   : > { %v293_v10 = vld [vmem:[%s1129_s7 + $0x140] sm:$0xff]  ;;  %292 = vst [vmem:[%s1134_s8 + $0x48] sm:$0xff] %v291_v9 }
  0x21   : > { %v295_v11 = vld [vmem:[%s1129_s7 + $0x160] sm:$0xff]  ;;  %294 = vst [vmem:[%s1134_s8 + $0x50] sm:$0xff] %v293_v10 }
  0x22   : > { %296 = vst [vmem:[%s1134_s8 + $0x58] sm:$0xff] %v295_v11  ;;  %v297_v12 = vld [vmem:[%s1129_s7 + $0x180] sm:$0xff] }
  0x23   : > { %v299_v13 = vld [vmem:[%s1129_s7 + $0x1a0] sm:$0xff]  ;;  %298 = vst [vmem:[%s1134_s8 + $0x60] sm:$0xff] %v297_v12 }
  0x24   : > { %v301_v14 = vld [vmem:[%s1129_s7 + $0x1c0] sm:$0xff]  ;;  %300 = vst [vmem:[%s1134_s8 + $0x68] sm:$0xff] %v299_v13 }
  0x25   : > { %302 = vst [vmem:[%s1134_s8 + $0x70] sm:$0xff] %v301_v14  ;;  %v303_v15 = vld [vmem:[%s1129_s7 + $0x1e0] sm:$0xff] }
  0x26   : > { %v305_v16 = vld [vmem:[%s1129_s7 + $0x200] sm:$0xff]  ;;  %304 = vst [vmem:[%s1134_s8 + $0x78] sm:$0xff] %v303_v15 }
  0x27   : > { %v307_v17 = vld [vmem:[%s1129_s7 + $0x220] sm:$0xff]  ;;  %306 = vst [vmem:[%s1134_s8 + $0x80] sm:$0xff] %v305_v16 }
  0x28   : > { %308 = vst [vmem:[%s1134_s8 + $0x88] sm:$0xff] %v307_v17  ;;  %v309_v18 = vld [vmem:[%s1129_s7 + $0x240] sm:$0xff] }
  0x29   : > { %v311_v19 = vld [vmem:[%s1129_s7 + $0x260] sm:$0xff]  ;;  %310 = vst [vmem:[%s1134_s8 + $0x90] sm:$0xff] %v309_v18 }
  0x2a   : > { %v313_v20 = vld [vmem:[%s1129_s7 + $0x280] sm:$0xff]  ;;  %312 = vst [vmem:[%s1134_s8 + $0x98] sm:$0xff] %v311_v19 }
  0x2b   : > { %314 = vst [vmem:[%s1134_s8 + $0xa0] sm:$0xff] %v313_v20  ;;  %v315_v21 = vld [vmem:[%s1129_s7 + $0x2a0] sm:$0xff] }
  0x2c   : > { %v317_v22 = vld [vmem:[%s1129_s7 + $0x2c0] sm:$0xff]  ;;  %316 = vst [vmem:[%s1134_s8 + $0xa8] sm:$0xff] %v315_v21 }
  0x2d   : > { %v319_v23 = vld [vmem:[%s1129_s7 + $0x2e0] sm:$0xff]  ;;  %318 = vst [vmem:[%s1134_s8 + $0xb0] sm:$0xff] %v317_v22 }
  0x2e   : > { %320 = vst [vmem:[%s1134_s8 + $0xb8] sm:$0xff] %v319_v23  ;;  %v321_v24 = vld [vmem:[%s1129_s7 + $0x300] sm:$0xff] }
  0x2f   : > { %v323_v25 = vld [vmem:[%s1129_s7 + $0x320] sm:$0xff]  ;;  %322 = vst [vmem:[%s1134_s8 + $0xc0] sm:$0xff] %v321_v24 }
  0x30   : > { %v325_v26 = vld [vmem:[%s1129_s7 + $0x340] sm:$0xff]  ;;  %324 = vst [vmem:[%s1134_s8 + $0xc8] sm:$0xff] %v323_v25 }
  0x31   : > { %326 = vst [vmem:[%s1134_s8 + $0xd0] sm:$0xff] %v325_v26  ;;  %v327_v27 = vld [vmem:[%s1129_s7 + $0x360] sm:$0xff] }
  0x32   : > { %v329_v28 = vld [vmem:[%s1129_s7 + $0x380] sm:$0xff]  ;;  %328 = vst [vmem:[%s1134_s8 + $0xd8] sm:$0xff] %v327_v27 }
  0x33   : > { %v331_v29 = vld [vmem:[%s1129_s7 + $0x3a0] sm:$0xff]  ;;  %330 = vst [vmem:[%s1134_s8 + $0xe0] sm:$0xff] %v329_v28 }
  0x34   : > { %332 = vst [vmem:[%s1134_s8 + $0xe8] sm:$0xff] %v331_v29  ;;  %v333_v30 = vld [vmem:[%s1129_s7 + $0x3c0] sm:$0xff] }
  0x35   : > { %v335_v31 = vld [vmem:[%s1129_s7 + $0x3e0] sm:$0xff]  ;;  %334 = vst [vmem:[%s1134_s8 + $0xf0] sm:$0xff] %v333_v30 }
  0x36   : > { %336 = vst [vmem:[%s1134_s8 + $0xf8] sm:$0xff] %v335_v31 }
  0x37 PF: > { %p837_p7 = scmp.ge.s32.totalorder %s1046_s18, 1  ;;  %p349_p8 = scmp.lt.s32.totalorder %s1046_s18, 9 }
  0x39   : > { %p350_p9 = pnand %p837_p7, %p349_p8 }
  0x3a   : > { %s356_s9 = sand.u32 (!%p350_p9), 1, %s1022_s12   ;;  %s839_s10 = sshll.u32 (!%p350_p9), %s1030_s14, 1 }
  0x3b   : > { %353 = sbr.rel (%p350_p9) target bundleno = 351 (0x15f), region = 66  ;;  %s838_s11 = sshll.u32 (!%p350_p9), %s356_s9, 8 }
  0x3c   : > { %p399_p10 = scmp.lt.s32.totalorder (!%p350_p9), %s839_s10, 3  ;;  %s841_s21 = sshll.u32 (!%p350_p9), %s1034_s15, 1 }
  0x3d   : > { %p409_p11 = scmp.lt.s32.totalorder (!%p350_p9), %s841_s21, 7  ;;  %s1219_s5 = scalar_lea.vmem (!%p350_p9), [#allocation3], %s838_s11 }
  0x3e   : > { %p844_p12 = scmp.ne.s32.totalorder (!%p350_p9), %s1030_s14, 0 }
  0x40   : > { %s1300_s10 = smov (!%p399_p10, %s839_s10), 3  ;;  %s1302_s21 = smov (!%p409_p11, %s841_s21), 7 }
  0x41   : > { %s840_s22 = sshll.u32 %s1300_s10, 2  ;;  %s411_s12 = scalar_lea.vmem %s1285_s2, %s1302_s21 }
  0x42   : > { %s1205_s26 = scalar_lea.vmem %s1283_s0, %s840_s22  ;;  %s843_s29 = sshll.u32 %s1302_s21, 2 }
  0x43   : > { %s1217_s15 = scalar_lea.vmem %s1286_s3, %s843_s29  ;;  %426 = sbr.rel (%p844_p12) target bundleno = 74 (0x4a), region = 74 }
  0x48   : > { %v1048_v32 = vmov 0.0  }
  0x49   : > { %427 = vst [vmem:[#allocation2] sm:$0xff] %v1048_v32  ;;  %428 = vst [vmem:[#allocation2 + $0x8] sm:$0xff] %v1048_v32 }
  0x4a PF: > { %v942_v33 = vld [vmem:[%s1219_s5 + $0x74] ss:$8 sps:$4 sm:$0xff]   ;;  %v944_v34 = vld [vmem:[%s1219_s5 + $0x70] ss:$8 sps:$4 sm:$0xff]   ;;  %v945_v35 = vld [vmem:[%s1219_s5 + $0x64] ss:$8 sps:$4 sm:$0xff]  }
  0x4b   : > { %631 = vmatprep.subr.bf16.mxu0 %v942_v33  ;;  %v947_v36 = vld [vmem:[%s1219_s5 + $0x60] ss:$8 sps:$4 sm:$0xff]   ;;  %v948_v37 = vld [vmem:[%s1219_s5 + $0x54] ss:$8 sps:$4 sm:$0xff]   ;;  %v950_v38 = vld [vmem:[%s1219_s5 + $0x50] ss:$8 sps:$4 sm:$0xff]  }
  0x4c   : > { %632 = vmatpush1.bf16.msra.mxu0 %v944_v34  ;;  %v951_v39 = vld [vmem:[%s1219_s5 + $0x44] ss:$8 sps:$4 sm:$0xff]   ;;  %v953_v40 = vld [vmem:[%s1219_s5 + $0x40] ss:$8 sps:$4 sm:$0xff]   ;;  %v954_v41 = vld [vmem:[%s1219_s5 + $0x34] ss:$8 sps:$4 sm:$0xff]  }
  0x4d   : > { %633 = vmatprep.subr.bf16.mxu0 %v945_v35  ;;  %v956_v42 = vld [vmem:[%s1219_s5 + $0x30] ss:$8 sps:$4 sm:$0xff]   ;;  %v957_v43 = vld [vmem:[%s1219_s5 + $0x24] ss:$8 sps:$4 sm:$0xff]   ;;  %v959_v44 = vld [vmem:[%s1219_s5 + $0x20] ss:$8 sps:$4 sm:$0xff]  }
  0x4e   : > { %v960_v45 = vld [vmem:[%s1219_s5 + $0x14] ss:$8 sps:$4 sm:$0xff]   ;;  %v962_v48 = vld [vmem:[%s1219_s5 + $0x10] ss:$8 sps:$4 sm:$0xff]   ;;  %v963_v49 = vld [vmem:[%s1219_s5 + $0x4] ss:$8 sps:$4 sm:$0xff]  }
  0x4f   : > { %v431_v46 = vld [vmem:[%s1205_s26] sm:$0xff]  ;;  %v965_v50 = vld [vmem:[%s1219_s5] ss:$8 sps:$4 sm:$0xff]   ;;  %v969_v53 = vld [vmem:[%s1219_s5 + $0xe4] ss:$8 sps:$4 sm:$0xff]   ;;  %p879_p13 = scmp.ne.s32.totalorder %s1030_s14, 1 }
  0x50   : > { %634 = vmatpush1.bf16.msra.mxu0 %v947_v36  ;;  %v846_v47 = vcombine.high %v431_v46, %v431_v46  ;;  %v966_v51 = vld [vmem:[%s1219_s5 + $0xf4] ss:$8 sps:$4 sm:$0xff]   ;;  %v968_v52 = vld [vmem:[%s1219_s5 + $0xf0] ss:$8 sps:$4 sm:$0xff]   ;;  %v971_v54 = vld [vmem:[%s1219_s5 + $0xe0] ss:$8 sps:$4 sm:$0xff]   ;;  %v845_v3 = vcombine.low %v431_v46, %v431_v46 }
  0x51   : > { %635 = vmatprep.subr.bf16.mxu0 %v948_v37  ;;  %v972_v55 = vld [vmem:[%s1219_s5 + $0xd4] ss:$8 sps:$4 sm:$0xff]   ;;  %v974_v56 = vld [vmem:[%s1219_s5 + $0xd0] ss:$8 sps:$4 sm:$0xff]   ;;  %v975_v57 = vld [vmem:[%s1219_s5 + $0xc4] ss:$8 sps:$4 sm:$0xff]  }
  0x52   : > { %663 = vmatprep.mubr.bf16.mxu0 %v846_v47  ;;  %v977_v58 = vld [vmem:[%s1219_s5 + $0xc0] ss:$8 sps:$4 sm:$0xff]   ;;  %v978_v59 = vld [vmem:[%s1219_s5 + $0xb4] ss:$8 sps:$4 sm:$0xff]   ;;  %v980_v60 = vld [vmem:[%s1219_s5 + $0xb0] ss:$8 sps:$4 sm:$0xff]  }
  0x53   : > { %v981_v61 = vld [vmem:[%s1219_s5 + $0xa4] ss:$8 sps:$4 sm:$0xff]   ;;  %v983_v62 = vld [vmem:[%s1219_s5 + $0xa0] ss:$8 sps:$4 sm:$0xff]   ;;  %v984_v63 = vld [vmem:[%s1219_s5 + $0x94] ss:$8 sps:$4 sm:$0xff]  }
  0x54   : > { %636 = vmatpush1.bf16.msra.mxu0 %v950_v38  ;;  %v986_v0 = vld [vmem:[%s1219_s5 + $0x90] ss:$8 sps:$4 sm:$0xff]   ;;  %v987_v1 = vld [vmem:[%s1219_s5 + $0x84] ss:$8 sps:$4 sm:$0xff]   ;;  %v989_v2 = vld [vmem:[%s1219_s5 + $0x80] ss:$8 sps:$4 sm:$0xff]  }
  0x55   : > { %637 = vmatprep.subr.bf16.mxu0 %v951_v39  ;;  %v429_v4 = vld [vmem:[#allocation2] sm:$0xff]  ;;  %v430_v6 = vld [vmem:[#allocation2 + $0x8] sm:$0xff] }
  0x58   : > { %638 = vmatpush1.bf16.msra.mxu0 %v953_v40 }
  0x59   : > { %639 = vmatprep.subr.bf16.mxu0 %v954_v41 }
  0x5c   : > { %640 = vmatpush1.bf16.msra.mxu0 %v956_v42 }
  0x5d   : > { %641 = vmatprep.subr.bf16.mxu0 %v957_v43 }
  0x60   : > { %642 = vmatpush1.bf16.msra.mxu0 %v959_v44 }
  0x61   : > { %643 = vmatprep.subr.bf16.mxu0 %v960_v45 }
  0x64   : > { %644 = vmatpush1.bf16.msra.mxu0 %v962_v48 }
  0x65   : > { %645 = vmatprep.subr.bf16.mxu0 %v963_v49 }
  0x68   : > { %646 = vmatpush1.bf16.msra.mxu0 %v965_v50 }
  0x69   : > { %647 = vmatprep.subr.bf16.mxu0 %v966_v51 }
  0x6c   : > { %648 = vmatpush2.bf16.msra.mxu0 %v968_v52 }
  0x6d   : > { %649 = vmatprep.subr.bf16.mxu0 %v969_v53 }
  0x70   : > { %650 = vmatpush2.bf16.msra.mxu0 %v971_v54 }
  0x71   : > { %651 = vmatprep.subr.bf16.mxu0 %v972_v55 }
  0x74   : > { %652 = vmatpush2.bf16.msra.mxu0 %v974_v56 }
  0x75   : > { %653 = vmatprep.subr.bf16.mxu0 %v975_v57 }
  0x78   : > { %654 = vmatpush2.bf16.msra.mxu0 %v977_v58 }
  0x79   : > { %655 = vmatprep.subr.bf16.mxu0 %v978_v59 }
  0x7c   : > { %656 = vmatpush2.bf16.msra.mxu0 %v980_v60 }
  0x7d   : > { %657 = vmatprep.subr.bf16.mxu0 %v981_v61 }
  0x80   : > { %658 = vmatpush2.bf16.msra.mxu0 %v983_v62 }
  0x81   : > { %659 = vmatprep.subr.bf16.mxu0 %v984_v63 }
  0x84   : > { %660 = vmatpush2.bf16.msra.mxu0 %v986_v0 }
  0x85   : > { %661 = vmatprep.subr.bf16.mxu0 %v987_v1 }
  0x88   : > { %662 = vmatpush2.bf16.msra.mxu0 %v989_v2 }
  0x8b   : > { %664 = vmatmul.mubr.bf16.vlgmr.msra.gmra.mxu0 %v845_v3 }
 0x14b   : > { %v665_v5 = vpop.f32.mrf.mxu0 }
 0x14c   : > { %v672_v7 = vadd.f32 %v665_v5, %v429_v4 }
 0x14d   : > { %v667_v8 = vpop.f32.mrf.mxu0  ;;  %679 = sbr.rel (%p879_p13) target bundleno = 351 (0x15f), region = 78 }
 0x14e   : > { %674 = vst [vmem:[#allocation2] sm:$0xff] %v672_v7  ;;  %v673_v9 = vadd.f32 %v667_v8, %v430_v6 }
 0x14f   : > { %v669_v10 = vpop.f32.mrf.mxu0 }
 0x150   : > { %675 = vst [vmem:[#allocation2 + $0x8] sm:$0xff] %v673_v9 }
 0x151   : > { %v670_v11 = vpop.f32.mrf.mxu0 }
 0x152   : > { %v684_v12 = vlaneseq  ;;  %v682_v14 = vld [vmem:[%s411_s12] sm:$0x3] }
 0x154   : > { %v685_v13 = vshrl.u32 %v684_v12, 7 }
 0x155   : > { %v680_v17 = vld [vmem:[#allocation2] sm:$0xff] }
 0x156   : > { %v686_v15 = vsub.s32 0, %v685_v13  ;;  %v690_v16 = vsub.s32 1, %v685_v13 }
 0x157   : > { %v681_v18 = vld [vmem:[#allocation2 + $0x8] sm:$0xff] }
 0x158   : > { %v687_v19 = vrot.slane %v682_v14, %v686_v15  ;;  %v691_v20 = vrot.slane %v682_v14, %v690_v16 }
 0x15a   : > { %v694_v21 = vadd.f32 %v687_v19, %v680_v17  ;;  %v695_v22 = vadd.f32 %v691_v20, %v681_v18 }
 0x15c   : > { %v884_v23 = vpack.c.bf16 %v695_v22, %v694_v21 }
 0x15e   : > { %704 = vst [vmem:[%s1217_s15] sm:$0xff] %v884_v23 }
 0x15f PF: > { %s13_s18 = sadd.s32 1, %s1046_s18   ;;  %s1287_s12 = smov %s1026_s13 }
 0x160   : > { %p10_p0 = scmp.ge.s32.totalorder %s13_s18, 10   ;;  %s1288_s13 = smov %s1120_s25 }
 0x161   : > { %s1289_s14 = smov %s1038_s16  ;;  %s1290_s15 = smov %s1042_s17 }
 0x162   : > { %s1291_s16 = smov %s1294_s19  ;;  %s1292_s17 = smov %s1298_s20 }
 0x163   :  { %12 = sbr.rel (!%p10_p0) target bundleno = 4 (0x4), region = 119 }

// kernel: resnet50_forward.84
= control target key start
LH: loop header
LB: loop body
LE: loop exit
PB: predicated region body
PF: predicated region fallthrough
CT: control target
= control target key end

     0   :  { %8 = vsyncpa [#allocation4], 0  ;;  %s899_s12 = smov 0   ;;  %s901_s13 = smov 0   ;;  %s1000_s0 = inlined_call_operand.vmem [shape: bf16[8,1024], index: 0, kind: input, shape index: {}]   ;;  %s1001_s1 = inlined_call_operand.vmem [shape: bf16[1024,256], index: 1, kind: input, shape index: {}]   ;;  %s1002_s2 = inlined_call_operand.hbm [shape: f32[1,256], index: 2, kind: input, shape index: {}]   ;;  %s1003_s3 = inlined_call_operand.vmem [shape: bf16[8,256], index: 3, kind: output, shape index: {}]  }
   0x1   :  { %s903_s14 = smov 0  }
   0x2 LB: > { %s683_s15 = sadd.s32 4294967295, %s875_s14   ;;  %s26_s16 = sadd.s32 1, %s871_s13  ;;  %s875_s14 = sphi %s903_s14, %s14_s14   ;;  %s871_s13 = sphi %s901_s13, %s1007_s13   ;;  %s867_s12 = sphi %s899_s12, %s1006_s12  }
   0x3   : > { %p27_p0 = scmp.ge.s32.totalorder %s26_s16, 4  ;;  %p684_p1 = scmp.ge.s32.totalorder %s875_s14, 1 }
   0x4   : > { %p148_p2 = scmp.lt.s32.totalorder %s875_s14, 5  ;;  %p924_p4 = scmp.eq.s32.totalorder %s683_s15, 0 }
   0x5   : > { %s1009_s16 = smov (%p27_p0, %s26_s16), 0  ;;  %s877_s19 = smov [#allocation3]  }
   0x6   : > { %p920_p3 = pnand %p684_p1, %p148_p2  ;;  %s164_s20 = sshll.u32 %s877_s19, 4  ;;  %s165_s20 = int_to_ptr.vmem [resolvable:$true] %s164_s20 }
   0x7   : > { %s834_s21 = scalar_lea.vmem %s165_s20, 32  ;;  %p842_p11 = scmp.lt.s32.totalorder %s165_s20, %s165_s20 }
   0x8   : > { %p741_p5 = pneg %p920_p3  ;;  %p835_p8 = scmp.ne.s32.totalorder %s165_s20, %s834_s21 }
   0x9   : > { %p843_p12 = scmp.lt.s32.totalorder %s834_s21, %s834_s21 }
   0xa   : > { %p742_p6 = pnand %p924_p4, %p741_p5 }
   0xb   : > { %p844_p13 = por %p843_p12, %p842_p11 }
   0xc   : > { %p825_p7 = pneg %p742_p6 }
   0xe   : > { %p837_p9 = pnand %p835_p8, %p825_p7 }
  0x10   : > { %p838_p10 = pneg %p837_p9 }
  0x12   : > { %p845_p0 = pnand %p844_p13, %p838_p10 }
  0x14   : > { %848 = shalt.err (!%p845_p0)
}
  0x15   : > { %744 = dma.hbm_to_vmem [thread:$0]  (!%p742_p6), %s1002_s2, 32, %s165_s20, [#allocation4]  }
  0x16   : > { %205 = sbr.rel (%p920_p3) target bundleno = 320 (0x140), region = 32 }
  0x1b   : > { %862 = dma.done.wait (%p924_p4), [#allocation4], 32  }
  0x1c   : > { %864 = vsyncadd (%p924_p4), [#allocation4], 4294967264  ;;  %s689_s24 = sshll.u32 %s867_s12, 1  ;;  %s691_s25 = sshll.u32 %s867_s12, 5 }
  0x1d   : > { %p250_p1 = scmp.lt.s32.totalorder %s689_s24, 7  ;;  %p259_p2 = scmp.lt.s32.totalorder %s691_s25, 127 }
  0x1e   : > { %p694_p3 = scmp.ne.s32.totalorder %s867_s12, 0 }
  0x1f   : > { %s1011_s24 = smov (!%p250_p1, %s689_s24), 7  ;;  %s1013_s25 = smov (!%p259_p2, %s691_s25), 127 }
  0x20   : > { %s690_s26 = sshll.u32 %s1011_s24, 2  ;;  %s735_s30 = sshll.u32 %s1013_s25, 3 }
  0x21   : > { %s946_s29 = scalar_lea.vmem %s1000_s0, %s690_s26  ;;  %s951_s6 = scalar_lea.vmem %s1001_s1, %s735_s30 }
  0x22   : > { %283 = sbr.rel (%p694_p3) target bundleno = 41 (0x29), region = 40 }
  0x27   : > { %v878_v0 = vmov 0.0  }
  0x28   : > { %284 = vst [vmem:[#allocation2] sm:$0xff] %v878_v0  ;;  %285 = vst [vmem:[#allocation2 + $0x8] sm:$0xff] %v878_v0 }
  0x29 PF: > { %v773_v1 = vld [vmem:[%s951_s6 + $0x74] ss:$8 sps:$4 sm:$0xff]   ;;  %v775_v2 = vld [vmem:[%s951_s6 + $0x70] ss:$8 sps:$4 sm:$0xff]   ;;  %v776_v3 = vld [vmem:[%s951_s6 + $0x64] ss:$8 sps:$4 sm:$0xff]  }
  0x2a   : > { %488 = vmatprep.subr.bf16.mxu0 %v773_v1  ;;  %v778_v4 = vld [vmem:[%s951_s6 + $0x60] ss:$8 sps:$4 sm:$0xff]   ;;  %v779_v5 = vld [vmem:[%s951_s6 + $0x54] ss:$8 sps:$4 sm:$0xff]   ;;  %v781_v6 = vld [vmem:[%s951_s6 + $0x50] ss:$8 sps:$4 sm:$0xff]  }
  0x2b   : > { %489 = vmatpush1.bf16.msra.mxu0 %v775_v2  ;;  %v782_v7 = vld [vmem:[%s951_s6 + $0x44] ss:$8 sps:$4 sm:$0xff]   ;;  %v784_v8 = vld [vmem:[%s951_s6 + $0x40] ss:$8 sps:$4 sm:$0xff]   ;;  %v785_v9 = vld [vmem:[%s951_s6 + $0x34] ss:$8 sps:$4 sm:$0xff]  }
  0x2c   : > { %490 = vmatprep.subr.bf16.mxu0 %v776_v3  ;;  %v787_v10 = vld [vmem:[%s951_s6 + $0x30] ss:$8 sps:$4 sm:$0xff]   ;;  %v788_v11 = vld [vmem:[%s951_s6 + $0x24] ss:$8 sps:$4 sm:$0xff]   ;;  %v790_v12 = vld [vmem:[%s951_s6 + $0x20] ss:$8 sps:$4 sm:$0xff]  }
  0x2d   : > { %v791_v13 = vld [vmem:[%s951_s6 + $0x14] ss:$8 sps:$4 sm:$0xff]   ;;  %v288_v14 = vld [vmem:[%s946_s29] sm:$0xff]  ;;  %v793_v16 = vld [vmem:[%s951_s6 + $0x10] ss:$8 sps:$4 sm:$0xff]   ;;  %p729_p4 = scmp.ne.s32.totalorder %s867_s12, 3 }
  0x2e   : > { %v696_v15 = vcombine.high %v288_v14, %v288_v14  ;;  %v794_v17 = vld [vmem:[%s951_s6 + $0x4] ss:$8 sps:$4 sm:$0xff]   ;;  %v796_v18 = vld [vmem:[%s951_s6] ss:$8 sps:$4 sm:$0xff]   ;;  %v797_v19 = vld [vmem:[%s951_s6 + $0xf4] ss:$8 sps:$4 sm:$0xff]   ;;  %v695_v35 = vcombine.low %v288_v14, %v288_v14 }
  0x2f   : > { %491 = vmatpush1.bf16.msra.mxu0 %v778_v4  ;;  %v799_v20 = vld [vmem:[%s951_s6 + $0xf0] ss:$8 sps:$4 sm:$0xff]   ;;  %v800_v21 = vld [vmem:[%s951_s6 + $0xe4] ss:$8 sps:$4 sm:$0xff]   ;;  %v802_v22 = vld [vmem:[%s951_s6 + $0xe0] ss:$8 sps:$4 sm:$0xff]  }
  0x30   : > { %492 = vmatprep.subr.bf16.mxu0 %v779_v5  ;;  %520 = vmatprep.mubr.bf16.mxu0 %v696_v15  ;;  %v803_v23 = vld [vmem:[%s951_s6 + $0xd4] ss:$8 sps:$4 sm:$0xff]   ;;  %v805_v24 = vld [vmem:[%s951_s6 + $0xd0] ss:$8 sps:$4 sm:$0xff]   ;;  %v806_v25 = vld [vmem:[%s951_s6 + $0xc4] ss:$8 sps:$4 sm:$0xff]  }
  0x31   : > { %v808_v26 = vld [vmem:[%s951_s6 + $0xc0] ss:$8 sps:$4 sm:$0xff]   ;;  %v809_v27 = vld [vmem:[%s951_s6 + $0xb4] ss:$8 sps:$4 sm:$0xff]   ;;  %v811_v28 = vld [vmem:[%s951_s6 + $0xb0] ss:$8 sps:$4 sm:$0xff]  }
  0x32   : > { %v812_v29 = vld [vmem:[%s951_s6 + $0xa4] ss:$8 sps:$4 sm:$0xff]   ;;  %v814_v30 = vld [vmem:[%s951_s6 + $0xa0] ss:$8 sps:$4 sm:$0xff]   ;;  %v815_v31 = vld [vmem:[%s951_s6 + $0x94] ss:$8 sps:$4 sm:$0xff]  }
  0x33   : > { %493 = vmatpush1.bf16.msra.mxu0 %v781_v6  ;;  %v817_v32 = vld [vmem:[%s951_s6 + $0x90] ss:$8 sps:$4 sm:$0xff]   ;;  %v818_v33 = vld [vmem:[%s951_s6 + $0x84] ss:$8 sps:$4 sm:$0xff]   ;;  %v820_v34 = vld [vmem:[%s951_s6 + $0x80] ss:$8 sps:$4 sm:$0xff]  }
  0x34   : > { %494 = vmatprep.subr.bf16.mxu0 %v782_v7  ;;  %v286_v36 = vld [vmem:[#allocation2] sm:$0xff]  ;;  %v287_v38 = vld [vmem:[#allocation2 + $0x8] sm:$0xff] }
  0x37   : > { %495 = vmatpush1.bf16.msra.mxu0 %v784_v8 }
  0x38   : > { %496 = vmatprep.subr.bf16.mxu0 %v785_v9 }
  0x3b   : > { %497 = vmatpush1.bf16.msra.mxu0 %v787_v10 }
  0x3c   : > { %498 = vmatprep.subr.bf16.mxu0 %v788_v11 }
  0x3f   : > { %499 = vmatpush1.bf16.msra.mxu0 %v790_v12 }
  0x40   : > { %500 = vmatprep.subr.bf16.mxu0 %v791_v13 }
  0x43   : > { %501 = vmatpush1.bf16.msra.mxu0 %v793_v16 }
  0x44   : > { %502 = vmatprep.subr.bf16.mxu0 %v794_v17 }
  0x47   : > { %503 = vmatpush1.bf16.msra.mxu0 %v796_v18 }
  0x48   : > { %504 = vmatprep.subr.bf16.mxu0 %v797_v19 }
  0x4b   : > { %505 = vmatpush2.bf16.msra.mxu0 %v799_v20 }
  0x4c   : > { %506 = vmatprep.subr.bf16.mxu0 %v800_v21 }
  0x4f   : > { %507 = vmatpush2.bf16.msra.mxu0 %v802_v22 }
  0x50   : > { %508 = vmatprep.subr.bf16.mxu0 %v803_v23 }
  0x53   : > { %509 = vmatpush2.bf16.msra.mxu0 %v805_v24 }
  0x54   : > { %510 = vmatprep.subr.bf16.mxu0 %v806_v25 }
  0x57   : > { %511 = vmatpush2.bf16.msra.mxu0 %v808_v26 }
  0x58   : > { %512 = vmatprep.subr.bf16.mxu0 %v809_v27 }
  0x5b   : > { %513 = vmatpush2.bf16.msra.mxu0 %v811_v28 }
  0x5c   : > { %514 = vmatprep.subr.bf16.mxu0 %v812_v29 }
  0x5f   : > { %515 = vmatpush2.bf16.msra.mxu0 %v814_v30 }
  0x60   : > { %516 = vmatprep.subr.bf16.mxu0 %v815_v31 }
  0x63   : > { %517 = vmatpush2.bf16.msra.mxu0 %v817_v32 }
  0x64   : > { %518 = vmatprep.subr.bf16.mxu0 %v818_v33 }
  0x67   : > { %519 = vmatpush2.bf16.msra.mxu0 %v820_v34 }
  0x6a   : > { %521 = vmatmul.mubr.bf16.vlgmr.msra.gmra.mxu0 %v695_v35 }
 0x12a   : > { %v522_v37 = vpop.f32.mrf.mxu0 }
 0x12b   : > { %v529_v39 = vadd.f32 %v522_v37, %v286_v36 }
 0x12c   : > { %v524_v40 = vpop.f32.mrf.mxu0  ;;  %536 = sbr.rel (%p729_p4) target bundleno = 320 (0x140), region = 44 }
 0x12d   : > { %531 = vst [vmem:[#allocation2] sm:$0xff] %v529_v39  ;;  %v530_v41 = vadd.f32 %v524_v40, %v287_v38 }
 0x12e   : > { %v526_v42 = vpop.f32.mrf.mxu0 }
 0x12f   : > { %532 = vst [vmem:[#allocation2 + $0x8] sm:$0xff] %v530_v41 }
 0x130   : > { %v527_v43 = vpop.f32.mrf.mxu0 }
 0x131   : > { %v541_v44 = vlaneseq  ;;  %v539_v46 = vld [vmem:[#allocation3] sm:$0x3] }
 0x133   : > { %v542_v45 = vshrl.u32 %v541_v44, 7 }
 0x134   : > { %v537_v49 = vld [vmem:[#allocation2] sm:$0xff] }
 0x135   : > { %v543_v47 = vsub.s32 0, %v542_v45  ;;  %v547_v48 = vsub.s32 1, %v542_v45 }
 0x136   : > { %v538_v50 = vld [vmem:[#allocation2 + $0x8] sm:$0xff] }
 0x137   : > { %v544_v51 = vrot.slane %v539_v46, %v543_v47  ;;  %v548_v52 = vrot.slane %v539_v46, %v547_v48 }
 0x139   : > { %v551_v53 = vadd.f32 %v544_v51, %v537_v49  ;;  %v552_v54 = vadd.f32 %v548_v52, %v538_v50 }
 0x13b   : > { %v553_v55 = vmax.f32 %v551_v53, 0.0  ;;  %v554_v56 = vmax.f32 %v552_v54, 0.0 }
 0x13d   : > { %v736_v57 = vpack.c.bf16 %v554_v56, %v553_v55 }
 0x13f   : > { %563 = vst [vmem:[%s1003_s3] sm:$0xff] %v736_v57 }
 0x140 PF: > { %s14_s14 = sadd.s32 1, %s875_s14   ;;  %s1006_s12 = smov %s871_s13 }
 0x141   : > { %p11_p5 = scmp.ge.s32.totalorder %s14_s14, 6   ;;  %s1007_s13 = smov %s1009_s16 }
 0x143   :  { %13 = sbr.rel (!%p11_p5) target bundleno = 2 (0x2), region = 79 }
 0x148   :  { %594 = vsyncpa [#allocation4], 1 }
 0x149   :  { %596 = vsyncpa [#allocation4 + $0x1], 1 }

// kernel: resnet50_forward.88
= control target key start
LH: loop header
LB: loop body
LE: loop exit
PB: predicated region body
PF: predicated region fallthrough
CT: control target
= control target key end

     0   :  { %8 = vsyncpa [#allocation4], 0  ;;  %s899_s12 = smov 0   ;;  %s901_s13 = smov 0   ;;  %s1000_s0 = inlined_call_operand.vmem [shape: bf16[8,2304], index: 0, kind: input, shape index: {}]   ;;  %s1001_s1 = inlined_call_operand.vmem [shape: bf16[2304,256], index: 1, kind: input, shape index: {}]   ;;  %s1002_s2 = inlined_call_operand.hbm [shape: f32[1,256], index: 2, kind: input, shape index: {}]   ;;  %s1003_s3 = inlined_call_operand.vmem [shape: bf16[8,256], index: 3, kind: output, shape index: {}]  }
   0x1   :  { %s903_s14 = smov 0  }
   0x2 LB: > { %s683_s15 = sadd.s32 4294967295, %s875_s14   ;;  %s26_s16 = sadd.s32 1, %s871_s13  ;;  %s875_s14 = sphi %s903_s14, %s14_s14   ;;  %s871_s13 = sphi %s901_s13, %s1007_s13   ;;  %s867_s12 = sphi %s899_s12, %s1006_s12  }
   0x3   : > { %p27_p0 = scmp.ge.s32.totalorder %s26_s16, 9  ;;  %p684_p1 = scmp.ge.s32.totalorder %s875_s14, 1 }
   0x4   : > { %p148_p2 = scmp.lt.s32.totalorder %s875_s14, 10  ;;  %p924_p4 = scmp.eq.s32.totalorder %s683_s15, 0 }
   0x5   : > { %s1009_s16 = smov (%p27_p0, %s26_s16), 0  ;;  %s877_s19 = smov [#allocation3]  }
   0x6   : > { %p920_p3 = pnand %p684_p1, %p148_p2  ;;  %s164_s20 = sshll.u32 %s877_s19, 4  ;;  %s165_s20 = int_to_ptr.vmem [resolvable:$true] %s164_s20 }
   0x7   : > { %s834_s21 = scalar_lea.vmem %s165_s20, 32  ;;  %p842_p11 = scmp.lt.s32.totalorder %s165_s20, %s165_s20 }
   0x8   : > { %p741_p5 = pneg %p920_p3  ;;  %p835_p8 = scmp.ne.s32.totalorder %s165_s20, %s834_s21 }
   0x9   : > { %p843_p12 = scmp.lt.s32.totalorder %s834_s21, %s834_s21 }
   0xa   : > { %p742_p6 = pnand %p924_p4, %p741_p5 }
   0xb   : > { %p844_p13 = por %p843_p12, %p842_p11 }
   0xc   : > { %p825_p7 = pneg %p742_p6 }
   0xe   : > { %p837_p9 = pnand %p835_p8, %p825_p7 }
  0x10   : > { %p838_p10 = pneg %p837_p9 }
  0x12   : > { %p845_p0 = pnand %p844_p13, %p838_p10 }
  0x14   : > { %848 = shalt.err (!%p845_p0)
}
  0x15   : > { %744 = dma.hbm_to_vmem [thread:$0]  (!%p742_p6), %s1002_s2, 32, %s165_s20, [#allocation4]  }
  0x16   : > { %205 = sbr.rel (%p920_p3) target bundleno = 320 (0x140), region = 32 }
  0x1b   : > { %862 = dma.done.wait (%p924_p4), [#allocation4], 32  }
  0x1c   : > { %864 = vsyncadd (%p924_p4), [#allocation4], 4294967264  ;;  %s689_s24 = sshll.u32 %s867_s12, 1  ;;  %s691_s25 = sshll.u32 %s867_s12, 5 }
  0x1d   : > { %p250_p1 = scmp.lt.s32.totalorder %s689_s24, 17  ;;  %p259_p2 = scmp.lt.s32.totalorder %s691_s25, 287 }
  0x1e   : > { %p694_p3 = scmp.ne.s32.totalorder %s867_s12, 0 }
  0x1f   : > { %s1011_s24 = smov (!%p250_p1, %s689_s24), 17  ;;  %s1013_s25 = smov (!%p259_p2, %s691_s25), 287 }
  0x20   : > { %s690_s26 = sshll.u32 %s1011_s24, 2  ;;  %s735_s30 = sshll.u32 %s1013_s25, 3 }
  0x21   : > { %s946_s29 = scalar_lea.vmem %s1000_s0, %s690_s26  ;;  %s951_s6 = scalar_lea.vmem %s1001_s1, %s735_s30 }
  0x22   : > { %283 = sbr.rel (%p694_p3) target bundleno = 41 (0x29), region = 40 }
  0x27   : > { %v878_v0 = vmov 0.0  }
  0x28   : > { %284 = vst [vmem:[#allocation2] sm:$0xff] %v878_v0  ;;  %285 = vst [vmem:[#allocation2 + $0x8] sm:$0xff] %v878_v0 }
  0x29 PF: > { %v773_v1 = vld [vmem:[%s951_s6 + $0x74] ss:$8 sps:$4 sm:$0xff]   ;;  %v775_v2 = vld [vmem:[%s951_s6 + $0x70] ss:$8 sps:$4 sm:$0xff]   ;;  %v776_v3 = vld [vmem:[%s951_s6 + $0x64] ss:$8 sps:$4 sm:$0xff]  }
  0x2a   : > { %488 = vmatprep.subr.bf16.mxu0 %v773_v1  ;;  %v778_v4 = vld [vmem:[%s951_s6 + $0x60] ss:$8 sps:$4 sm:$0xff]   ;;  %v779_v5 = vld [vmem:[%s951_s6 + $0x54] ss:$8 sps:$4 sm:$0xff]   ;;  %v781_v6 = vld [vmem:[%s951_s6 + $0x50] ss:$8 sps:$4 sm:$0xff]  }
  0x2b   : > { %489 = vmatpush1.bf16.msra.mxu0 %v775_v2  ;;  %v782_v7 = vld [vmem:[%s951_s6 + $0x44] ss:$8 sps:$4 sm:$0xff]   ;;  %v784_v8 = vld [vmem:[%s951_s6 + $0x40] ss:$8 sps:$4 sm:$0xff]   ;;  %v785_v9 = vld [vmem:[%s951_s6 + $0x34] ss:$8 sps:$4 sm:$0xff]  }
  0x2c   : > { %490 = vmatprep.subr.bf16.mxu0 %v776_v3  ;;  %v787_v10 = vld [vmem:[%s951_s6 + $0x30] ss:$8 sps:$4 sm:$0xff]   ;;  %v788_v11 = vld [vmem:[%s951_s6 + $0x24] ss:$8 sps:$4 sm:$0xff]   ;;  %v790_v12 = vld [vmem:[%s951_s6 + $0x20] ss:$8 sps:$4 sm:$0xff]  }
  0x2d   : > { %v791_v13 = vld [vmem:[%s951_s6 + $0x14] ss:$8 sps:$4 sm:$0xff]   ;;  %v288_v14 = vld [vmem:[%s946_s29] sm:$0xff]  ;;  %v793_v16 = vld [vmem:[%s951_s6 + $0x10] ss:$8 sps:$4 sm:$0xff]   ;;  %p729_p4 = scmp.ne.s32.totalorder %s867_s12, 8 }
  0x2e   : > { %v696_v15 = vcombine.high %v288_v14, %v288_v14  ;;  %v794_v17 = vld [vmem:[%s951_s6 + $0x4] ss:$8 sps:$4 sm:$0xff]   ;;  %v796_v18 = vld [vmem:[%s951_s6] ss:$8 sps:$4 sm:$0xff]   ;;  %v797_v19 = vld [vmem:[%s951_s6 + $0xf4] ss:$8 sps:$4 sm:$0xff]   ;;  %v695_v35 = vcombine.low %v288_v14, %v288_v14 }
  0x2f   : > { %491 = vmatpush1.bf16.msra.mxu0 %v778_v4  ;;  %v799_v20 = vld [vmem:[%s951_s6 + $0xf0] ss:$8 sps:$4 sm:$0xff]   ;;  %v800_v21 = vld [vmem:[%s951_s6 + $0xe4] ss:$8 sps:$4 sm:$0xff]   ;;  %v802_v22 = vld [vmem:[%s951_s6 + $0xe0] ss:$8 sps:$4 sm:$0xff]  }
  0x30   : > { %492 = vmatprep.subr.bf16.mxu0 %v779_v5  ;;  %520 = vmatprep.mubr.bf16.mxu0 %v696_v15  ;;  %v803_v23 = vld [vmem:[%s951_s6 + $0xd4] ss:$8 sps:$4 sm:$0xff]   ;;  %v805_v24 = vld [vmem:[%s951_s6 + $0xd0] ss:$8 sps:$4 sm:$0xff]   ;;  %v806_v25 = vld [vmem:[%s951_s6 + $0xc4] ss:$8 sps:$4 sm:$0xff]  }
  0x31   : > { %v808_v26 = vld [vmem:[%s951_s6 + $0xc0] ss:$8 sps:$4 sm:$0xff]   ;;  %v809_v27 = vld [vmem:[%s951_s6 + $0xb4] ss:$8 sps:$4 sm:$0xff]   ;;  %v811_v28 = vld [vmem:[%s951_s6 + $0xb0] ss:$8 sps:$4 sm:$0xff]  }
  0x32   : > { %v812_v29 = vld [vmem:[%s951_s6 + $0xa4] ss:$8 sps:$4 sm:$0xff]   ;;  %v814_v30 = vld [vmem:[%s951_s6 + $0xa0] ss:$8 sps:$4 sm:$0xff]   ;;  %v815_v31 = vld [vmem:[%s951_s6 + $0x94] ss:$8 sps:$4 sm:$0xff]  }
  0x33   : > { %493 = vmatpush1.bf16.msra.mxu0 %v781_v6  ;;  %v817_v32 = vld [vmem:[%s951_s6 + $0x90] ss:$8 sps:$4 sm:$0xff]   ;;  %v818_v33 = vld [vmem:[%s951_s6 + $0x84] ss:$8 sps:$4 sm:$0xff]   ;;  %v820_v34 = vld [vmem:[%s951_s6 + $0x80] ss:$8 sps:$4 sm:$0xff]  }
  0x34   : > { %494 = vmatprep.subr.bf16.mxu0 %v782_v7  ;;  %v286_v36 = vld [vmem:[#allocation2] sm:$0xff]  ;;  %v287_v38 = vld [vmem:[#allocation2 + $0x8] sm:$0xff] }
  0x37   : > { %495 = vmatpush1.bf16.msra.mxu0 %v784_v8 }
  0x38   : > { %496 = vmatprep.subr.bf16.mxu0 %v785_v9 }
  0x3b   : > { %497 = vmatpush1.bf16.msra.mxu0 %v787_v10 }
  0x3c   : > { %498 = vmatprep.subr.bf16.mxu0 %v788_v11 }
  0x3f   : > { %499 = vmatpush1.bf16.msra.mxu0 %v790_v12 }
  0x40   : > { %500 = vmatprep.subr.bf16.mxu0 %v791_v13 }
  0x43   : > { %501 = vmatpush1.bf16.msra.mxu0 %v793_v16 }
  0x44   : > { %502 = vmatprep.subr.bf16.mxu0 %v794_v17 }
  0x47   : > { %503 = vmatpush1.bf16.msra.mxu0 %v796_v18 }
  0x48   : > { %504 = vmatprep.subr.bf16.mxu0 %v797_v19 }
  0x4b   : > { %505 = vmatpush2.bf16.msra.mxu0 %v799_v20 }
  0x4c   : > { %506 = vmatprep.subr.bf16.mxu0 %v800_v21 }
  0x4f   : > { %507 = vmatpush2.bf16.msra.mxu0 %v802_v22 }
  0x50   : > { %508 = vmatprep.subr.bf16.mxu0 %v803_v23 }
  0x53   : > { %509 = vmatpush2.bf16.msra.mxu0 %v805_v24 }
  0x54   : > { %510 = vmatprep.subr.bf16.mxu0 %v806_v25 }
  0x57   : > { %511 = vmatpush2.bf16.msra.mxu0 %v808_v26 }
  0x58   : > { %512 = vmatprep.subr.bf16.mxu0 %v809_v27 }
  0x5b   : > { %513 = vmatpush2.bf16.msra.mxu0 %v811_v28 }
  0x5c   : > { %514 = vmatprep.subr.bf16.mxu0 %v812_v29 }
  0x5f   : > { %515 = vmatpush2.bf16.msra.mxu0 %v814_v30 }
  0x60   : > { %516 = vmatprep.subr.bf16.mxu0 %v815_v31 }
  0x63   : > { %517 = vmatpush2.bf16.msra.mxu0 %v817_v32 }
  0x64   : > { %518 = vmatprep.subr.bf16.mxu0 %v818_v33 }
  0x67   : > { %519 = vmatpush2.bf16.msra.mxu0 %v820_v34 }
  0x6a   : > { %521 = vmatmul.mubr.bf16.vlgmr.msra.gmra.mxu0 %v695_v35 }
 0x12a   : > { %v522_v37 = vpop.f32.mrf.mxu0 }
 0x12b   : > { %v529_v39 = vadd.f32 %v522_v37, %v286_v36 }
 0x12c   : > { %v524_v40 = vpop.f32.mrf.mxu0  ;;  %536 = sbr.rel (%p729_p4) target bundleno = 320 (0x140), region = 44 }
 0x12d   : > { %531 = vst [vmem:[#allocation2] sm:$0xff] %v529_v39  ;;  %v530_v41 = vadd.f32 %v524_v40, %v287_v38 }
 0x12e   : > { %v526_v42 = vpop.f32.mrf.mxu0 }
 0x12f   : > { %532 = vst [vmem:[#allocation2 + $0x8] sm:$0xff] %v530_v41 }
 0x130   : > { %v527_v43 = vpop.f32.mrf.mxu0 }
 0x131   : > { %v541_v44 = vlaneseq  ;;  %v539_v46 = vld [vmem:[#allocation3] sm:$0x3] }
 0x133   : > { %v542_v45 = vshrl.u32 %v541_v44, 7 }
 0x134   : > { %v537_v49 = vld [vmem:[#allocation2] sm:$0xff] }
 0x135   : > { %v543_v47 = vsub.s32 0, %v542_v45  ;;  %v547_v48 = vsub.s32 1, %v542_v45 }
 0x136   : > { %v538_v50 = vld [vmem:[#allocation2 + $0x8] sm:$0xff] }
 0x137   : > { %v544_v51 = vrot.slane %v539_v46, %v543_v47  ;;  %v548_v52 = vrot.slane %v539_v46, %v547_v48 }
 0x139   : > { %v551_v53 = vadd.f32 %v544_v51, %v537_v49  ;;  %v552_v54 = vadd.f32 %v548_v52, %v538_v50 }
 0x13b   : > { %v553_v55 = vmax.f32 %v551_v53, 0.0  ;;  %v554_v56 = vmax.f32 %v552_v54, 0.0 }
 0x13d   : > { %v736_v57 = vpack.c.bf16 %v554_v56, %v553_v55 }
 0x13f   : > { %563 = vst [vmem:[%s1003_s3] sm:$0xff] %v736_v57 }
 0x140 PF: > { %s14_s14 = sadd.s32 1, %s875_s14   ;;  %s1006_s12 = smov %s871_s13 }
 0x141   : > { %p11_p5 = scmp.ge.s32.totalorder %s14_s14, 11   ;;  %s1007_s13 = smov %s1009_s16 }
 0x143   :  { %13 = sbr.rel (!%p11_p5) target bundleno = 2 (0x2), region = 79 }
 0x148   :  { %594 = vsyncpa [#allocation4], 1 }
 0x149   :  { %596 = vsyncpa [#allocation4 + $0x1], 1 }

// kernel: resnet50_forward.96
= control target key start
LH: loop header
LB: loop body
LE: loop exit
PB: predicated region body
PF: predicated region fallthrough
CT: control target
= control target key end

     0   :  { %s851_s12 = smov 0   ;;  %s853_s13 = smov 0   ;;  %s933_s0 = inlined_call_operand.vmem [shape: bf16[8,1024], index: 0, kind: input, shape index: {}]   ;;  %s934_s1 = inlined_call_operand.vmem [shape: bf16[1024,256], index: 1, kind: input, shape index: {}]   ;;  %s935_s2 = inlined_call_operand.vmem [shape: f32[1,256], index: 2, kind: input, shape index: {}]   ;;  %s936_s3 = inlined_call_operand.vmem [shape: bf16[8,256], index: 3, kind: output, shape index: {}]  }
   0x1   :  { %s855_s14 = smov 0  }
   0x2 LB: > { %s25_s15 = sadd.s32 1, %s824_s13  ;;  %p682_p0 = scmp.ge.s32.totalorder %s828_s14, 1  ;;  %s828_s14 = sphi %s855_s14, %s13_s14   ;;  %s824_s13 = sphi %s853_s13, %s938_s13   ;;  %s820_s12 = sphi %s851_s12, %s937_s12  }
   0x3   : > { %p26_p1 = scmp.ge.s32.totalorder %s25_s15, 4  ;;  %p194_p2 = scmp.lt.s32.totalorder %s828_s14, 5 }
   0x5   : > { %s940_s15 = smov (%p26_p1, %s25_s15), 0  ;;  %p195_p3 = pnand %p682_p0, %p194_p2 }
   0x6   : > { %s683_s16 = sshll.u32 (!%p195_p3), %s820_s12, 1  ;;  %s685_s17 = sshll.u32 (!%p195_p3), %s820_s12, 5 }
   0x7   : > { %198 = sbr.rel (%p195_p3) target bundleno = 301 (0x12d), region = 32  ;;  %p243_p4 = scmp.lt.s32.totalorder (!%p195_p3), %s683_s16, 7 }
   0x8   : > { %p252_p5 = scmp.lt.s32.totalorder (!%p195_p3), %s685_s17, 127  ;;  %p688_p6 = scmp.ne.s32.totalorder (!%p195_p3), %s820_s12, 0 }
   0xc   : > { %s942_s16 = smov (!%p243_p4, %s683_s16), 7  ;;  %s944_s17 = smov (!%p252_p5, %s685_s17), 127 }
   0xd   : > { %s684_s18 = sshll.u32 %s942_s16, 2  ;;  %s729_s22 = sshll.u32 %s944_s17, 3 }
   0xe   : > { %s876_s21 = scalar_lea.vmem %s933_s0, %s684_s18  ;;  %s881_s25 = scalar_lea.vmem %s934_s1, %s729_s22 }
   0xf   : > { %280 = sbr.rel (%p688_p6) target bundleno = 22 (0x16), region = 36 }
  0x14   : > { %v830_v0 = vmov 0.0  }
  0x15   : > { %281 = vst [vmem:[#allocation2] sm:$0xff] %v830_v0  ;;  %282 = vst [vmem:[#allocation2 + $0x8] sm:$0xff] %v830_v0 }
  0x16 PF: > { %v756_v1 = vld [vmem:[%s881_s25 + $0x74] ss:$8 sps:$4 sm:$0xff]   ;;  %v758_v2 = vld [vmem:[%s881_s25 + $0x70] ss:$8 sps:$4 sm:$0xff]   ;;  %v759_v3 = vld [vmem:[%s881_s25 + $0x64] ss:$8 sps:$4 sm:$0xff]  }
  0x17   : > { %485 = vmatprep.subr.bf16.mxu0 %v756_v1  ;;  %v761_v4 = vld [vmem:[%s881_s25 + $0x60] ss:$8 sps:$4 sm:$0xff]   ;;  %v762_v5 = vld [vmem:[%s881_s25 + $0x54] ss:$8 sps:$4 sm:$0xff]   ;;  %v764_v6 = vld [vmem:[%s881_s25 + $0x50] ss:$8 sps:$4 sm:$0xff]  }
  0x18   : > { %486 = vmatpush1.bf16.msra.mxu0 %v758_v2  ;;  %v765_v7 = vld [vmem:[%s881_s25 + $0x44] ss:$8 sps:$4 sm:$0xff]   ;;  %v767_v8 = vld [vmem:[%s881_s25 + $0x40] ss:$8 sps:$4 sm:$0xff]   ;;  %v768_v9 = vld [vmem:[%s881_s25 + $0x34] ss:$8 sps:$4 sm:$0xff]  }
  0x19   : > { %487 = vmatprep.subr.bf16.mxu0 %v759_v3  ;;  %v770_v10 = vld [vmem:[%s881_s25 + $0x30] ss:$8 sps:$4 sm:$0xff]   ;;  %v771_v11 = vld [vmem:[%s881_s25 + $0x24] ss:$8 sps:$4 sm:$0xff]   ;;  %v773_v12 = vld [vmem:[%s881_s25 + $0x20] ss:$8 sps:$4 sm:$0xff]  }
  0x1a   : > { %v774_v13 = vld [vmem:[%s881_s25 + $0x14] ss:$8 sps:$4 sm:$0xff]   ;;  %v285_v14 = vld [vmem:[%s876_s21] sm:$0xff]  ;;  %v776_v16 = vld [vmem:[%s881_s25 + $0x10] ss:$8 sps:$4 sm:$0xff]   ;;  %p723_p7 = scmp.ne.s32.totalorder %s820_s12, 3 }
  0x1b   : > { %v690_v15 = vcombine.high %v285_v14, %v285_v14  ;;  %v777_v17 = vld [vmem:[%s881_s25 + $0x4] ss:$8 sps:$4 sm:$0xff]   ;;  %v779_v18 = vld [vmem:[%s881_s25] ss:$8 sps:$4 sm:$0xff]   ;;  %v780_v19 = vld [vmem:[%s881_s25 + $0xf4] ss:$8 sps:$4 sm:$0xff]   ;;  %v689_v35 = vcombine.low %v285_v14, %v285_v14 }
  0x1c   : > { %488 = vmatpush1.bf16.msra.mxu0 %v761_v4  ;;  %v782_v20 = vld [vmem:[%s881_s25 + $0xf0] ss:$8 sps:$4 sm:$0xff]   ;;  %v783_v21 = vld [vmem:[%s881_s25 + $0xe4] ss:$8 sps:$4 sm:$0xff]   ;;  %v785_v22 = vld [vmem:[%s881_s25 + $0xe0] ss:$8 sps:$4 sm:$0xff]  }
  0x1d   : > { %489 = vmatprep.subr.bf16.mxu0 %v762_v5  ;;  %517 = vmatprep.mubr.bf16.mxu0 %v690_v15  ;;  %v786_v23 = vld [vmem:[%s881_s25 + $0xd4] ss:$8 sps:$4 sm:$0xff]   ;;  %v788_v24 = vld [vmem:[%s881_s25 + $0xd0] ss:$8 sps:$4 sm:$0xff]   ;;  %v789_v25 = vld [vmem:[%s881_s25 + $0xc4] ss:$8 sps:$4 sm:$0xff]  }
  0x1e   : > { %v791_v26 = vld [vmem:[%s881_s25 + $0xc0] ss:$8 sps:$4 sm:$0xff]   ;;  %v792_v27 = vld [vmem:[%s881_s25 + $0xb4] ss:$8 sps:$4 sm:$0xff]   ;;  %v794_v28 = vld [vmem:[%s881_s25 + $0xb0] ss:$8 sps:$4 sm:$0xff]  }
  0x1f   : > { %v795_v29 = vld [vmem:[%s881_s25 + $0xa4] ss:$8 sps:$4 sm:$0xff]   ;;  %v797_v30 = vld [vmem:[%s881_s25 + $0xa0] ss:$8 sps:$4 sm:$0xff]   ;;  %v798_v31 = vld [vmem:[%s881_s25 + $0x94] ss:$8 sps:$4 sm:$0xff]  }
  0x20   : > { %490 = vmatpush1.bf16.msra.mxu0 %v764_v6  ;;  %v800_v32 = vld [vmem:[%s881_s25 + $0x90] ss:$8 sps:$4 sm:$0xff]   ;;  %v801_v33 = vld [vmem:[%s881_s25 + $0x84] ss:$8 sps:$4 sm:$0xff]   ;;  %v803_v34 = vld [vmem:[%s881_s25 + $0x80] ss:$8 sps:$4 sm:$0xff]  }
  0x21   : > { %491 = vmatprep.subr.bf16.mxu0 %v765_v7  ;;  %v283_v36 = vld [vmem:[#allocation2] sm:$0xff]  ;;  %v284_v38 = vld [vmem:[#allocation2 + $0x8] sm:$0xff] }
  0x24   : > { %492 = vmatpush1.bf16.msra.mxu0 %v767_v8 }
  0x25   : > { %493 = vmatprep.subr.bf16.mxu0 %v768_v9 }
  0x28   : > { %494 = vmatpush1.bf16.msra.mxu0 %v770_v10 }
  0x29   : > { %495 = vmatprep.subr.bf16.mxu0 %v771_v11 }
  0x2c   : > { %496 = vmatpush1.bf16.msra.mxu0 %v773_v12 }
  0x2d   : > { %497 = vmatprep.subr.bf16.mxu0 %v774_v13 }
  0x30   : > { %498 = vmatpush1.bf16.msra.mxu0 %v776_v16 }
  0x31   : > { %499 = vmatprep.subr.bf16.mxu0 %v777_v17 }
  0x34   : > { %500 = vmatpush1.bf16.msra.mxu0 %v779_v18 }
  0x35   : > { %501 = vmatprep.subr.bf16.mxu0 %v780_v19 }
  0x38   : > { %502 = vmatpush2.bf16.msra.mxu0 %v782_v20 }
  0x39   : > { %503 = vmatprep.subr.bf16.mxu0 %v783_v21 }
  0x3c   : > { %504 = vmatpush2.bf16.msra.mxu0 %v785_v22 }
  0x3d   : > { %505 = vmatprep.subr.bf16.mxu0 %v786_v23 }
  0x40   : > { %506 = vmatpush2.bf16.msra.mxu0 %v788_v24 }
  0x41   : > { %507 = vmatprep.subr.bf16.mxu0 %v789_v25 }
  0x44   : > { %508 = vmatpush2.bf16.msra.mxu0 %v791_v26 }
  0x45   : > { %509 = vmatprep.subr.bf16.mxu0 %v792_v27 }
  0x48   : > { %510 = vmatpush2.bf16.msra.mxu0 %v794_v28 }
  0x49   : > { %511 = vmatprep.subr.bf16.mxu0 %v795_v29 }
  0x4c   : > { %512 = vmatpush2.bf16.msra.mxu0 %v797_v30 }
  0x4d   : > { %513 = vmatprep.subr.bf16.mxu0 %v798_v31 }
  0x50   : > { %514 = vmatpush2.bf16.msra.mxu0 %v800_v32 }
  0x51   : > { %515 = vmatprep.subr.bf16.mxu0 %v801_v33 }
  0x54   : > { %516 = vmatpush2.bf16.msra.mxu0 %v803_v34 }
  0x57   : > { %518 = vmatmul.mubr.bf16.vlgmr.msra.gmra.mxu0 %v689_v35 }
 0x117   : > { %v519_v37 = vpop.f32.mrf.mxu0 }
 0x118   : > { %v526_v39 = vadd.f32 %v519_v37, %v283_v36 }
 0x119   : > { %v521_v40 = vpop.f32.mrf.mxu0  ;;  %533 = sbr.rel (%p723_p7) target bundleno = 301 (0x12d), region = 40 }
 0x11a   : > { %528 = vst [vmem:[#allocation2] sm:$0xff] %v526_v39  ;;  %v527_v41 = vadd.f32 %v521_v40, %v284_v38 }
 0x11b   : > { %v523_v42 = vpop.f32.mrf.mxu0 }
 0x11c   : > { %529 = vst [vmem:[#allocation2 + $0x8] sm:$0xff] %v527_v41 }
 0x11d   : > { %v524_v43 = vpop.f32.mrf.mxu0 }
 0x11e   : > { %v538_v44 = vlaneseq  ;;  %v536_v46 = vld [vmem:[%s935_s2] sm:$0x3] }
 0x120   : > { %v539_v45 = vshrl.u32 %v538_v44, 7 }
 0x121   : > { %v534_v49 = vld [vmem:[#allocation2] sm:$0xff] }
 0x122   : > { %v540_v47 = vsub.s32 0, %v539_v45  ;;  %v544_v48 = vsub.s32 1, %v539_v45 }
 0x123   : > { %v535_v50 = vld [vmem:[#allocation2 + $0x8] sm:$0xff] }
 0x124   : > { %v541_v51 = vrot.slane %v536_v46, %v540_v47  ;;  %v545_v52 = vrot.slane %v536_v46, %v544_v48 }
 0x126   : > { %v548_v53 = vadd.f32 %v541_v51, %v534_v49  ;;  %v549_v54 = vadd.f32 %v545_v52, %v535_v50 }
 0x128   : > { %v550_v55 = vmax.f32 %v548_v53, 0.0  ;;  %v551_v56 = vmax.f32 %v549_v54, 0.0 }
 0x12a   : > { %v730_v57 = vpack.c.bf16 %v551_v56, %v550_v55 }
 0x12c   : > { %560 = vst [vmem:[%s936_s3] sm:$0xff] %v730_v57 }
 0x12d PF: > { %s13_s14 = sadd.s32 1, %s828_s14   ;;  %s937_s12 = smov %s824_s13 }
 0x12e   : > { %p10_p8 = scmp.ge.s32.totalorder %s13_s14, 6   ;;  %s938_s13 = smov %s940_s15 }
 0x130   :  { %12 = sbr.rel (!%p10_p8) target bundleno = 2 (0x2), region = 76 }

// kernel: resnet50_forward.99
= control target key start
LH: loop header
LB: loop body
LE: loop exit
PB: predicated region body
PF: predicated region fallthrough
CT: control target
= control target key end

     0   :  { %s1071_s12 = smov 0   ;;  %s1073_s13 = smov 0   ;;  %s1285_s0 = inlined_call_operand.vmem [shape: bf16[8,1024], index: 0, kind: input, shape index: {}]   ;;  %s1286_s1 = inlined_call_operand.vmem [shape: bf16[1024,512], index: 1, kind: input, shape index: {}]   ;;  %s1287_s2 = inlined_call_operand.vmem [shape: f32[1,512], index: 2, kind: input, shape index: {}]   ;;  %s1288_s3 = inlined_call_operand.vmem [shape: bf16[8,512], index: 3, kind: output, shape index: {}]  }
   0x1   :  { %s1075_s14 = smov 0   ;;  %s1077_s15 = smov 0  }
   0x2   :  { %s1079_s16 = smov 0   ;;  %s1081_s17 = smov 0  }
   0x3   :  { %s1083_s18 = smov 0  }
   0x4 LB: > { %s25_s19 = sadd.s32 1, %s1040_s16  ;;  %s28_s20 = sadd.s32 1, %s1044_s17  ;;  %s1048_s18 = sphi %s1083_s18, %s13_s18   ;;  %s1044_s17 = sphi %s1081_s17, %s1294_s17   ;;  %s1040_s16 = sphi %s1079_s16, %s1293_s16   ;;  %s1036_s15 = sphi %s1077_s15, %s1292_s15   ;;  %s1032_s14 = sphi %s1075_s14, %s1291_s14   ;;  %s1028_s13 = sphi %s1073_s13, %s1290_s13   ;;  %s1024_s12 = sphi %s1071_s12, %s1289_s12  }
   0x5   : > { %p26_p0 = scmp.ge.s32.totalorder %s25_s19, 4  ;;  %p76_p1 = scmp.ne.s32.totalorder %s1028_s13, %s1024_s12 }
   0x6   : > { %p77_p2 = scmp.eq.s32.totalorder %s1048_s18, 0  ;;  %s69_s24 = sadd.s32 1, %s1028_s13 }
   0x7   : > { %s1296_s19 = smov (%p26_p0, %s25_s19), 0  ;;  %s1298_s20 = smov (!%p26_p0, %s28_s20), %s1044_s17 }
   0x8   : > { %p78_p3 = por %p77_p2, %p76_p1  ;;  %p30_p4 = scmp.ge.s32.totalorder %s1298_s20, 2 }
   0x9   : > { %s64_s21 = ssub.s32 %s1040_s16, %s1296_s19  ;;  %p833_p6 = scmp.ge.s32.totalorder %s1048_s18, 8 }
   0xa   : > { %s1300_s20 = smov (%p30_p4, %s1298_s20), 0 }
   0xb   : > { %s65_s22 = ssub.s32 %s1044_s17, %s1300_s20  ;;  %156 = sbr.rel (%p833_p6) target bundleno = 39 (0x27), region = 16 }
   0xc   : > { %s66_s23 = sor.u32 %s65_s22, %s64_s21 }
   0xd   : > { %p67_p5 = scmp.eq.s32.totalorder %s66_s23, 0 }
   0xf   : > { %s1122_s25 = scalar_select %p67_p5, %s1028_s13, %s69_s24  }
  0x10   : > { %172 = sbr.rel (!%p78_p3) target bundleno = 39 (0x27), region = 24  ;;  %s174_s26 = sand.u32 (%p78_p3), 1, %s1028_s13  }
  0x11   : > { %s836_s27 = sshll.u32 (%p78_p3), %s1044_s17, 1  ;;  %s834_s28 = sshll.u32 (%p78_p3), %s174_s26, 8 }
  0x12   : > { %s885_s29 = sshll.u32 (%p78_p3), %s1040_s16, 7  ;;  %s1136_s8 = scalar_lea.vmem (%p78_p3), [#allocation3], %s834_s28 }
  0x13   : > { %s180_s30 = sadd.s32 (%p78_p3), %s885_s29, %s836_s27 }
  0x14   : > { %s838_s4 = sshll.u32 (%p78_p3), %s180_s30, 2 }
  0x15   : > { %s1131_s7 = scalar_lea.vmem %s1286_s1, %s838_s4 }
  0x16   : > { %v273_v0 = vld [vmem:[%s1131_s7] sm:$0xff]  ;;  %v275_v1 = vld [vmem:[%s1131_s7 + $0x10] sm:$0xff] }
  0x17   : > { %v277_v2 = vld [vmem:[%s1131_s7 + $0x20] sm:$0xff]  ;;  %274 = vst [vmem:[%s1136_s8] sm:$0xff] %v273_v0  ;;  %276 = vst [vmem:[%s1136_s8 + $0x8] sm:$0xff] %v275_v1  ;;  %v279_v3 = vld [vmem:[%s1131_s7 + $0x30] sm:$0xff] }
  0x18   : > { %278 = vst [vmem:[%s1136_s8 + $0x10] sm:$0xff] %v277_v2  ;;  %v281_v4 = vld [vmem:[%s1131_s7 + $0x40] sm:$0xff]  ;;  %v283_v5 = vld [vmem:[%s1131_s7 + $0x50] sm:$0xff]  ;;  %280 = vst [vmem:[%s1136_s8 + $0x18] sm:$0xff] %v279_v3 }
  0x19   : > { %282 = vst [vmem:[%s1136_s8 + $0x20] sm:$0xff] %v281_v4  ;;  %284 = vst [vmem:[%s1136_s8 + $0x28] sm:$0xff] %v283_v5  ;;  %v285_v6 = vld [vmem:[%s1131_s7 + $0x60] sm:$0xff]  ;;  %v287_v7 = vld [vmem:[%s1131_s7 + $0x70] sm:$0xff] }
  0x1a   : > { %v289_v8 = vld [vmem:[%s1131_s7 + $0x80] sm:$0xff]  ;;  %286 = vst [vmem:[%s1136_s8 + $0x30] sm:$0xff] %v285_v6  ;;  %288 = vst [vmem:[%s1136_s8 + $0x38] sm:$0xff] %v287_v7  ;;  %v291_v9 = vld [vmem:[%s1131_s7 + $0x90] sm:$0xff] }
  0x1b   : > { %290 = vst [vmem:[%s1136_s8 + $0x40] sm:$0xff] %v289_v8  ;;  %v293_v10 = vld [vmem:[%s1131_s7 + $0xa0] sm:$0xff]  ;;  %v295_v11 = vld [vmem:[%s1131_s7 + $0xb0] sm:$0xff]  ;;  %292 = vst [vmem:[%s1136_s8 + $0x48] sm:$0xff] %v291_v9 }
  0x1c   : > { %294 = vst [vmem:[%s1136_s8 + $0x50] sm:$0xff] %v293_v10  ;;  %296 = vst [vmem:[%s1136_s8 + $0x58] sm:$0xff] %v295_v11  ;;  %v297_v12 = vld [vmem:[%s1131_s7 + $0xc0] sm:$0xff]  ;;  %v299_v13 = vld [vmem:[%s1131_s7 + $0xd0] sm:$0xff] }
  0x1d   : > { %v301_v14 = vld [vmem:[%s1131_s7 + $0xe0] sm:$0xff]  ;;  %298 = vst [vmem:[%s1136_s8 + $0x60] sm:$0xff] %v297_v12  ;;  %300 = vst [vmem:[%s1136_s8 + $0x68] sm:$0xff] %v299_v13  ;;  %v303_v15 = vld [vmem:[%s1131_s7 + $0xf0] sm:$0xff] }
  0x1e   : > { %302 = vst [vmem:[%s1136_s8 + $0x70] sm:$0xff] %v301_v14  ;;  %v305_v16 = vld [vmem:[%s1131_s7 + $0x100] sm:$0xff]  ;;  %v307_v17 = vld [vmem:[%s1131_s7 + $0x110] sm:$0xff]  ;;  %304 = vst [vmem:[%s1136_s8 + $0x78] sm:$0xff] %v303_v15 }
  0x1f   : > { %306 = vst [vmem:[%s1136_s8 + $0x80] sm:$0xff] %v305_v16  ;;  %308 = vst [vmem:[%s1136_s8 + $0x88] sm:$0xff] %v307_v17  ;;  %v309_v18 = vld [vmem:[%s1131_s7 + $0x120] sm:$0xff]  ;;  %v311_v19 = vld [vmem:[%s1131_s7 + $0x130] sm:$0xff] }
  0x20   : > { %v313_v20 = vld [vmem:[%s1131_s7 + $0x140] sm:$0xff]  ;;  %310 = vst [vmem:[%s1136_s8 + $0x90] sm:$0xff] %v309_v18  ;;  %312 = vst [vmem:[%s1136_s8 + $0x98] sm:$0xff] %v311_v19  ;;  %v315_v21 = vld [vmem:[%s1131_s7 + $0x150] sm:$0xff] }
  0x21   : > { %314 = vst [vmem:[%s1136_s8 + $0xa0] sm:$0xff] %v313_v20  ;;  %v317_v22 = vld [vmem:[%s1131_s7 + $0x160] sm:$0xff]  ;;  %v319_v23 = vld [vmem:[%s1131_s7 + $0x170] sm:$0xff]  ;;  %316 = vst [vmem:[%s1136_s8 + $0xa8] sm:$0xff] %v315_v21 }
  0x22   : > { %318 = vst [vmem:[%s1136_s8 + $0xb0] sm:$0xff] %v317_v22  ;;  %320 = vst [vmem:[%s1136_s8 + $0xb8] sm:$0xff] %v319_v23  ;;  %v321_v24 = vld [vmem:[%s1131_s7 + $0x180] sm:$0xff]  ;;  %v323_v25 = vld [vmem:[%s1131_s7 + $0x190] sm:$0xff] }
  0x23   : > { %v325_v26 = vld [vmem:[%s1131_s7 + $0x1a0] sm:$0xff]  ;;  %322 = vst [vmem:[%s1136_s8 + $0xc0] sm:$0xff] %v321_v24  ;;  %324 = vst [vmem:[%s1136_s8 + $0xc8] sm:$0xff] %v323_v25  ;;  %v327_v27 = vld [vmem:[%s1131_s7 + $0x1b0] sm:$0xff] }
  0x24   : > { %326 = vst [vmem:[%s1136_s8 + $0xd0] sm:$0xff] %v325_v26  ;;  %v329_v28 = vld [vmem:[%s1131_s7 + $0x1c0] sm:$0xff]  ;;  %v331_v29 = vld [vmem:[%s1131_s7 + $0x1d0] sm:$0xff]  ;;  %328 = vst [vmem:[%s1136_s8 + $0xd8] sm:$0xff] %v327_v27 }
  0x25   : > { %330 = vst [vmem:[%s1136_s8 + $0xe0] sm:$0xff] %v329_v28  ;;  %332 = vst [vmem:[%s1136_s8 + $0xe8] sm:$0xff] %v331_v29  ;;  %v333_v30 = vld [vmem:[%s1131_s7 + $0x1e0] sm:$0xff]  ;;  %v335_v31 = vld [vmem:[%s1131_s7 + $0x1f0] sm:$0xff] }
  0x26   : > { %334 = vst [vmem:[%s1136_s8 + $0xf0] sm:$0xff] %v333_v30  ;;  %336 = vst [vmem:[%s1136_s8 + $0xf8] sm:$0xff] %v335_v31 }
  0x27 PF: > { %p839_p7 = scmp.ge.s32.totalorder %s1048_s18, 1  ;;  %p349_p8 = scmp.lt.s32.totalorder %s1048_s18, 9 }
  0x29   : > { %p350_p9 = pnand %p839_p7, %p349_p8 }
  0x2a   : > { %s356_s9 = sand.u32 (!%p350_p9), 1, %s1024_s12   ;;  %s841_s10 = sshll.u32 (!%p350_p9), %s1032_s14, 1 }
  0x2b   : > { %353 = sbr.rel (%p350_p9) target bundleno = 337 (0x151), region = 66  ;;  %s840_s11 = sshll.u32 (!%p350_p9), %s356_s9, 8 }
  0x2c   : > { %p399_p10 = scmp.lt.s32.totalorder (!%p350_p9), %s841_s10, 7  ;;  %s843_s21 = sshll.u32 (!%p350_p9), %s1036_s15, 1 }
  0x2d   : > { %p409_p11 = scmp.lt.s32.totalorder (!%p350_p9), %s843_s21, 3  ;;  %s1221_s5 = scalar_lea.vmem (!%p350_p9), [#allocation3], %s840_s11 }
  0x2e   : > { %p846_p12 = scmp.ne.s32.totalorder (!%p350_p9), %s1032_s14, 0 }
  0x30   : > { %s1302_s10 = smov (!%p399_p10, %s841_s10), 7  ;;  %s1304_s21 = smov (!%p409_p11, %s843_s21), 3 }
  0x31   : > { %s842_s22 = sshll.u32 %s1302_s10, 2  ;;  %s411_s12 = scalar_lea.vmem %s1287_s2, %s1304_s21 }
  0x32   : > { %s1207_s26 = scalar_lea.vmem %s1285_s0, %s842_s22  ;;  %s845_s29 = sshll.u32 %s1304_s21, 2 }
  0x33   : > { %s1219_s15 = scalar_lea.vmem %s1288_s3, %s845_s29  ;;  %426 = sbr.rel (%p846_p12) target bundleno = 58 (0x3a), region = 74 }
  0x38   : > { %v1050_v32 = vmov 0.0  }
  0x39   : > { %427 = vst [vmem:[#allocation2] sm:$0xff] %v1050_v32  ;;  %428 = vst [vmem:[#allocation2 + $0x8] sm:$0xff] %v1050_v32 }
  0x3a PF: > { %v944_v33 = vld [vmem:[%s1221_s5 + $0x74] ss:$8 sps:$4 sm:$0xff]   ;;  %v946_v34 = vld [vmem:[%s1221_s5 + $0x70] ss:$8 sps:$4 sm:$0xff]   ;;  %v947_v35 = vld [vmem:[%s1221_s5 + $0x64] ss:$8 sps:$4 sm:$0xff]  }
  0x3b   : > { %631 = vmatprep.subr.bf16.mxu0 %v944_v33  ;;  %v949_v36 = vld [vmem:[%s1221_s5 + $0x60] ss:$8 sps:$4 sm:$0xff]   ;;  %v950_v37 = vld [vmem:[%s1221_s5 + $0x54] ss:$8 sps:$4 sm:$0xff]   ;;  %v952_v38 = vld [vmem:[%s1221_s5 + $0x50] ss:$8 sps:$4 sm:$0xff]  }
  0x3c   : > { %632 = vmatpush1.bf16.msra.mxu0 %v946_v34  ;;  %v953_v39 = vld [vmem:[%s1221_s5 + $0x44] ss:$8 sps:$4 sm:$0xff]   ;;  %v955_v40 = vld [vmem:[%s1221_s5 + $0x40] ss:$8 sps:$4 sm:$0xff]   ;;  %v956_v41 = vld [vmem:[%s1221_s5 + $0x34] ss:$8 sps:$4 sm:$0xff]  }
  0x3d   : > { %633 = vmatprep.subr.bf16.mxu0 %v947_v35  ;;  %v958_v42 = vld [vmem:[%s1221_s5 + $0x30] ss:$8 sps:$4 sm:$0xff]   ;;  %v959_v43 = vld [vmem:[%s1221_s5 + $0x24] ss:$8 sps:$4 sm:$0xff]   ;;  %v961_v44 = vld [vmem:[%s1221_s5 + $0x20] ss:$8 sps:$4 sm:$0xff]  }
  0x3e   : > { %v962_v45 = vld [vmem:[%s1221_s5 + $0x14] ss:$8 sps:$4 sm:$0xff]   ;;  %v964_v48 = vld [vmem:[%s1221_s5 + $0x10] ss:$8 sps:$4 sm:$0xff]   ;;  %v965_v49 = vld [vmem:[%s1221_s5 + $0x4] ss:$8 sps:$4 sm:$0xff]  }
  0x3f   : > { %v431_v46 = vld [vmem:[%s1207_s26] sm:$0xff]  ;;  %v967_v50 = vld [vmem:[%s1221_s5] ss:$8 sps:$4 sm:$0xff]   ;;  %v971_v53 = vld [vmem:[%s1221_s5 + $0xe4] ss:$8 sps:$4 sm:$0xff]   ;;  %p881_p13 = scmp.ne.s32.totalorder %s1032_s14, 3 }
  0x40   : > { %634 = vmatpush1.bf16.msra.mxu0 %v949_v36  ;;  %v848_v47 = vcombine.high %v431_v46, %v431_v46  ;;  %v968_v51 = vld [vmem:[%s1221_s5 + $0xf4] ss:$8 sps:$4 sm:$0xff]   ;;  %v970_v52 = vld [vmem:[%s1221_s5 + $0xf0] ss:$8 sps:$4 sm:$0xff]   ;;  %v973_v54 = vld [vmem:[%s1221_s5 + $0xe0] ss:$8 sps:$4 sm:$0xff]   ;;  %v847_v3 = vcombine.low %v431_v46, %v431_v46 }
  0x41   : > { %635 = vmatprep.subr.bf16.mxu0 %v950_v37  ;;  %v974_v55 = vld [vmem:[%s1221_s5 + $0xd4] ss:$8 sps:$4 sm:$0xff]   ;;  %v976_v56 = vld [vmem:[%s1221_s5 + $0xd0] ss:$8 sps:$4 sm:$0xff]   ;;  %v977_v57 = vld [vmem:[%s1221_s5 + $0xc4] ss:$8 sps:$4 sm:$0xff]  }
  0x42   : > { %663 = vmatprep.mubr.bf16.mxu0 %v848_v47  ;;  %v979_v58 = vld [vmem:[%s1221_s5 + $0xc0] ss:$8 sps:$4 sm:$0xff]   ;;  %v980_v59 = vld [vmem:[%s1221_s5 + $0xb4] ss:$8 sps:$4 sm:$0xff]   ;;  %v982_v60 = vld [vmem:[%s1221_s5 + $0xb0] ss:$8 sps:$4 sm:$0xff]  }
  0x43   : > { %v983_v61 = vld [vmem:[%s1221_s5 + $0xa4] ss:$8 sps:$4 sm:$0xff]   ;;  %v985_v62 = vld [vmem:[%s1221_s5 + $0xa0] ss:$8 sps:$4 sm:$0xff]   ;;  %v986_v63 = vld [vmem:[%s1221_s5 + $0x94] ss:$8 sps:$4 sm:$0xff]  }
  0x44   : > { %636 = vmatpush1.bf16.msra.mxu0 %v952_v38  ;;  %v988_v0 = vld [vmem:[%s1221_s5 + $0x90] ss:$8 sps:$4 sm:$0xff]   ;;  %v989_v1 = vld [vmem:[%s1221_s5 + $0x84] ss:$8 sps:$4 sm:$0xff]   ;;  %v991_v2 = vld [vmem:[%s1221_s5 + $0x80] ss:$8 sps:$4 sm:$0xff]  }
  0x45   : > { %637 = vmatprep.subr.bf16.mxu0 %v953_v39  ;;  %v429_v4 = vld [vmem:[#allocation2] sm:$0xff]  ;;  %v430_v6 = vld [vmem:[#allocation2 + $0x8] sm:$0xff] }
  0x48   : > { %638 = vmatpush1.bf16.msra.mxu0 %v955_v40 }
  0x49   : > { %639 = vmatprep.subr.bf16.mxu0 %v956_v41 }
  0x4c   : > { %640 = vmatpush1.bf16.msra.mxu0 %v958_v42 }
  0x4d   : > { %641 = vmatprep.subr.bf16.mxu0 %v959_v43 }
  0x50   : > { %642 = vmatpush1.bf16.msra.mxu0 %v961_v44 }
  0x51   : > { %643 = vmatprep.subr.bf16.mxu0 %v962_v45 }
  0x54   : > { %644 = vmatpush1.bf16.msra.mxu0 %v964_v48 }
  0x55   : > { %645 = vmatprep.subr.bf16.mxu0 %v965_v49 }
  0x58   : > { %646 = vmatpush1.bf16.msra.mxu0 %v967_v50 }
  0x59   : > { %647 = vmatprep.subr.bf16.mxu0 %v968_v51 }
  0x5c   : > { %648 = vmatpush2.bf16.msra.mxu0 %v970_v52 }
  0x5d   : > { %649 = vmatprep.subr.bf16.mxu0 %v971_v53 }
  0x60   : > { %650 = vmatpush2.bf16.msra.mxu0 %v973_v54 }
  0x61   : > { %651 = vmatprep.subr.bf16.mxu0 %v974_v55 }
  0x64   : > { %652 = vmatpush2.bf16.msra.mxu0 %v976_v56 }
  0x65   : > { %653 = vmatprep.subr.bf16.mxu0 %v977_v57 }
  0x68   : > { %654 = vmatpush2.bf16.msra.mxu0 %v979_v58 }
  0x69   : > { %655 = vmatprep.subr.bf16.mxu0 %v980_v59 }
  0x6c   : > { %656 = vmatpush2.bf16.msra.mxu0 %v982_v60 }
  0x6d   : > { %657 = vmatprep.subr.bf16.mxu0 %v983_v61 }
  0x70   : > { %658 = vmatpush2.bf16.msra.mxu0 %v985_v62 }
  0x71   : > { %659 = vmatprep.subr.bf16.mxu0 %v986_v63 }
  0x74   : > { %660 = vmatpush2.bf16.msra.mxu0 %v988_v0 }
  0x75   : > { %661 = vmatprep.subr.bf16.mxu0 %v989_v1 }
  0x78   : > { %662 = vmatpush2.bf16.msra.mxu0 %v991_v2 }
  0x7b   : > { %664 = vmatmul.mubr.bf16.vlgmr.msra.gmra.mxu0 %v847_v3 }
 0x13b   : > { %v665_v5 = vpop.f32.mrf.mxu0 }
 0x13c   : > { %v672_v7 = vadd.f32 %v665_v5, %v429_v4 }
 0x13d   : > { %v667_v8 = vpop.f32.mrf.mxu0  ;;  %679 = sbr.rel (%p881_p13) target bundleno = 337 (0x151), region = 78 }
 0x13e   : > { %674 = vst [vmem:[#allocation2] sm:$0xff] %v672_v7  ;;  %v673_v9 = vadd.f32 %v667_v8, %v430_v6 }
 0x13f   : > { %v669_v10 = vpop.f32.mrf.mxu0 }
 0x140   : > { %675 = vst [vmem:[#allocation2 + $0x8] sm:$0xff] %v673_v9 }
 0x141   : > { %v670_v11 = vpop.f32.mrf.mxu0 }
 0x142   : > { %v684_v12 = vlaneseq  ;;  %v682_v14 = vld [vmem:[%s411_s12] sm:$0x3] }
 0x144   : > { %v685_v13 = vshrl.u32 %v684_v12, 7 }
 0x145   : > { %v680_v17 = vld [vmem:[#allocation2] sm:$0xff] }
 0x146   : > { %v686_v15 = vsub.s32 0, %v685_v13  ;;  %v690_v16 = vsub.s32 1, %v685_v13 }
 0x147   : > { %v681_v18 = vld [vmem:[#allocation2 + $0x8] sm:$0xff] }
 0x148   : > { %v687_v19 = vrot.slane %v682_v14, %v686_v15  ;;  %v691_v20 = vrot.slane %v682_v14, %v690_v16 }
 0x14a   : > { %v694_v21 = vadd.f32 %v687_v19, %v680_v17  ;;  %v695_v22 = vadd.f32 %v691_v20, %v681_v18 }
 0x14c   : > { %v696_v23 = vmax.f32 %v694_v21, 0.0  ;;  %v697_v24 = vmax.f32 %v695_v22, 0.0 }
 0x14e   : > { %v886_v25 = vpack.c.bf16 %v697_v24, %v696_v23 }
 0x150   : > { %706 = vst [vmem:[%s1219_s15] sm:$0xff] %v886_v25 }
 0x151 PF: > { %s13_s18 = sadd.s32 1, %s1048_s18   ;;  %s1289_s12 = smov %s1028_s13 }
 0x152   : > { %p10_p0 = scmp.ge.s32.totalorder %s13_s18, 10   ;;  %s1290_s13 = smov %s1122_s25 }
 0x153   : > { %s1291_s14 = smov %s1040_s16  ;;  %s1292_s15 = smov %s1044_s17 }
 0x154   : > { %s1293_s16 = smov %s1296_s19  ;;  %s1294_s17 = smov %s1300_s20 }
 0x155   :  { %12 = sbr.rel (!%p10_p0) target bundleno = 4 (0x4), region = 119 }

// kernel: resnet50_forward.100
= control target key start
LH: loop header
LB: loop body
LE: loop exit
PB: predicated region body
PF: predicated region fallthrough
CT: control target
= control target key end

     0   :  { %s1071_s12 = smov 0   ;;  %s1073_s13 = smov 0   ;;  %s1285_s0 = inlined_call_operand.vmem [shape: bf16[8,4608], index: 0, kind: input, shape index: {}]   ;;  %s1286_s1 = inlined_call_operand.vmem [shape: bf16[4608,512], index: 1, kind: input, shape index: {}]   ;;  %s1287_s2 = inlined_call_operand.vmem [shape: f32[1,512], index: 2, kind: input, shape index: {}]   ;;  %s1288_s3 = inlined_call_operand.vmem [shape: bf16[8,512], index: 3, kind: output, shape index: {}]  }
   0x1   :  { %s1075_s14 = smov 0   ;;  %s1077_s15 = smov 0  }
   0x2   :  { %s1079_s16 = smov 0   ;;  %s1081_s17 = smov 0  }
   0x3   :  { %s1083_s18 = smov 0  }
   0x4 LB: > { %s25_s19 = sadd.s32 1, %s1040_s16  ;;  %s28_s20 = sadd.s32 1, %s1044_s17  ;;  %s1048_s18 = sphi %s1083_s18, %s13_s18   ;;  %s1044_s17 = sphi %s1081_s17, %s1294_s17   ;;  %s1040_s16 = sphi %s1079_s16, %s1293_s16   ;;  %s1036_s15 = sphi %s1077_s15, %s1292_s15   ;;  %s1032_s14 = sphi %s1075_s14, %s1291_s14   ;;  %s1028_s13 = sphi %s1073_s13, %s1290_s13   ;;  %s1024_s12 = sphi %s1071_s12, %s1289_s12  }
   0x5   : > { %p26_p0 = scmp.ge.s32.totalorder %s25_s19, 18  ;;  %p76_p1 = scmp.ne.s32.totalorder %s1028_s13, %s1024_s12 }
   0x6   : > { %p77_p2 = scmp.eq.s32.totalorder %s1048_s18, 0  ;;  %s69_s24 = sadd.s32 1, %s1028_s13 }
   0x7   : > { %s1296_s19 = smov (%p26_p0, %s25_s19), 0  ;;  %s1298_s20 = smov (!%p26_p0, %s28_s20), %s1044_s17 }
   0x8   : > { %p78_p3 = por %p77_p2, %p76_p1  ;;  %p30_p4 = scmp.ge.s32.totalorder %s1298_s20, 2 }
   0x9   : > { %s64_s21 = ssub.s32 %s1040_s16, %s1296_s19  ;;  %p833_p6 = scmp.ge.s32.totalorder %s1048_s18, 36 }
   0xa   : > { %s1300_s20 = smov (%p30_p4, %s1298_s20), 0 }
   0xb   : > { %s65_s22 = ssub.s32 %s1044_s17, %s1300_s20  ;;  %156 = sbr.rel (%p833_p6) target bundleno = 39 (0x27), region = 16 }
   0xc   : > { %s66_s23 = sor.u32 %s65_s22, %s64_s21 }
   0xd   : > { %p67_p5 = scmp.eq.s32.totalorder %s66_s23, 0 }
   0xf   : > { %s1122_s25 = scalar_select %p67_p5, %s1028_s13, %s69_s24  }
  0x10   : > { %172 = sbr.rel (!%p78_p3) target bundleno = 39 (0x27), region = 24  ;;  %s174_s26 = sand.u32 (%p78_p3), 1, %s1028_s13  }
  0x11   : > { %s836_s27 = sshll.u32 (%p78_p3), %s1044_s17, 1  ;;  %s834_s28 = sshll.u32 (%p78_p3), %s174_s26, 8 }
  0x12   : > { %s885_s29 = sshll.u32 (%p78_p3), %s1040_s16, 7  ;;  %s1136_s8 = scalar_lea.vmem (%p78_p3), [#allocation3], %s834_s28 }
  0x13   : > { %s180_s30 = sadd.s32 (%p78_p3), %s885_s29, %s836_s27 }
  0x14   : > { %s838_s4 = sshll.u32 (%p78_p3), %s180_s30, 2 }
  0x15   : > { %s1131_s7 = scalar_lea.vmem %s1286_s1, %s838_s4 }
  0x16   : > { %v273_v0 = vld [vmem:[%s1131_s7] sm:$0xff]  ;;  %v275_v1 = vld [vmem:[%s1131_s7 + $0x10] sm:$0xff] }
  0x17   : > { %v277_v2 = vld [vmem:[%s1131_s7 + $0x20] sm:$0xff]  ;;  %274 = vst [vmem:[%s1136_s8] sm:$0xff] %v273_v0  ;;  %276 = vst [vmem:[%s1136_s8 + $0x8] sm:$0xff] %v275_v1  ;;  %v279_v3 = vld [vmem:[%s1131_s7 + $0x30] sm:$0xff] }
  0x18   : > { %278 = vst [vmem:[%s1136_s8 + $0x10] sm:$0xff] %v277_v2  ;;  %v281_v4 = vld [vmem:[%s1131_s7 + $0x40] sm:$0xff]  ;;  %v283_v5 = vld [vmem:[%s1131_s7 + $0x50] sm:$0xff]  ;;  %280 = vst [vmem:[%s1136_s8 + $0x18] sm:$0xff] %v279_v3 }
  0x19   : > { %282 = vst [vmem:[%s1136_s8 + $0x20] sm:$0xff] %v281_v4  ;;  %284 = vst [vmem:[%s1136_s8 + $0x28] sm:$0xff] %v283_v5  ;;  %v285_v6 = vld [vmem:[%s1131_s7 + $0x60] sm:$0xff]  ;;  %v287_v7 = vld [vmem:[%s1131_s7 + $0x70] sm:$0xff] }
  0x1a   : > { %v289_v8 = vld [vmem:[%s1131_s7 + $0x80] sm:$0xff]  ;;  %286 = vst [vmem:[%s1136_s8 + $0x30] sm:$0xff] %v285_v6  ;;  %288 = vst [vmem:[%s1136_s8 + $0x38] sm:$0xff] %v287_v7  ;;  %v291_v9 = vld [vmem:[%s1131_s7 + $0x90] sm:$0xff] }
  0x1b   : > { %290 = vst [vmem:[%s1136_s8 + $0x40] sm:$0xff] %v289_v8  ;;  %v293_v10 = vld [vmem:[%s1131_s7 + $0xa0] sm:$0xff]  ;;  %v295_v11 = vld [vmem:[%s1131_s7 + $0xb0] sm:$0xff]  ;;  %292 = vst [vmem:[%s1136_s8 + $0x48] sm:$0xff] %v291_v9 }
  0x1c   : > { %294 = vst [vmem:[%s1136_s8 + $0x50] sm:$0xff] %v293_v10  ;;  %296 = vst [vmem:[%s1136_s8 + $0x58] sm:$0xff] %v295_v11  ;;  %v297_v12 = vld [vmem:[%s1131_s7 + $0xc0] sm:$0xff]  ;;  %v299_v13 = vld [vmem:[%s1131_s7 + $0xd0] sm:$0xff] }
  0x1d   : > { %v301_v14 = vld [vmem:[%s1131_s7 + $0xe0] sm:$0xff]  ;;  %298 = vst [vmem:[%s1136_s8 + $0x60] sm:$0xff] %v297_v12  ;;  %300 = vst [vmem:[%s1136_s8 + $0x68] sm:$0xff] %v299_v13  ;;  %v303_v15 = vld [vmem:[%s1131_s7 + $0xf0] sm:$0xff] }
  0x1e   : > { %302 = vst [vmem:[%s1136_s8 + $0x70] sm:$0xff] %v301_v14  ;;  %v305_v16 = vld [vmem:[%s1131_s7 + $0x100] sm:$0xff]  ;;  %v307_v17 = vld [vmem:[%s1131_s7 + $0x110] sm:$0xff]  ;;  %304 = vst [vmem:[%s1136_s8 + $0x78] sm:$0xff] %v303_v15 }
  0x1f   : > { %306 = vst [vmem:[%s1136_s8 + $0x80] sm:$0xff] %v305_v16  ;;  %308 = vst [vmem:[%s1136_s8 + $0x88] sm:$0xff] %v307_v17  ;;  %v309_v18 = vld [vmem:[%s1131_s7 + $0x120] sm:$0xff]  ;;  %v311_v19 = vld [vmem:[%s1131_s7 + $0x130] sm:$0xff] }
  0x20   : > { %v313_v20 = vld [vmem:[%s1131_s7 + $0x140] sm:$0xff]  ;;  %310 = vst [vmem:[%s1136_s8 + $0x90] sm:$0xff] %v309_v18  ;;  %312 = vst [vmem:[%s1136_s8 + $0x98] sm:$0xff] %v311_v19  ;;  %v315_v21 = vld [vmem:[%s1131_s7 + $0x150] sm:$0xff] }
  0x21   : > { %314 = vst [vmem:[%s1136_s8 + $0xa0] sm:$0xff] %v313_v20  ;;  %v317_v22 = vld [vmem:[%s1131_s7 + $0x160] sm:$0xff]  ;;  %v319_v23 = vld [vmem:[%s1131_s7 + $0x170] sm:$0xff]  ;;  %316 = vst [vmem:[%s1136_s8 + $0xa8] sm:$0xff] %v315_v21 }
  0x22   : > { %318 = vst [vmem:[%s1136_s8 + $0xb0] sm:$0xff] %v317_v22  ;;  %320 = vst [vmem:[%s1136_s8 + $0xb8] sm:$0xff] %v319_v23  ;;  %v321_v24 = vld [vmem:[%s1131_s7 + $0x180] sm:$0xff]  ;;  %v323_v25 = vld [vmem:[%s1131_s7 + $0x190] sm:$0xff] }
  0x23   : > { %v325_v26 = vld [vmem:[%s1131_s7 + $0x1a0] sm:$0xff]  ;;  %322 = vst [vmem:[%s1136_s8 + $0xc0] sm:$0xff] %v321_v24  ;;  %324 = vst [vmem:[%s1136_s8 + $0xc8] sm:$0xff] %v323_v25  ;;  %v327_v27 = vld [vmem:[%s1131_s7 + $0x1b0] sm:$0xff] }
  0x24   : > { %326 = vst [vmem:[%s1136_s8 + $0xd0] sm:$0xff] %v325_v26  ;;  %v329_v28 = vld [vmem:[%s1131_s7 + $0x1c0] sm:$0xff]  ;;  %v331_v29 = vld [vmem:[%s1131_s7 + $0x1d0] sm:$0xff]  ;;  %328 = vst [vmem:[%s1136_s8 + $0xd8] sm:$0xff] %v327_v27 }
  0x25   : > { %330 = vst [vmem:[%s1136_s8 + $0xe0] sm:$0xff] %v329_v28  ;;  %332 = vst [vmem:[%s1136_s8 + $0xe8] sm:$0xff] %v331_v29  ;;  %v333_v30 = vld [vmem:[%s1131_s7 + $0x1e0] sm:$0xff]  ;;  %v335_v31 = vld [vmem:[%s1131_s7 + $0x1f0] sm:$0xff] }
  0x26   : > { %334 = vst [vmem:[%s1136_s8 + $0xf0] sm:$0xff] %v333_v30  ;;  %336 = vst [vmem:[%s1136_s8 + $0xf8] sm:$0xff] %v335_v31 }
  0x27 PF: > { %p839_p7 = scmp.ge.s32.totalorder %s1048_s18, 1  ;;  %p349_p8 = scmp.lt.s32.totalorder %s1048_s18, 37 }
  0x29   : > { %p350_p9 = pnand %p839_p7, %p349_p8 }
  0x2a   : > { %s356_s9 = sand.u32 (!%p350_p9), 1, %s1024_s12   ;;  %s841_s10 = sshll.u32 (!%p350_p9), %s1032_s14, 1 }
  0x2b   : > { %353 = sbr.rel (%p350_p9) target bundleno = 337 (0x151), region = 66  ;;  %s840_s11 = sshll.u32 (!%p350_p9), %s356_s9, 8 }
  0x2c   : > { %p399_p10 = scmp.lt.s32.totalorder (!%p350_p9), %s841_s10, 35  ;;  %s843_s21 = sshll.u32 (!%p350_p9), %s1036_s15, 1 }
  0x2d   : > { %p409_p11 = scmp.lt.s32.totalorder (!%p350_p9), %s843_s21, 3  ;;  %s1221_s5 = scalar_lea.vmem (!%p350_p9), [#allocation3], %s840_s11 }
  0x2e   : > { %p846_p12 = scmp.ne.s32.totalorder (!%p350_p9), %s1032_s14, 0 }
  0x30   : > { %s1302_s10 = smov (!%p399_p10, %s841_s10), 35  ;;  %s1304_s21 = smov (!%p409_p11, %s843_s21), 3 }
  0x31   : > { %s842_s22 = sshll.u32 %s1302_s10, 2  ;;  %s411_s12 = scalar_lea.vmem %s1287_s2, %s1304_s21 }
  0x32   : > { %s1207_s26 = scalar_lea.vmem %s1285_s0, %s842_s22  ;;  %s845_s29 = sshll.u32 %s1304_s21, 2 }
  0x33   : > { %s1219_s15 = scalar_lea.vmem %s1288_s3, %s845_s29  ;;  %426 = sbr.rel (%p846_p12) target bundleno = 58 (0x3a), region = 74 }
  0x38   : > { %v1050_v32 = vmov 0.0  }
  0x39   : > { %427 = vst [vmem:[#allocation2] sm:$0xff] %v1050_v32  ;;  %428 = vst [vmem:[#allocation2 + $0x8] sm:$0xff] %v1050_v32 }
  0x3a PF: > { %v944_v33 = vld [vmem:[%s1221_s5 + $0x74] ss:$8 sps:$4 sm:$0xff]   ;;  %v946_v34 = vld [vmem:[%s1221_s5 + $0x70] ss:$8 sps:$4 sm:$0xff]   ;;  %v947_v35 = vld [vmem:[%s1221_s5 + $0x64] ss:$8 sps:$4 sm:$0xff]  }
  0x3b   : > { %631 = vmatprep.subr.bf16.mxu0 %v944_v33  ;;  %v949_v36 = vld [vmem:[%s1221_s5 + $0x60] ss:$8 sps:$4 sm:$0xff]   ;;  %v950_v37 = vld [vmem:[%s1221_s5 + $0x54] ss:$8 sps:$4 sm:$0xff]   ;;  %v952_v38 = vld [vmem:[%s1221_s5 + $0x50] ss:$8 sps:$4 sm:$0xff]  }
  0x3c   : > { %632 = vmatpush1.bf16.msra.mxu0 %v946_v34  ;;  %v953_v39 = vld [vmem:[%s1221_s5 + $0x44] ss:$8 sps:$4 sm:$0xff]   ;;  %v955_v40 = vld [vmem:[%s1221_s5 + $0x40] ss:$8 sps:$4 sm:$0xff]   ;;  %v956_v41 = vld [vmem:[%s1221_s5 + $0x34] ss:$8 sps:$4 sm:$0xff]  }
  0x3d   : > { %633 = vmatprep.subr.bf16.mxu0 %v947_v35  ;;  %v958_v42 = vld [vmem:[%s1221_s5 + $0x30] ss:$8 sps:$4 sm:$0xff]   ;;  %v959_v43 = vld [vmem:[%s1221_s5 + $0x24] ss:$8 sps:$4 sm:$0xff]   ;;  %v961_v44 = vld [vmem:[%s1221_s5 + $0x20] ss:$8 sps:$4 sm:$0xff]  }
  0x3e   : > { %v962_v45 = vld [vmem:[%s1221_s5 + $0x14] ss:$8 sps:$4 sm:$0xff]   ;;  %v964_v48 = vld [vmem:[%s1221_s5 + $0x10] ss:$8 sps:$4 sm:$0xff]   ;;  %v965_v49 = vld [vmem:[%s1221_s5 + $0x4] ss:$8 sps:$4 sm:$0xff]  }
  0x3f   : > { %v431_v46 = vld [vmem:[%s1207_s26] sm:$0xff]  ;;  %v967_v50 = vld [vmem:[%s1221_s5] ss:$8 sps:$4 sm:$0xff]   ;;  %v971_v53 = vld [vmem:[%s1221_s5 + $0xe4] ss:$8 sps:$4 sm:$0xff]   ;;  %p881_p13 = scmp.ne.s32.totalorder %s1032_s14, 17 }
  0x40   : > { %634 = vmatpush1.bf16.msra.mxu0 %v949_v36  ;;  %v848_v47 = vcombine.high %v431_v46, %v431_v46  ;;  %v968_v51 = vld [vmem:[%s1221_s5 + $0xf4] ss:$8 sps:$4 sm:$0xff]   ;;  %v970_v52 = vld [vmem:[%s1221_s5 + $0xf0] ss:$8 sps:$4 sm:$0xff]   ;;  %v973_v54 = vld [vmem:[%s1221_s5 + $0xe0] ss:$8 sps:$4 sm:$0xff]   ;;  %v847_v3 = vcombine.low %v431_v46, %v431_v46 }
  0x41   : > { %635 = vmatprep.subr.bf16.mxu0 %v950_v37  ;;  %v974_v55 = vld [vmem:[%s1221_s5 + $0xd4] ss:$8 sps:$4 sm:$0xff]   ;;  %v976_v56 = vld [vmem:[%s1221_s5 + $0xd0] ss:$8 sps:$4 sm:$0xff]   ;;  %v977_v57 = vld [vmem:[%s1221_s5 + $0xc4] ss:$8 sps:$4 sm:$0xff]  }
  0x42   : > { %663 = vmatprep.mubr.bf16.mxu0 %v848_v47  ;;  %v979_v58 = vld [vmem:[%s1221_s5 + $0xc0] ss:$8 sps:$4 sm:$0xff]   ;;  %v980_v59 = vld [vmem:[%s1221_s5 + $0xb4] ss:$8 sps:$4 sm:$0xff]   ;;  %v982_v60 = vld [vmem:[%s1221_s5 + $0xb0] ss:$8 sps:$4 sm:$0xff]  }
  0x43   : > { %v983_v61 = vld [vmem:[%s1221_s5 + $0xa4] ss:$8 sps:$4 sm:$0xff]   ;;  %v985_v62 = vld [vmem:[%s1221_s5 + $0xa0] ss:$8 sps:$4 sm:$0xff]   ;;  %v986_v63 = vld [vmem:[%s1221_s5 + $0x94] ss:$8 sps:$4 sm:$0xff]  }
  0x44   : > { %636 = vmatpush1.bf16.msra.mxu0 %v952_v38  ;;  %v988_v0 = vld [vmem:[%s1221_s5 + $0x90] ss:$8 sps:$4 sm:$0xff]   ;;  %v989_v1 = vld [vmem:[%s1221_s5 + $0x84] ss:$8 sps:$4 sm:$0xff]   ;;  %v991_v2 = vld [vmem:[%s1221_s5 + $0x80] ss:$8 sps:$4 sm:$0xff]  }
  0x45   : > { %637 = vmatprep.subr.bf16.mxu0 %v953_v39  ;;  %v429_v4 = vld [vmem:[#allocation2] sm:$0xff]  ;;  %v430_v6 = vld [vmem:[#allocation2 + $0x8] sm:$0xff] }
  0x48   : > { %638 = vmatpush1.bf16.msra.mxu0 %v955_v40 }
  0x49   : > { %639 = vmatprep.subr.bf16.mxu0 %v956_v41 }
  0x4c   : > { %640 = vmatpush1.bf16.msra.mxu0 %v958_v42 }
  0x4d   : > { %641 = vmatprep.subr.bf16.mxu0 %v959_v43 }
  0x50   : > { %642 = vmatpush1.bf16.msra.mxu0 %v961_v44 }
  0x51   : > { %643 = vmatprep.subr.bf16.mxu0 %v962_v45 }
  0x54   : > { %644 = vmatpush1.bf16.msra.mxu0 %v964_v48 }
  0x55   : > { %645 = vmatprep.subr.bf16.mxu0 %v965_v49 }
  0x58   : > { %646 = vmatpush1.bf16.msra.mxu0 %v967_v50 }
  0x59   : > { %647 = vmatprep.subr.bf16.mxu0 %v968_v51 }
  0x5c   : > { %648 = vmatpush2.bf16.msra.mxu0 %v970_v52 }
  0x5d   : > { %649 = vmatprep.subr.bf16.mxu0 %v971_v53 }
  0x60   : > { %650 = vmatpush2.bf16.msra.mxu0 %v973_v54 }
  0x61   : > { %651 = vmatprep.subr.bf16.mxu0 %v974_v55 }
  0x64   : > { %652 = vmatpush2.bf16.msra.mxu0 %v976_v56 }
  0x65   : > { %653 = vmatprep.subr.bf16.mxu0 %v977_v57 }
  0x68   : > { %654 = vmatpush2.bf16.msra.mxu0 %v979_v58 }
  0x69   : > { %655 = vmatprep.subr.bf16.mxu0 %v980_v59 }
  0x6c   : > { %656 = vmatpush2.bf16.msra.mxu0 %v982_v60 }
  0x6d   : > { %657 = vmatprep.subr.bf16.mxu0 %v983_v61 }
  0x70   : > { %658 = vmatpush2.bf16.msra.mxu0 %v985_v62 }
  0x71   : > { %659 = vmatprep.subr.bf16.mxu0 %v986_v63 }
  0x74   : > { %660 = vmatpush2.bf16.msra.mxu0 %v988_v0 }
  0x75   : > { %661 = vmatprep.subr.bf16.mxu0 %v989_v1 }
  0x78   : > { %662 = vmatpush2.bf16.msra.mxu0 %v991_v2 }
  0x7b   : > { %664 = vmatmul.mubr.bf16.vlgmr.msra.gmra.mxu0 %v847_v3 }
 0x13b   : > { %v665_v5 = vpop.f32.mrf.mxu0 }
 0x13c   : > { %v672_v7 = vadd.f32 %v665_v5, %v429_v4 }
 0x13d   : > { %v667_v8 = vpop.f32.mrf.mxu0  ;;  %679 = sbr.rel (%p881_p13) target bundleno = 337 (0x151), region = 78 }
 0x13e   : > { %674 = vst [vmem:[#allocation2] sm:$0xff] %v672_v7  ;;  %v673_v9 = vadd.f32 %v667_v8, %v430_v6 }
 0x13f   : > { %v669_v10 = vpop.f32.mrf.mxu0 }
 0x140   : > { %675 = vst [vmem:[#allocation2 + $0x8] sm:$0xff] %v673_v9 }
 0x141   : > { %v670_v11 = vpop.f32.mrf.mxu0 }
 0x142   : > { %v684_v12 = vlaneseq  ;;  %v682_v14 = vld [vmem:[%s411_s12] sm:$0x3] }
 0x144   : > { %v685_v13 = vshrl.u32 %v684_v12, 7 }
 0x145   : > { %v680_v17 = vld [vmem:[#allocation2] sm:$0xff] }
 0x146   : > { %v686_v15 = vsub.s32 0, %v685_v13  ;;  %v690_v16 = vsub.s32 1, %v685_v13 }
 0x147   : > { %v681_v18 = vld [vmem:[#allocation2 + $0x8] sm:$0xff] }
 0x148   : > { %v687_v19 = vrot.slane %v682_v14, %v686_v15  ;;  %v691_v20 = vrot.slane %v682_v14, %v690_v16 }
 0x14a   : > { %v694_v21 = vadd.f32 %v687_v19, %v680_v17  ;;  %v695_v22 = vadd.f32 %v691_v20, %v681_v18 }
 0x14c   : > { %v696_v23 = vmax.f32 %v694_v21, 0.0  ;;  %v697_v24 = vmax.f32 %v695_v22, 0.0 }
 0x14e   : > { %v886_v25 = vpack.c.bf16 %v697_v24, %v696_v23 }
 0x150   : > { %706 = vst [vmem:[%s1219_s15] sm:$0xff] %v886_v25 }
 0x151 PF: > { %s13_s18 = sadd.s32 1, %s1048_s18   ;;  %s1289_s12 = smov %s1028_s13 }
 0x152   : > { %p10_p0 = scmp.ge.s32.totalorder %s13_s18, 38   ;;  %s1290_s13 = smov %s1122_s25 }
 0x153   : > { %s1291_s14 = smov %s1040_s16  ;;  %s1292_s15 = smov %s1044_s17 }
 0x154   : > { %s1293_s16 = smov %s1296_s19  ;;  %s1294_s17 = smov %s1300_s20 }
 0x155   :  { %12 = sbr.rel (!%p10_p0) target bundleno = 4 (0x4), region = 119 }

// kernel: resnet50_forward.102
= control target key start
LH: loop header
LB: loop body
LE: loop exit
PB: predicated region body
PF: predicated region fallthrough
CT: control target
= control target key end

     0   :  { %s1164_s15 = smov 0   ;;  %s1166_s16 = smov 0   ;;  %s1384_s0 = inlined_call_operand.vmem [shape: bf16[8,512], index: 0, kind: input, shape index: {}]   ;;  %s1385_s1 = inlined_call_operand.vmem [shape: bf16[512,2048], index: 1, kind: input, shape index: {}]   ;;  %s1386_s2 = inlined_call_operand.vmem [shape: f32[1,2048], index: 2, kind: input, shape index: {}]   ;;  %s1387_s3 = inlined_call_operand.vmem [shape: bf16[8,2048], index: 3, kind: input, shape index: {}]   ;;  %s1388_s4 = inlined_call_operand.vmem [shape: bf16[8,2048], index: 4, kind: output, shape index: {}]  }
   0x1   :  { %s1168_s17 = smov 0   ;;  %s1170_s18 = smov 0  }
   0x2   :  { %s1172_s19 = smov 0   ;;  %s1174_s20 = smov 0  }
   0x3   :  { %s1176_s21 = smov 0  }
   0x4 LB: > { %s26_s22 = sadd.s32 1, %s1128_s19  ;;  %s29_s23 = sadd.s32 1, %s1132_s20  ;;  %s1136_s21 = sphi %s1176_s21, %s14_s21   ;;  %s1132_s20 = sphi %s1174_s20, %s1394_s20   ;;  %s1128_s19 = sphi %s1172_s19, %s1393_s19   ;;  %s1124_s18 = sphi %s1170_s18, %s1392_s18   ;;  %s1120_s17 = sphi %s1168_s17, %s1391_s17   ;;  %s1116_s16 = sphi %s1166_s16, %s1390_s16   ;;  %s1112_s15 = sphi %s1164_s15, %s1389_s15  }
   0x5   : > { %p27_p0 = scmp.ge.s32.totalorder %s26_s22, 2  ;;  %p77_p1 = scmp.ne.s32.totalorder %s1116_s16, %s1112_s15 }
   0x6   : > { %p78_p2 = scmp.eq.s32.totalorder %s1136_s21, 0  ;;  %s70_s27 = sadd.s32 1, %s1116_s16 }
   0x7   : > { %s1396_s22 = smov (%p27_p0, %s26_s22), 0  ;;  %s1398_s23 = smov (!%p27_p0, %s29_s23), %s1132_s20 }
   0x8   : > { %p79_p3 = por %p78_p2, %p77_p1  ;;  %p31_p4 = scmp.ge.s32.totalorder %s1398_s23, 8 }
   0x9   : > { %s65_s24 = ssub.s32 %s1128_s19, %s1396_s22  ;;  %p919_p6 = scmp.ge.s32.totalorder %s1136_s21, 16 }
   0xa   : > { %s1400_s23 = smov (%p31_p4, %s1398_s23), 0 }
   0xb   : > { %s66_s25 = ssub.s32 %s1132_s20, %s1400_s23  ;;  %185 = sbr.rel (%p919_p6) target bundleno = 55 (0x37), region = 16 }
   0xc   : > { %s67_s26 = sor.u32 %s66_s25, %s65_s24 }
   0xd   : > { %p68_p5 = scmp.eq.s32.totalorder %s67_s26, 0 }
   0xf   : > { %s1215_s28 = scalar_select %p68_p5, %s1116_s16, %s70_s27  }
  0x10   : > { %201 = sbr.rel (!%p79_p3) target bundleno = 55 (0x37), region = 24  ;;  %s203_s29 = sand.u32 (%p79_p3), 1, %s1116_s16  }
  0x11   : > { %s922_s30 = sshll.u32 (%p79_p3), %s1132_s20, 1  ;;  %s920_s5 = sshll.u32 (%p79_p3), %s203_s29, 8 }
  0x12   : > { %s973_s6 = sshll.u32 (%p79_p3), %s1128_s19, 9  ;;  %s1229_s12 = scalar_lea.vmem (%p79_p3), [#allocation3], %s920_s5 }
  0x13   : > { %s209_s7 = sadd.s32 (%p79_p3), %s973_s6, %s922_s30 }
  0x14   : > { %s924_s8 = sshll.u32 (%p79_p3), %s209_s7, 2 }
  0x15   : > { %s1224_s11 = scalar_lea.vmem %s1385_s1, %s924_s8 }
  0x16   : > { %v302_v0 = vld [vmem:[%s1224_s11] sm:$0xff] }
  0x17   : > { %v304_v1 = vld [vmem:[%s1224_s11 + $0x40] sm:$0xff]  ;;  %303 = vst [vmem:[%s1229_s12] sm:$0xff] %v302_v0 }
  0x18   : > { %v306_v2 = vld [vmem:[%s1224_s11 + $0x80] sm:$0xff]  ;;  %305 = vst [vmem:[%s1229_s12 + $0x8] sm:$0xff] %v304_v1 }
  0x19   : > { %307 = vst [vmem:[%s1229_s12 + $0x10] sm:$0xff] %v306_v2  ;;  %v308_v3 = vld [vmem:[%s1224_s11 + $0xc0] sm:$0xff] }
  0x1a   : > { %v310_v4 = vld [vmem:[%s1224_s11 + $0x100] sm:$0xff]  ;;  %309 = vst [vmem:[%s1229_s12 + $0x18] sm:$0xff] %v308_v3 }
  0x1b   : > { %v312_v5 = vld [vmem:[%s1224_s11 + $0x140] sm:$0xff]  ;;  %311 = vst [vmem:[%s1229_s12 + $0x20] sm:$0xff] %v310_v4 }
  0x1c   : > { %313 = vst [vmem:[%s1229_s12 + $0x28] sm:$0xff] %v312_v5  ;;  %v314_v6 = vld [vmem:[%s1224_s11 + $0x180] sm:$0xff] }
  0x1d   : > { %v316_v7 = vld [vmem:[%s1224_s11 + $0x1c0] sm:$0xff]  ;;  %315 = vst [vmem:[%s1229_s12 + $0x30] sm:$0xff] %v314_v6 }
  0x1e   : > { %v318_v8 = vld [vmem:[%s1224_s11 + $0x200] sm:$0xff]  ;;  %317 = vst [vmem:[%s1229_s12 + $0x38] sm:$0xff] %v316_v7 }
  0x1f   : > { %319 = vst [vmem:[%s1229_s12 + $0x40] sm:$0xff] %v318_v8  ;;  %v320_v9 = vld [vmem:[%s1224_s11 + $0x240] sm:$0xff] }
  0x20   : > { %v322_v10 = vld [vmem:[%s1224_s11 + $0x280] sm:$0xff]  ;;  %321 = vst [vmem:[%s1229_s12 + $0x48] sm:$0xff] %v320_v9 }
  0x21   : > { %v324_v11 = vld [vmem:[%s1224_s11 + $0x2c0] sm:$0xff]  ;;  %323 = vst [vmem:[%s1229_s12 + $0x50] sm:$0xff] %v322_v10 }
  0x22   : > { %325 = vst [vmem:[%s1229_s12 + $0x58] sm:$0xff] %v324_v11  ;;  %v326_v12 = vld [vmem:[%s1224_s11 + $0x300] sm:$0xff] }
  0x23   : > { %v328_v13 = vld [vmem:[%s1224_s11 + $0x340] sm:$0xff]  ;;  %327 = vst [vmem:[%s1229_s12 + $0x60] sm:$0xff] %v326_v12 }
  0x24   : > { %v330_v14 = vld [vmem:[%s1224_s11 + $0x380] sm:$0xff]  ;;  %329 = vst [vmem:[%s1229_s12 + $0x68] sm:$0xff] %v328_v13 }
  0x25   : > { %331 = vst [vmem:[%s1229_s12 + $0x70] sm:$0xff] %v330_v14  ;;  %v332_v15 = vld [vmem:[%s1224_s11 + $0x3c0] sm:$0xff] }
  0x26   : > { %v334_v16 = vld [vmem:[%s1224_s11 + $0x400] sm:$0xff]  ;;  %333 = vst [vmem:[%s1229_s12 + $0x78] sm:$0xff] %v332_v15 }
  0x27   : > { %v336_v17 = vld [vmem:[%s1224_s11 + $0x440] sm:$0xff]  ;;  %335 = vst [vmem:[%s1229_s12 + $0x80] sm:$0xff] %v334_v16 }
  0x28   : > { %337 = vst [vmem:[%s1229_s12 + $0x88] sm:$0xff] %v336_v17  ;;  %v338_v18 = vld [vmem:[%s1224_s11 + $0x480] sm:$0xff] }
  0x29   : > { %v340_v19 = vld [vmem:[%s1224_s11 + $0x4c0] sm:$0xff]  ;;  %339 = vst [vmem:[%s1229_s12 + $0x90] sm:$0xff] %v338_v18 }
  0x2a   : > { %v342_v20 = vld [vmem:[%s1224_s11 + $0x500] sm:$0xff]  ;;  %341 = vst [vmem:[%s1229_s12 + $0x98] sm:$0xff] %v340_v19 }
  0x2b   : > { %343 = vst [vmem:[%s1229_s12 + $0xa0] sm:$0xff] %v342_v20  ;;  %v344_v21 = vld [vmem:[%s1224_s11 + $0x540] sm:$0xff] }
  0x2c   : > { %v346_v22 = vld [vmem:[%s1224_s11 + $0x580] sm:$0xff]  ;;  %345 = vst [vmem:[%s1229_s12 + $0xa8] sm:$0xff] %v344_v21 }
  0x2d   : > { %v348_v23 = vld [vmem:[%s1224_s11 + $0x5c0] sm:$0xff]  ;;  %347 = vst [vmem:[%s1229_s12 + $0xb0] sm:$0xff] %v346_v22 }
  0x2e   : > { %349 = vst [vmem:[%s1229_s12 + $0xb8] sm:$0xff] %v348_v23  ;;  %v350_v24 = vld [vmem:[%s1224_s11 + $0x600] sm:$0xff] }
  0x2f   : > { %v352_v25 = vld [vmem:[%s1224_s11 + $0x640] sm:$0xff]  ;;  %351 = vst [vmem:[%s1229_s12 + $0xc0] sm:$0xff] %v350_v24 }
  0x30   : > { %v354_v26 = vld [vmem:[%s1224_s11 + $0x680] sm:$0xff]  ;;  %353 = vst [vmem:[%s1229_s12 + $0xc8] sm:$0xff] %v352_v25 }
  0x31   : > { %355 = vst [vmem:[%s1229_s12 + $0xd0] sm:$0xff] %v354_v26  ;;  %v356_v27 = vld [vmem:[%s1224_s11 + $0x6c0] sm:$0xff] }
  0x32   : > { %v358_v28 = vld [vmem:[%s1224_s11 + $0x700] sm:$0xff]  ;;  %357 = vst [vmem:[%s1229_s12 + $0xd8] sm:$0xff] %v356_v27 }
  0x33   : > { %v360_v29 = vld [vmem:[%s1224_s11 + $0x740] sm:$0xff]  ;;  %359 = vst [vmem:[%s1229_s12 + $0xe0] sm:$0xff] %v358_v28 }
  0x34   : > { %361 = vst [vmem:[%s1229_s12 + $0xe8] sm:$0xff] %v360_v29  ;;  %v362_v30 = vld [vmem:[%s1224_s11 + $0x780] sm:$0xff] }
  0x35   : > { %v364_v31 = vld [vmem:[%s1224_s11 + $0x7c0] sm:$0xff]  ;;  %363 = vst [vmem:[%s1229_s12 + $0xf0] sm:$0xff] %v362_v30 }
  0x36   : > { %365 = vst [vmem:[%s1229_s12 + $0xf8] sm:$0xff] %v364_v31 }
  0x37 PF: > { %p925_p7 = scmp.ge.s32.totalorder %s1136_s21, 1  ;;  %p391_p8 = scmp.lt.s32.totalorder %s1136_s21, 17 }
  0x39   : > { %p392_p9 = pnand %p925_p7, %p391_p8 }
  0x3a   : > { %s398_s13 = sand.u32 (!%p392_p9), 1, %s1112_s15   ;;  %s927_s14 = sshll.u32 (!%p392_p9), %s1120_s17, 1 }
  0x3b   : > { %395 = sbr.rel (%p392_p9) target bundleno = 356 (0x164), region = 70  ;;  %s926_s24 = sshll.u32 (!%p392_p9), %s398_s13, 8 }
  0x3c   : > { %p452_p10 = scmp.lt.s32.totalorder (!%p392_p9), %s927_s14, 3  ;;  %s929_s25 = sshll.u32 (!%p392_p9), %s1124_s18, 1 }
  0x3d   : > { %p462_p11 = scmp.lt.s32.totalorder (!%p392_p9), %s929_s25, 15  ;;  %s1319_s13 = scalar_lea.vmem (!%p392_p9), [#allocation3], %s926_s24 }
  0x3e   : > { %p934_p12 = scmp.ne.s32.totalorder (!%p392_p9), %s1120_s17, 0 }
  0x40   : > { %s1402_s14 = smov (!%p452_p10, %s927_s14), 3  ;;  %s1404_s25 = smov (!%p462_p11, %s929_s25), 15 }
  0x41   : > { %s928_s26 = sshll.u32 %s1402_s14, 2  ;;  %s464_s15 = scalar_lea.vmem %s1386_s2, %s1404_s25 }
  0x42   : > { %s1300_s30 = scalar_lea.vmem %s1384_s0, %s928_s26  ;;  %s931_s7 = sshll.u32 %s1404_s25, 2 }
  0x43   : > { %s1312_s18 = scalar_lea.vmem %s1387_s3, %s931_s7  ;;  %s1317_s12 = scalar_lea.vmem %s1388_s4, %s931_s7 }
  0x44   : > { %489 = sbr.rel (%p934_p12) target bundleno = 75 (0x4b), region = 78 }
  0x49   : > { %v1138_v32 = vmov 0.0  }
  0x4a   : > { %490 = vst [vmem:[#allocation2] sm:$0xff] %v1138_v32  ;;  %491 = vst [vmem:[#allocation2 + $0x8] sm:$0xff] %v1138_v32 }
  0x4b PF: > { %v1032_v33 = vld [vmem:[%s1319_s13 + $0x74] ss:$8 sps:$4 sm:$0xff]   ;;  %v1034_v34 = vld [vmem:[%s1319_s13 + $0x70] ss:$8 sps:$4 sm:$0xff]   ;;  %v1035_v35 = vld [vmem:[%s1319_s13 + $0x64] ss:$8 sps:$4 sm:$0xff]  }
  0x4c   : > { %694 = vmatprep.subr.bf16.mxu0 %v1032_v33  ;;  %v1037_v36 = vld [vmem:[%s1319_s13 + $0x60] ss:$8 sps:$4 sm:$0xff]   ;;  %v1038_v37 = vld [vmem:[%s1319_s13 + $0x54] ss:$8 sps:$4 sm:$0xff]   ;;  %v1040_v38 = vld [vmem:[%s1319_s13 + $0x50] ss:$8 sps:$4 sm:$0xff]  }
  0x4d   : > { %695 = vmatpush1.bf16.msra.mxu0 %v1034_v34  ;;  %v1041_v39 = vld [vmem:[%s1319_s13 + $0x44] ss:$8 sps:$4 sm:$0xff]   ;;  %v1043_v40 = vld [vmem:[%s1319_s13 + $0x40] ss:$8 sps:$4 sm:$0xff]   ;;  %v1044_v41 = vld [vmem:[%s1319_s13 + $0x34] ss:$8 sps:$4 sm:$0xff]  }
  0x4e   : > { %696 = vmatprep.subr.bf16.mxu0 %v1035_v35  ;;  %v1046_v42 = vld [vmem:[%s1319_s13 + $0x30] ss:$8 sps:$4 sm:$0xff]   ;;  %v1047_v43 = vld [vmem:[%s1319_s13 + $0x24] ss:$8 sps:$4 sm:$0xff]   ;;  %v1049_v44 = vld [vmem:[%s1319_s13 + $0x20] ss:$8 sps:$4 sm:$0xff]  }
  0x4f   : > { %v1050_v45 = vld [vmem:[%s1319_s13 + $0x14] ss:$8 sps:$4 sm:$0xff]   ;;  %v1052_v48 = vld [vmem:[%s1319_s13 + $0x10] ss:$8 sps:$4 sm:$0xff]   ;;  %v1053_v49 = vld [vmem:[%s1319_s13 + $0x4] ss:$8 sps:$4 sm:$0xff]  }
  0x50   : > { %v494_v46 = vld [vmem:[%s1300_s30] sm:$0xff]  ;;  %v1055_v50 = vld [vmem:[%s1319_s13] ss:$8 sps:$4 sm:$0xff]   ;;  %v1059_v53 = vld [vmem:[%s1319_s13 + $0xe4] ss:$8 sps:$4 sm:$0xff]   ;;  %p969_p13 = scmp.ne.s32.totalorder %s1120_s17, 1 }
  0x51   : > { %697 = vmatpush1.bf16.msra.mxu0 %v1037_v36  ;;  %v936_v47 = vcombine.high %v494_v46, %v494_v46  ;;  %v1056_v51 = vld [vmem:[%s1319_s13 + $0xf4] ss:$8 sps:$4 sm:$0xff]   ;;  %v1058_v52 = vld [vmem:[%s1319_s13 + $0xf0] ss:$8 sps:$4 sm:$0xff]   ;;  %v1061_v54 = vld [vmem:[%s1319_s13 + $0xe0] ss:$8 sps:$4 sm:$0xff]   ;;  %v935_v3 = vcombine.low %v494_v46, %v494_v46 }
  0x52   : > { %698 = vmatprep.subr.bf16.mxu0 %v1038_v37  ;;  %v1062_v55 = vld [vmem:[%s1319_s13 + $0xd4] ss:$8 sps:$4 sm:$0xff]   ;;  %v1064_v56 = vld [vmem:[%s1319_s13 + $0xd0] ss:$8 sps:$4 sm:$0xff]   ;;  %v1065_v57 = vld [vmem:[%s1319_s13 + $0xc4] ss:$8 sps:$4 sm:$0xff]  }
  0x53   : > { %726 = vmatprep.mubr.bf16.mxu0 %v936_v47  ;;  %v1067_v58 = vld [vmem:[%s1319_s13 + $0xc0] ss:$8 sps:$4 sm:$0xff]   ;;  %v1068_v59 = vld [vmem:[%s1319_s13 + $0xb4] ss:$8 sps:$4 sm:$0xff]   ;;  %v1070_v60 = vld [vmem:[%s1319_s13 + $0xb0] ss:$8 sps:$4 sm:$0xff]  }
  0x54   : > { %v1071_v61 = vld [vmem:[%s1319_s13 + $0xa4] ss:$8 sps:$4 sm:$0xff]   ;;  %v1073_v62 = vld [vmem:[%s1319_s13 + $0xa0] ss:$8 sps:$4 sm:$0xff]   ;;  %v1074_v63 = vld [vmem:[%s1319_s13 + $0x94] ss:$8 sps:$4 sm:$0xff]  }
  0x55   : > { %699 = vmatpush1.bf16.msra.mxu0 %v1040_v38  ;;  %v1076_v0 = vld [vmem:[%s1319_s13 + $0x90] ss:$8 sps:$4 sm:$0xff]   ;;  %v1077_v1 = vld [vmem:[%s1319_s13 + $0x84] ss:$8 sps:$4 sm:$0xff]   ;;  %v1079_v2 = vld [vmem:[%s1319_s13 + $0x80] ss:$8 sps:$4 sm:$0xff]  }
  0x56   : > { %700 = vmatprep.subr.bf16.mxu0 %v1041_v39  ;;  %v492_v4 = vld [vmem:[#allocation2] sm:$0xff]  ;;  %v493_v6 = vld [vmem:[#allocation2 + $0x8] sm:$0xff] }
  0x59   : > { %701 = vmatpush1.bf16.msra.mxu0 %v1043_v40 }
  0x5a   : > { %702 = vmatprep.subr.bf16.mxu0 %v1044_v41 }
  0x5d   : > { %703 = vmatpush1.bf16.msra.mxu0 %v1046_v42 }
  0x5e   : > { %704 = vmatprep.subr.bf16.mxu0 %v1047_v43 }
  0x61   : > { %705 = vmatpush1.bf16.msra.mxu0 %v1049_v44 }
  0x62   : > { %706 = vmatprep.subr.bf16.mxu0 %v1050_v45 }
  0x65   : > { %707 = vmatpush1.bf16.msra.mxu0 %v1052_v48 }
  0x66   : > { %708 = vmatprep.subr.bf16.mxu0 %v1053_v49 }
  0x69   : > { %709 = vmatpush1.bf16.msra.mxu0 %v1055_v50 }
  0x6a   : > { %710 = vmatprep.subr.bf16.mxu0 %v1056_v51 }
  0x6d   : > { %711 = vmatpush2.bf16.msra.mxu0 %v1058_v52 }
  0x6e   : > { %712 = vmatprep.subr.bf16.mxu0 %v1059_v53 }
  0x71   : > { %713 = vmatpush2.bf16.msra.mxu0 %v1061_v54 }
  0x72   : > { %714 = vmatprep.subr.bf16.mxu0 %v1062_v55 }
  0x75   : > { %715 = vmatpush2.bf16.msra.mxu0 %v1064_v56 }
  0x76   : > { %716 = vmatprep.subr.bf16.mxu0 %v1065_v57 }
  0x79   : > { %717 = vmatpush2.bf16.msra.mxu0 %v1067_v58 }
  0x7a   : > { %718 = vmatprep.subr.bf16.mxu0 %v1068_v59 }
  0x7d   : > { %719 = vmatpush2.bf16.msra.mxu0 %v1070_v60 }
  0x7e   : > { %720 = vmatprep.subr.bf16.mxu0 %v1071_v61 }
  0x81   : > { %721 = vmatpush2.bf16.msra.mxu0 %v1073_v62 }
  0x82   : > { %722 = vmatprep.subr.bf16.mxu0 %v1074_v63 }
  0x85   : > { %723 = vmatpush2.bf16.msra.mxu0 %v1076_v0 }
  0x86   : > { %724 = vmatprep.subr.bf16.mxu0 %v1077_v1 }
  0x89   : > { %725 = vmatpush2.bf16.msra.mxu0 %v1079_v2 }
  0x8c   : > { %727 = vmatmul.mubr.bf16.vlgmr.msra.gmra.mxu0 %v935_v3 }
 0x14c   : > { %v728_v5 = vpop.f32.mrf.mxu0 }
 0x14d   : > { %v735_v7 = vadd.f32 %v728_v5, %v492_v4 }
 0x14e   : > { %v730_v8 = vpop.f32.mrf.mxu0  ;;  %742 = sbr.rel (%p969_p13) target bundleno = 356 (0x164), region = 82 }
 0x14f   : > { %737 = vst [vmem:[#allocation2] sm:$0xff] %v735_v7  ;;  %v736_v9 = vadd.f32 %v730_v8, %v493_v6 }
 0x150   : > { %v732_v10 = vpop.f32.mrf.mxu0 }
 0x151   : > { %738 = vst [vmem:[#allocation2 + $0x8] sm:$0xff] %v736_v9 }
 0x152   : > { %v733_v11 = vpop.f32.mrf.mxu0 }
 0x153   : > { %v747_v12 = vlaneseq  ;;  %v745_v14 = vld [vmem:[%s464_s15] sm:$0x3] }
 0x154   : > { %v759_v15 = vld [vmem:[%s1312_s18] sm:$0xff] }
 0x155   : > { %v748_v13 = vshrl.u32 %v747_v12, 7  ;;  %v760_v22 = vunpack.c.l.bf16 %v759_v15  ;;  %v761_v23 = vunpack.c.h.bf16 %v759_v15 }
 0x156   : > { %v743_v18 = vld [vmem:[#allocation2] sm:$0xff] }
 0x157   : > { %v749_v16 = vsub.s32 0, %v748_v13  ;;  %v753_v17 = vsub.s32 1, %v748_v13 }
 0x158   : > { %v744_v19 = vld [vmem:[#allocation2 + $0x8] sm:$0xff] }
 0x159   : > { %v750_v20 = vrot.slane %v745_v14, %v749_v16  ;;  %v754_v21 = vrot.slane %v745_v14, %v753_v17 }
 0x15b   : > { %v757_v24 = vadd.f32 %v750_v20, %v743_v18  ;;  %v758_v25 = vadd.f32 %v754_v21, %v744_v19 }
 0x15d   : > { %v762_v26 = vadd.f32 %v760_v22, %v757_v24  ;;  %v763_v27 = vadd.f32 %v761_v23, %v758_v25 }
 0x15f   : > { %v764_v28 = vmax.f32 %v762_v26, 0.0  ;;  %v765_v29 = vmax.f32 %v763_v27, 0.0 }
 0x161   : > { %v974_v30 = vpack.c.bf16 %v765_v29, %v764_v28 }
 0x163   : > { %774 = vst [vmem:[%s1317_s12] sm:$0xff] %v974_v30 }
 0x164 PF: > { %s14_s21 = sadd.s32 1, %s1136_s21   ;;  %s1389_s15 = smov %s1116_s16 }
 0x165   : > { %p11_p0 = scmp.ge.s32.totalorder %s14_s21, 18   ;;  %s1390_s16 = smov %s1215_s28 }
 0x166   : > { %s1391_s17 = smov %s1128_s19  ;;  %s1392_s18 = smov %s1132_s20 }
 0x167   : > { %s1393_s19 = smov %s1396_s22  ;;  %s1394_s20 = smov %s1400_s23 }
 0x168   :  { %13 = sbr.rel (!%p11_p0) target bundleno = 4 (0x4), region = 126 }

// kernel: resnet50_forward.103
= control target key start
LH: loop header
LB: loop body
LE: loop exit
PB: predicated region body
PF: predicated region fallthrough
CT: control target
= control target key end

     0   :  { %s1071_s12 = smov 0   ;;  %s1073_s13 = smov 0   ;;  %s1285_s0 = inlined_call_operand.vmem [shape: bf16[8,2048], index: 0, kind: input, shape index: {}]   ;;  %s1286_s1 = inlined_call_operand.vmem [shape: bf16[2048,512], index: 1, kind: input, shape index: {}]   ;;  %s1287_s2 = inlined_call_operand.vmem [shape: f32[1,512], index: 2, kind: input, shape index: {}]   ;;  %s1288_s3 = inlined_call_operand.vmem [shape: bf16[8,512], index: 3, kind: output, shape index: {}]  }
   0x1   :  { %s1075_s14 = smov 0   ;;  %s1077_s15 = smov 0  }
   0x2   :  { %s1079_s16 = smov 0   ;;  %s1081_s17 = smov 0  }
   0x3   :  { %s1083_s18 = smov 0  }
   0x4 LB: > { %s25_s19 = sadd.s32 1, %s1040_s16  ;;  %s28_s20 = sadd.s32 1, %s1044_s17  ;;  %s1048_s18 = sphi %s1083_s18, %s13_s18   ;;  %s1044_s17 = sphi %s1081_s17, %s1294_s17   ;;  %s1040_s16 = sphi %s1079_s16, %s1293_s16   ;;  %s1036_s15 = sphi %s1077_s15, %s1292_s15   ;;  %s1032_s14 = sphi %s1075_s14, %s1291_s14   ;;  %s1028_s13 = sphi %s1073_s13, %s1290_s13   ;;  %s1024_s12 = sphi %s1071_s12, %s1289_s12  }
   0x5   : > { %p26_p0 = scmp.ge.s32.totalorder %s25_s19, 8  ;;  %p76_p1 = scmp.ne.s32.totalorder %s1028_s13, %s1024_s12 }
   0x6   : > { %p77_p2 = scmp.eq.s32.totalorder %s1048_s18, 0  ;;  %s69_s24 = sadd.s32 1, %s1028_s13 }
   0x7   : > { %s1296_s19 = smov (%p26_p0, %s25_s19), 0  ;;  %s1298_s20 = smov (!%p26_p0, %s28_s20), %s1044_s17 }
   0x8   : > { %p78_p3 = por %p77_p2, %p76_p1  ;;  %p30_p4 = scmp.ge.s32.totalorder %s1298_s20, 2 }
   0x9   : > { %s64_s21 = ssub.s32 %s1040_s16, %s1296_s19  ;;  %p833_p6 = scmp.ge.s32.totalorder %s1048_s18, 16 }
   0xa   : > { %s1300_s20 = smov (%p30_p4, %s1298_s20), 0 }
   0xb   : > { %s65_s22 = ssub.s32 %s1044_s17, %s1300_s20  ;;  %156 = sbr.rel (%p833_p6) target bundleno = 39 (0x27), region = 16 }
   0xc   : > { %s66_s23 = sor.u32 %s65_s22, %s64_s21 }
   0xd   : > { %p67_p5 = scmp.eq.s32.totalorder %s66_s23, 0 }
   0xf   : > { %s1122_s25 = scalar_select %p67_p5, %s1028_s13, %s69_s24  }
  0x10   : > { %172 = sbr.rel (!%p78_p3) target bundleno = 39 (0x27), region = 24  ;;  %s174_s26 = sand.u32 (%p78_p3), 1, %s1028_s13  }
  0x11   : > { %s836_s27 = sshll.u32 (%p78_p3), %s1044_s17, 1  ;;  %s834_s28 = sshll.u32 (%p78_p3), %s174_s26, 8 }
  0x12   : > { %s885_s29 = sshll.u32 (%p78_p3), %s1040_s16, 7  ;;  %s1136_s8 = scalar_lea.vmem (%p78_p3), [#allocation3], %s834_s28 }
  0x13   : > { %s180_s30 = sadd.s32 (%p78_p3), %s885_s29, %s836_s27 }
  0x14   : > { %s838_s4 = sshll.u32 (%p78_p3), %s180_s30, 2 }
  0x15   : > { %s1131_s7 = scalar_lea.vmem %s1286_s1, %s838_s4 }
  0x16   : > { %v273_v0 = vld [vmem:[%s1131_s7] sm:$0xff]  ;;  %v275_v1 = vld [vmem:[%s1131_s7 + $0x10] sm:$0xff] }
  0x17   : > { %v277_v2 = vld [vmem:[%s1131_s7 + $0x20] sm:$0xff]  ;;  %274 = vst [vmem:[%s1136_s8] sm:$0xff] %v273_v0  ;;  %276 = vst [vmem:[%s1136_s8 + $0x8] sm:$0xff] %v275_v1  ;;  %v279_v3 = vld [vmem:[%s1131_s7 + $0x30] sm:$0xff] }
  0x18   : > { %278 = vst [vmem:[%s1136_s8 + $0x10] sm:$0xff] %v277_v2  ;;  %v281_v4 = vld [vmem:[%s1131_s7 + $0x40] sm:$0xff]  ;;  %v283_v5 = vld [vmem:[%s1131_s7 + $0x50] sm:$0xff]  ;;  %280 = vst [vmem:[%s1136_s8 + $0x18] sm:$0xff] %v279_v3 }
  0x19   : > { %282 = vst [vmem:[%s1136_s8 + $0x20] sm:$0xff] %v281_v4  ;;  %284 = vst [vmem:[%s1136_s8 + $0x28] sm:$0xff] %v283_v5  ;;  %v285_v6 = vld [vmem:[%s1131_s7 + $0x60] sm:$0xff]  ;;  %v287_v7 = vld [vmem:[%s1131_s7 + $0x70] sm:$0xff] }
  0x1a   : > { %v289_v8 = vld [vmem:[%s1131_s7 + $0x80] sm:$0xff]  ;;  %286 = vst [vmem:[%s1136_s8 + $0x30] sm:$0xff] %v285_v6  ;;  %288 = vst [vmem:[%s1136_s8 + $0x38] sm:$0xff] %v287_v7  ;;  %v291_v9 = vld [vmem:[%s1131_s7 + $0x90] sm:$0xff] }
  0x1b   : > { %290 = vst [vmem:[%s1136_s8 + $0x40] sm:$0xff] %v289_v8  ;;  %v293_v10 = vld [vmem:[%s1131_s7 + $0xa0] sm:$0xff]  ;;  %v295_v11 = vld [vmem:[%s1131_s7 + $0xb0] sm:$0xff]  ;;  %292 = vst [vmem:[%s1136_s8 + $0x48] sm:$0xff] %v291_v9 }
  0x1c   : > { %294 = vst [vmem:[%s1136_s8 + $0x50] sm:$0xff] %v293_v10  ;;  %296 = vst [vmem:[%s1136_s8 + $0x58] sm:$0xff] %v295_v11  ;;  %v297_v12 = vld [vmem:[%s1131_s7 + $0xc0] sm:$0xff]  ;;  %v299_v13 = vld [vmem:[%s1131_s7 + $0xd0] sm:$0xff] }
  0x1d   : > { %v301_v14 = vld [vmem:[%s1131_s7 + $0xe0] sm:$0xff]  ;;  %298 = vst [vmem:[%s1136_s8 + $0x60] sm:$0xff] %v297_v12  ;;  %300 = vst [vmem:[%s1136_s8 + $0x68] sm:$0xff] %v299_v13  ;;  %v303_v15 = vld [vmem:[%s1131_s7 + $0xf0] sm:$0xff] }
  0x1e   : > { %302 = vst [vmem:[%s1136_s8 + $0x70] sm:$0xff] %v301_v14  ;;  %v305_v16 = vld [vmem:[%s1131_s7 + $0x100] sm:$0xff]  ;;  %v307_v17 = vld [vmem:[%s1131_s7 + $0x110] sm:$0xff]  ;;  %304 = vst [vmem:[%s1136_s8 + $0x78] sm:$0xff] %v303_v15 }
  0x1f   : > { %306 = vst [vmem:[%s1136_s8 + $0x80] sm:$0xff] %v305_v16  ;;  %308 = vst [vmem:[%s1136_s8 + $0x88] sm:$0xff] %v307_v17  ;;  %v309_v18 = vld [vmem:[%s1131_s7 + $0x120] sm:$0xff]  ;;  %v311_v19 = vld [vmem:[%s1131_s7 + $0x130] sm:$0xff] }
  0x20   : > { %v313_v20 = vld [vmem:[%s1131_s7 + $0x140] sm:$0xff]  ;;  %310 = vst [vmem:[%s1136_s8 + $0x90] sm:$0xff] %v309_v18  ;;  %312 = vst [vmem:[%s1136_s8 + $0x98] sm:$0xff] %v311_v19  ;;  %v315_v21 = vld [vmem:[%s1131_s7 + $0x150] sm:$0xff] }
  0x21   : > { %314 = vst [vmem:[%s1136_s8 + $0xa0] sm:$0xff] %v313_v20  ;;  %v317_v22 = vld [vmem:[%s1131_s7 + $0x160] sm:$0xff]  ;;  %v319_v23 = vld [vmem:[%s1131_s7 + $0x170] sm:$0xff]  ;;  %316 = vst [vmem:[%s1136_s8 + $0xa8] sm:$0xff] %v315_v21 }
  0x22   : > { %318 = vst [vmem:[%s1136_s8 + $0xb0] sm:$0xff] %v317_v22  ;;  %320 = vst [vmem:[%s1136_s8 + $0xb8] sm:$0xff] %v319_v23  ;;  %v321_v24 = vld [vmem:[%s1131_s7 + $0x180] sm:$0xff]  ;;  %v323_v25 = vld [vmem:[%s1131_s7 + $0x190] sm:$0xff] }
  0x23   : > { %v325_v26 = vld [vmem:[%s1131_s7 + $0x1a0] sm:$0xff]  ;;  %322 = vst [vmem:[%s1136_s8 + $0xc0] sm:$0xff] %v321_v24  ;;  %324 = vst [vmem:[%s1136_s8 + $0xc8] sm:$0xff] %v323_v25  ;;  %v327_v27 = vld [vmem:[%s1131_s7 + $0x1b0] sm:$0xff] }
  0x24   : > { %326 = vst [vmem:[%s1136_s8 + $0xd0] sm:$0xff] %v325_v26  ;;  %v329_v28 = vld [vmem:[%s1131_s7 + $0x1c0] sm:$0xff]  ;;  %v331_v29 = vld [vmem:[%s1131_s7 + $0x1d0] sm:$0xff]  ;;  %328 = vst [vmem:[%s1136_s8 + $0xd8] sm:$0xff] %v327_v27 }
  0x25   : > { %330 = vst [vmem:[%s1136_s8 + $0xe0] sm:$0xff] %v329_v28  ;;  %332 = vst [vmem:[%s1136_s8 + $0xe8] sm:$0xff] %v331_v29  ;;  %v333_v30 = vld [vmem:[%s1131_s7 + $0x1e0] sm:$0xff]  ;;  %v335_v31 = vld [vmem:[%s1131_s7 + $0x1f0] sm:$0xff] }
  0x26   : > { %334 = vst [vmem:[%s1136_s8 + $0xf0] sm:$0xff] %v333_v30  ;;  %336 = vst [vmem:[%s1136_s8 + $0xf8] sm:$0xff] %v335_v31 }
  0x27 PF: > { %p839_p7 = scmp.ge.s32.totalorder %s1048_s18, 1  ;;  %p349_p8 = scmp.lt.s32.totalorder %s1048_s18, 17 }
  0x29   : > { %p350_p9 = pnand %p839_p7, %p349_p8 }
  0x2a   : > { %s356_s9 = sand.u32 (!%p350_p9), 1, %s1024_s12   ;;  %s841_s10 = sshll.u32 (!%p350_p9), %s1032_s14, 1 }
  0x2b   : > { %353 = sbr.rel (%p350_p9) target bundleno = 337 (0x151), region = 66  ;;  %s840_s11 = sshll.u32 (!%p350_p9), %s356_s9, 8 }
  0x2c   : > { %p399_p10 = scmp.lt.s32.totalorder (!%p350_p9), %s841_s10, 15  ;;  %s843_s21 = sshll.u32 (!%p350_p9), %s1036_s15, 1 }
  0x2d   : > { %p409_p11 = scmp.lt.s32.totalorder (!%p350_p9), %s843_s21, 3  ;;  %s1221_s5 = scalar_lea.vmem (!%p350_p9), [#allocation3], %s840_s11 }
  0x2e   : > { %p846_p12 = scmp.ne.s32.totalorder (!%p350_p9), %s1032_s14, 0 }
  0x30   : > { %s1302_s10 = smov (!%p399_p10, %s841_s10), 15  ;;  %s1304_s21 = smov (!%p409_p11, %s843_s21), 3 }
  0x31   : > { %s842_s22 = sshll.u32 %s1302_s10, 2  ;;  %s411_s12 = scalar_lea.vmem %s1287_s2, %s1304_s21 }
  0x32   : > { %s1207_s26 = scalar_lea.vmem %s1285_s0, %s842_s22  ;;  %s845_s29 = sshll.u32 %s1304_s21, 2 }
  0x33   : > { %s1219_s15 = scalar_lea.vmem %s1288_s3, %s845_s29  ;;  %426 = sbr.rel (%p846_p12) target bundleno = 58 (0x3a), region = 74 }
  0x38   : > { %v1050_v32 = vmov 0.0  }
  0x39   : > { %427 = vst [vmem:[#allocation2] sm:$0xff] %v1050_v32  ;;  %428 = vst [vmem:[#allocation2 + $0x8] sm:$0xff] %v1050_v32 }
  0x3a PF: > { %v944_v33 = vld [vmem:[%s1221_s5 + $0x74] ss:$8 sps:$4 sm:$0xff]   ;;  %v946_v34 = vld [vmem:[%s1221_s5 + $0x70] ss:$8 sps:$4 sm:$0xff]   ;;  %v947_v35 = vld [vmem:[%s1221_s5 + $0x64] ss:$8 sps:$4 sm:$0xff]  }
  0x3b   : > { %631 = vmatprep.subr.bf16.mxu0 %v944_v33  ;;  %v949_v36 = vld [vmem:[%s1221_s5 + $0x60] ss:$8 sps:$4 sm:$0xff]   ;;  %v950_v37 = vld [vmem:[%s1221_s5 + $0x54] ss:$8 sps:$4 sm:$0xff]   ;;  %v952_v38 = vld [vmem:[%s1221_s5 + $0x50] ss:$8 sps:$4 sm:$0xff]  }
  0x3c   : > { %632 = vmatpush1.bf16.msra.mxu0 %v946_v34  ;;  %v953_v39 = vld [vmem:[%s1221_s5 + $0x44] ss:$8 sps:$4 sm:$0xff]   ;;  %v955_v40 = vld [vmem:[%s1221_s5 + $0x40] ss:$8 sps:$4 sm:$0xff]   ;;  %v956_v41 = vld [vmem:[%s1221_s5 + $0x34] ss:$8 sps:$4 sm:$0xff]  }
  0x3d   : > { %633 = vmatprep.subr.bf16.mxu0 %v947_v35  ;;  %v958_v42 = vld [vmem:[%s1221_s5 + $0x30] ss:$8 sps:$4 sm:$0xff]   ;;  %v959_v43 = vld [vmem:[%s1221_s5 + $0x24] ss:$8 sps:$4 sm:$0xff]   ;;  %v961_v44 = vld [vmem:[%s1221_s5 + $0x20] ss:$8 sps:$4 sm:$0xff]  }
  0x3e   : > { %v962_v45 = vld [vmem:[%s1221_s5 + $0x14] ss:$8 sps:$4 sm:$0xff]   ;;  %v964_v48 = vld [vmem:[%s1221_s5 + $0x10] ss:$8 sps:$4 sm:$0xff]   ;;  %v965_v49 = vld [vmem:[%s1221_s5 + $0x4] ss:$8 sps:$4 sm:$0xff]  }
  0x3f   : > { %v431_v46 = vld [vmem:[%s1207_s26] sm:$0xff]  ;;  %v967_v50 = vld [vmem:[%s1221_s5] ss:$8 sps:$4 sm:$0xff]   ;;  %v971_v53 = vld [vmem:[%s1221_s5 + $0xe4] ss:$8 sps:$4 sm:$0xff]   ;;  %p881_p13 = scmp.ne.s32.totalorder %s1032_s14, 7 }
  0x40   : > { %634 = vmatpush1.bf16.msra.mxu0 %v949_v36  ;;  %v848_v47 = vcombine.high %v431_v46, %v431_v46  ;;  %v968_v51 = vld [vmem:[%s1221_s5 + $0xf4] ss:$8 sps:$4 sm:$0xff]   ;;  %v970_v52 = vld [vmem:[%s1221_s5 + $0xf0] ss:$8 sps:$4 sm:$0xff]   ;;  %v973_v54 = vld [vmem:[%s1221_s5 + $0xe0] ss:$8 sps:$4 sm:$0xff]   ;;  %v847_v3 = vcombine.low %v431_v46, %v431_v46 }
  0x41   : > { %635 = vmatprep.subr.bf16.mxu0 %v950_v37  ;;  %v974_v55 = vld [vmem:[%s1221_s5 + $0xd4] ss:$8 sps:$4 sm:$0xff]   ;;  %v976_v56 = vld [vmem:[%s1221_s5 + $0xd0] ss:$8 sps:$4 sm:$0xff]   ;;  %v977_v57 = vld [vmem:[%s1221_s5 + $0xc4] ss:$8 sps:$4 sm:$0xff]  }
  0x42   : > { %663 = vmatprep.mubr.bf16.mxu0 %v848_v47  ;;  %v979_v58 = vld [vmem:[%s1221_s5 + $0xc0] ss:$8 sps:$4 sm:$0xff]   ;;  %v980_v59 = vld [vmem:[%s1221_s5 + $0xb4] ss:$8 sps:$4 sm:$0xff]   ;;  %v982_v60 = vld [vmem:[%s1221_s5 + $0xb0] ss:$8 sps:$4 sm:$0xff]  }
  0x43   : > { %v983_v61 = vld [vmem:[%s1221_s5 + $0xa4] ss:$8 sps:$4 sm:$0xff]   ;;  %v985_v62 = vld [vmem:[%s1221_s5 + $0xa0] ss:$8 sps:$4 sm:$0xff]   ;;  %v986_v63 = vld [vmem:[%s1221_s5 + $0x94] ss:$8 sps:$4 sm:$0xff]  }
  0x44   : > { %636 = vmatpush1.bf16.msra.mxu0 %v952_v38  ;;  %v988_v0 = vld [vmem:[%s1221_s5 + $0x90] ss:$8 sps:$4 sm:$0xff]   ;;  %v989_v1 = vld [vmem:[%s1221_s5 + $0x84] ss:$8 sps:$4 sm:$0xff]   ;;  %v991_v2 = vld [vmem:[%s1221_s5 + $0x80] ss:$8 sps:$4 sm:$0xff]  }
  0x45   : > { %637 = vmatprep.subr.bf16.mxu0 %v953_v39  ;;  %v429_v4 = vld [vmem:[#allocation2] sm:$0xff]  ;;  %v430_v6 = vld [vmem:[#allocation2 + $0x8] sm:$0xff] }
  0x48   : > { %638 = vmatpush1.bf16.msra.mxu0 %v955_v40 }
  0x49   : > { %639 = vmatprep.subr.bf16.mxu0 %v956_v41 }
  0x4c   : > { %640 = vmatpush1.bf16.msra.mxu0 %v958_v42 }
  0x4d   : > { %641 = vmatprep.subr.bf16.mxu0 %v959_v43 }
  0x50   : > { %642 = vmatpush1.bf16.msra.mxu0 %v961_v44 }
  0x51   : > { %643 = vmatprep.subr.bf16.mxu0 %v962_v45 }
  0x54   : > { %644 = vmatpush1.bf16.msra.mxu0 %v964_v48 }
  0x55   : > { %645 = vmatprep.subr.bf16.mxu0 %v965_v49 }
  0x58   : > { %646 = vmatpush1.bf16.msra.mxu0 %v967_v50 }
  0x59   : > { %647 = vmatprep.subr.bf16.mxu0 %v968_v51 }
  0x5c   : > { %648 = vmatpush2.bf16.msra.mxu0 %v970_v52 }
  0x5d   : > { %649 = vmatprep.subr.bf16.mxu0 %v971_v53 }
  0x60   : > { %650 = vmatpush2.bf16.msra.mxu0 %v973_v54 }
  0x61   : > { %651 = vmatprep.subr.bf16.mxu0 %v974_v55 }
  0x64   : > { %652 = vmatpush2.bf16.msra.mxu0 %v976_v56 }
  0x65   : > { %653 = vmatprep.subr.bf16.mxu0 %v977_v57 }
  0x68   : > { %654 = vmatpush2.bf16.msra.mxu0 %v979_v58 }
  0x69   : > { %655 = vmatprep.subr.bf16.mxu0 %v980_v59 }
  0x6c   : > { %656 = vmatpush2.bf16.msra.mxu0 %v982_v60 }
  0x6d   : > { %657 = vmatprep.subr.bf16.mxu0 %v983_v61 }
  0x70   : > { %658 = vmatpush2.bf16.msra.mxu0 %v985_v62 }
  0x71   : > { %659 = vmatprep.subr.bf16.mxu0 %v986_v63 }
  0x74   : > { %660 = vmatpush2.bf16.msra.mxu0 %v988_v0 }
  0x75   : > { %661 = vmatprep.subr.bf16.mxu0 %v989_v1 }
  0x78   : > { %662 = vmatpush2.bf16.msra.mxu0 %v991_v2 }
  0x7b   : > { %664 = vmatmul.mubr.bf16.vlgmr.msra.gmra.mxu0 %v847_v3 }
 0x13b   : > { %v665_v5 = vpop.f32.mrf.mxu0 }
 0x13c   : > { %v672_v7 = vadd.f32 %v665_v5, %v429_v4 }
 0x13d   : > { %v667_v8 = vpop.f32.mrf.mxu0  ;;  %679 = sbr.rel (%p881_p13) target bundleno = 337 (0x151), region = 78 }
 0x13e   : > { %674 = vst [vmem:[#allocation2] sm:$0xff] %v672_v7  ;;  %v673_v9 = vadd.f32 %v667_v8, %v430_v6 }
 0x13f   : > { %v669_v10 = vpop.f32.mrf.mxu0 }
 0x140   : > { %675 = vst [vmem:[#allocation2 + $0x8] sm:$0xff] %v673_v9 }
 0x141   : > { %v670_v11 = vpop.f32.mrf.mxu0 }
 0x142   : > { %v684_v12 = vlaneseq  ;;  %v682_v14 = vld [vmem:[%s411_s12] sm:$0x3] }
 0x144   : > { %v685_v13 = vshrl.u32 %v684_v12, 7 }
 0x145   : > { %v680_v17 = vld [vmem:[#allocation2] sm:$0xff] }
 0x146   : > { %v686_v15 = vsub.s32 0, %v685_v13  ;;  %v690_v16 = vsub.s32 1, %v685_v13 }
 0x147   : > { %v681_v18 = vld [vmem:[#allocation2 + $0x8] sm:$0xff] }
 0x148   : > { %v687_v19 = vrot.slane %v682_v14, %v686_v15  ;;  %v691_v20 = vrot.slane %v682_v14, %v690_v16 }
 0x14a   : > { %v694_v21 = vadd.f32 %v687_v19, %v680_v17  ;;  %v695_v22 = vadd.f32 %v691_v20, %v681_v18 }
 0x14c   : > { %v696_v23 = vmax.f32 %v694_v21, 0.0  ;;  %v697_v24 = vmax.f32 %v695_v22, 0.0 }
 0x14e   : > { %v886_v25 = vpack.c.bf16 %v697_v24, %v696_v23 }
 0x150   : > { %706 = vst [vmem:[%s1219_s15] sm:$0xff] %v886_v25 }
 0x151 PF: > { %s13_s18 = sadd.s32 1, %s1048_s18   ;;  %s1289_s12 = smov %s1028_s13 }
 0x152   : > { %p10_p0 = scmp.ge.s32.totalorder %s13_s18, 18   ;;  %s1290_s13 = smov %s1122_s25 }
 0x153   : > { %s1291_s14 = smov %s1040_s16  ;;  %s1292_s15 = smov %s1044_s17 }
 0x154   : > { %s1293_s16 = smov %s1296_s19  ;;  %s1294_s17 = smov %s1300_s20 }
 0x155   :  { %12 = sbr.rel (!%p10_p0) target bundleno = 4 (0x4), region = 119 }

// kernel: resnet50_forward.101
= control target key start
LH: loop header
LB: loop body
LE: loop exit
PB: predicated region body
PF: predicated region fallthrough
CT: control target
= control target key end

     0   :  { %s1069_s12 = smov 0   ;;  %s1071_s13 = smov 0   ;;  %s1283_s0 = inlined_call_operand.vmem [shape: bf16[8,1024], index: 0, kind: input, shape index: {}]   ;;  %s1284_s1 = inlined_call_operand.vmem [shape: bf16[1024,2048], index: 1, kind: input, shape index: {}]   ;;  %s1285_s2 = inlined_call_operand.vmem [shape: f32[1,2048], index: 2, kind: input, shape index: {}]   ;;  %s1286_s3 = inlined_call_operand.vmem [shape: bf16[8,2048], index: 3, kind: output, shape index: {}]  }
   0x1   :  { %s1073_s14 = smov 0   ;;  %s1075_s15 = smov 0  }
   0x2   :  { %s1077_s16 = smov 0   ;;  %s1079_s17 = smov 0  }
   0x3   :  { %s1081_s18 = smov 0  }
   0x4 LB: > { %s25_s19 = sadd.s32 1, %s1038_s16  ;;  %s28_s20 = sadd.s32 1, %s1042_s17  ;;  %s1046_s18 = sphi %s1081_s18, %s13_s18   ;;  %s1042_s17 = sphi %s1079_s17, %s1292_s17   ;;  %s1038_s16 = sphi %s1077_s16, %s1291_s16   ;;  %s1034_s15 = sphi %s1075_s15, %s1290_s15   ;;  %s1030_s14 = sphi %s1073_s14, %s1289_s14   ;;  %s1026_s13 = sphi %s1071_s13, %s1288_s13   ;;  %s1022_s12 = sphi %s1069_s12, %s1287_s12  }
   0x5   : > { %p26_p0 = scmp.ge.s32.totalorder %s25_s19, 4  ;;  %p76_p1 = scmp.ne.s32.totalorder %s1026_s13, %s1022_s12 }
   0x6   : > { %p77_p2 = scmp.eq.s32.totalorder %s1046_s18, 0  ;;  %s69_s24 = sadd.s32 1, %s1026_s13 }
   0x7   : > { %s1294_s19 = smov (%p26_p0, %s25_s19), 0  ;;  %s1296_s20 = smov (!%p26_p0, %s28_s20), %s1042_s17 }
   0x8   : > { %p78_p3 = por %p77_p2, %p76_p1  ;;  %p30_p4 = scmp.ge.s32.totalorder %s1296_s20, 8 }
   0x9   : > { %s64_s21 = ssub.s32 %s1038_s16, %s1294_s19  ;;  %p831_p6 = scmp.ge.s32.totalorder %s1046_s18, 32 }
   0xa   : > { %s1298_s20 = smov (%p30_p4, %s1296_s20), 0 }
   0xb   : > { %s65_s22 = ssub.s32 %s1042_s17, %s1298_s20  ;;  %156 = sbr.rel (%p831_p6) target bundleno = 55 (0x37), region = 16 }
   0xc   : > { %s66_s23 = sor.u32 %s65_s22, %s64_s21 }
   0xd   : > { %p67_p5 = scmp.eq.s32.totalorder %s66_s23, 0 }
   0xf   : > { %s1120_s25 = scalar_select %p67_p5, %s1026_s13, %s69_s24  }
  0x10   : > { %172 = sbr.rel (!%p78_p3) target bundleno = 55 (0x37), region = 24  ;;  %s174_s26 = sand.u32 (%p78_p3), 1, %s1026_s13  }
  0x11   : > { %s834_s27 = sshll.u32 (%p78_p3), %s1042_s17, 1  ;;  %s832_s28 = sshll.u32 (%p78_p3), %s174_s26, 8 }
  0x12   : > { %s883_s29 = sshll.u32 (%p78_p3), %s1038_s16, 9  ;;  %s1134_s8 = scalar_lea.vmem (%p78_p3), [#allocation3], %s832_s28 }
  0x13   : > { %s180_s30 = sadd.s32 (%p78_p3), %s883_s29, %s834_s27 }
  0x14   : > { %s836_s4 = sshll.u32 (%p78_p3), %s180_s30, 2 }
  0x15   : > { %s1129_s7 = scalar_lea.vmem %s1284_s1, %s836_s4 }
  0x16   : > { %v273_v0 = vld [vmem:[%s1129_s7] sm:$0xff] }
  0x17   : > { %v275_v1 = vld [vmem:[%s1129_s7 + $0x40] sm:$0xff]  ;;  %274 = vst [vmem:[%s1134_s8] sm:$0xff] %v273_v0 }
  0x18   : > { %v277_v2 = vld [vmem:[%s1129_s7 + $0x80] sm:$0xff]  ;;  %276 = vst [vmem:[%s1134_s8 + $0x8] sm:$0xff] %v275_v1 }
  0x19   : > { %278 = vst [vmem:[%s1134_s8 + $0x10] sm:$0xff] %v277_v2  ;;  %v279_v3 = vld [vmem:[%s1129_s7 + $0xc0] sm:$0xff] }
  0x1a   : > { %v281_v4 = vld [vmem:[%s1129_s7 + $0x100] sm:$0xff]  ;;  %280 = vst [vmem:[%s1134_s8 + $0x18] sm:$0xff] %v279_v3 }
  0x1b   : > { %v283_v5 = vld [vmem:[%s1129_s7 + $0x140] sm:$0xff]  ;;  %282 = vst [vmem:[%s1134_s8 + $0x20] sm:$0xff] %v281_v4 }
  0x1c   : > { %284 = vst [vmem:[%s1134_s8 + $0x28] sm:$0xff] %v283_v5  ;;  %v285_v6 = vld [vmem:[%s1129_s7 + $0x180] sm:$0xff] }
  0x1d   : > { %v287_v7 = vld [vmem:[%s1129_s7 + $0x1c0] sm:$0xff]  ;;  %286 = vst [vmem:[%s1134_s8 + $0x30] sm:$0xff] %v285_v6 }
  0x1e   : > { %v289_v8 = vld [vmem:[%s1129_s7 + $0x200] sm:$0xff]  ;;  %288 = vst [vmem:[%s1134_s8 + $0x38] sm:$0xff] %v287_v7 }
  0x1f   : > { %290 = vst [vmem:[%s1134_s8 + $0x40] sm:$0xff] %v289_v8  ;;  %v291_v9 = vld [vmem:[%s1129_s7 + $0x240] sm:$0xff] }
  0x20   : > { %v293_v10 = vld [vmem:[%s1129_s7 + $0x280] sm:$0xff]  ;;  %292 = vst [vmem:[%s1134_s8 + $0x48] sm:$0xff] %v291_v9 }
  0x21   : > { %v295_v11 = vld [vmem:[%s1129_s7 + $0x2c0] sm:$0xff]  ;;  %294 = vst [vmem:[%s1134_s8 + $0x50] sm:$0xff] %v293_v10 }
  0x22   : > { %296 = vst [vmem:[%s1134_s8 + $0x58] sm:$0xff] %v295_v11  ;;  %v297_v12 = vld [vmem:[%s1129_s7 + $0x300] sm:$0xff] }
  0x23   : > { %v299_v13 = vld [vmem:[%s1129_s7 + $0x340] sm:$0xff]  ;;  %298 = vst [vmem:[%s1134_s8 + $0x60] sm:$0xff] %v297_v12 }
  0x24   : > { %v301_v14 = vld [vmem:[%s1129_s7 + $0x380] sm:$0xff]  ;;  %300 = vst [vmem:[%s1134_s8 + $0x68] sm:$0xff] %v299_v13 }
  0x25   : > { %302 = vst [vmem:[%s1134_s8 + $0x70] sm:$0xff] %v301_v14  ;;  %v303_v15 = vld [vmem:[%s1129_s7 + $0x3c0] sm:$0xff] }
  0x26   : > { %v305_v16 = vld [vmem:[%s1129_s7 + $0x400] sm:$0xff]  ;;  %304 = vst [vmem:[%s1134_s8 + $0x78] sm:$0xff] %v303_v15 }
  0x27   : > { %v307_v17 = vld [vmem:[%s1129_s7 + $0x440] sm:$0xff]  ;;  %306 = vst [vmem:[%s1134_s8 + $0x80] sm:$0xff] %v305_v16 }
  0x28   : > { %308 = vst [vmem:[%s1134_s8 + $0x88] sm:$0xff] %v307_v17  ;;  %v309_v18 = vld [vmem:[%s1129_s7 + $0x480] sm:$0xff] }
  0x29   : > { %v311_v19 = vld [vmem:[%s1129_s7 + $0x4c0] sm:$0xff]  ;;  %310 = vst [vmem:[%s1134_s8 + $0x90] sm:$0xff] %v309_v18 }
  0x2a   : > { %v313_v20 = vld [vmem:[%s1129_s7 + $0x500] sm:$0xff]  ;;  %312 = vst [vmem:[%s1134_s8 + $0x98] sm:$0xff] %v311_v19 }
  0x2b   : > { %314 = vst [vmem:[%s1134_s8 + $0xa0] sm:$0xff] %v313_v20  ;;  %v315_v21 = vld [vmem:[%s1129_s7 + $0x540] sm:$0xff] }
  0x2c   : > { %v317_v22 = vld [vmem:[%s1129_s7 + $0x580] sm:$0xff]  ;;  %316 = vst [vmem:[%s1134_s8 + $0xa8] sm:$0xff] %v315_v21 }
  0x2d   : > { %v319_v23 = vld [vmem:[%s1129_s7 + $0x5c0] sm:$0xff]  ;;  %318 = vst [vmem:[%s1134_s8 + $0xb0] sm:$0xff] %v317_v22 }
  0x2e   : > { %320 = vst [vmem:[%s1134_s8 + $0xb8] sm:$0xff] %v319_v23  ;;  %v321_v24 = vld [vmem:[%s1129_s7 + $0x600] sm:$0xff] }
  0x2f   : > { %v323_v25 = vld [vmem:[%s1129_s7 + $0x640] sm:$0xff]  ;;  %322 = vst [vmem:[%s1134_s8 + $0xc0] sm:$0xff] %v321_v24 }
  0x30   : > { %v325_v26 = vld [vmem:[%s1129_s7 + $0x680] sm:$0xff]  ;;  %324 = vst [vmem:[%s1134_s8 + $0xc8] sm:$0xff] %v323_v25 }
  0x31   : > { %326 = vst [vmem:[%s1134_s8 + $0xd0] sm:$0xff] %v325_v26  ;;  %v327_v27 = vld [vmem:[%s1129_s7 + $0x6c0] sm:$0xff] }
  0x32   : > { %v329_v28 = vld [vmem:[%s1129_s7 + $0x700] sm:$0xff]  ;;  %328 = vst [vmem:[%s1134_s8 + $0xd8] sm:$0xff] %v327_v27 }
  0x33   : > { %v331_v29 = vld [vmem:[%s1129_s7 + $0x740] sm:$0xff]  ;;  %330 = vst [vmem:[%s1134_s8 + $0xe0] sm:$0xff] %v329_v28 }
  0x34   : > { %332 = vst [vmem:[%s1134_s8 + $0xe8] sm:$0xff] %v331_v29  ;;  %v333_v30 = vld [vmem:[%s1129_s7 + $0x780] sm:$0xff] }
  0x35   : > { %v335_v31 = vld [vmem:[%s1129_s7 + $0x7c0] sm:$0xff]  ;;  %334 = vst [vmem:[%s1134_s8 + $0xf0] sm:$0xff] %v333_v30 }
  0x36   : > { %336 = vst [vmem:[%s1134_s8 + $0xf8] sm:$0xff] %v335_v31 }
  0x37 PF: > { %p837_p7 = scmp.ge.s32.totalorder %s1046_s18, 1  ;;  %p349_p8 = scmp.lt.s32.totalorder %s1046_s18, 33 }
  0x39   : > { %p350_p9 = pnand %p837_p7, %p349_p8 }
  0x3a   : > { %s356_s9 = sand.u32 (!%p350_p9), 1, %s1022_s12   ;;  %s839_s10 = sshll.u32 (!%p350_p9), %s1030_s14, 1 }
  0x3b   : > { %353 = sbr.rel (%p350_p9) target bundleno = 351 (0x15f), region = 66  ;;  %s838_s11 = sshll.u32 (!%p350_p9), %s356_s9, 8 }
  0x3c   : > { %p399_p10 = scmp.lt.s32.totalorder (!%p350_p9), %s839_s10, 7  ;;  %s841_s21 = sshll.u32 (!%p350_p9), %s1034_s15, 1 }
  0x3d   : > { %p409_p11 = scmp.lt.s32.totalorder (!%p350_p9), %s841_s21, 15  ;;  %s1219_s5 = scalar_lea.vmem (!%p350_p9), [#allocation3], %s838_s11 }
  0x3e   : > { %p844_p12 = scmp.ne.s32.totalorder (!%p350_p9), %s1030_s14, 0 }
  0x40   : > { %s1300_s10 = smov (!%p399_p10, %s839_s10), 7  ;;  %s1302_s21 = smov (!%p409_p11, %s841_s21), 15 }
  0x41   : > { %s840_s22 = sshll.u32 %s1300_s10, 2  ;;  %s411_s12 = scalar_lea.vmem %s1285_s2, %s1302_s21 }
  0x42   : > { %s1205_s26 = scalar_lea.vmem %s1283_s0, %s840_s22  ;;  %s843_s29 = sshll.u32 %s1302_s21, 2 }
  0x43   : > { %s1217_s15 = scalar_lea.vmem %s1286_s3, %s843_s29  ;;  %426 = sbr.rel (%p844_p12) target bundleno = 74 (0x4a), region = 74 }
  0x48   : > { %v1048_v32 = vmov 0.0  }
  0x49   : > { %427 = vst [vmem:[#allocation2] sm:$0xff] %v1048_v32  ;;  %428 = vst [vmem:[#allocation2 + $0x8] sm:$0xff] %v1048_v32 }
  0x4a PF: > { %v942_v33 = vld [vmem:[%s1219_s5 + $0x74] ss:$8 sps:$4 sm:$0xff]   ;;  %v944_v34 = vld [vmem:[%s1219_s5 + $0x70] ss:$8 sps:$4 sm:$0xff]   ;;  %v945_v35 = vld [vmem:[%s1219_s5 + $0x64] ss:$8 sps:$4 sm:$0xff]  }
  0x4b   : > { %631 = vmatprep.subr.bf16.mxu0 %v942_v33  ;;  %v947_v36 = vld [vmem:[%s1219_s5 + $0x60] ss:$8 sps:$4 sm:$0xff]   ;;  %v948_v37 = vld [vmem:[%s1219_s5 + $0x54] ss:$8 sps:$4 sm:$0xff]   ;;  %v950_v38 = vld [vmem:[%s1219_s5 + $0x50] ss:$8 sps:$4 sm:$0xff]  }
  0x4c   : > { %632 = vmatpush1.bf16.msra.mxu0 %v944_v34  ;;  %v951_v39 = vld [vmem:[%s1219_s5 + $0x44] ss:$8 sps:$4 sm:$0xff]   ;;  %v953_v40 = vld [vmem:[%s1219_s5 + $0x40] ss:$8 sps:$4 sm:$0xff]   ;;  %v954_v41 = vld [vmem:[%s1219_s5 + $0x34] ss:$8 sps:$4 sm:$0xff]  }
  0x4d   : > { %633 = vmatprep.subr.bf16.mxu0 %v945_v35  ;;  %v956_v42 = vld [vmem:[%s1219_s5 + $0x30] ss:$8 sps:$4 sm:$0xff]   ;;  %v957_v43 = vld [vmem:[%s1219_s5 + $0x24] ss:$8 sps:$4 sm:$0xff]   ;;  %v959_v44 = vld [vmem:[%s1219_s5 + $0x20] ss:$8 sps:$4 sm:$0xff]  }
  0x4e   : > { %v960_v45 = vld [vmem:[%s1219_s5 + $0x14] ss:$8 sps:$4 sm:$0xff]   ;;  %v962_v48 = vld [vmem:[%s1219_s5 + $0x10] ss:$8 sps:$4 sm:$0xff]   ;;  %v963_v49 = vld [vmem:[%s1219_s5 + $0x4] ss:$8 sps:$4 sm:$0xff]  }
  0x4f   : > { %v431_v46 = vld [vmem:[%s1205_s26] sm:$0xff]  ;;  %v965_v50 = vld [vmem:[%s1219_s5] ss:$8 sps:$4 sm:$0xff]   ;;  %v969_v53 = vld [vmem:[%s1219_s5 + $0xe4] ss:$8 sps:$4 sm:$0xff]   ;;  %p879_p13 = scmp.ne.s32.totalorder %s1030_s14, 3 }
  0x50   : > { %634 = vmatpush1.bf16.msra.mxu0 %v947_v36  ;;  %v846_v47 = vcombine.high %v431_v46, %v431_v46  ;;  %v966_v51 = vld [vmem:[%s1219_s5 + $0xf4] ss:$8 sps:$4 sm:$0xff]   ;;  %v968_v52 = vld [vmem:[%s1219_s5 + $0xf0] ss:$8 sps:$4 sm:$0xff]   ;;  %v971_v54 = vld [vmem:[%s1219_s5 + $0xe0] ss:$8 sps:$4 sm:$0xff]   ;;  %v845_v3 = vcombine.low %v431_v46, %v431_v46 }
  0x51   : > { %635 = vmatprep.subr.bf16.mxu0 %v948_v37  ;;  %v972_v55 = vld [vmem:[%s1219_s5 + $0xd4] ss:$8 sps:$4 sm:$0xff]   ;;  %v974_v56 = vld [vmem:[%s1219_s5 + $0xd0] ss:$8 sps:$4 sm:$0xff]   ;;  %v975_v57 = vld [vmem:[%s1219_s5 + $0xc4] ss:$8 sps:$4 sm:$0xff]  }
  0x52   : > { %663 = vmatprep.mubr.bf16.mxu0 %v846_v47  ;;  %v977_v58 = vld [vmem:[%s1219_s5 + $0xc0] ss:$8 sps:$4 sm:$0xff]   ;;  %v978_v59 = vld [vmem:[%s1219_s5 + $0xb4] ss:$8 sps:$4 sm:$0xff]   ;;  %v980_v60 = vld [vmem:[%s1219_s5 + $0xb0] ss:$8 sps:$4 sm:$0xff]  }
  0x53   : > { %v981_v61 = vld [vmem:[%s1219_s5 + $0xa4] ss:$8 sps:$4 sm:$0xff]   ;;  %v983_v62 = vld [vmem:[%s1219_s5 + $0xa0] ss:$8 sps:$4 sm:$0xff]   ;;  %v984_v63 = vld [vmem:[%s1219_s5 + $0x94] ss:$8 sps:$4 sm:$0xff]  }
  0x54   : > { %636 = vmatpush1.bf16.msra.mxu0 %v950_v38  ;;  %v986_v0 = vld [vmem:[%s1219_s5 + $0x90] ss:$8 sps:$4 sm:$0xff]   ;;  %v987_v1 = vld [vmem:[%s1219_s5 + $0x84] ss:$8 sps:$4 sm:$0xff]   ;;  %v989_v2 = vld [vmem:[%s1219_s5 + $0x80] ss:$8 sps:$4 sm:$0xff]  }
  0x55   : > { %637 = vmatprep.subr.bf16.mxu0 %v951_v39  ;;  %v429_v4 = vld [vmem:[#allocation2] sm:$0xff]  ;;  %v430_v6 = vld [vmem:[#allocation2 + $0x8] sm:$0xff] }
  0x58   : > { %638 = vmatpush1.bf16.msra.mxu0 %v953_v40 }
  0x59   : > { %639 = vmatprep.subr.bf16.mxu0 %v954_v41 }
  0x5c   : > { %640 = vmatpush1.bf16.msra.mxu0 %v956_v42 }
  0x5d   : > { %641 = vmatprep.subr.bf16.mxu0 %v957_v43 }
  0x60   : > { %642 = vmatpush1.bf16.msra.mxu0 %v959_v44 }
  0x61   : > { %643 = vmatprep.subr.bf16.mxu0 %v960_v45 }
  0x64   : > { %644 = vmatpush1.bf16.msra.mxu0 %v962_v48 }
  0x65   : > { %645 = vmatprep.subr.bf16.mxu0 %v963_v49 }
  0x68   : > { %646 = vmatpush1.bf16.msra.mxu0 %v965_v50 }
  0x69   : > { %647 = vmatprep.subr.bf16.mxu0 %v966_v51 }
  0x6c   : > { %648 = vmatpush2.bf16.msra.mxu0 %v968_v52 }
  0x6d   : > { %649 = vmatprep.subr.bf16.mxu0 %v969_v53 }
  0x70   : > { %650 = vmatpush2.bf16.msra.mxu0 %v971_v54 }
  0x71   : > { %651 = vmatprep.subr.bf16.mxu0 %v972_v55 }
  0x74   : > { %652 = vmatpush2.bf16.msra.mxu0 %v974_v56 }
  0x75   : > { %653 = vmatprep.subr.bf16.mxu0 %v975_v57 }
  0x78   : > { %654 = vmatpush2.bf16.msra.mxu0 %v977_v58 }
  0x79   : > { %655 = vmatprep.subr.bf16.mxu0 %v978_v59 }
  0x7c   : > { %656 = vmatpush2.bf16.msra.mxu0 %v980_v60 }
  0x7d   : > { %657 = vmatprep.subr.bf16.mxu0 %v981_v61 }
  0x80   : > { %658 = vmatpush2.bf16.msra.mxu0 %v983_v62 }
  0x81   : > { %659 = vmatprep.subr.bf16.mxu0 %v984_v63 }
  0x84   : > { %660 = vmatpush2.bf16.msra.mxu0 %v986_v0 }
  0x85   : > { %661 = vmatprep.subr.bf16.mxu0 %v987_v1 }
  0x88   : > { %662 = vmatpush2.bf16.msra.mxu0 %v989_v2 }
  0x8b   : > { %664 = vmatmul.mubr.bf16.vlgmr.msra.gmra.mxu0 %v845_v3 }
 0x14b   : > { %v665_v5 = vpop.f32.mrf.mxu0 }
 0x14c   : > { %v672_v7 = vadd.f32 %v665_v5, %v429_v4 }
 0x14d   : > { %v667_v8 = vpop.f32.mrf.mxu0  ;;  %679 = sbr.rel (%p879_p13) target bundleno = 351 (0x15f), region = 78 }
 0x14e   : > { %674 = vst [vmem:[#allocation2] sm:$0xff] %v672_v7  ;;  %v673_v9 = vadd.f32 %v667_v8, %v430_v6 }
 0x14f   : > { %v669_v10 = vpop.f32.mrf.mxu0 }
 0x150   : > { %675 = vst [vmem:[#allocation2 + $0x8] sm:$0xff] %v673_v9 }
 0x151   : > { %v670_v11 = vpop.f32.mrf.mxu0 }
 0x152   : > { %v684_v12 = vlaneseq  ;;  %v682_v14 = vld [vmem:[%s411_s12] sm:$0x3] }
 0x154   : > { %v685_v13 = vshrl.u32 %v684_v12, 7 }
 0x155   : > { %v680_v17 = vld [vmem:[#allocation2] sm:$0xff] }
 0x156   : > { %v686_v15 = vsub.s32 0, %v685_v13  ;;  %v690_v16 = vsub.s32 1, %v685_v13 }
 0x157   : > { %v681_v18 = vld [vmem:[#allocation2 + $0x8] sm:$0xff] }
 0x158   : > { %v687_v19 = vrot.slane %v682_v14, %v686_v15  ;;  %v691_v20 = vrot.slane %v682_v14, %v690_v16 }
 0x15a   : > { %v694_v21 = vadd.f32 %v687_v19, %v680_v17  ;;  %v695_v22 = vadd.f32 %v691_v20, %v681_v18 }
 0x15c   : > { %v884_v23 = vpack.c.bf16 %v695_v22, %v694_v21 }
 0x15e   : > { %704 = vst [vmem:[%s1217_s15] sm:$0xff] %v884_v23 }
 0x15f PF: > { %s13_s18 = sadd.s32 1, %s1046_s18   ;;  %s1287_s12 = smov %s1026_s13 }
 0x160   : > { %p10_p0 = scmp.ge.s32.totalorder %s13_s18, 34   ;;  %s1288_s13 = smov %s1120_s25 }
 0x161   : > { %s1289_s14 = smov %s1038_s16  ;;  %s1290_s15 = smov %s1042_s17 }
 0x162   : > { %s1291_s16 = smov %s1294_s19  ;;  %s1292_s17 = smov %s1298_s20 }
 0x163   :  { %12 = sbr.rel (!%p10_p0) target bundleno = 4 (0x4), region = 119 }

// kernel: resnet50_forward.109
= control target key start
LH: loop header
LB: loop body
LE: loop exit
PB: predicated region body
PF: predicated region fallthrough
CT: control target
= control target key end

     0   :  { %s706_s12 = smov 0   ;;  %s708_s13 = smov 0   ;;  %s769_s0 = inlined_call_operand.vmem [shape: bf16[8,2048], index: 0, kind: input, shape index: {}]   ;;  %s770_s1 = inlined_call_operand.vmem [shape: bf16[2048,128], index: 1, kind: input, shape index: {}]   ;;  %s771_s2 = inlined_call_operand.vmem [shape: f32[1,128], index: 2, kind: input, shape index: {}]   ;;  %s772_s3 = inlined_call_operand.vmem [shape: f32[8,128], index: 3, kind: output, shape index: {}]  }
   0x1   :  { %s710_s14 = smov 0  }
   0x2 LB: > { %s25_s15 = sadd.s32 1, %s679_s13  ;;  %p567_p0 = scmp.ge.s32.totalorder %s683_s14, 1  ;;  %s683_s14 = sphi %s710_s14, %s13_s14   ;;  %s679_s13 = sphi %s708_s13, %s774_s13   ;;  %s675_s12 = sphi %s706_s12, %s773_s12  }
   0x3   : > { %p26_p1 = scmp.ge.s32.totalorder %s25_s15, 8  ;;  %p189_p2 = scmp.lt.s32.totalorder %s683_s14, 9 }
   0x5   : > { %s776_s15 = smov (%p26_p1, %s25_s15), 0  ;;  %p190_p3 = pnand %p567_p0, %p189_p2 }
   0x6   : > { %s568_s16 = sshll.u32 (!%p190_p3), %s675_s12, 1  ;;  %s570_s17 = sshll.u32 (!%p190_p3), %s675_s12, 5 }
   0x7   : > { %193 = sbr.rel (%p190_p3) target bundleno = 265 (0x109), region = 32  ;;  %p233_p4 = scmp.lt.s32.totalorder (!%p190_p3), %s568_s16, 15 }
   0x8   : > { %p241_p5 = scmp.lt.s32.totalorder (!%p190_p3), %s570_s17, 255  ;;  %p572_p6 = scmp.ne.s32.totalorder (!%p190_p3), %s675_s12, 0 }
   0xc   : > { %s778_s16 = smov (!%p233_p4, %s568_s16), 15  ;;  %s780_s17 = smov (!%p241_p5, %s570_s17), 255 }
   0xd   : > { %s569_s18 = sshll.u32 %s778_s16, 2  ;;  %s571_s22 = sshll.u32 %s780_s17, 2 }
   0xe   : > { %s238_s21 = scalar_lea.vmem %s769_s0, %s569_s18  ;;  %s734_s25 = scalar_lea.vmem %s770_s1, %s571_s22 }
   0xf   : > { %263 = sbr.rel (%p572_p6) target bundleno = 22 (0x16), region = 36 }
  0x14   : > { %v685_v0 = vmov 0.0  }
  0x15   : > { %264 = vst [vmem:[#allocation2] sm:$0xff] %v685_v0 }
  0x16 PF: > { %v643_v1 = vld [vmem:[%s734_s25 + $0x78] sm:$0xff]   ;;  %v645_v3 = vld [vmem:[%s734_s25 + $0x70] sm:$0xff]   ;;  %v647_v5 = vld [vmem:[%s734_s25 + $0x68] sm:$0xff]   ;;  %p591_p7 = scmp.ne.s32.totalorder %s675_s12, 7 }
  0x17   : > { %v644_v2 = vld [vmem:[%s734_s25 + $0x38] sm:$0xff]   ;;  %596 = vmatprep.subr.bf16.mxu0 %v643_v1  ;;  %v646_v4 = vld [vmem:[%s734_s25 + $0x30] sm:$0xff]   ;;  %v648_v6 = vld [vmem:[%s734_s25 + $0x28] sm:$0xff]  }
  0x18   : > { %597 = vmatpush3.bf16.msra.mxu0 %v644_v2  ;;  %v649_v7 = vld [vmem:[%s734_s25 + $0x60] sm:$0xff]   ;;  %v651_v9 = vld [vmem:[%s734_s25 + $0x58] sm:$0xff]   ;;  %v653_v11 = vld [vmem:[%s734_s25 + $0x50] sm:$0xff]  }
  0x19   : > { %598 = vmatprep.subr.bf16.mxu0 %v645_v3  ;;  %v650_v8 = vld [vmem:[%s734_s25 + $0x20] sm:$0xff]   ;;  %v652_v10 = vld [vmem:[%s734_s25 + $0x18] sm:$0xff]   ;;  %v654_v14 = vld [vmem:[%s734_s25 + $0x10] sm:$0xff]  }
  0x1a   : > { %v266_v12 = vld [vmem:[%s238_s21] sm:$0xff]  ;;  %v655_v15 = vld [vmem:[%s734_s25 + $0x48] sm:$0xff]  }
  0x1b   : > { %v574_v13 = vcombine.high %v266_v12, %v266_v12  ;;  %v656_v16 = vld [vmem:[%s734_s25 + $0x8] sm:$0xff]   ;;  %v657_v17 = vld [vmem:[%s734_s25 + $0x40] sm:$0xff]   ;;  %v573_v19 = vcombine.low %v266_v12, %v266_v12 }
  0x1c   : > { %599 = vmatpush3.bf16.msra.mxu0 %v646_v4  ;;  %v658_v18 = vld [vmem:[%s734_s25] sm:$0xff]  }
  0x1d   : > { %600 = vmatprep.subr.bf16.mxu0 %v647_v5  ;;  %434 = vmatprep.mubr.bf16.mxu0 %v574_v13  ;;  %v265_v21 = vld [vmem:[#allocation2] sm:$0xff] }
  0x20   : > { %601 = vmatpush3.bf16.msra.mxu0 %v648_v6 }
  0x21   : > { %602 = vmatprep.subr.bf16.mxu0 %v649_v7 }
  0x24   : > { %603 = vmatpush3.bf16.msra.mxu0 %v650_v8 }
  0x25   : > { %604 = vmatprep.subr.bf16.mxu0 %v651_v9 }
  0x28   : > { %605 = vmatpush3.bf16.msra.mxu0 %v652_v10 }
  0x29   : > { %606 = vmatprep.subr.bf16.mxu0 %v653_v11 }
  0x2c   : > { %607 = vmatpush3.bf16.msra.mxu0 %v654_v14 }
  0x2d   : > { %608 = vmatprep.subr.bf16.mxu0 %v655_v15 }
  0x30   : > { %609 = vmatpush3.bf16.msra.mxu0 %v656_v16 }
  0x31   : > { %610 = vmatprep.subr.bf16.mxu0 %v657_v17 }
  0x34   : > { %611 = vmatpush3.bf16.msra.mxu0 %v658_v18 }
  0x37   : > { %435 = vmatmul.mubr.bf16.vlgmr.msra.gmra.mxu0 %v573_v19 }
  0xf7   : > { %v612_v20 = vpop.f32.mrf.mxu0 }
  0xf9   : > { %v613_v22 = vpop.f32.mrf.mxu0 }
  0xfa   : > { %v614_v23 = vadd.f32 %v613_v22, %v612_v20  ;;  %447 = sbr.rel (%p591_p7) target bundleno = 265 (0x109), region = 40 }
  0xfb   : > { %v615_v24 = vpop.f32.mrf.mxu0 }
  0xfc   : > { %v442_v25 = vadd.f32 %v614_v23, %v265_v21 }
  0xfd   : > { %v616_v26 = vpop.f32.mrf.mxu0 }
  0xfe   : > { %443 = vst [vmem:[#allocation2] sm:$0xff] %v442_v25 }
  0xff   : > { %v592_v28 = vld [vmem:[%s771_s2] ss:$0 sm:$0xff] }
 0x105   : > { %v448_v27 = vld [vmem:[#allocation2] sm:$0xff] }
 0x106   : > { %v456_v29 = vadd.f32 %v592_v28, %v448_v27 }
 0x108   : > { %457 = vst [vmem:[%s772_s3] sm:$0xff] %v456_v29 }
 0x109 PF: > { %s13_s14 = sadd.s32 1, %s683_s14   ;;  %s773_s12 = smov %s679_s13 }
 0x10a   : > { %p10_p8 = scmp.ge.s32.totalorder %s13_s14, 10   ;;  %s774_s13 = smov %s776_s15 }
 0x10c   :  { %12 = sbr.rel (!%p10_p8) target bundleno = 2 (0x2), region = 76 }

</bundles_post_ra>
